<compile_context>
chip_gen: v7x
topology: tpu7x:2x2x1
jax: 0.10.0
libtpu: 0.0.40
codegen_flags: <defaults>
</compile_context>

<pallas_src>
import functools
import math

import jax
import jax.numpy as jnp
import numpy as np
from jax.experimental import pallas as pl
from jax.experimental.pallas import tpu as pltpu

BN_EPS = 1e-5
LANE = 128
VMEM_LIMIT_BYTES = 32 * 1024 * 1024
_HI = jax.lax.Precision.HIGHEST


def _round_up(x, m):
    return ((x + m - 1) // m) * m


def _pad_last(x, target):
    pad = target - x.shape[-1]
    if pad == 0:
        return x
    return jnp.pad(x, [(0, 0)] * (x.ndim - 1) + [(0, pad)])


# ----------------------------------------------------------------------------
# Kernel 1: fused (X @ W) * scale + shift [+ ReLU]   (1x1 conv + folded BN)
# ----------------------------------------------------------------------------
def matmul_bn_act_kernel(x_ref, w_ref, scale_ref, shift_ref, o_ref, *, apply_relu):
    acc = jnp.dot(x_ref[...], w_ref[...],
                  preferred_element_type=jnp.float32, precision=_HI)
    y = acc * scale_ref[...] + shift_ref[...]
    if apply_relu:
        y = jnp.maximum(y, 0.0)
    o_ref[...] = y.astype(o_ref.dtype)


def matmul_bn_act(x2d, wmat, scale, shift, apply_relu):
    """x2d: (M, K), wmat: (K, N), scale/shift: (1, N); K, N multiples of 128."""
    M, K = x2d.shape
    Np = wmat.shape[1]
    TM = M if M <= 1024 else 512          # big row tiles; ragged tail handled by Pallas
    kernel = functools.partial(matmul_bn_act_kernel, apply_relu=apply_relu)
    return pl.pallas_call(
        kernel,
        out_shape=jax.ShapeDtypeStruct((M, Np), jnp.float32),
        grid=(pl.cdiv(M, TM),),
        in_specs=[
            pl.BlockSpec((TM, K), lambda i: (i, 0)),
            pl.BlockSpec((K, Np), lambda i: (0, 0)),   # weight resident across steps
            pl.BlockSpec((1, Np), lambda i: (0, 0)),
            pl.BlockSpec((1, Np), lambda i: (0, 0)),
        ],
        out_specs=pl.BlockSpec((TM, Np), lambda i: (i, 0)),
        compiler_params=pltpu.CompilerParams(
            dimension_semantics=("parallel",),
            vmem_limit_bytes=VMEM_LIMIT_BYTES,
        ),
    )(x2d, wmat, scale, shift)


# ----------------------------------------------------------------------------
# Kernel 2: 3x3 conv + folded BN + ReLU.  9 accumulating tap matmuls in-kernel
# over shifted windows of a padded / phase-split input (no im2col in HBM).
# ----------------------------------------------------------------------------
def conv3x3_bn_act_kernel(x_ref, w_ref, scale_ref, shift_ref, o_ref, *,
                          stride, h_out, w_out, apply_relu):
    cin = x_ref.shape[-1]
    cout = o_ref.shape[-1]
    acc = jnp.zeros((h_out * w_out, cout), jnp.float32)
    for kh in range(3):
        for kw in range(3):
            pi = (kh % stride) * stride + (kw % stride)   # phase index
            oh, ow = kh // stride, kw // stride           # window offset in phase
            xs = x_ref[0, pi, oh:oh + h_out, ow:ow + w_out, :]
            acc = acc + jnp.dot(xs.reshape(h_out * w_out, cin),
                                w_ref[kh * 3 + kw],
                                preferred_element_type=jnp.float32,
                                precision=_HI)
    y = acc * scale_ref[...] + shift_ref[...]
    if apply_relu:
        y = jnp.maximum(y, 0.0)
    o_ref[...] = y.reshape(1, h_out, w_out, cout).astype(o_ref.dtype)


def conv3x3_bn_act(xph, wtaps, scale, shift, stride, h_out, w_out, apply_relu):
    N, P, Hph, Wph, cin_p = xph.shape
    cout_p = wtaps.shape[-1]
    kernel = functools.partial(conv3x3_bn_act_kernel, stride=stride,
                               h_out=h_out, w_out=w_out, apply_relu=apply_relu)
    return pl.pallas_call(
        kernel,
        out_shape=jax.ShapeDtypeStruct((N, h_out, w_out, cout_p), jnp.float32),
        grid=(N,),
        in_specs=[
            pl.BlockSpec((1, P, Hph, Wph, cin_p), lambda n: (n, 0, 0, 0, 0)),
            pl.BlockSpec((9, cin_p, cout_p), lambda n: (0, 0, 0)),
            pl.BlockSpec((1, cout_p), lambda n: (0, 0)),
            pl.BlockSpec((1, cout_p), lambda n: (0, 0)),
        ],
        out_specs=pl.BlockSpec((1, h_out, w_out, cout_p), lambda n: (n, 0, 0, 0)),
        compiler_params=pltpu.CompilerParams(
            dimension_semantics=("parallel",),
            vmem_limit_bytes=VMEM_LIMIT_BYTES,
        ),
    )(xph, wtaps, scale, shift)


# ----------------------------------------------------------------------------
# Kernel 3: streaming SE scale + residual add + ReLU.
# ----------------------------------------------------------------------------
def se_scale_add_relu_kernel(f_ref, r_ref, s_ref, o_ref):
    o_ref[...] = jnp.maximum(f_ref[...] * s_ref[...] + r_ref[...], 0.0).astype(o_ref.dtype)


def se_scale_add_relu(f3, res3, se_scale3):
    """f3/res3: (N, S, Cp); se_scale3: (N, 1, Cp)."""
    N, S, Cp = f3.shape
    TS = S if S <= 2048 else 512
    return pl.pallas_call(
        se_scale_add_relu_kernel,
        out_shape=jax.ShapeDtypeStruct((N, S, Cp), jnp.float32),
        grid=(N, pl.cdiv(S, TS)),
        in_specs=[
            pl.BlockSpec((1, TS, Cp), lambda n, t: (n, t, 0)),
            pl.BlockSpec((1, TS, Cp), lambda n, t: (n, t, 0)),
            pl.BlockSpec((1, 1, Cp), lambda n, t: (n, 0, 0)),
        ],
        out_specs=pl.BlockSpec((1, TS, Cp), lambda n, t: (n, t, 0)),
        compiler_params=pltpu.CompilerParams(
            dimension_semantics=("parallel", "parallel"),
            vmem_limit_bytes=VMEM_LIMIT_BYTES,
        ),
    )(f3, res3, se_scale3)


# ----------------------------------------------------------------------------
# Plain-JAX glue: BN folding, weight prep (channel padding), phase split.
# ----------------------------------------------------------------------------
def _bn_fold(p):
    scale = p["gamma"] / jnp.sqrt(p["var"] + BN_EPS)
    shift = p["beta"] + scale * (p["b"] - p["mean"])
    return scale.reshape(1, -1), shift.reshape(1, -1)


def _prep_1x1(p, cin_p, cout_p):
    w = p["w"][:, :, 0, 0].T                      # (Cin, Cout)
    w = jnp.pad(w, ((0, cin_p - w.shape[0]), (0, cout_p - w.shape[1])))
    scale, shift = _bn_fold(p)
    return w, _pad_last(scale, cout_p), _pad_last(shift, cout_p)


def _prep_3x3(p, cin_p, cout_p):
    cout, cin = p["w"].shape[0], p["w"].shape[1]
    w = jnp.transpose(p["w"], (2, 3, 1, 0)).reshape(9, cin, cout)   # (tap, Cin, Cout)
    w = jnp.pad(w, ((0, 0), (0, cin_p - cin), (0, cout_p - cout)))
    scale, shift = _bn_fold(p)
    return w, _pad_last(scale, cout_p), _pad_last(shift, cout_p)


def _phase_split_3x3(x_nhwc, stride):
    """Pad spatially by 1; for stride 2 split into 2x2 phase grids so all
    in-kernel tap windows are unit-stride.  One pass over the activation."""
    N, H, W, C = x_nhwc.shape
    xp = jnp.pad(x_nhwc, ((0, 0), (1, 1), (1, 1), (0, 0)))
    H_out = (H + 2 - 3) // stride + 1
    W_out = (W + 2 - 3) // stride + 1
    if stride == 1:
        return xp[:, None], H_out, W_out          # (N, 1, H+2, W+2, C)
    s = stride
    Hp, Wp = H + 2, W + 2
    Hp2, Wp2 = _round_up(Hp, s), _round_up(Wp, s)
    xp = jnp.pad(xp, ((0, 0), (0, Hp2 - Hp), (0, Wp2 - Wp), (0, 0)))
    xph = xp.reshape(N, Hp2 // s, s, Wp2 // s, s, C)
    xph = jnp.transpose(xph, (0, 2, 4, 1, 3, 5)).reshape(N, s * s, Hp2 // s, Wp2 // s, C)
    return xph, H_out, W_out


# ----------------------------------------------------------------------------
# Forward pass (matches PyTorch ResidualBlock.forward, BN in inference mode).
# ----------------------------------------------------------------------------
def residual_block_forward(x_nchw, params, in_channels, out_channels, first=False):
    projection = in_channels != out_channels
    stride = 2 if projection else 1
    if first:
        stride = 1

    N, _, H, W = x_nchw.shape
    res_c = params["c1"]["w"].shape[0]
    cin_p = _round_up(in_channels, LANE)
    res_p = _round_up(res_c, LANE)
    cout_p = _round_up(out_channels, LANE)

    # NCHW -> NHWC, channels zero-padded to a lane-dense multiple of 128.
    x = _pad_last(jnp.transpose(x_nchw, (0, 2, 3, 1)), cin_p)

    # c1: 1x1 conv + BN + ReLU
    w1, sc1, sh1 = _prep_1x1(params["c1"], cin_p, res_p)
    f = matmul_bn_act(x.reshape(N * H * W, cin_p), w1, sc1, sh1, True)
    f = f.reshape(N, H, W, res_p)

    # c2: 3x3 conv (stride) + BN + ReLU
    w2, sc2, sh2 = _prep_3x3(params["c2"], res_p, res_p)
    xph, H_out, W_out = _phase_split_3x3(f, stride)
    f = conv3x3_bn_act(xph, w2, sc2, sh2, stride, H_out, W_out, True)

    # c3: 1x1 conv + BN (no ReLU)
    w3, sc3, sh3 = _prep_1x1(params["c3"], res_p, cout_p)
    f = matmul_bn_act(f.reshape(N * H_out * W_out, res_p), w3, sc3, sh3, False)
    f = f.reshape(N, H_out, W_out, cout_p)

    # Residual path
    if projection:
        ps = 1 if first else 2
        xr = x[:, ::ps, ::ps, :] if ps > 1 else x
        wp, scp, shp = _prep_1x1(params["p"], cin_p, cout_p)
        res = matmul_bn_act(xr.reshape(N * H_out * W_out, cin_p), wp, scp, shp, False)
        res = res.reshape(N, H_out, W_out, cout_p)
    else:
        res = x  # cin_p == cout_p since in_channels == out_channels

    # SE block: batched pool + tiny FCs in plain JAX, then streaming kernel.
    # (Reference SEBlock applies ReLU after fc2 -- not sigmoid -- reproduced.)
    se = params["se"]
    C = out_channels
    pooled = jnp.mean(f, axis=(1, 2))[:, :C]                                   # (N, C)
    t = jnp.maximum(jnp.dot(pooled, se["w1"], precision=_HI) + se["b1"], 0.0)  # (N, Cr)
    t = jnp.maximum(jnp.dot(t, se["w2"], precision=_HI) + se["b2"], 0.0)       # (N, C)
    se_scale = _pad_last(t, cout_p).reshape(N, 1, cout_p)

    S = H_out * W_out
    out = se_scale_add_relu(f.reshape(N, S, cout_p), res.reshape(N, S, cout_p), se_scale)
    out = out.reshape(N, H_out, W_out, cout_p)[..., :C]
    return jnp.transpose(out, (0, 3, 1, 2))  # NHWC -> NCHW


# ----------------------------------------------------------------------------
# Deterministic parameter construction (shapes from the PyTorch __init__)
# ----------------------------------------------------------------------------
def conv_block_params(key, cin, cout, k):
    ks = jax.random.split(key, 6)
    fan_in = cin * k * k
    return dict(
        w=jax.random.normal(ks[0], (cout, cin, k, k), jnp.float32) / math.sqrt(fan_in),
        b=0.1 * jax.random.normal(ks[1], (cout,), jnp.float32),
        gamma=1.0 + 0.1 * jax.random.normal(ks[2], (cout,), jnp.float32),
        beta=0.1 * jax.random.normal(ks[3], (cout,), jnp.float32),
        mean=0.1 * jax.random.normal(ks[4], (cout,), jnp.float32),
        var=jax.random.uniform(ks[5], (cout,), jnp.float32, 0.5, 1.5),
    )


def make_params(key, in_channels, out_channels, r, first=False):
    res_channels = out_channels // 4
    projection = in_channels != out_channels
    if projection:
        res_channels = in_channels // 2
    if first:
        res_channels = in_channels
    ks = jax.random.split(key, 8)
    params = {}
    if projection or first:
        params["p"] = conv_block_params(ks[0], in_channels, out_channels, 1)
    params["c1"] = conv_block_params(ks[1], in_channels, res_channels, 1)
    params["c2"] = conv_block_params(ks[2], res_channels, res_channels, 3)
    params["c3"] = conv_block_params(ks[3], res_channels, out_channels, 1)
    C, Cr = out_channels, out_channels // r
    params["se"] = dict(
        w1=(jax.random.normal(ks[4], (Cr, C), jnp.float32) / math.sqrt(C)).T,  # (C, Cr)
        b1=(0.1 * jax.random.normal(ks[5], (Cr,), jnp.float32)).reshape(1, Cr),
        w2=(jax.random.normal(ks[6], (C, Cr), jnp.float32) / math.sqrt(Cr)).T,  # (Cr, C)
        b2=(0.1 * jax.random.normal(ks[7], (C,), jnp.float32)).reshape(1, C),
    )
    return params


# ----------------------------------------------------------------------------
# Pure-JAX reference (BN inference mode, HIGHEST precision for a tight check)
# ----------------------------------------------------------------------------
def conv_block_ref(x_nchw, p, stride, padding, apply_relu):
    y = jax.lax.conv_general_dilated(
        x_nchw, p["w"], (stride, stride), [(padding, padding)] * 2,
        dimension_numbers=("NCHW", "OIHW", "NCHW"), precision=_HI,
    )
    y = y + p["b"][None, :, None, None]
    scale = p["gamma"] / jnp.sqrt(p["var"] + BN_EPS)
    y = (y - p["mean"][None, :, None, None]) * scale[None, :, None, None] \
        + p["beta"][None, :, None, None]
    return jnp.maximum(y, 0.0) if apply_relu else y


def residual_block_ref(x, params, in_channels, out_channels, first=False):
    projection = in_channels != out_channels
    stride = 2 if projection else 1
    if first:
        stride = 1
    f = conv_block_ref(x, params["c1"], 1, 0, True)
    f = conv_block_ref(f, params["c2"], stride, 1, True)
    f = conv_block_ref(f, params["c3"], 1, 0, False)
    pooled = jnp.mean(f, axis=(2, 3))  # (N, C)
    se = params["se"]
    s = jnp.maximum(jnp.dot(pooled, se["w1"], precision=_HI) + se["b1"], 0.0)
    s = jnp.maximum(jnp.dot(s, se["w2"], precision=_HI) + se["b2"], 0.0)
    f = f * s[:, :, None, None]
    res = x
    if projection:
        res = conv_block_ref(x, params["p"], 1 if first else 2, 0, False)
    return jnp.maximum(f + res, 0.0)


if __name__ == "__main__":
    root = jax.random.PRNGKey(0)
    kx1, kp1, kx2, kp2 = jax.random.split(root, 4)

    fwd = jax.jit(residual_block_forward, static_argnums=(2, 3, 4))

    # Case 1: identity residual (in == out), stride 1
    x1 = jax.random.normal(kx1, (2, 32, 8, 8), jnp.float32)
    p1 = make_params(kp1, 32, 32, r=4)
    out1 = jax.block_until_ready(fwd(x1, p1, 32, 32, False))
    ref1 = residual_block_ref(x1, p1, 32, 32, False)
    np.testing.assert_allclose(np.asarray(out1), np.asarray(ref1), rtol=1e-5, atol=2e-4)

    # Case 2: projection residual (in != out), stride 2
    x2 = jax.random.normal(kx2, (2, 16, 8, 8), jnp.float32)
    p2 = make_params(kp2, 16, 32, r=4)
    out2 = jax.block_until_ready(fwd(x2, p2, 16, 32, False))
    ref2 = residual_block_ref(x2, p2, 16, 32, False)
    np.testing.assert_allclose(np.asarray(out2), np.asarray(ref2), rtol=1e-5, atol=2e-4)

    print("KERNEL_OK")
</pallas_src>

<mosaic_0001>
module attributes {stable_mosaic.version = 11 : i64} {
  func.func @matmul_bn_act_kernel(%arg0: i32, %arg1: memref<128x128xf32, #tpu.memory_space<vmem>>, %arg2: memref<128x128xf32, #tpu.memory_space<vmem>>, %arg3: memref<1x128xf32, #tpu.memory_space<vmem>>, %arg4: memref<1x128xf32, #tpu.memory_space<vmem>>, %arg5: memref<128x128xf32, #tpu.memory_space<vmem>>) attributes {dimension_semantics = [#tpu.dimension_semantics<parallel>], iteration_bounds = array<i64: 1>, scalar_prefetch = 0 : i64, scratch_operands = 0 : i64, tpu.core_type = #tpu.core_type<tc>, window_params = [{transform_indices = @transform_0, window_bounds = array<i64: 128, 128>}, {pipeline_mode = #tpu.pipeline_mode<synchronous>, transform_indices = @transform_1, window_bounds = array<i64: 128, 128>}, {pipeline_mode = #tpu.pipeline_mode<synchronous>, transform_indices = @transform_2, window_bounds = array<i64: 1, 128>}, {pipeline_mode = #tpu.pipeline_mode<synchronous>, transform_indices = @transform_3, window_bounds = array<i64: 1, 128>}, {transform_indices = @transform_4, window_bounds = array<i64: 128, 128>}]} {
    %c0 = arith.constant 0 : index
    %c0_0 = arith.constant 0 : index
    %0 = vector.load %arg1[%c0, %c0_0] : memref<128x128xf32, #tpu.memory_space<vmem>>, vector<128x128xf32>
    %c0_1 = arith.constant 0 : index
    %c0_2 = arith.constant 0 : index
    %1 = vector.load %arg2[%c0_1, %c0_2] : memref<128x128xf32, #tpu.memory_space<vmem>>, vector<128x128xf32>
    %cst = arith.constant dense<0.000000e+00> : vector<128x128xf32>
    %2 = tpu.matmul %0, %1, %cst {dimension_numbers = #tpu.dot_dimension_numbers<[1], [0], [0], [1], [0, 0, 1, 1], [], []>, precision = #tpu.contract_precision<fp32>} : vector<128x128xf32>, vector<128x128xf32>, vector<128x128xf32> -> vector<128x128xf32>
    %c0_3 = arith.constant 0 : index
    %c0_4 = arith.constant 0 : index
    %3 = vector.load %arg3[%c0_3, %c0_4] : memref<1x128xf32, #tpu.memory_space<vmem>>, vector<1x128xf32>
    %4 = vector.broadcast %3 : vector<1x128xf32> to vector<128x128xf32>
    %5 = arith.mulf %2, %4 : vector<128x128xf32>
    %c0_5 = arith.constant 0 : index
    %c0_6 = arith.constant 0 : index
    %6 = vector.load %arg4[%c0_5, %c0_6] : memref<1x128xf32, #tpu.memory_space<vmem>>, vector<1x128xf32>
    %7 = vector.broadcast %6 : vector<1x128xf32> to vector<128x128xf32>
    %8 = arith.addf %5, %7 : vector<128x128xf32>
    %cst_7 = arith.constant 0.000000e+00 : f32
    %9 = vector.broadcast %cst_7 : f32 to vector<128x128xf32>
    %10 = arith.maximumf %8, %9 : vector<128x128xf32>
    %c0_8 = arith.constant 0 : index
    %c0_9 = arith.constant 0 : index
    %11 = vector.load %arg5[%c0_8, %c0_9] : memref<128x128xf32, #tpu.memory_space<vmem>>, vector<128x128xf32>
    tpu.vector_store %arg5[%c0_8, %c0_9], %10 {strides = array<i32>} : memref<128x128xf32, #tpu.memory_space<vmem>>, vector<128x128xf32>,
    return
  }
  func.func @transform_0(%arg0: i32) -> (i32, i32) {
    %c0_i32 = arith.constant 0 : i32
    %c0_i32_0 = arith.constant 0 : i32
    return %arg0, %c0_i32 : i32, i32
  }
  func.func @transform_1(%arg0: i32) -> (i32, i32) {
    %c0_i32 = arith.constant 0 : i32
    %c0_i32_0 = arith.constant 0 : i32
    %c0_i32_1 = arith.constant 0 : i32
    return %c0_i32, %c0_i32_0 : i32, i32
  }
  func.func @transform_2(%arg0: i32) -> (i32, i32) {
    %c0_i32 = arith.constant 0 : i32
    %c0_i32_0 = arith.constant 0 : i32
    %c0_i32_1 = arith.constant 0 : i32
    return %c0_i32, %c0_i32_0 : i32, i32
  }
  func.func @transform_3(%arg0: i32) -> (i32, i32) {
    %c0_i32 = arith.constant 0 : i32
    %c0_i32_0 = arith.constant 0 : i32
    %c0_i32_1 = arith.constant 0 : i32
    return %c0_i32, %c0_i32_0 : i32, i32
  }
  func.func @transform_4(%arg0: i32) -> (i32, i32) {
    %c0_i32 = arith.constant 0 : i32
    %c0_i32_0 = arith.constant 0 : i32
    return %arg0, %c0_i32 : i32, i32
  }
}

module attributes {stable_mosaic.version = 11 : i64} {
  func.func @matmul_bn_act_kernel(%arg0: i32, %arg1: memref<128x128xf32, #tpu.memory_space<vmem>>, %arg2: memref<128x128xf32, #tpu.memory_space<vmem>>, %arg3: memref<1x128xf32, #tpu.memory_space<vmem>>, %arg4: memref<1x128xf32, #tpu.memory_space<vmem>>, %arg5: memref<128x128xf32, #tpu.memory_space<vmem>>) attributes {dimension_semantics = [#tpu.dimension_semantics<parallel>], iteration_bounds = array<i64: 1>, scalar_prefetch = 0 : i64, scratch_operands = 0 : i64, tpu.core_type = #tpu.core_type<tc>, window_params = [{transform_indices = @transform_0, window_bounds = array<i64: 128, 128>}, {pipeline_mode = #tpu.pipeline_mode<synchronous>, transform_indices = @transform_1, window_bounds = array<i64: 128, 128>}, {pipeline_mode = #tpu.pipeline_mode<synchronous>, transform_indices = @transform_2, window_bounds = array<i64: 1, 128>}, {pipeline_mode = #tpu.pipeline_mode<synchronous>, transform_indices = @transform_3, window_bounds = array<i64: 1, 128>}, {transform_indices = @transform_4, window_bounds = array<i64: 128, 128>}]} {
    %c0 = arith.constant 0 : index
    %c0_0 = arith.constant 0 : index
    %0 = vector.load %arg1[%c0, %c0_0] : memref<128x128xf32, #tpu.memory_space<vmem>>, vector<128x128xf32>
    %c0_1 = arith.constant 0 : index
    %c0_2 = arith.constant 0 : index
    %1 = vector.load %arg2[%c0_1, %c0_2] : memref<128x128xf32, #tpu.memory_space<vmem>>, vector<128x128xf32>
    %cst = arith.constant dense<0.000000e+00> : vector<128x128xf32>
    %2 = tpu.matmul %0, %1, %cst {dimension_numbers = #tpu.dot_dimension_numbers<[1], [0], [0], [1], [0, 0, 1, 1], [], []>, precision = #tpu.contract_precision<fp32>} : vector<128x128xf32>, vector<128x128xf32>, vector<128x128xf32> -> vector<128x128xf32>
    %c0_3 = arith.constant 0 : index
    %c0_4 = arith.constant 0 : index
    %3 = vector.load %arg3[%c0_3, %c0_4] : memref<1x128xf32, #tpu.memory_space<vmem>>, vector<1x128xf32>
    %4 = vector.broadcast %3 : vector<1x128xf32> to vector<128x128xf32>
    %5 = arith.mulf %2, %4 : vector<128x128xf32>
    %c0_5 = arith.constant 0 : index
    %c0_6 = arith.constant 0 : index
    %6 = vector.load %arg4[%c0_5, %c0_6] : memref<1x128xf32, #tpu.memory_space<vmem>>, vector<1x128xf32>
    %7 = vector.broadcast %6 : vector<1x128xf32> to vector<128x128xf32>
    %8 = arith.addf %5, %7 : vector<128x128xf32>
    %c0_7 = arith.constant 0 : index
    %c0_8 = arith.constant 0 : index
    %9 = vector.load %arg5[%c0_7, %c0_8] : memref<128x128xf32, #tpu.memory_space<vmem>>, vector<128x128xf32>
    tpu.vector_store %arg5[%c0_7, %c0_8], %8 {strides = array<i32>} : memref<128x128xf32, #tpu.memory_space<vmem>>, vector<128x128xf32>,
    return
  }
  func.func @transform_0(%arg0: i32) -> (i32, i32) {
    %c0_i32 = arith.constant 0 : i32
    %c0_i32_0 = arith.constant 0 : i32
    return %arg0, %c0_i32 : i32, i32
  }
  func.func @transform_1(%arg0: i32) -> (i32, i32) {
    %c0_i32 = arith.constant 0 : i32
    %c0_i32_0 = arith.constant 0 : i32
    %c0_i32_1 = arith.constant 0 : i32
    return %c0_i32, %c0_i32_0 : i32, i32
  }
  func.func @transform_2(%arg0: i32) -> (i32, i32) {
    %c0_i32 = arith.constant 0 : i32
    %c0_i32_0 = arith.constant 0 : i32
    %c0_i32_1 = arith.constant 0 : i32
    return %c0_i32, %c0_i32_0 : i32, i32
  }
  func.func @transform_3(%arg0: i32) -> (i32, i32) {
    %c0_i32 = arith.constant 0 : i32
    %c0_i32_0 = arith.constant 0 : i32
    %c0_i32_1 = arith.constant 0 : i32
    return %c0_i32, %c0_i32_0 : i32, i32
  }
  func.func @transform_4(%arg0: i32) -> (i32, i32) {
    %c0_i32 = arith.constant 0 : i32
    %c0_i32_0 = arith.constant 0 : i32
    return %arg0, %c0_i32 : i32, i32
  }
}

module attributes {stable_mosaic.version = 11 : i64} {
  func.func @conv3x3_bn_act_kernel(%arg0: i32, %arg1: memref<1x1x10x10x128xf32, #tpu.memory_space<vmem>>, %arg2: memref<9x128x128xf32, #tpu.memory_space<vmem>>, %arg3: memref<1x128xf32, #tpu.memory_space<vmem>>, %arg4: memref<1x128xf32, #tpu.memory_space<vmem>>, %arg5: memref<1x8x8x128xf32, #tpu.memory_space<vmem>>) attributes {dimension_semantics = [#tpu.dimension_semantics<parallel>], iteration_bounds = array<i64: 2>, scalar_prefetch = 0 : i64, scratch_operands = 0 : i64, tpu.core_type = #tpu.core_type<tc>, window_params = [{transform_indices = @transform_0, window_bounds = array<i64: 1, 1, 10, 10, 128>}, {pipeline_mode = #tpu.pipeline_mode<synchronous>, transform_indices = @transform_1, window_bounds = array<i64: 9, 128, 128>}, {pipeline_mode = #tpu.pipeline_mode<synchronous>, transform_indices = @transform_2, window_bounds = array<i64: 1, 128>}, {pipeline_mode = #tpu.pipeline_mode<synchronous>, transform_indices = @transform_3, window_bounds = array<i64: 1, 128>}, {transform_indices = @transform_4, window_bounds = array<i64: 1, 8, 8, 128>}]} {
    %cst = arith.constant 0.000000e+00 : f32
    %0 = vector.broadcast %cst : f32 to vector<64x128xf32>
    %c0 = arith.constant 0 : index
    %c0_0 = arith.constant 0 : index
    %c0_1 = arith.constant 0 : index
    %c0_2 = arith.constant 0 : index
    %c0_3 = arith.constant 0 : index
    %1 = vector.load %arg1[%c0, %c0_0, %c0_1, %c0_2, %c0_3] : memref<1x1x10x10x128xf32, #tpu.memory_space<vmem>>, vector<1x1x8x8x128xf32>
    %2 = vector.shape_cast %1 : vector<1x1x8x8x128xf32> to vector<8x8x128xf32>
    %3 = vector.shape_cast %2 : vector<8x8x128xf32> to vector<64x128xf32>
    %c0_4 = arith.constant 0 : index
    %c0_5 = arith.constant 0 : index
    %c0_6 = arith.constant 0 : index
    %4 = vector.load %arg2[%c0_4, %c0_5, %c0_6] : memref<9x128x128xf32, #tpu.memory_space<vmem>>, vector<1x128x128xf32>
    %5 = vector.shape_cast %4 : vector<1x128x128xf32> to vector<128x128xf32>
    %cst_7 = arith.constant dense<0.000000e+00> : vector<64x128xf32>
    %6 = tpu.matmul %3, %5, %cst_7 {dimension_numbers = #tpu.dot_dimension_numbers<[1], [0], [0], [1], [0, 0, 1, 1], [], []>, precision = #tpu.contract_precision<fp32>} : vector<64x128xf32>, vector<128x128xf32>, vector<64x128xf32> -> vector<64x128xf32>
    %7 = arith.addf %0, %6 : vector<64x128xf32>
    %c0_8 = arith.constant 0 : index
    %c0_9 = arith.constant 0 : index
    %c0_10 = arith.constant 0 : index
    %c1 = arith.constant 1 : index
    %c0_11 = arith.constant 0 : index
    %8 = vector.load %arg1[%c0_8, %c0_9, %c0_10, %c1, %c0_11] : memref<1x1x10x10x128xf32, #tpu.memory_space<vmem>>, vector<1x1x8x8x128xf32>
    %9 = vector.shape_cast %8 : vector<1x1x8x8x128xf32> to vector<8x8x128xf32>
    %10 = vector.shape_cast %9 : vector<8x8x128xf32> to vector<64x128xf32>
    %c1_12 = arith.constant 1 : index
    %c0_13 = arith.constant 0 : index
    %c0_14 = arith.constant 0 : index
    %11 = vector.load %arg2[%c1_12, %c0_13, %c0_14] : memref<9x128x128xf32, #tpu.memory_space<vmem>>, vector<1x128x128xf32>
    %12 = vector.shape_cast %11 : vector<1x128x128xf32> to vector<128x128xf32>
    %cst_15 = arith.constant dense<0.000000e+00> : vector<64x128xf32>
    %13 = tpu.matmul %10, %12, %cst_15 {dimension_numbers = #tpu.dot_dimension_numbers<[1], [0], [0], [1], [0, 0, 1, 1], [], []>, precision = #tpu.contract_precision<fp32>} : vector<64x128xf32>, vector<128x128xf32>, vector<64x128xf32> -> vector<64x128xf32>
    %14 = arith.addf %7, %13 : vector<64x128xf32>
    %c0_16 = arith.constant 0 : index
    %c0_17 = arith.constant 0 : index
    %c0_18 = arith.constant 0 : index
    %c2 = arith.constant 2 : index
    %c0_19 = arith.constant 0 : index
    %15 = vector.load %arg1[%c0_16, %c0_17, %c0_18, %c2, %c0_19] : memref<1x1x10x10x128xf32, #tpu.memory_space<vmem>>, vector<1x1x8x8x128xf32>
    %16 = vector.shape_cast %15 : vector<1x1x8x8x128xf32> to vector<8x8x128xf32>
    %17 = vector.shape_cast %16 : vector<8x8x128xf32> to vector<64x128xf32>
    %c2_20 = arith.constant 2 : index
    %c0_21 = arith.constant 0 : index
    %c0_22 = arith.constant 0 : index
    %18 = vector.load %arg2[%c2_20, %c0_21, %c0_22] : memref<9x128x128xf32, #tpu.memory_space<vmem>>, vector<1x128x128xf32>
    %19 = vector.shape_cast %18 : vector<1x128x128xf32> to vector<128x128xf32>
    %cst_23 = arith.constant dense<0.000000e+00> : vector<64x128xf32>
    %20 = tpu.matmul %17, %19, %cst_23 {dimension_numbers = #tpu.dot_dimension_numbers<[1], [0], [0], [1], [0, 0, 1, 1], [], []>, precision = #tpu.contract_precision<fp32>} : vector<64x128xf32>, vector<128x128xf32>, vector<64x128xf32> -> vector<64x128xf32>
    %21 = arith.addf %14, %20 : vector<64x128xf32>
    %c0_24 = arith.constant 0 : index
    %c0_25 = arith.constant 0 : index
    %c1_26 = arith.constant 1 : index
    %c0_27 = arith.constant 0 : index
    %c0_28 = arith.constant 0 : index
    %22 = vector.load %arg1[%c0_24, %c0_25, %c1_26, %c0_27, %c0_28] : memref<1x1x10x10x128xf32, #tpu.memory_space<vmem>>, vector<1x1x8x8x128xf32>
    %23 = vector.shape_cast %22 : vector<1x1x8x8x128xf32> to vector<8x8x128xf32>
    %24 = vector.shape_cast %23 : vector<8x8x128xf32> to vector<64x128xf32>
    %c3 = arith.constant 3 : index
    %c0_29 = arith.constant 0 : index
    %c0_30 = arith.constant 0 : index
    %25 = vector.load %arg2[%c3, %c0_29, %c0_30] : memref<9x128x128xf32, #tpu.memory_space<vmem>>, vector<1x128x128xf32>
    %26 = vector.shape_cast %25 : vector<1x128x128xf32> to vector<128x128xf32>
    %cst_31 = arith.constant dense<0.000000e+00> : vector<64x128xf32>
    %27 = tpu.matmul %24, %26, %cst_31 {dimension_numbers = #tpu.dot_dimension_numbers<[1], [0], [0], [1], [0, 0, 1, 1], [], []>, precision = #tpu.contract_precision<fp32>} : vector<64x128xf32>, vector<128x128xf32>, vector<64x128xf32> -> vector<64x128xf32>
    %28 = arith.addf %21, %27 : vector<64x128xf32>
    %c0_32 = arith.constant 0 : index
    %c0_33 = arith.constant 0 : index
    %c1_34 = arith.constant 1 : index
    %c1_35 = arith.constant 1 : index
    %c0_36 = arith.constant 0 : index
    %29 = vector.load %arg1[%c0_32, %c0_33, %c1_34, %c1_35, %c0_36] : memref<1x1x10x10x128xf32, #tpu.memory_space<vmem>>, vector<1x1x8x8x128xf32>
    %30 = vector.shape_cast %29 : vector<1x1x8x8x128xf32> to vector<8x8x128xf32>
    %31 = vector.shape_cast %30 : vector<8x8x128xf32> to vector<64x128xf32>
    %c4 = arith.constant 4 : index
    %c0_37 = arith.constant 0 : index
    %c0_38 = arith.constant 0 : index
    %32 = vector.load %arg2[%c4, %c0_37, %c0_38] : memref<9x128x128xf32, #tpu.memory_space<vmem>>, vector<1x128x128xf32>
    %33 = vector.shape_cast %32 : vector<1x128x128xf32> to vector<128x128xf32>
    %cst_39 = arith.constant dense<0.000000e+00> : vector<64x128xf32>
    %34 = tpu.matmul %31, %33, %cst_39 {dimension_numbers = #tpu.dot_dimension_numbers<[1], [0], [0], [1], [0, 0, 1, 1], [], []>, precision = #tpu.contract_precision<fp32>} : vector<64x128xf32>, vector<128x128xf32>, vector<64x128xf32> -> vector<64x128xf32>
    %35 = arith.addf %28, %34 : vector<64x128xf32>
    %c0_40 = arith.constant 0 : index
    %c0_41 = arith.constant 0 : index
    %c1_42 = arith.constant 1 : index
    %c2_43 = arith.constant 2 : index
    %c0_44 = arith.constant 0 : index
    %36 = vector.load %arg1[%c0_40, %c0_41, %c1_42, %c2_43, %c0_44] : memref<1x1x10x10x128xf32, #tpu.memory_space<vmem>>, vector<1x1x8x8x128xf32>
    %37 = vector.shape_cast %36 : vector<1x1x8x8x128xf32> to vector<8x8x128xf32>
    %38 = vector.shape_cast %37 : vector<8x8x128xf32> to vector<64x128xf32>
    %c5 = arith.constant 5 : index
    %c0_45 = arith.constant 0 : index
    %c0_46 = arith.constant 0 : index
    %39 = vector.load %arg2[%c5, %c0_45, %c0_46] : memref<9x128x128xf32, #tpu.memory_space<vmem>>, vector<1x128x128xf32>
    %40 = vector.shape_cast %39 : vector<1x128x128xf32> to vector<128x128xf32>
    %cst_47 = arith.constant dense<0.000000e+00> : vector<64x128xf32>
    %41 = tpu.matmul %38, %40, %cst_47 {dimension_numbers = #tpu.dot_dimension_numbers<[1], [0], [0], [1], [0, 0, 1, 1], [], []>, precision = #tpu.contract_precision<fp32>} : vector<64x128xf32>, vector<128x128xf32>, vector<64x128xf32> -> vector<64x128xf32>
    %42 = arith.addf %35, %41 : vector<64x128xf32>
    %c0_48 = arith.constant 0 : index
    %c0_49 = arith.constant 0 : index
    %c2_50 = arith.constant 2 : index
    %c0_51 = arith.constant 0 : index
    %c0_52 = arith.constant 0 : index
    %43 = vector.load %arg1[%c0_48, %c0_49, %c2_50, %c0_51, %c0_52] : memref<1x1x10x10x128xf32, #tpu.memory_space<vmem>>, vector<1x1x8x8x128xf32>
    %44 = vector.shape_cast %43 : vector<1x1x8x8x128xf32> to vector<8x8x128xf32>
    %45 = vector.shape_cast %44 : vector<8x8x128xf32> to vector<64x128xf32>
    %c6 = arith.constant 6 : index
    %c0_53 = arith.constant 0 : index
    %c0_54 = arith.constant 0 : index
    %46 = vector.load %arg2[%c6, %c0_53, %c0_54] : memref<9x128x128xf32, #tpu.memory_space<vmem>>, vector<1x128x128xf32>
    %47 = vector.shape_cast %46 : vector<1x128x128xf32> to vector<128x128xf32>
    %cst_55 = arith.constant dense<0.000000e+00> : vector<64x128xf32>
    %48 = tpu.matmul %45, %47, %cst_55 {dimension_numbers = #tpu.dot_dimension_numbers<[1], [0], [0], [1], [0, 0, 1, 1], [], []>, precision = #tpu.contract_precision<fp32>} : vector<64x128xf32>, vector<128x128xf32>, vector<64x128xf32> -> vector<64x128xf32>
    %49 = arith.addf %42, %48 : vector<64x128xf32>
    %c0_56 = arith.constant 0 : index
    %c0_57 = arith.constant 0 : index
    %c2_58 = arith.constant 2 : index
    %c1_59 = arith.constant 1 : index
    %c0_60 = arith.constant 0 : index
    %50 = vector.load %arg1[%c0_56, %c0_57, %c2_58, %c1_59, %c0_60] : memref<1x1x10x10x128xf32, #tpu.memory_space<vmem>>, vector<1x1x8x8x128xf32>
    %51 = vector.shape_cast %50 : vector<1x1x8x8x128xf32> to vector<8x8x128xf32>
    %52 = vector.shape_cast %51 : vector<8x8x128xf32> to vector<64x128xf32>
    %c7 = arith.constant 7 : index
    %c0_61 = arith.constant 0 : index
    %c0_62 = arith.constant 0 : index
    %53 = vector.load %arg2[%c7, %c0_61, %c0_62] : memref<9x128x128xf32, #tpu.memory_space<vmem>>, vector<1x128x128xf32>
    %54 = vector.shape_cast %53 : vector<1x128x128xf32> to vector<128x128xf32>
    %cst_63 = arith.constant dense<0.000000e+00> : vector<64x128xf32>
    %55 = tpu.matmul %52, %54, %cst_63 {dimension_numbers = #tpu.dot_dimension_numbers<[1], [0], [0], [1], [0, 0, 1, 1], [], []>, precision = #tpu.contract_precision<fp32>} : vector<64x128xf32>, vector<128x128xf32>, vector<64x128xf32> -> vector<64x128xf32>
    %56 = arith.addf %49, %55 : vector<64x128xf32>
    %c0_64 = arith.constant 0 : index
    %c0_65 = arith.constant 0 : index
    %c2_66 = arith.constant 2 : index
    %c2_67 = arith.constant 2 : index
    %c0_68 = arith.constant 0 : index
    %57 = vector.load %arg1[%c0_64, %c0_65, %c2_66, %c2_67, %c0_68] : memref<1x1x10x10x128xf32, #tpu.memory_space<vmem>>, vector<1x1x8x8x128xf32>
    %58 = vector.shape_cast %57 : vector<1x1x8x8x128xf32> to vector<8x8x128xf32>
    %59 = vector.shape_cast %58 : vector<8x8x128xf32> to vector<64x128xf32>
    %c8 = arith.constant 8 : index
    %c0_69 = arith.constant 0 : index
    %c0_70 = arith.constant 0 : index
    %60 = vector.load %arg2[%c8, %c0_69, %c0_70] : memref<9x128x128xf32, #tpu.memory_space<vmem>>, vector<1x128x128xf32>
    %61 = vector.shape_cast %60 : vector<1x128x128xf32> to vector<128x128xf32>
    %cst_71 = arith.constant dense<0.000000e+00> : vector<64x128xf32>
    %62 = tpu.matmul %59, %61, %cst_71 {dimension_numbers = #tpu.dot_dimension_numbers<[1], [0], [0], [1], [0, 0, 1, 1], [], []>, precision = #tpu.contract_precision<fp32>} : vector<64x128xf32>, vector<128x128xf32>, vector<64x128xf32> -> vector<64x128xf32>
    %63 = arith.addf %56, %62 : vector<64x128xf32>
    %c0_72 = arith.constant 0 : index
    %c0_73 = arith.constant 0 : index
    %64 = vector.load %arg3[%c0_72, %c0_73] : memref<1x128xf32, #tpu.memory_space<vmem>>, vector<1x128xf32>
    %65 = vector.broadcast %64 : vector<1x128xf32> to vector<64x128xf32>
    %66 = arith.mulf %63, %65 : vector<64x128xf32>
    %c0_74 = arith.constant 0 : index
    %c0_75 = arith.constant 0 : index
    %67 = vector.load %arg4[%c0_74, %c0_75] : memref<1x128xf32, #tpu.memory_space<vmem>>, vector<1x128xf32>
    %68 = vector.broadcast %67 : vector<1x128xf32> to vector<64x128xf32>
    %69 = arith.addf %66, %68 : vector<64x128xf32>
    %cst_76 = arith.constant 0.000000e+00 : f32
    %70 = vector.broadcast %cst_76 : f32 to vector<64x128xf32>
    %71 = arith.maximumf %69, %70 : vector<64x128xf32>
    %72 = vector.shape_cast %71 : vector<64x128xf32> to vector<1x8x8x128xf32>
    %c0_77 = arith.constant 0 : index
    %c0_78 = arith.constant 0 : index
    %c0_79 = arith.constant 0 : index
    %c0_80 = arith.constant 0 : index
    %73 = vector.load %arg5[%c0_77, %c0_78, %c0_79, %c0_80] : memref<1x8x8x128xf32, #tpu.memory_space<vmem>>, vector<1x8x8x128xf32>
    tpu.vector_store %arg5[%c0_77, %c0_78, %c0_79, %c0_80], %72 {strides = array<i32>} : memref<1x8x8x128xf32, #tpu.memory_space<vmem>>, vector<1x8x8x128xf32>,
    return
  }
  func.func @transform_0(%arg0: i32) -> (i32, i32, i32, i32, i32) {
    %c0_i32 = arith.constant 0 : i32
    %c0_i32_0 = arith.constant 0 : i32
    %c0_i32_1 = arith.constant 0 : i32
    %c0_i32_2 = arith.constant 0 : i32
    %c0_i32_3 = arith.constant 0 : i32
    return %arg0, %c0_i32, %c0_i32_0, %c0_i32_1, %c0_i32_2 : i32, i32, i32, i32, i32
  }
  func.func @transform_1(%arg0: i32) -> (i32, i32, i32) {
    %c0_i32 = arith.constant 0 : i32
    %c0_i32_0 = arith.constant 0 : i32
    %c0_i32_1 = arith.constant 0 : i32
    %c0_i32_2 = arith.constant 0 : i32
    return %c0_i32, %c0_i32_0, %c0_i32_1 : i32, i32, i32
  }
  func.func @transform_2(%arg0: i32) -> (i32, i32) {
    %c0_i32 = arith.constant 0 : i32
    %c0_i32_0 = arith.constant 0 : i32
    %c0_i32_1 = arith.constant 0 : i32
    return %c0_i32, %c0_i32_0 : i32, i32
  }
  func.func @transform_3(%arg0: i32) -> (i32, i32) {
    %c0_i32 = arith.constant 0 : i32
    %c0_i32_0 = arith.constant 0 : i32
    %c0_i32_1 = arith.constant 0 : i32
    return %c0_i32, %c0_i32_0 : i32, i32
  }
  func.func @transform_4(%arg0: i32) -> (i32, i32, i32, i32) {
    %c0_i32 = arith.constant 0 : i32
    %c0_i32_0 = arith.constant 0 : i32
    %c0_i32_1 = arith.constant 0 : i32
    %c0_i32_2 = arith.constant 0 : i32
    return %arg0, %c0_i32, %c0_i32_0, %c0_i32_1 : i32, i32, i32, i32
  }
}

module attributes {stable_mosaic.version = 11 : i64} {
  func.func @se_scale_add_relu_kernel(%arg0: i32, %arg1: i32, %arg2: memref<1x64x128xf32, #tpu.memory_space<vmem>>, %arg3: memref<1x64x128xf32, #tpu.memory_space<vmem>>, %arg4: memref<1x1x128xf32, #tpu.memory_space<vmem>>, %arg5: memref<1x64x128xf32, #tpu.memory_space<vmem>>) attributes {dimension_semantics = [#tpu.dimension_semantics<parallel>, #tpu.dimension_semantics<parallel>], iteration_bounds = array<i64: 2, 1>, scalar_prefetch = 0 : i64, scratch_operands = 0 : i64, tpu.core_type = #tpu.core_type<tc>, window_params = [{transform_indices = @transform_0, window_bounds = array<i64: 1, 64, 128>}, {transform_indices = @transform_1, window_bounds = array<i64: 1, 64, 128>}, {transform_indices = @transform_2, window_bounds = array<i64: 1, 1, 128>}, {transform_indices = @transform_3, window_bounds = array<i64: 1, 64, 128>}]} {
    %c0 = arith.constant 0 : index
    %c0_0 = arith.constant 0 : index
    %c0_1 = arith.constant 0 : index
    %0 = vector.load %arg2[%c0, %c0_0, %c0_1] : memref<1x64x128xf32, #tpu.memory_space<vmem>>, vector<1x64x128xf32>
    %c0_2 = arith.constant 0 : index
    %c0_3 = arith.constant 0 : index
    %c0_4 = arith.constant 0 : index
    %1 = vector.load %arg4[%c0_2, %c0_3, %c0_4] : memref<1x1x128xf32, #tpu.memory_space<vmem>>, vector<1x1x128xf32>
    %2 = vector.broadcast %1 : vector<1x1x128xf32> to vector<1x64x128xf32>
    %3 = arith.mulf %0, %2 : vector<1x64x128xf32>
    %c0_5 = arith.constant 0 : index
    %c0_6 = arith.constant 0 : index
    %c0_7 = arith.constant 0 : index
    %4 = vector.load %arg3[%c0_5, %c0_6, %c0_7] : memref<1x64x128xf32, #tpu.memory_space<vmem>>, vector<1x64x128xf32>
    %5 = arith.addf %3, %4 : vector<1x64x128xf32>
    %cst = arith.constant 0.000000e+00 : f32
    %6 = vector.broadcast %cst : f32 to vector<1x64x128xf32>
    %7 = arith.maximumf %5, %6 : vector<1x64x128xf32>
    %c0_8 = arith.constant 0 : index
    %c0_9 = arith.constant 0 : index
    %c0_10 = arith.constant 0 : index
    %8 = vector.load %arg5[%c0_8, %c0_9, %c0_10] : memref<1x64x128xf32, #tpu.memory_space<vmem>>, vector<1x64x128xf32>
    tpu.vector_store %arg5[%c0_8, %c0_9, %c0_10], %7 {strides = array<i32>} : memref<1x64x128xf32, #tpu.memory_space<vmem>>, vector<1x64x128xf32>,
    return
  }
  func.func @transform_0(%arg0: i32, %arg1: i32) -> (i32, i32, i32) {
    %c0_i32 = arith.constant 0 : i32
    %c0_i32_0 = arith.constant 0 : i32
    return %arg0, %arg1, %c0_i32 : i32, i32, i32
  }
  func.func @transform_1(%arg0: i32, %arg1: i32) -> (i32, i32, i32) {
    %c0_i32 = arith.constant 0 : i32
    %c0_i32_0 = arith.constant 0 : i32
    return %arg0, %arg1, %c0_i32 : i32, i32, i32
  }
  func.func @transform_2(%arg0: i32, %arg1: i32) -> (i32, i32, i32) {
    %c0_i32 = arith.constant 0 : i32
    %c0_i32_0 = arith.constant 0 : i32
    %c0_i32_1 = arith.constant 0 : i32
    return %arg0, %c0_i32, %c0_i32_0 : i32, i32, i32
  }
  func.func @transform_3(%arg0: i32, %arg1: i32) -> (i32, i32, i32) {
    %c0_i32 = arith.constant 0 : i32
    %c0_i32_0 = arith.constant 0 : i32
    return %arg0, %arg1, %c0_i32 : i32, i32, i32
  }
}

</mosaic_0001>

<bundles_post_ra>
// kernel: residual_block_forward.7
= control target key start
LH: loop header
LB: loop body
LE: loop exit
PB: predicated region body
PF: predicated region fallthrough
CT: control target
= control target key end

     0   :  { %s514_s12 = smov 0   ;;  %s516_s13 = smov 0   ;;  %s563_s0 = inlined_call_operand.vmem [shape: f32[2,64,128], index: 0, kind: input, shape index: {}]   ;;  %s564_s1 = inlined_call_operand.vmem [shape: f32[2,64,128], index: 1, kind: input, shape index: {}]   ;;  %s565_s2 = inlined_call_operand.vmem [shape: f32[2,1,128], index: 2, kind: input, shape index: {}]   ;;  %s566_s3 = inlined_call_operand.vmem [shape: f32[2,64,128], index: 3, kind: output, shape index: {}]  }
   0x1   :  { %s518_s14 = smov 0  }
   0x2 LB: > { %s25_s15 = sadd.s32 1, %s488_s13  ;;  %p433_p0 = scmp.ge.s32.totalorder %s492_s14, 1  ;;  %s492_s14 = sphi %s518_s14, %s13_s14   ;;  %s488_s13 = sphi %s516_s13, %s568_s13   ;;  %s484_s12 = sphi %s514_s12, %s567_s12  }
   0x3   : > { %p27_p1 = scmp.ge.s32.totalorder %s25_s15, 2  ;;  %p183_p2 = scmp.lt.s32.totalorder %s492_s14, 3 }
   0x5   : > { %s570_s15 = smov (%p27_p1, %s25_s15), 0  ;;  %p184_p3 = pnand %p433_p0, %p183_p2 }
   0x6   : > { %p228_p4 = scmp.lt.s32.totalorder (!%p184_p3), %s484_s12, 1 }
   0x7   : > { %187 = sbr.rel (%p184_p3) target bundleno = 30 (0x1e), region = 32 }
   0xe   : > { %s572_s12 = smov (!%p228_p4, %s484_s12), 1 }
   0xf   : > { %s443_s16 = sshll.u32 %s572_s12, 6  ;;  %s249_s19 = scalar_lea.vmem %s565_s2, %s572_s12 }
  0x10   : > { %s235_s22 = scalar_lea.vmem %s563_s0, %s443_s16  ;;  %s541_s25 = scalar_lea.vmem %s564_s1, %s443_s16  ;;  %v440_v0 = vld [vmem:[%s249_s19] ss:$0 sm:$0xff] }
  0x11   : > { %v260_v1 = vld [vmem:[%s235_s22] sm:$0xff]  ;;  %v261_v3 = vld [vmem:[%s235_s22 + $0x8] sm:$0xff]  ;;  %v262_v7 = vld [vmem:[%s235_s22 + $0x10] sm:$0xff]  ;;  %s258_s28 = scalar_lea.vmem %s566_s3, %s443_s16 }
  0x12   : > { %v283_v2 = vld [vmem:[%s541_s25] sm:$0xff]  ;;  %v275_v4 = vmul.f32 %v440_v0, %v260_v1  ;;  %v276_v5 = vmul.f32 %v440_v0, %v261_v3  ;;  %v284_v6 = vld [vmem:[%s541_s25 + $0x8] sm:$0xff]  ;;  %v285_v8 = vld [vmem:[%s541_s25 + $0x10] sm:$0xff]  ;;  %v277_v9 = vmul.f32 %v440_v0, %v262_v7 }
  0x13   : > { %v263_v10 = vld [vmem:[%s235_s22 + $0x18] sm:$0xff]  ;;  %v264_v12 = vld [vmem:[%s235_s22 + $0x20] sm:$0xff]  ;;  %v265_v18 = vld [vmem:[%s235_s22 + $0x28] sm:$0xff] }
  0x14   : > { %v286_v11 = vld [vmem:[%s541_s25 + $0x18] sm:$0xff]  ;;  %v291_v13 = vadd.f32 %v283_v2, %v275_v4  ;;  %v292_v14 = vadd.f32 %v284_v6, %v276_v5  ;;  %v278_v15 = vmul.f32 %v440_v0, %v263_v10  ;;  %v279_v16 = vmul.f32 %v440_v0, %v264_v12  ;;  %v287_v17 = vld [vmem:[%s541_s25 + $0x20] sm:$0xff]  ;;  %v288_v19 = vld [vmem:[%s541_s25 + $0x28] sm:$0xff] }
  0x15   : > { %v293_v20 = vadd.f32 %v285_v8, %v277_v9  ;;  %v280_v21 = vmul.f32 %v440_v0, %v265_v18  ;;  %v266_v22 = vld [vmem:[%s235_s22 + $0x30] sm:$0xff]  ;;  %v267_v23 = vld [vmem:[%s235_s22 + $0x38] sm:$0xff] }
  0x16   : > { %v299_v24 = vmax.f32 %v291_v13, 0.0  ;;  %v300_v25 = vmax.f32 %v292_v14, 0.0  ;;  %v294_v26 = vadd.f32 %v286_v11, %v278_v15  ;;  %v295_v27 = vadd.f32 %v287_v17, %v279_v16  ;;  %v289_v28 = vld [vmem:[%s541_s25 + $0x30] sm:$0xff]  ;;  %v290_v29 = vld [vmem:[%s541_s25 + $0x38] sm:$0xff] }
  0x17   : > { %v301_v30 = vmax.f32 %v293_v20, 0.0  ;;  %v296_v31 = vadd.f32 %v288_v19, %v280_v21  ;;  %v281_v32 = vmul.f32 %v440_v0, %v266_v22  ;;  %v282_v33 = vmul.f32 %v440_v0, %v267_v23 }
  0x18   : > { %307 = vst [vmem:[%s258_s28] sm:$0xff] %v299_v24  ;;  %308 = vst [vmem:[%s258_s28 + $0x8] sm:$0xff] %v300_v25  ;;  %v302_v34 = vmax.f32 %v294_v26, 0.0  ;;  %v303_v35 = vmax.f32 %v295_v27, 0.0 }
  0x19   : > { %309 = vst [vmem:[%s258_s28 + $0x10] sm:$0xff] %v301_v30  ;;  %v304_v36 = vmax.f32 %v296_v31, 0.0  ;;  %v297_v37 = vadd.f32 %v289_v28, %v281_v32  ;;  %v298_v38 = vadd.f32 %v290_v29, %v282_v33 }
  0x1a   : > { %310 = vst [vmem:[%s258_s28 + $0x18] sm:$0xff] %v302_v34  ;;  %311 = vst [vmem:[%s258_s28 + $0x20] sm:$0xff] %v303_v35 }
  0x1b   : > { %312 = vst [vmem:[%s258_s28 + $0x28] sm:$0xff] %v304_v36  ;;  %v305_v39 = vmax.f32 %v297_v37, 0.0  ;;  %v306_v40 = vmax.f32 %v298_v38, 0.0 }
  0x1d   : > { %313 = vst [vmem:[%s258_s28 + $0x30] sm:$0xff] %v305_v39  ;;  %314 = vst [vmem:[%s258_s28 + $0x38] sm:$0xff] %v306_v40 }
  0x1e PF: > { %s13_s14 = sadd.s32 1, %s492_s14   ;;  %s567_s12 = smov %s488_s13 }
  0x1f   : > { %p10_p5 = scmp.ge.s32.totalorder %s13_s14, 4   ;;  %s568_s13 = smov %s570_s15 }
  0x21   :  { %12 = sbr.rel (!%p10_p5) target bundleno = 2 (0x2), region = 68 }

// kernel: residual_block_forward.6
= control target key start
LH: loop header
LB: loop body
LE: loop exit
PB: predicated region body
PF: predicated region fallthrough
CT: control target
= control target key end

     0   :  { %s2923_s1 = inlined_call_operand.vmem [shape: f32[128,128], index: 1, kind: input, shape index: {}]   ;;  %s2924_s0 = inlined_call_operand.vmem [shape: f32[128,128], index: 0, kind: input, shape index: {}]   ;;  %s2925_s2 = inlined_call_operand.vmem [shape: f32[1,128], index: 2, kind: input, shape index: {}]   ;;  %s2926_s3 = inlined_call_operand.vmem [shape: f32[1,128], index: 3, kind: input, shape index: {}]   ;;  %s2927_s4 = inlined_call_operand.vmem [shape: f32[128,128], index: 4, kind: output, shape index: {}]  }
   0x1   :  { %v33_v0 = vld [vmem:[%s2923_s1] sm:$0xff]  ;;  %v34_v1 = vld [vmem:[%s2923_s1 + $0x8] sm:$0xff]  ;;  %v35_v2 = vld [vmem:[%s2923_s1 + $0x10] sm:$0xff] }
   0x2   :  { %v50_v3 = vand.u32 4294901760, %v33_v0  ;;  %v53_v4 = vand.u32 4294901760, %v34_v1  ;;  %v36_v5 = vld [vmem:[%s2923_s1 + $0x18] sm:$0xff]  ;;  %v56_v6 = vand.u32 4294901760, %v35_v2  ;;  %v2243_v7 = vld [vmem:[%s2923_s1 + $0x20] sm:$0xff]  ;;  %v2248_v8 = vld [vmem:[%s2923_s1 + $0x28] sm:$0xff] }
   0x3   :  { %v59_v9 = vand.u32 4294901760, %v36_v5  ;;  %v62_v11 = vand.u32 4294901760, %v2243_v7  ;;  %v65_v12 = vand.u32 4294901760, %v2248_v8  ;;  %v2259_v14 = vld [vmem:[%s2923_s1 + $0x30] sm:$0xff]  ;;  %v2264_v15 = vld [vmem:[%s2923_s1 + $0x38] sm:$0xff]  ;;  %v17_v16 = vld [vmem:[%s2924_s0] sm:$0xff] }
   0x4   :  { %v2250_v10 = vpack.c.bf16 %v53_v4, %v50_v3  ;;  %v2273_v17 = vand.u32 4294901760, %v17_v16  ;;  %v68_v19 = vand.u32 4294901760, %v2259_v14  ;;  %v71_v20 = vand.u32 4294901760, %v2264_v15  ;;  %v18_v21 = vld [vmem:[%s2924_s0 + $0x8] sm:$0xff]  ;;  %v2291_v22 = vld [vmem:[%s2923_s1 + $0x40] sm:$0xff]  ;;  %v2319_v30 = vld [vmem:[%s2923_s1 + $0x50] sm:$0xff] }
   0x5   :  { %v2254_v13 = vpack.c.bf16 %v59_v9, %v56_v6  ;;  %v2281_v18 = vpack.c.bf16 %v65_v12, %v62_v11  ;;  %v2296_v23 = vld [vmem:[%s2923_s1 + $0x48] sm:$0xff]  ;;  %v2304_v26 = vand.u32 4294901760, %v18_v21  ;;  %v2938_v28 = vand.u32 4294901760, %v2291_v22  ;;  %v19_v31 = vld [vmem:[%s2924_s0 + $0x10] sm:$0xff]  ;;  %v2327_v32 = vld [vmem:[%s2923_s1 + $0x58] sm:$0xff] }
   0x6   :  { %1932 = vmatprep.subr.bf16.mxu1 %v2250_v10  ;;  %2028 = vmatprep.subr.bf16.mxu0 %v2250_v10  ;;  %v2299_v24 = vsub.f32 %v17_v16, %v2273_v17  ;;  %v2312_v27 = vpack.c.bf16 %v71_v20, %v68_v19  ;;  %v2936_v29 = vand.u32 4294901760, %v2296_v23  ;;  %v20_v34 = vld [vmem:[%s2924_s0 + $0x18] sm:$0xff]  ;;  %v2333_v35 = vsub.f32 %v33_v0, %v50_v3  ;;  %v2343_v38 = vld [vmem:[%s2923_s1 + $0x60] sm:$0xff]  ;;  %v2348_v39 = vld [vmem:[%s2923_s1 + $0x68] sm:$0xff] }
   0x7   :  { %1934 = vmatpush3.bf16.msra.mxu1 %v2250_v10  ;;  %2030 = vmatpush3.bf16.msra.mxu0 %v2250_v10  ;;  %v2335_v36 = vsub.f32 %v34_v1, %v53_v4  ;;  %v2935_v37 = vand.u32 4294901760, %v2319_v30  ;;  %v2351_v41 = vsub.f32 %v18_v21, %v2304_v26  ;;  %v2353_v42 = vand.u32 4294901760, %v19_v31  ;;  %v2367_v45 = vld [vmem:[%s2923_s1 + $0x70] sm:$0xff]  ;;  %v2372_v46 = vld [vmem:[%s2923_s1 + $0x78] sm:$0xff]  ;;  %v21_v50 = vld [vmem:[%s2924_s0 + $0x20] sm:$0xff] }
   0x8   :  { %1936 = vmatprep.subr.bf16.mxu1 %v2254_v13  ;;  %2032 = vmatprep.subr.bf16.mxu0 %v2254_v13  ;;  %2971 = vst [vmem:[#allocation2_spill] sm:$0xff] %v2299_v24  ;;  %v132_v25 = vand.u32 4294901760, %v2299_v24  ;;  %2972 = vst [vmem:[#allocation3_spill] sm:$0xff] %v2312_v27  ;;  %v2361_v43 = vpack.c.bf16 %v2936_v29, %v2938_v28  ;;  %v2933_v44 = vand.u32 4294901760, %v2327_v32  ;;  %v2374_v47 = vand.u32 4294901760, %v20_v34  ;;  %v22_v55 = vld [vmem:[%s2924_s0 + $0x28] sm:$0xff] }
   0x9   :  { %2973 = vst [vmem:[#allocation4_spill] sm:$0xff] %v2351_v41  ;;  %v2376_v48 = vsub.f32 %v35_v2, %v56_v6  ;;  %v2378_v49 = vsub.f32 %v36_v5, %v59_v9  ;;  %v2931_v51 = vand.u32 4294901760, %v2343_v38  ;;  %v2930_v52 = vand.u32 4294901760, %v2348_v39  ;;  %v23_v2 = vld [vmem:[%s2924_s0 + $0x30] sm:$0xff]  ;;  %v24_v9 = vld [vmem:[%s2924_s0 + $0x38] sm:$0xff] }
   0xa   :  { %v133_v33 = vsub.f32 %v2299_v24, %v132_v25  ;;  %1795 = vmatprep.mubr.f32.mxu0 %v132_v25  ;;  %2974 = vst [vmem:[#allocation5_spill] sm:$0xff] %v2361_v43  ;;  %v293_v53 = vand.u32 4294901760, %v2333_v35  ;;  %v300_v54 = vand.u32 4294901760, %v2335_v36  ;;  %v2929_v56 = vand.u32 4294901760, %v2367_v45 }
   0xb   :  { %1938 = vmatpush3.bf16.msra.mxu1 %v2254_v13  ;;  %2034 = vmatpush3.bf16.msra.mxu0 %v2254_v13  ;;  %v2928_v57 = vand.u32 4294901760, %v2372_v46  ;;  %v2932_v58 = vand.u32 4294901760, %v2351_v41  ;;  %v2396_v59 = vsub.f32 %v19_v31, %v2353_v42  ;;  %v2404_v60 = vpack.c.bf16 %v2933_v44, %v2935_v37 }
   0xc   :  { %1940 = vmatprep.subr.bf16.mxu1 %v2281_v18  ;;  %2036 = vmatprep.subr.bf16.mxu0 %v2281_v18  ;;  %v134_v40 = vand.u32 4294901760, %v133_v33  ;;  %v2407_v61 = vsub.f32 %v20_v34, %v2374_v47  ;;  %v307_v62 = vand.u32 4294901760, %v2376_v48  ;;  %v2410_v63 = vand.u32 4294901760, %v21_v50 }
   0xd   :  { %2975 = vst [vmem:[#allocation6_spill] sm:$0xff] %v2396_v59  ;;  %2976 = vst [vmem:[#allocation7_spill] sm:$0xff] %v2404_v60  ;;  %v314_v0 = vand.u32 4294901760, %v2378_v49  ;;  %v2413_v1 = vand.u32 4294901760, %v22_v55  ;;  %v294_v3 = vsub.f32 %v2333_v35, %v293_v53  ;;  %v301_v4 = vsub.f32 %v2335_v36, %v300_v54 }
   0xe   :  { %1627 = vmatprep.mubr.f32.mxu1 %v134_v40  ;;  %2977 = vst [vmem:[#allocation8_spill] sm:$0xff] %v2407_v61  ;;  %v2423_v5 = vsub.f32 %v2243_v7, %v62_v11  ;;  %v2428_v6 = vsub.f32 %v2248_v8, %v65_v12  ;;  %v2439_v16 = vpack.c.bf16 %v2930_v52, %v2931_v51  ;;  %v2934_v11 = vand.u32 4294901760, %v2396_v59 }
   0xf   :  { %1942 = vmatpush3.bf16.msra.mxu1 %v2281_v18  ;;  %2038 = vmatpush3.bf16.msra.mxu0 %v2281_v18  ;;  %v2445_v7 = vpack.c.bf16 %v2928_v57, %v2929_v56  ;;  %v2450_v8 = vsub.f32 %v2351_v41, %v2932_v58  ;;  %v2937_v12 = vand.u32 4294901760, %v2407_v61  ;;  %v308_v21 = vsub.f32 %v2376_v48, %v307_v62 }
  0x10   :  { %1944 = vmatprep.subr.bf16.mxu1 %v2312_v27  ;;  %2040 = vmatprep.subr.bf16.mxu0 %v2312_v27  ;;  %2978 = vst [vmem:[#allocation9_spill] sm:$0xff] %v2439_v16  ;;  %v2458_v25 = vsub.f32 %v21_v50, %v2410_v63  ;;  %v2460_v31 = vand.u32 4294901760, %v23_v2  ;;  %v315_v33 = vsub.f32 %v2378_v49, %v314_v0  ;;  %v2466_v40 = vand.u32 4294901760, %v24_v9 }
  0x11   :  { %2979 = vst [vmem:[#allocation10_spill] sm:$0xff] %v2445_v7  ;;  %v2464_v34 = vsub.f32 %v22_v55, %v2413_v1  ;;  %v2471_v57 = vsub.f32 %v2259_v14, %v68_v19  ;;  %v295_v56 = vand.u32 4294901760, %v294_v3  ;;  %v302_v52 = vand.u32 4294901760, %v301_v4  ;;  %v25_v19 = vld [vmem:[%s2924_s0 + $0x40] sm:$0xff] }
  0x12   :  { %2980 = vst [vmem:[#allocation11_spill] sm:$0xff] %v2458_v25  ;;  %2981 = vst [vmem:[#allocation12_spill] sm:$0xff] %v2460_v31  ;;  %v321_v51 = vand.u32 4294901760, %v2423_v5  ;;  %v328_v50 = vand.u32 4294901760, %v2428_v6  ;;  %v144_v55 = vand.u32 4294901760, %v2450_v8  ;;  %v2478_v58 = vpack.c.bf16 %v300_v54, %v293_v53 }
  0x13   :  { %1946 = vmatpush3.bf16.msra.mxu1 %v2312_v27  ;;  %2042 = vmatpush3.bf16.msra.mxu0 %v2312_v27  ;;  %2982 = vst [vmem:[#allocation13_spill] sm:$0xff] %v2464_v34  ;;  %2983 = vst [vmem:[#allocation14_spill] sm:$0xff] %v2466_v40  ;;  %v2483_v44 = vsub.f32 %v2396_v59, %v2934_v11  ;;  %v2488_v14 = vsub.f32 %v2264_v15, %v71_v20  ;;  %v309_v54 = vand.u32 4294901760, %v308_v21 }
  0x14   :  { %1948 = vmatprep.subr.bf16.mxu1 %v2361_v43  ;;  %2044 = vmatprep.subr.bf16.mxu0 %v2361_v43  ;;  %v2498_v53 = vsub.f32 %v2407_v61, %v2937_v12  ;;  %v2942_v3 = vand.u32 4294901760, %v2458_v25  ;;  %v2502_v4 = vsub.f32 %v23_v2, %v2460_v31  ;;  %v316_v15 = vand.u32 4294901760, %v315_v33 }
  0x15   :  { %v2506_v8 = vsub.f32 %v24_v9, %v2466_v40  ;;  %v1963_v37 = vpack.c.bf16 %v302_v52, %v295_v56  ;;  %v322_v29 = vsub.f32 %v2423_v5, %v321_v51  ;;  %v329_v12 = vsub.f32 %v2428_v6, %v328_v50  ;;  %v26_v9 = vld [vmem:[%s2924_s0 + $0x48] sm:$0xff] }
  0x16   :  { %2984 = vst [vmem:[#allocation15_spill] sm:$0xff] %v2502_v4  ;;  %v2511_v28 = vand.u32 4294901760, %v25_v19  ;;  %v154_v2 = vand.u32 4294901760, %v2483_v44  ;;  %v342_v21 = vand.u32 4294901760, %v2488_v14  ;;  %v2987_v52 = vand.u32 4294901760, %v2291_v22 }
  0x17   :  { %1950 = vmatpush3.bf16.msra.mxu1 %v2361_v43  ;;  %2046 = vmatpush3.bf16.msra.mxu0 %v2361_v43  ;;  %2985 = vst [vmem:[#allocation16_spill] sm:$0xff] %v2506_v8  ;;  %v2988_v33 = vand.u32 4294901760, %v2296_v23  ;;  %v164_v44 = vand.u32 4294901760, %v2498_v53  ;;  %v2063_v20 = vpack.c.bf16 %v314_v0, %v307_v62  ;;  %v2536_v24 = vsub.f32 %v2458_v25, %v2942_v3 }
  0x18   :  { %1952 = vmatprep.subr.bf16.mxu1 %v2404_v60  ;;  %2048 = vmatprep.subr.bf16.mxu0 %v2404_v60  ;;  %2986 = vst [vmem:[#allocation17_spill] sm:$0xff] %v2511_v28  ;;  %v2523_v56 = vsub.f32 %v2291_v22, %v2987_v52  ;;  %v27_v52 = vld [vmem:[%s2924_s0 + $0x50] sm:$0xff]  ;;  %v2990_v62 = vand.u32 4294901760, %v2471_v57  ;;  %v323_v3 = vand.u32 4294901760, %v322_v29  ;;  %v2552_v22 = vsub.f32 %v25_v19, %v2511_v28  ;;  %v28_v29 = vld [vmem:[%s2924_s0 + $0x58] sm:$0xff] }
  0x19   :  { %v2528_v11 = vsub.f32 %v2296_v23, %v2988_v33  ;;  %v1967_v23 = vpack.c.bf16 %v316_v15, %v309_v54  ;;  %v2989_v33 = vand.u32 4294901760, %v2464_v34  ;;  %v2554_v43 = vand.u32 4294901760, %v26_v9 }
  0x1a   :  { %v336_v0 = vsub.f32 %v2471_v57, %v2990_v62  ;;  %v343_v54 = vsub.f32 %v2488_v14, %v342_v21  ;;  %v2561_v53 = vand.u32 4294901760, %v27_v52  ;;  %v2568_v19 = vpack.c.bf16 %v328_v50, %v321_v51 }
  0x1b   :  { %1954 = vmatpush3.bf16.msra.mxu1 %v2404_v60  ;;  %2050 = vmatpush3.bf16.msra.mxu0 %v2404_v60  ;;  %v330_v60 = vand.u32 4294901760, %v329_v12  ;;  %v174_v12 = vand.u32 4294901760, %v2536_v24  ;;  %v2991_v62 = vand.u32 4294901760, %v2502_v4  ;;  %v2993_v40 = vand.u32 4294901760, %v2506_v8 }
  0x1c   :  { %1956 = vmatprep.subr.bf16.mxu1 %v2439_v16  ;;  %2052 = vmatprep.subr.bf16.mxu0 %v2439_v16  ;;  %v337_v24 = vand.u32 4294901760, %v336_v0  ;;  %v2994_v51 = vand.u32 4294901760, %v2327_v32  ;;  %v2600_v0 = vand.u32 4294901760, %v28_v29 }
  0x1d   :  { %v2584_v27 = vsub.f32 %v2506_v8, %v2993_v40  ;;  %v2598_v40 = vsub.f32 %v26_v9, %v2554_v43 }
  0x1e   :  { %v2589_v50 = vsub.f32 %v2327_v32, %v2994_v51  ;;  %v344_v32 = vand.u32 4294901760, %v343_v54  ;;  %v2996_v51 = vand.u32 4294901760, %v2523_v56 }
  0x1f   :  { %1958 = vmatpush3.bf16.msra.mxu1 %v2439_v16  ;;  %2054 = vmatpush3.bf16.msra.mxu0 %v2439_v16  ;;  %v2545_v16 = vsub.f32 %v2464_v34, %v2989_v33  ;;  %v2992_v33 = vand.u32 4294901760, %v2319_v30 }
  0x20   :  { %1960 = vmatprep.subr.bf16.mxu1 %v2445_v7  ;;  %2056 = vmatprep.subr.bf16.mxu0 %v2445_v7  ;;  %v350_v31 = vsub.f32 %v2523_v56, %v2996_v51  ;;  %v2999_v51 = vand.u32 4294901760, %v2343_v38 }
  0x21   :  { %v2578_v15 = vsub.f32 %v2319_v30, %v2992_v33  ;;  %v184_v28 = vand.u32 4294901760, %v2545_v16  ;;  %v2995_v30 = vand.u32 4294901760, %v2351_v41  ;;  %v1971_v16 = vpack.c.bf16 %v330_v60, %v323_v3  ;;  %v30_v3 = vld [vmem:[%s2924_s0 + $0x68] sm:$0xff] }
  0x22   :  { %v2610_v60 = vsub.f32 %v27_v52, %v2561_v53  ;;  %v204_v52 = vand.u32 4294901760, %v2584_v27  ;;  %v3003_v27 = vand.u32 4294901760, %v2552_v22 }
  0x23   :  { %1962 = vmatpush3.bf16.msra.mxu1 %v2445_v7  ;;  %2058 = vmatpush3.bf16.msra.mxu0 %v2445_v7  ;;  %v2573_v7 = vsub.f32 %v2502_v4, %v2991_v62  ;;  %v29_v62 = vld [vmem:[%s2924_s0 + $0x60] sm:$0xff] }
  0x24   :  { %1964 = vmatprep.subr.bf16.mxu1 %v1963_v37  ;;  %2060 = vmatprep.subr.bf16.mxu0 %v2478_v58  ;;  %v2619_v54 = vand.u32 4294901760, %v29_v62 }
  0x26   :  { %1628 = vmatmul.mubr.f32.vlgmr.msra.gmra.mrb[0].mxu1 %v144_v55  ;;  %1796 = vmatmul.mubr.f32.vlgmr.msra.gmra.mrb[0].mxu0 %v2995_v30  ;;  %v2997_v55 = vand.u32 4294901760, %v2528_v11 }
  0x27   :  { %1966 = vmatpush3.bf16.msra.mxu1 %v1963_v37  ;;  %2062 = vmatpush3.bf16.msra.mxu0 %v2478_v58  ;;  %v2998_v37 = vand.u32 4294901760, %v2396_v59  ;;  %v194_v58 = vand.u32 4294901760, %v2573_v7  ;;  %v3001_v7 = vand.u32 4294901760, %v2348_v39  ;;  %v31_v59 = vld [vmem:[%s2924_s0 + $0x70] sm:$0xff] }
  0x28   :  { %v357_v30 = vsub.f32 %v2528_v11, %v2997_v55  ;;  %1630 = vmatprep.mubr.f32.mxu1 %v154_v2  ;;  %v2624_v55 = vsub.f32 %v2343_v38, %v2999_v51  ;;  %1968 = vmatprep.subr.bf16.mxu1 %v1967_v23  ;;  %v3000_v2 = vand.u32 4294901760, %v2471_v57  ;;  %v3002_v38 = vand.u32 4294901760, %v2407_v61 }
  0x29   :  { %1798 = vmatprep.mubr.f32.mxu0 %v2998_v37  ;;  %2064 = vmatprep.subr.bf16.mxu0 %v2063_v20  ;;  %v2633_v9 = vsub.f32 %v2348_v39, %v3001_v7  ;;  %v213_v51 = vsub.f32 %v2552_v22, %v3003_v27  ;;  %v2647_v37 = vand.u32 4294901760, %v30_v3  ;;  %v1975_v39 = vpack.c.bf16 %v344_v32, %v337_v24 }
  0x2a   :  { %v2071_v33 = vpack.c.bf16 %v342_v21, %v3000_v2  ;;  %1631 = vmatmul.mubr.f32.gmra.mrb[2].mxu1 %v164_v44  ;;  %1799 = vmatmul.mubr.f32.gmra.mrb[2].mxu0 %v3002_v38  ;;  %v2645_v2 = vsub.f32 %v28_v29, %v2600_v0  ;;  %v351_v7 = vand.u32 4294901760, %v350_v31  ;;  %v358_v41 = vand.u32 4294901760, %v357_v30  ;;  %v32_v38 = vld [vmem:[%s2924_s0 + $0x78] sm:$0xff] }
  0x2b   :  { %3005 = vst [vmem:[#allocation19_spill] sm:$0xff] %v2647_v37  ;;  %1970 = vmatpush3.bf16.msra.mxu1 %v1967_v23  ;;  %2066 = vmatpush3.bf16.msra.mxu0 %v2063_v20  ;;  %v3006_v27 = vand.u32 4294901760, %v2458_v25  ;;  %v3007_v29 = vand.u32 4294901760, %v2578_v15  ;;  %v2659_v23 = vsub.f32 %v29_v62, %v2619_v54  ;;  %v2662_v20 = vand.u32 4294901760, %v31_v59 }
  0x2c   :  { %3004 = vst [vmem:[#allocation18_spill] sm:$0xff] %v2645_v2  ;;  %1633 = vmatprep.mubr.f32.mxu1 %v174_v12  ;;  %1972 = vmatprep.subr.bf16.mxu1 %v1971_v16  ;;  %v3010_v24 = vand.u32 4294901760, %v2589_v50  ;;  %v384_v32 = vand.u32 4294901760, %v2633_v9  ;;  %v3011_v30 = vand.u32 4294901760, %v2367_v45  ;;  %v3012_v62 = vand.u32 4294901760, %v2372_v46 }
  0x2d   :  { %1801 = vmatprep.mubr.f32.mxu0 %v3006_v27  ;;  %v364_v21 = vsub.f32 %v2578_v15, %v3007_v29  ;;  %3008 = vst [vmem:[#allocation20_spill] sm:$0xff] %v2659_v23  ;;  %3009 = vst [vmem:[#allocation21_spill] sm:$0xff] %v2662_v20  ;;  %2068 = vmatprep.subr.bf16.mxu0 %v2568_v19  ;;  %v3013_v31 = vand.u32 4294901760, %v2464_v34  ;;  %v3014_v44 = vand.u32 4294901760, %v2598_v40  ;;  %v242_v25 = vand.u32 4294901760, %v2645_v2 }
  0x2e   :  { %v371_v12 = vsub.f32 %v2589_v50, %v3010_v24  ;;  %v2672_v27 = vsub.f32 %v2367_v45, %v3011_v30  ;;  %v2677_v29 = vsub.f32 %v2372_v46, %v3012_v62  ;;  %1634 = vmatmul.mubr.f32.gmra.mrb[4].mxu1 %v184_v28  ;;  %v2686_v61 = vsub.f32 %v30_v3, %v2647_v37 }
  0x2f   :  { %1802 = vmatmul.mubr.f32.gmra.mrb[4].mxu0 %v3013_v31  ;;  %v223_v24 = vsub.f32 %v2598_v40, %v3014_v44  ;;  %v2688_v45 = vand.u32 4294901760, %v32_v38  ;;  %1974 = vmatpush3.bf16.msra.mxu1 %v1971_v16  ;;  %v214_v46 = vand.u32 4294901760, %v213_v51  ;;  %v1979_v30 = vpack.c.bf16 %v358_v41, %v351_v7 }
  0x30   :  { %3015 = vst [vmem:[#allocation22_spill] sm:$0xff] %v2686_v61  ;;  %2070 = vmatpush3.bf16.msra.mxu0 %v2568_v19  ;;  %v3016_v28 = vand.u32 4294901760, %v2523_v56  ;;  %v3017_v31 = vand.u32 4294901760, %v2528_v11  ;;  %v3018_v34 = vand.u32 4294901760, %v2610_v60  ;;  %1636 = vmatprep.mubr.f32.mxu1 %v194_v58  ;;  %v3019_v3 = vand.u32 4294901760, %v2502_v4 }
  0x31   :  { %v365_v37 = vand.u32 4294901760, %v364_v21  ;;  %v252_v16 = vand.u32 4294901760, %v2659_v23  ;;  %v3020_v19 = vand.u32 4294901760, %v2624_v55  ;;  %v2705_v51 = vsub.f32 %v31_v59, %v2662_v20  ;;  %1976 = vmatprep.subr.bf16.mxu1 %v1975_v39  ;;  %2072 = vmatprep.subr.bf16.mxu0 %v2071_v33 }
  0x32   :  { %v2075_v62 = vpack.c.bf16 %v3017_v31, %v3016_v28  ;;  %v233_v44 = vsub.f32 %v2610_v60, %v3018_v34  ;;  %1804 = vmatprep.mubr.f32.mxu0 %v3019_v3  ;;  %v372_v7 = vand.u32 4294901760, %v371_v12  ;;  %v385_v28 = vsub.f32 %v2633_v9, %v384_v32  ;;  %1637 = vmatmul.mubr.f32.gmra.mrb[6].mxu1 %v204_v52 }
  0x33   :  { %v378_v41 = vsub.f32 %v2624_v55, %v3020_v19  ;;  %v391_v34 = vand.u32 4294901760, %v2672_v27  ;;  %v398_v58 = vand.u32 4294901760, %v2677_v29  ;;  %v3021_v21 = vand.u32 4294901760, %v2506_v8  ;;  %1978 = vmatpush3.bf16.msra.mxu1 %v1975_v39  ;;  %1639 = vmatprep.mubr.f32.mxu1 %v214_v46 }
  0x34   :  { %v224_v31 = vand.u32 4294901760, %v223_v24  ;;  %v243_v3 = vsub.f32 %v2645_v2, %v242_v25  ;;  %v262_v19 = vand.u32 4294901760, %v2686_v61  ;;  %v2715_v59 = vsub.f32 %v32_v38, %v2688_v45  ;;  %2074 = vmatpush3.bf16.msra.mxu0 %v2071_v33  ;;  %1980 = vmatprep.subr.bf16.mxu1 %v1979_v30 }
  0x35   :  { %1805 = vmatmul.mubr.f32.gmra.mrb[6].mxu0 %v3021_v21  ;;  %v234_v12 = vand.u32 4294901760, %v233_v44  ;;  %v3022_v4 = vand.u32 4294901760, %v2552_v22  ;;  %v3023_v52 = vand.u32 4294901760, %v2578_v15  ;;  %v3024_v8 = vand.u32 4294901760, %v2589_v50  ;;  %2076 = vmatprep.subr.bf16.mxu0 %v2075_v62 }
  0x36   :  { %v253_v24 = vsub.f32 %v2659_v23, %v252_v16  ;;  %v379_v2 = vand.u32 4294901760, %v378_v41  ;;  %v272_v20 = vand.u32 4294901760, %v2705_v51  ;;  %v1983_v38 = vpack.c.bf16 %v372_v7, %v365_v37  ;;  %1640 = vmatmul.mubr.f32.gmra.mrb[8].mxu1 %v224_v31 }
  0x37   :  { %1807 = vmatprep.mubr.f32.mxu0 %v3022_v4  ;;  %v2079_v21 = vpack.c.bf16 %v3024_v8, %v3023_v52  ;;  %v386_v39 = vand.u32 4294901760, %v385_v28  ;;  %v392_v33 = vsub.f32 %v2672_v27, %v391_v34  ;;  %v399_v46 = vsub.f32 %v2677_v29, %v398_v58  ;;  %1982 = vmatpush3.bf16.msra.mxu1 %v1979_v30 }
  0x38   :  { %v3025_v4 = vand.u32 4294901760, %v2598_v40  ;;  %v244_v44 = vand.u32 4294901760, %v243_v3  ;;  %v263_v8 = vsub.f32 %v2686_v61, %v262_v19  ;;  %v282_v52 = vand.u32 4294901760, %v2715_v59  ;;  %2078 = vmatpush3.bf16.msra.mxu0 %v2075_v62  ;;  %1642 = vmatprep.mubr.f32.mxu1 %v234_v12 }
  0x39   :  { %v3026_v41 = vand.u32 4294901760, %v2610_v60  ;;  %v254_v37 = vand.u32 4294901760, %v253_v24  ;;  %v273_v7 = vsub.f32 %v2705_v51, %v272_v20  ;;  %1984 = vmatprep.subr.bf16.mxu1 %v1983_v38  ;;  %2080 = vmatprep.subr.bf16.mxu0 %v2079_v21  ;;  %v1987_v28 = vpack.c.bf16 %v386_v39, %v379_v2 }
  0x3a   :  { %1808 = vmatmul.mubr.f32.gmra.mrb[8].mxu0 %v3025_v4  ;;  %v3027_v31 = vand.u32 4294901760, %v2624_v55  ;;  %v393_v3 = vand.u32 4294901760, %v392_v33  ;;  %v400_v23 = vand.u32 4294901760, %v399_v46  ;;  %1643 = vmatmul.mubr.f32.gmra.mrb[10].mxu1 %v244_v44  ;;  %v264_v61 = vand.u32 4294901760, %v263_v8 }
  0x3b   :  { %1810 = vmatprep.mubr.f32.mxu0 %v3026_v41  ;;  %v283_v30 = vsub.f32 %v2715_v59, %v282_v52  ;;  %1986 = vmatpush3.bf16.msra.mxu1 %v1983_v38  ;;  %v274_v62 = vand.u32 4294901760, %v273_v7  ;;  %v2087_v24 = vpack.c.bf16 %v398_v58, %v391_v34 }
  0x3c   :  { %v2083_v4 = vpack.c.bf16 %v384_v32, %v3027_v31  ;;  %2082 = vmatpush3.bf16.msra.mxu0 %v2079_v21  ;;  %1645 = vmatprep.mubr.f32.mxu1 %v254_v37  ;;  %v1991_v12 = vpack.c.bf16 %v400_v23, %v393_v3  ;;  %v3039_v23 = vld [vmem:[#allocation4_spill] sm:$0xff] }
  0x3d   :  { %1988 = vmatprep.subr.bf16.mxu1 %v1987_v28  ;;  %v284_v2 = vand.u32 4294901760, %v283_v30  ;;  %v3041_v32 = vld [vmem:[#allocation8_spill] sm:$0xff] }
  0x3e   :  { %1811 = vmatmul.mubr.f32.gmra.mrb[10].mxu0 %v242_v25  ;;  %2084 = vmatprep.subr.bf16.mxu0 %v2083_v4  ;;  %v1995_v25 = vpack.c.bf16 %v2335_v36, %v2333_v35  ;;  %v2003_v35 = vpack.c.bf16 %v2428_v6, %v2423_v5  ;;  %v3028_v36 = vld [vmem:[#allocation12_spill] sm:$0xff]  ;;  %v2015_v5 = vpack.c.bf16 %v2589_v50, %v2578_v15  ;;  %v3033_v6 = vld [vmem:[#allocation7_spill] sm:$0xff]  ;;  %v3036_v50 = vld [vmem:[#allocation21_spill] sm:$0xff] }
  0x3f   :  { %1813 = vmatprep.mubr.f32.mxu0 %v252_v16  ;;  %1646 = vmatmul.mubr.f32.gmra.mrb[12].mxu1 %v264_v61  ;;  %v1999_v61 = vpack.c.bf16 %v2378_v49, %v2376_v48  ;;  %v2011_v48 = vpack.c.bf16 %v2528_v11, %v2523_v56  ;;  %v3030_v49 = vld [vmem:[#allocation14_spill] sm:$0xff]  ;;  %v2019_v11 = vpack.c.bf16 %v2633_v9, %v2624_v55  ;;  %v3035_v15 = vld [vmem:[#allocation19_spill] sm:$0xff] }
  0x40   :  { %1990 = vmatpush3.bf16.msra.mxu1 %v1987_v28  ;;  %2086 = vmatpush3.bf16.msra.mxu0 %v2083_v4  ;;  %v2023_v56 = vpack.c.bf16 %v2677_v29, %v2672_v27  ;;  %v3037_v9 = vld [vmem:[#allocation10_spill] sm:$0xff]  ;;  %v3042_v27 = vld [vmem:[#allocation11_spill] sm:$0xff]  ;;  %v3043_v29 = vld [vmem:[#allocation13_spill] sm:$0xff] }
  0x41   :  { %1648 = vmatprep.mubr.f32.mxu1 %v274_v62  ;;  %1992 = vmatprep.subr.bf16.mxu1 %v1991_v12  ;;  %v3038_v55 = vld [vmem:[#allocation2_spill] sm:$0xff] }
  0x42   :  { %1814 = vmatmul.mubr.f32.gmra.mrb[12].mxu0 %v262_v19  ;;  %2088 = vmatprep.subr.bf16.mxu0 %v2087_v24 }
  0x43   :  { %1816 = vmatprep.mubr.f32.mxu0 %v272_v20  ;;  %1649 = vmatmul.mubr.f32.gmra.mrb[14].mxu1 %v284_v2  ;;  %v3040_v20 = vld [vmem:[#allocation6_spill] sm:$0xff] }
  0x44   :  { %1994 = vmatpush3.bf16.msra.mxu1 %v1991_v12  ;;  %2090 = vmatpush3.bf16.msra.mxu0 %v2087_v24 }
  0x45   :  { %1683 = vmatprep.mubr.f32.mxu1 %v2273_v17  ;;  %1996 = vmatprep.subr.bf16.mxu1 %v1995_v25 }
  0x46   :  { %1817 = vmatmul.mubr.f32.gmra.mrb[14].mxu0 %v282_v52  ;;  %2092 = vmatprep.subr.bf16.mxu0 %v2250_v10 }
  0x47   :  { %1851 = vmatprep.mubr.f32.mxu0 %v2273_v17  ;;  %1684 = vmatmul.mubr.f32.vlgmr.msra.gmra.mrb[0].mxu1 %v2304_v26 }
  0x48   :  { %1998 = vmatpush3.bf16.msra.mxu1 %v1995_v25  ;;  %1686 = vmatprep.mubr.f32.mxu1 %v2353_v42 }
  0x49   :  { %2000 = vmatprep.subr.bf16.mxu1 %v1999_v61 }
  0x4a   :  { %1852 = vmatmul.mubr.f32.vlgmr.msra.gmra.mrb[0].mxu0 %v2304_v26 }
  0x4b   :  { %2094 = vmatpush3.bf16.msra.mxu0 %v2250_v10  ;;  %1854 = vmatprep.mubr.f32.mxu0 %v2353_v42  ;;  %v2007_v10 = vpack.c.bf16 %v2488_v14, %v2471_v57  ;;  %v3031_v57 = vld [vmem:[#allocation17_spill] sm:$0xff] }
  0x4c   :  { %2096 = vmatprep.subr.bf16.mxu0 %v2254_v13  ;;  %1687 = vmatmul.mubr.f32.gmra.mrb[2].mxu1 %v2374_v47  ;;  %v3034_v14 = vld [vmem:[#allocation9_spill] sm:$0xff] }
  0x4d   :  { %2002 = vmatpush3.bf16.msra.mxu1 %v1999_v61  ;;  %1689 = vmatprep.mubr.f32.mxu1 %v2410_v63 }
  0x4e   :  { %1855 = vmatmul.mubr.f32.gmra.mrb[2].mxu0 %v2374_v47  ;;  %2004 = vmatprep.subr.bf16.mxu1 %v2003_v35 }
  0x4f   :  { %2098 = vmatpush3.bf16.msra.mxu0 %v2254_v13  ;;  %1857 = vmatprep.mubr.f32.mxu0 %v2410_v63  ;;  %v3029_v13 = vld [vmem:[#allocation3_spill] sm:$0xff] }
  0x50   :  { %2100 = vmatprep.subr.bf16.mxu0 %v2281_v18  ;;  %1690 = vmatmul.mubr.f32.gmra.mrb[4].mxu1 %v2413_v1 }
  0x51   :  { %2006 = vmatpush3.bf16.msra.mxu1 %v2003_v35  ;;  %1692 = vmatprep.mubr.f32.mxu1 %v3028_v36 }
  0x52   :  { %1858 = vmatmul.mubr.f32.gmra.mrb[4].mxu0 %v2413_v1  ;;  %2008 = vmatprep.subr.bf16.mxu1 %v2007_v10 }
  0x53   :  { %2102 = vmatpush3.bf16.msra.mxu0 %v2281_v18  ;;  %1860 = vmatprep.mubr.f32.mxu0 %v3028_v36  ;;  %v3032_v18 = vld [vmem:[#allocation5_spill] sm:$0xff] }
  0x54   :  { %2104 = vmatprep.subr.bf16.mxu0 %v3029_v13  ;;  %1693 = vmatmul.mubr.f32.gmra.mrb[6].mxu1 %v3030_v49 }
  0x55   :  { %2010 = vmatpush3.bf16.msra.mxu1 %v2007_v10  ;;  %1695 = vmatprep.mubr.f32.mxu1 %v3031_v57 }
  0x56   :  { %1861 = vmatmul.mubr.f32.gmra.mrb[6].mxu0 %v3030_v49  ;;  %2012 = vmatprep.subr.bf16.mxu1 %v2011_v48 }
  0x57   :  { %2106 = vmatpush3.bf16.msra.mxu0 %v3029_v13  ;;  %1863 = vmatprep.mubr.f32.mxu0 %v3031_v57 }
  0x58   :  { %2108 = vmatprep.subr.bf16.mxu0 %v3032_v18  ;;  %1696 = vmatmul.mubr.f32.gmra.mrb[8].mxu1 %v2554_v43 }
  0x59   :  { %2014 = vmatpush3.bf16.msra.mxu1 %v2011_v48  ;;  %1698 = vmatprep.mubr.f32.mxu1 %v2561_v53 }
  0x5a   :  { %1864 = vmatmul.mubr.f32.gmra.mrb[8].mxu0 %v2554_v43  ;;  %2016 = vmatprep.subr.bf16.mxu1 %v2015_v5 }
  0x5b   :  { %2110 = vmatpush3.bf16.msra.mxu0 %v3032_v18  ;;  %1866 = vmatprep.mubr.f32.mxu0 %v2561_v53 }
  0x5c   :  { %2112 = vmatprep.subr.bf16.mxu0 %v3033_v6  ;;  %1699 = vmatmul.mubr.f32.gmra.mrb[10].mxu1 %v2600_v0 }
  0x5d   :  { %2018 = vmatpush3.bf16.msra.mxu1 %v2015_v5  ;;  %1701 = vmatprep.mubr.f32.mxu1 %v2619_v54 }
  0x5e   :  { %1867 = vmatmul.mubr.f32.gmra.mrb[10].mxu0 %v2600_v0  ;;  %2020 = vmatprep.subr.bf16.mxu1 %v2019_v11 }
  0x5f   :  { %2114 = vmatpush3.bf16.msra.mxu0 %v3033_v6  ;;  %1869 = vmatprep.mubr.f32.mxu0 %v2619_v54 }
  0x60   :  { %2116 = vmatprep.subr.bf16.mxu0 %v3034_v14  ;;  %1702 = vmatmul.mubr.f32.gmra.mrb[12].mxu1 %v3035_v15 }
  0x61   :  { %2022 = vmatpush3.bf16.msra.mxu1 %v2019_v11  ;;  %1704 = vmatprep.mubr.f32.mxu1 %v3036_v50 }
  0x62   :  { %1870 = vmatmul.mubr.f32.gmra.mrb[12].mxu0 %v3035_v15  ;;  %2024 = vmatprep.subr.bf16.mxu1 %v2023_v56 }
  0x63   :  { %2118 = vmatpush3.bf16.msra.mxu0 %v3034_v14  ;;  %1872 = vmatprep.mubr.f32.mxu0 %v3036_v50 }
  0x64   :  { %2120 = vmatprep.subr.bf16.mxu0 %v3037_v9  ;;  %1705 = vmatmul.mubr.f32.gmra.mrb[14].mxu1 %v2688_v45 }
  0x65   :  { %2026 = vmatpush3.bf16.msra.mxu1 %v2023_v56  ;;  %1739 = vmatprep.mubr.f32.mxu1 %v3038_v55 }
  0x66   :  { %1873 = vmatmul.mubr.f32.gmra.mrb[14].mxu0 %v2688_v45 }
  0x67   :  { %2122 = vmatpush3.bf16.msra.mxu0 %v3037_v9  ;;  %1907 = vmatprep.mubr.f32.mxu0 %v2273_v17  ;;  %v3044_v17 = vld [vmem:[#allocation15_spill] sm:$0xff] }
  0x68   :  { %1740 = vmatmul.mubr.f32.vlgmr.msra.gmra.mrb[0].mxu1 %v3039_v23 }
  0x69   :  { %1742 = vmatprep.mubr.f32.mxu1 %v3040_v20 }
  0x6a   :  { %1908 = vmatmul.mubr.f32.vlgmr.msra.gmra.mrb[0].mxu0 %v2304_v26  ;;  %v3045_v26 = vld [vmem:[#allocation16_spill] sm:$0xff] }
  0x6b   :  { %1910 = vmatprep.mubr.f32.mxu0 %v2353_v42  ;;  %v3046_v42 = vld [vmem:[#allocation18_spill] sm:$0xff] }
  0x6c   :  { %1743 = vmatmul.mubr.f32.gmra.mrb[2].mxu1 %v3041_v32 }
  0x6d   :  { %1745 = vmatprep.mubr.f32.mxu1 %v3042_v27 }
  0x6e   :  { %1911 = vmatmul.mubr.f32.gmra.mrb[2].mxu0 %v2374_v47  ;;  %v3047_v47 = vld [vmem:[#allocation20_spill] sm:$0xff] }
  0x6f   :  { %1913 = vmatprep.mubr.f32.mxu0 %v2410_v63  ;;  %v3048_v63 = vld [vmem:[#allocation22_spill] sm:$0xff] }
  0x70   :  { %1746 = vmatmul.mubr.f32.gmra.mrb[4].mxu1 %v3043_v29 }
  0x71   :  { %1748 = vmatprep.mubr.f32.mxu1 %v3044_v17 }
  0x72   :  { %1914 = vmatmul.mubr.f32.gmra.mrb[4].mxu0 %v2413_v1 }
  0x73   :  { %1916 = vmatprep.mubr.f32.mxu0 %v3028_v36 }
  0x74   :  { %1749 = vmatmul.mubr.f32.gmra.mrb[6].mxu1 %v3045_v26 }
  0x75   :  { %1751 = vmatprep.mubr.f32.mxu1 %v2552_v22  ;;  %v2836_v22 = vld [vmem:[%s2925_s2] ss:$0 sm:$0xff] }
  0x76   :  { %1917 = vmatmul.mubr.f32.gmra.mrb[6].mxu0 %v3030_v49 }
  0x77   :  { %1919 = vmatprep.mubr.f32.mxu0 %v3031_v57 }
  0x78   :  { %1752 = vmatmul.mubr.f32.gmra.mrb[8].mxu1 %v2598_v40 }
  0x79   :  { %1754 = vmatprep.mubr.f32.mxu1 %v2610_v60  ;;  %v2841_v60 = vld [vmem:[%s2926_s3] ss:$0 sm:$0xff] }
  0x7a   :  { %1920 = vmatmul.mubr.f32.gmra.mrb[8].mxu0 %v2554_v43 }
  0x7b   :  { %1922 = vmatprep.mubr.f32.mxu0 %v2561_v53 }
  0x7c   :  { %1755 = vmatmul.mubr.f32.gmra.mrb[10].mxu1 %v3046_v42 }
  0x7d   :  { %1757 = vmatprep.mubr.f32.mxu1 %v3047_v47 }
  0x7e   :  { %1923 = vmatmul.mubr.f32.gmra.mrb[10].mxu0 %v2600_v0 }
  0x7f   :  { %1925 = vmatprep.mubr.f32.mxu0 %v2619_v54 }
  0x80   :  { %1758 = vmatmul.mubr.f32.gmra.mrb[12].mxu1 %v3048_v63 }
  0x81   :  { %1760 = vmatprep.mubr.f32.mxu1 %v2705_v51 }
  0x82   :  { %1926 = vmatmul.mubr.f32.gmra.mrb[12].mxu0 %v3035_v15 }
  0x83   :  { %1928 = vmatprep.mubr.f32.mxu0 %v3036_v50 }
  0x84   :  { %1761 = vmatmul.mubr.f32.gmra.mrb[14].mxu1 %v2715_v59 }
  0x86   :  { %1929 = vmatmul.mubr.f32.gmra.mrb[14].mxu0 %v2688_v45 }
 0x13b   :  { %v1741_v43 = vpop.f32.mrb[0].mxu1 }
 0x13c   :  { %v631_v40 = vpop.f32.mrb[1].mxu1 }
 0x13d   :  { %v1909_v1 = vpop.f32.mrb[0].mxu0 }
 0x13e   :  { %v2123_v53 = vadd.f32 %v1909_v1, %v1741_v43  ;;  %v1241_v0 = vpop.f32.mrb[1].mxu0 }
 0x13f   :  { %v2124_v54 = vadd.f32 %v1241_v0, %v631_v40  ;;  %v1744_v51 = vpop.f32.mrb[2].mxu1 }
 0x140   :  { %v1343_v16 = vmul.f32 %v2123_v53, %v2836_v22  ;;  %v645_v59 = vpop.f32.mrb[3].mxu1 }
 0x141   :  { %v1342_v45 = vmul.f32 %v2124_v54, %v2836_v22  ;;  %v1912_v34 = vpop.f32.mrb[2].mxu0 }
 0x142   :  { %v1366_v58 = vadd.f32 %v2841_v60, %v1343_v16  ;;  %v2125_v19 = vadd.f32 %v1912_v34, %v1744_v51  ;;  %v1253_v21 = vpop.f32.mrb[3].mxu0 }
 0x143   :  { %v1365_v38 = vadd.f32 %v2841_v60, %v1342_v45  ;;  %v2126_v39 = vadd.f32 %v1253_v21, %v645_v59  ;;  %v1747_v44 = vpop.f32.mrb[4].mxu1 }
 0x144   :  { %1382 = vst [vmem:[%s2927_s4 + $0x8] sm:$0xff] %v1366_v58  ;;  %v1345_v33 = vmul.f32 %v2125_v19, %v2836_v22  ;;  %v659_v37 = vpop.f32.mrb[5].mxu1 }
 0x145   :  { %1381 = vst [vmem:[%s2927_s4] sm:$0xff] %v1365_v38  ;;  %v1344_v46 = vmul.f32 %v2126_v39, %v2836_v22  ;;  %v1915_v8 = vpop.f32.mrb[4].mxu0 }
 0x146   :  { %v1368_v52 = vadd.f32 %v2841_v60, %v1345_v33  ;;  %v2127_v41 = vadd.f32 %v1915_v8, %v1747_v44  ;;  %v1265_v7 = vpop.f32.mrb[5].mxu0 }
 0x147   :  { %v1367_v28 = vadd.f32 %v2841_v60, %v1344_v46  ;;  %v2128_v31 = vadd.f32 %v1265_v7, %v659_v37  ;;  %v1750_v30 = vpop.f32.mrb[6].mxu1 }
 0x148   :  { %1384 = vst [vmem:[%s2927_s4 + $0x18] sm:$0xff] %v1368_v52  ;;  %v1347_v4 = vmul.f32 %v2127_v41, %v2836_v22  ;;  %v673_v2 = vpop.f32.mrb[7].mxu1 }
 0x149   :  { %1383 = vst [vmem:[%s2927_s4 + $0x10] sm:$0xff] %v1367_v28  ;;  %v1346_v3 = vmul.f32 %v2128_v31, %v2836_v22  ;;  %v1918_v62 = vpop.f32.mrb[6].mxu0 }
 0x14a   :  { %v1370_v12 = vadd.f32 %v2841_v60, %v1347_v4  ;;  %v2129_v24 = vadd.f32 %v1918_v62, %v1750_v30  ;;  %v1277_v25 = vpop.f32.mrb[7].mxu0 }
 0x14b   :  { %v1369_v61 = vadd.f32 %v2841_v60, %v1346_v3  ;;  %v2130_v35 = vadd.f32 %v1277_v25, %v673_v2  ;;  %v1753_v13 = vpop.f32.mrb[8].mxu1 }
 0x14c   :  { %1386 = vst [vmem:[%s2927_s4 + $0x28] sm:$0xff] %v1370_v12  ;;  %v1349_v10 = vmul.f32 %v2129_v24, %v2836_v22  ;;  %v687_v18 = vpop.f32.mrb[9].mxu1 }
 0x14d   :  { %1385 = vst [vmem:[%s2927_s4 + $0x20] sm:$0xff] %v1369_v61  ;;  %v1348_v36 = vmul.f32 %v2130_v35, %v2836_v22  ;;  %v1921_v48 = vpop.f32.mrb[8].mxu0 }
 0x14e   :  { %v1372_v49 = vadd.f32 %v2841_v60, %v1349_v10  ;;  %v2131_v57 = vadd.f32 %v1921_v48, %v1753_v13  ;;  %v1289_v5 = vpop.f32.mrb[9].mxu0 }
 0x14f   :  { %v1371_v6 = vadd.f32 %v2841_v60, %v1348_v36  ;;  %v2132_v11 = vadd.f32 %v1289_v5, %v687_v18  ;;  %v1756_v15 = vpop.f32.mrb[10].mxu1 }
 0x150   :  { %1388 = vst [vmem:[%s2927_s4 + $0x38] sm:$0xff] %v1372_v49  ;;  %v1351_v14 = vmul.f32 %v2131_v57, %v2836_v22  ;;  %v701_v23 = vpop.f32.mrb[11].mxu1 }
 0x151   :  { %1387 = vst [vmem:[%s2927_s4 + $0x30] sm:$0xff] %v1371_v6  ;;  %v1350_v56 = vmul.f32 %v2132_v11, %v2836_v22  ;;  %v1924_v50 = vpop.f32.mrb[10].mxu0 }
 0x152   :  { %v1374_v9 = vadd.f32 %v2841_v60, %v1351_v14  ;;  %v2133_v55 = vadd.f32 %v1924_v50, %v1756_v15  ;;  %v1301_v20 = vpop.f32.mrb[11].mxu0 }
 0x153   :  { %v1373_v32 = vadd.f32 %v2841_v60, %v1350_v56  ;;  %v2134_v27 = vadd.f32 %v1301_v20, %v701_v23  ;;  %v1759_v26 = vpop.f32.mrb[12].mxu1 }
 0x154   :  { %1390 = vst [vmem:[%s2927_s4 + $0x48] sm:$0xff] %v1374_v9  ;;  %v1353_v29 = vmul.f32 %v2133_v55, %v2836_v22  ;;  %v715_v43 = vpop.f32.mrb[13].mxu1 }
 0x155   :  { %1389 = vst [vmem:[%s2927_s4 + $0x40] sm:$0xff] %v1373_v32  ;;  %v1352_v17 = vmul.f32 %v2134_v27, %v2836_v22  ;;  %v1927_v42 = vpop.f32.mrb[12].mxu0 }
 0x156   :  { %v1376_v47 = vadd.f32 %v2841_v60, %v1353_v29  ;;  %v2135_v63 = vadd.f32 %v1927_v42, %v1759_v26  ;;  %v1313_v1 = vpop.f32.mrb[13].mxu0 }
 0x157   :  { %v1375_v53 = vadd.f32 %v2841_v60, %v1352_v17  ;;  %v2136_v40 = vadd.f32 %v1313_v1, %v715_v43  ;;  %v1762_v16 = vpop.f32.mrb[14].mxu1 }
 0x158   :  { %1392 = vst [vmem:[%s2927_s4 + $0x58] sm:$0xff] %v1376_v47  ;;  %v1355_v0 = vmul.f32 %v2135_v63, %v2836_v22  ;;  %v729_v58 = vpop.f32.mrb[15].mxu1 }
 0x159   :  { %1391 = vst [vmem:[%s2927_s4 + $0x50] sm:$0xff] %v1375_v53  ;;  %v1354_v54 = vmul.f32 %v2136_v40, %v2836_v22  ;;  %v1930_v45 = vpop.f32.mrb[14].mxu0 }
 0x15a   :  { %v1378_v51 = vadd.f32 %v2841_v60, %v1355_v0  ;;  %v2137_v34 = vadd.f32 %v1930_v45, %v1762_v16  ;;  %v1325_v19 = vpop.f32.mrb[15].mxu0 }
 0x15b   :  { %v1377_v59 = vadd.f32 %v2841_v60, %v1354_v54  ;;  %v2138_v21 = vadd.f32 %v1325_v19, %v729_v58 }
 0x15c   :  { %1394 = vst [vmem:[%s2927_s4 + $0x68] sm:$0xff] %v1378_v51  ;;  %v1357_v38 = vmul.f32 %v2137_v34, %v2836_v22 }
 0x15d   :  { %1393 = vst [vmem:[%s2927_s4 + $0x60] sm:$0xff] %v1377_v59  ;;  %v1356_v39 = vmul.f32 %v2138_v21, %v2836_v22 }
 0x15e   :  { %v1380_v33 = vadd.f32 %v2841_v60, %v1357_v38 }
 0x15f   :  { %v1379_v46 = vadd.f32 %v2841_v60, %v1356_v39 }
 0x160   :  { %1396 = vst [vmem:[%s2927_s4 + $0x78] sm:$0xff] %v1380_v33 }
 0x161   :  { %1395 = vst [vmem:[%s2927_s4 + $0x70] sm:$0xff] %v1379_v46 }

// kernel: residual_block_forward.4
= control target key start
LH: loop header
LB: loop body
LE: loop exit
PB: predicated region body
PF: predicated region fallthrough
CT: control target
= control target key end

     0   :  { %s2939_s1 = inlined_call_operand.vmem [shape: f32[128,128], index: 1, kind: input, shape index: {}]   ;;  %s2940_s0 = inlined_call_operand.vmem [shape: f32[128,128], index: 0, kind: input, shape index: {}]   ;;  %s2941_s2 = inlined_call_operand.vmem [shape: f32[1,128], index: 2, kind: input, shape index: {}]   ;;  %s2942_s3 = inlined_call_operand.vmem [shape: f32[1,128], index: 3, kind: input, shape index: {}]   ;;  %s2943_s4 = inlined_call_operand.vmem [shape: f32[128,128], index: 4, kind: output, shape index: {}]  }
   0x1   :  { %v33_v0 = vld [vmem:[%s2939_s1] sm:$0xff]  ;;  %v34_v1 = vld [vmem:[%s2939_s1 + $0x8] sm:$0xff]  ;;  %v35_v2 = vld [vmem:[%s2939_s1 + $0x10] sm:$0xff] }
   0x2   :  { %v50_v3 = vand.u32 4294901760, %v33_v0  ;;  %v53_v4 = vand.u32 4294901760, %v34_v1  ;;  %v36_v5 = vld [vmem:[%s2939_s1 + $0x18] sm:$0xff]  ;;  %v56_v6 = vand.u32 4294901760, %v35_v2  ;;  %v2259_v7 = vld [vmem:[%s2939_s1 + $0x20] sm:$0xff]  ;;  %v2264_v8 = vld [vmem:[%s2939_s1 + $0x28] sm:$0xff] }
   0x3   :  { %v59_v9 = vand.u32 4294901760, %v36_v5  ;;  %v62_v11 = vand.u32 4294901760, %v2259_v7  ;;  %v65_v12 = vand.u32 4294901760, %v2264_v8  ;;  %v2275_v14 = vld [vmem:[%s2939_s1 + $0x30] sm:$0xff]  ;;  %v2280_v15 = vld [vmem:[%s2939_s1 + $0x38] sm:$0xff]  ;;  %v17_v16 = vld [vmem:[%s2940_s0] sm:$0xff] }
   0x4   :  { %v2266_v10 = vpack.c.bf16 %v53_v4, %v50_v3  ;;  %v2289_v17 = vand.u32 4294901760, %v17_v16  ;;  %v68_v19 = vand.u32 4294901760, %v2275_v14  ;;  %v71_v20 = vand.u32 4294901760, %v2280_v15  ;;  %v18_v21 = vld [vmem:[%s2940_s0 + $0x8] sm:$0xff]  ;;  %v2307_v22 = vld [vmem:[%s2939_s1 + $0x40] sm:$0xff]  ;;  %v2335_v30 = vld [vmem:[%s2939_s1 + $0x50] sm:$0xff] }
   0x5   :  { %v2270_v13 = vpack.c.bf16 %v59_v9, %v56_v6  ;;  %v2297_v18 = vpack.c.bf16 %v65_v12, %v62_v11  ;;  %v2312_v23 = vld [vmem:[%s2939_s1 + $0x48] sm:$0xff]  ;;  %v2320_v26 = vand.u32 4294901760, %v18_v21  ;;  %v2954_v28 = vand.u32 4294901760, %v2307_v22  ;;  %v19_v31 = vld [vmem:[%s2940_s0 + $0x10] sm:$0xff]  ;;  %v2343_v32 = vld [vmem:[%s2939_s1 + $0x58] sm:$0xff] }
   0x6   :  { %1948 = vmatprep.subr.bf16.mxu1 %v2266_v10  ;;  %2044 = vmatprep.subr.bf16.mxu0 %v2266_v10  ;;  %v2315_v24 = vsub.f32 %v17_v16, %v2289_v17  ;;  %v2328_v27 = vpack.c.bf16 %v71_v20, %v68_v19  ;;  %v2952_v29 = vand.u32 4294901760, %v2312_v23  ;;  %v20_v34 = vld [vmem:[%s2940_s0 + $0x18] sm:$0xff]  ;;  %v2349_v35 = vsub.f32 %v33_v0, %v50_v3  ;;  %v2359_v38 = vld [vmem:[%s2939_s1 + $0x60] sm:$0xff]  ;;  %v2364_v39 = vld [vmem:[%s2939_s1 + $0x68] sm:$0xff] }
   0x7   :  { %1950 = vmatpush3.bf16.msra.mxu1 %v2266_v10  ;;  %2046 = vmatpush3.bf16.msra.mxu0 %v2266_v10  ;;  %v2351_v36 = vsub.f32 %v34_v1, %v53_v4  ;;  %v2951_v37 = vand.u32 4294901760, %v2335_v30  ;;  %v2367_v41 = vsub.f32 %v18_v21, %v2320_v26  ;;  %v2369_v42 = vand.u32 4294901760, %v19_v31  ;;  %v2383_v45 = vld [vmem:[%s2939_s1 + $0x70] sm:$0xff]  ;;  %v2388_v46 = vld [vmem:[%s2939_s1 + $0x78] sm:$0xff]  ;;  %v21_v50 = vld [vmem:[%s2940_s0 + $0x20] sm:$0xff] }
   0x8   :  { %1952 = vmatprep.subr.bf16.mxu1 %v2270_v13  ;;  %2048 = vmatprep.subr.bf16.mxu0 %v2270_v13  ;;  %2987 = vst [vmem:[#allocation2_spill] sm:$0xff] %v2315_v24  ;;  %v132_v25 = vand.u32 4294901760, %v2315_v24  ;;  %2988 = vst [vmem:[#allocation3_spill] sm:$0xff] %v2328_v27  ;;  %v2377_v43 = vpack.c.bf16 %v2952_v29, %v2954_v28  ;;  %v2949_v44 = vand.u32 4294901760, %v2343_v32  ;;  %v2390_v47 = vand.u32 4294901760, %v20_v34  ;;  %v22_v55 = vld [vmem:[%s2940_s0 + $0x28] sm:$0xff] }
   0x9   :  { %2989 = vst [vmem:[#allocation4_spill] sm:$0xff] %v2367_v41  ;;  %v2392_v48 = vsub.f32 %v35_v2, %v56_v6  ;;  %v2394_v49 = vsub.f32 %v36_v5, %v59_v9  ;;  %v2947_v51 = vand.u32 4294901760, %v2359_v38  ;;  %v2946_v52 = vand.u32 4294901760, %v2364_v39  ;;  %v23_v2 = vld [vmem:[%s2940_s0 + $0x30] sm:$0xff]  ;;  %v24_v9 = vld [vmem:[%s2940_s0 + $0x38] sm:$0xff] }
   0xa   :  { %v133_v33 = vsub.f32 %v2315_v24, %v132_v25  ;;  %1811 = vmatprep.mubr.f32.mxu0 %v132_v25  ;;  %2990 = vst [vmem:[#allocation5_spill] sm:$0xff] %v2377_v43  ;;  %v293_v53 = vand.u32 4294901760, %v2349_v35  ;;  %v300_v54 = vand.u32 4294901760, %v2351_v36  ;;  %v2945_v56 = vand.u32 4294901760, %v2383_v45 }
   0xb   :  { %1954 = vmatpush3.bf16.msra.mxu1 %v2270_v13  ;;  %2050 = vmatpush3.bf16.msra.mxu0 %v2270_v13  ;;  %v2944_v57 = vand.u32 4294901760, %v2388_v46  ;;  %v2948_v58 = vand.u32 4294901760, %v2367_v41  ;;  %v2412_v59 = vsub.f32 %v19_v31, %v2369_v42  ;;  %v2420_v60 = vpack.c.bf16 %v2949_v44, %v2951_v37 }
   0xc   :  { %1956 = vmatprep.subr.bf16.mxu1 %v2297_v18  ;;  %2052 = vmatprep.subr.bf16.mxu0 %v2297_v18  ;;  %v134_v40 = vand.u32 4294901760, %v133_v33  ;;  %v2423_v61 = vsub.f32 %v20_v34, %v2390_v47  ;;  %v307_v62 = vand.u32 4294901760, %v2392_v48  ;;  %v2426_v63 = vand.u32 4294901760, %v21_v50 }
   0xd   :  { %2991 = vst [vmem:[#allocation6_spill] sm:$0xff] %v2412_v59  ;;  %2992 = vst [vmem:[#allocation7_spill] sm:$0xff] %v2420_v60  ;;  %v314_v0 = vand.u32 4294901760, %v2394_v49  ;;  %v2429_v1 = vand.u32 4294901760, %v22_v55  ;;  %v294_v3 = vsub.f32 %v2349_v35, %v293_v53  ;;  %v301_v4 = vsub.f32 %v2351_v36, %v300_v54 }
   0xe   :  { %1643 = vmatprep.mubr.f32.mxu1 %v134_v40  ;;  %2993 = vst [vmem:[#allocation8_spill] sm:$0xff] %v2423_v61  ;;  %v2439_v5 = vsub.f32 %v2259_v7, %v62_v11  ;;  %v2444_v6 = vsub.f32 %v2264_v8, %v65_v12  ;;  %v2455_v16 = vpack.c.bf16 %v2946_v52, %v2947_v51  ;;  %v2950_v11 = vand.u32 4294901760, %v2412_v59 }
   0xf   :  { %1958 = vmatpush3.bf16.msra.mxu1 %v2297_v18  ;;  %2054 = vmatpush3.bf16.msra.mxu0 %v2297_v18  ;;  %v2461_v7 = vpack.c.bf16 %v2944_v57, %v2945_v56  ;;  %v2466_v8 = vsub.f32 %v2367_v41, %v2948_v58  ;;  %v2953_v12 = vand.u32 4294901760, %v2423_v61  ;;  %v308_v21 = vsub.f32 %v2392_v48, %v307_v62 }
  0x10   :  { %1960 = vmatprep.subr.bf16.mxu1 %v2328_v27  ;;  %2056 = vmatprep.subr.bf16.mxu0 %v2328_v27  ;;  %2994 = vst [vmem:[#allocation9_spill] sm:$0xff] %v2455_v16  ;;  %v2474_v25 = vsub.f32 %v21_v50, %v2426_v63  ;;  %v2476_v31 = vand.u32 4294901760, %v23_v2  ;;  %v315_v33 = vsub.f32 %v2394_v49, %v314_v0  ;;  %v2482_v40 = vand.u32 4294901760, %v24_v9 }
  0x11   :  { %2995 = vst [vmem:[#allocation10_spill] sm:$0xff] %v2461_v7  ;;  %v2480_v34 = vsub.f32 %v22_v55, %v2429_v1  ;;  %v2487_v57 = vsub.f32 %v2275_v14, %v68_v19  ;;  %v295_v56 = vand.u32 4294901760, %v294_v3  ;;  %v302_v52 = vand.u32 4294901760, %v301_v4  ;;  %v25_v19 = vld [vmem:[%s2940_s0 + $0x40] sm:$0xff] }
  0x12   :  { %2996 = vst [vmem:[#allocation11_spill] sm:$0xff] %v2474_v25  ;;  %2997 = vst [vmem:[#allocation12_spill] sm:$0xff] %v2476_v31  ;;  %v321_v51 = vand.u32 4294901760, %v2439_v5  ;;  %v328_v50 = vand.u32 4294901760, %v2444_v6  ;;  %v144_v55 = vand.u32 4294901760, %v2466_v8  ;;  %v2494_v58 = vpack.c.bf16 %v300_v54, %v293_v53 }
  0x13   :  { %1962 = vmatpush3.bf16.msra.mxu1 %v2328_v27  ;;  %2058 = vmatpush3.bf16.msra.mxu0 %v2328_v27  ;;  %2998 = vst [vmem:[#allocation13_spill] sm:$0xff] %v2480_v34  ;;  %2999 = vst [vmem:[#allocation14_spill] sm:$0xff] %v2482_v40  ;;  %v2499_v44 = vsub.f32 %v2412_v59, %v2950_v11  ;;  %v2504_v14 = vsub.f32 %v2280_v15, %v71_v20  ;;  %v309_v54 = vand.u32 4294901760, %v308_v21 }
  0x14   :  { %1964 = vmatprep.subr.bf16.mxu1 %v2377_v43  ;;  %2060 = vmatprep.subr.bf16.mxu0 %v2377_v43  ;;  %v2514_v53 = vsub.f32 %v2423_v61, %v2953_v12  ;;  %v2958_v3 = vand.u32 4294901760, %v2474_v25  ;;  %v2518_v4 = vsub.f32 %v23_v2, %v2476_v31  ;;  %v316_v15 = vand.u32 4294901760, %v315_v33 }
  0x15   :  { %v2522_v8 = vsub.f32 %v24_v9, %v2482_v40  ;;  %v1979_v37 = vpack.c.bf16 %v302_v52, %v295_v56  ;;  %v322_v29 = vsub.f32 %v2439_v5, %v321_v51  ;;  %v329_v12 = vsub.f32 %v2444_v6, %v328_v50  ;;  %v26_v9 = vld [vmem:[%s2940_s0 + $0x48] sm:$0xff] }
  0x16   :  { %3000 = vst [vmem:[#allocation15_spill] sm:$0xff] %v2518_v4  ;;  %v2527_v28 = vand.u32 4294901760, %v25_v19  ;;  %v154_v2 = vand.u32 4294901760, %v2499_v44  ;;  %v342_v21 = vand.u32 4294901760, %v2504_v14  ;;  %v3003_v52 = vand.u32 4294901760, %v2307_v22 }
  0x17   :  { %1966 = vmatpush3.bf16.msra.mxu1 %v2377_v43  ;;  %2062 = vmatpush3.bf16.msra.mxu0 %v2377_v43  ;;  %3001 = vst [vmem:[#allocation16_spill] sm:$0xff] %v2522_v8  ;;  %v3004_v33 = vand.u32 4294901760, %v2312_v23  ;;  %v164_v44 = vand.u32 4294901760, %v2514_v53  ;;  %v2079_v20 = vpack.c.bf16 %v314_v0, %v307_v62  ;;  %v2552_v24 = vsub.f32 %v2474_v25, %v2958_v3 }
  0x18   :  { %1968 = vmatprep.subr.bf16.mxu1 %v2420_v60  ;;  %2064 = vmatprep.subr.bf16.mxu0 %v2420_v60  ;;  %3002 = vst [vmem:[#allocation17_spill] sm:$0xff] %v2527_v28  ;;  %v2539_v56 = vsub.f32 %v2307_v22, %v3003_v52  ;;  %v27_v52 = vld [vmem:[%s2940_s0 + $0x50] sm:$0xff]  ;;  %v3006_v62 = vand.u32 4294901760, %v2487_v57  ;;  %v323_v3 = vand.u32 4294901760, %v322_v29  ;;  %v2568_v22 = vsub.f32 %v25_v19, %v2527_v28  ;;  %v28_v29 = vld [vmem:[%s2940_s0 + $0x58] sm:$0xff] }
  0x19   :  { %v2544_v11 = vsub.f32 %v2312_v23, %v3004_v33  ;;  %v1983_v23 = vpack.c.bf16 %v316_v15, %v309_v54  ;;  %v3005_v33 = vand.u32 4294901760, %v2480_v34  ;;  %v2570_v43 = vand.u32 4294901760, %v26_v9 }
  0x1a   :  { %v336_v0 = vsub.f32 %v2487_v57, %v3006_v62  ;;  %v343_v54 = vsub.f32 %v2504_v14, %v342_v21  ;;  %v2577_v53 = vand.u32 4294901760, %v27_v52  ;;  %v2584_v19 = vpack.c.bf16 %v328_v50, %v321_v51 }
  0x1b   :  { %1970 = vmatpush3.bf16.msra.mxu1 %v2420_v60  ;;  %2066 = vmatpush3.bf16.msra.mxu0 %v2420_v60  ;;  %v330_v60 = vand.u32 4294901760, %v329_v12  ;;  %v174_v12 = vand.u32 4294901760, %v2552_v24  ;;  %v3007_v62 = vand.u32 4294901760, %v2518_v4  ;;  %v3009_v40 = vand.u32 4294901760, %v2522_v8 }
  0x1c   :  { %1972 = vmatprep.subr.bf16.mxu1 %v2455_v16  ;;  %2068 = vmatprep.subr.bf16.mxu0 %v2455_v16  ;;  %v337_v24 = vand.u32 4294901760, %v336_v0  ;;  %v3010_v51 = vand.u32 4294901760, %v2343_v32  ;;  %v2616_v0 = vand.u32 4294901760, %v28_v29 }
  0x1d   :  { %v2600_v27 = vsub.f32 %v2522_v8, %v3009_v40  ;;  %v2614_v40 = vsub.f32 %v26_v9, %v2570_v43 }
  0x1e   :  { %v2605_v50 = vsub.f32 %v2343_v32, %v3010_v51  ;;  %v344_v32 = vand.u32 4294901760, %v343_v54  ;;  %v3012_v51 = vand.u32 4294901760, %v2539_v56 }
  0x1f   :  { %1974 = vmatpush3.bf16.msra.mxu1 %v2455_v16  ;;  %2070 = vmatpush3.bf16.msra.mxu0 %v2455_v16  ;;  %v2561_v16 = vsub.f32 %v2480_v34, %v3005_v33  ;;  %v3008_v33 = vand.u32 4294901760, %v2335_v30 }
  0x20   :  { %1976 = vmatprep.subr.bf16.mxu1 %v2461_v7  ;;  %2072 = vmatprep.subr.bf16.mxu0 %v2461_v7  ;;  %v350_v31 = vsub.f32 %v2539_v56, %v3012_v51  ;;  %v3015_v51 = vand.u32 4294901760, %v2359_v38 }
  0x21   :  { %v2594_v15 = vsub.f32 %v2335_v30, %v3008_v33  ;;  %v184_v28 = vand.u32 4294901760, %v2561_v16  ;;  %v3011_v30 = vand.u32 4294901760, %v2367_v41  ;;  %v1987_v16 = vpack.c.bf16 %v330_v60, %v323_v3  ;;  %v30_v3 = vld [vmem:[%s2940_s0 + $0x68] sm:$0xff] }
  0x22   :  { %v2626_v60 = vsub.f32 %v27_v52, %v2577_v53  ;;  %v204_v52 = vand.u32 4294901760, %v2600_v27  ;;  %v3019_v27 = vand.u32 4294901760, %v2568_v22 }
  0x23   :  { %1978 = vmatpush3.bf16.msra.mxu1 %v2461_v7  ;;  %2074 = vmatpush3.bf16.msra.mxu0 %v2461_v7  ;;  %v2589_v7 = vsub.f32 %v2518_v4, %v3007_v62  ;;  %v29_v62 = vld [vmem:[%s2940_s0 + $0x60] sm:$0xff] }
  0x24   :  { %1980 = vmatprep.subr.bf16.mxu1 %v1979_v37  ;;  %2076 = vmatprep.subr.bf16.mxu0 %v2494_v58  ;;  %v2635_v54 = vand.u32 4294901760, %v29_v62 }
  0x26   :  { %1644 = vmatmul.mubr.f32.vlgmr.msra.gmra.mrb[0].mxu1 %v144_v55  ;;  %1812 = vmatmul.mubr.f32.vlgmr.msra.gmra.mrb[0].mxu0 %v3011_v30  ;;  %v3013_v55 = vand.u32 4294901760, %v2544_v11 }
  0x27   :  { %1982 = vmatpush3.bf16.msra.mxu1 %v1979_v37  ;;  %2078 = vmatpush3.bf16.msra.mxu0 %v2494_v58  ;;  %v3014_v37 = vand.u32 4294901760, %v2412_v59  ;;  %v194_v58 = vand.u32 4294901760, %v2589_v7  ;;  %v3017_v7 = vand.u32 4294901760, %v2364_v39  ;;  %v31_v59 = vld [vmem:[%s2940_s0 + $0x70] sm:$0xff] }
  0x28   :  { %v357_v30 = vsub.f32 %v2544_v11, %v3013_v55  ;;  %1646 = vmatprep.mubr.f32.mxu1 %v154_v2  ;;  %v2640_v55 = vsub.f32 %v2359_v38, %v3015_v51  ;;  %1984 = vmatprep.subr.bf16.mxu1 %v1983_v23  ;;  %v3016_v2 = vand.u32 4294901760, %v2487_v57  ;;  %v3018_v38 = vand.u32 4294901760, %v2423_v61 }
  0x29   :  { %1814 = vmatprep.mubr.f32.mxu0 %v3014_v37  ;;  %2080 = vmatprep.subr.bf16.mxu0 %v2079_v20  ;;  %v2649_v9 = vsub.f32 %v2364_v39, %v3017_v7  ;;  %v213_v51 = vsub.f32 %v2568_v22, %v3019_v27  ;;  %v2663_v37 = vand.u32 4294901760, %v30_v3  ;;  %v1991_v39 = vpack.c.bf16 %v344_v32, %v337_v24 }
  0x2a   :  { %v2087_v33 = vpack.c.bf16 %v342_v21, %v3016_v2  ;;  %1647 = vmatmul.mubr.f32.gmra.mrb[2].mxu1 %v164_v44  ;;  %1815 = vmatmul.mubr.f32.gmra.mrb[2].mxu0 %v3018_v38  ;;  %v2661_v2 = vsub.f32 %v28_v29, %v2616_v0  ;;  %v351_v7 = vand.u32 4294901760, %v350_v31  ;;  %v358_v41 = vand.u32 4294901760, %v357_v30  ;;  %v32_v38 = vld [vmem:[%s2940_s0 + $0x78] sm:$0xff] }
  0x2b   :  { %3021 = vst [vmem:[#allocation19_spill] sm:$0xff] %v2663_v37  ;;  %1986 = vmatpush3.bf16.msra.mxu1 %v1983_v23  ;;  %2082 = vmatpush3.bf16.msra.mxu0 %v2079_v20  ;;  %v3022_v27 = vand.u32 4294901760, %v2474_v25  ;;  %v3023_v29 = vand.u32 4294901760, %v2594_v15  ;;  %v2675_v23 = vsub.f32 %v29_v62, %v2635_v54  ;;  %v2678_v20 = vand.u32 4294901760, %v31_v59 }
  0x2c   :  { %3020 = vst [vmem:[#allocation18_spill] sm:$0xff] %v2661_v2  ;;  %1649 = vmatprep.mubr.f32.mxu1 %v174_v12  ;;  %1988 = vmatprep.subr.bf16.mxu1 %v1987_v16  ;;  %v3026_v24 = vand.u32 4294901760, %v2605_v50  ;;  %v384_v32 = vand.u32 4294901760, %v2649_v9  ;;  %v3027_v30 = vand.u32 4294901760, %v2383_v45  ;;  %v3028_v62 = vand.u32 4294901760, %v2388_v46 }
  0x2d   :  { %1817 = vmatprep.mubr.f32.mxu0 %v3022_v27  ;;  %v364_v21 = vsub.f32 %v2594_v15, %v3023_v29  ;;  %3024 = vst [vmem:[#allocation20_spill] sm:$0xff] %v2675_v23  ;;  %3025 = vst [vmem:[#allocation21_spill] sm:$0xff] %v2678_v20  ;;  %2084 = vmatprep.subr.bf16.mxu0 %v2584_v19  ;;  %v3029_v31 = vand.u32 4294901760, %v2480_v34  ;;  %v3030_v44 = vand.u32 4294901760, %v2614_v40  ;;  %v242_v25 = vand.u32 4294901760, %v2661_v2 }
  0x2e   :  { %v371_v12 = vsub.f32 %v2605_v50, %v3026_v24  ;;  %v2688_v27 = vsub.f32 %v2383_v45, %v3027_v30  ;;  %v2693_v29 = vsub.f32 %v2388_v46, %v3028_v62  ;;  %1650 = vmatmul.mubr.f32.gmra.mrb[4].mxu1 %v184_v28  ;;  %v2702_v61 = vsub.f32 %v30_v3, %v2663_v37 }
  0x2f   :  { %1818 = vmatmul.mubr.f32.gmra.mrb[4].mxu0 %v3029_v31  ;;  %v223_v24 = vsub.f32 %v2614_v40, %v3030_v44  ;;  %v2704_v45 = vand.u32 4294901760, %v32_v38  ;;  %1990 = vmatpush3.bf16.msra.mxu1 %v1987_v16  ;;  %v214_v46 = vand.u32 4294901760, %v213_v51  ;;  %v1995_v30 = vpack.c.bf16 %v358_v41, %v351_v7 }
  0x30   :  { %3031 = vst [vmem:[#allocation22_spill] sm:$0xff] %v2702_v61  ;;  %2086 = vmatpush3.bf16.msra.mxu0 %v2584_v19  ;;  %v3032_v28 = vand.u32 4294901760, %v2539_v56  ;;  %v3033_v31 = vand.u32 4294901760, %v2544_v11  ;;  %v3034_v34 = vand.u32 4294901760, %v2626_v60  ;;  %1652 = vmatprep.mubr.f32.mxu1 %v194_v58  ;;  %v3035_v3 = vand.u32 4294901760, %v2518_v4 }
  0x31   :  { %v365_v37 = vand.u32 4294901760, %v364_v21  ;;  %v252_v16 = vand.u32 4294901760, %v2675_v23  ;;  %v3036_v19 = vand.u32 4294901760, %v2640_v55  ;;  %v2721_v51 = vsub.f32 %v31_v59, %v2678_v20  ;;  %1992 = vmatprep.subr.bf16.mxu1 %v1991_v39  ;;  %2088 = vmatprep.subr.bf16.mxu0 %v2087_v33 }
  0x32   :  { %v2091_v62 = vpack.c.bf16 %v3033_v31, %v3032_v28  ;;  %v233_v44 = vsub.f32 %v2626_v60, %v3034_v34  ;;  %1820 = vmatprep.mubr.f32.mxu0 %v3035_v3  ;;  %v372_v7 = vand.u32 4294901760, %v371_v12  ;;  %v385_v28 = vsub.f32 %v2649_v9, %v384_v32  ;;  %1653 = vmatmul.mubr.f32.gmra.mrb[6].mxu1 %v204_v52 }
  0x33   :  { %v378_v41 = vsub.f32 %v2640_v55, %v3036_v19  ;;  %v391_v34 = vand.u32 4294901760, %v2688_v27  ;;  %v398_v58 = vand.u32 4294901760, %v2693_v29  ;;  %v3037_v21 = vand.u32 4294901760, %v2522_v8  ;;  %1994 = vmatpush3.bf16.msra.mxu1 %v1991_v39  ;;  %1655 = vmatprep.mubr.f32.mxu1 %v214_v46 }
  0x34   :  { %v224_v31 = vand.u32 4294901760, %v223_v24  ;;  %v243_v3 = vsub.f32 %v2661_v2, %v242_v25  ;;  %v262_v19 = vand.u32 4294901760, %v2702_v61  ;;  %v2731_v59 = vsub.f32 %v32_v38, %v2704_v45  ;;  %2090 = vmatpush3.bf16.msra.mxu0 %v2087_v33  ;;  %1996 = vmatprep.subr.bf16.mxu1 %v1995_v30 }
  0x35   :  { %1821 = vmatmul.mubr.f32.gmra.mrb[6].mxu0 %v3037_v21  ;;  %v234_v12 = vand.u32 4294901760, %v233_v44  ;;  %v3038_v4 = vand.u32 4294901760, %v2568_v22  ;;  %v3039_v52 = vand.u32 4294901760, %v2594_v15  ;;  %v3040_v8 = vand.u32 4294901760, %v2605_v50  ;;  %2092 = vmatprep.subr.bf16.mxu0 %v2091_v62 }
  0x36   :  { %v253_v24 = vsub.f32 %v2675_v23, %v252_v16  ;;  %v379_v2 = vand.u32 4294901760, %v378_v41  ;;  %v272_v20 = vand.u32 4294901760, %v2721_v51  ;;  %v1999_v38 = vpack.c.bf16 %v372_v7, %v365_v37  ;;  %1656 = vmatmul.mubr.f32.gmra.mrb[8].mxu1 %v224_v31 }
  0x37   :  { %1823 = vmatprep.mubr.f32.mxu0 %v3038_v4  ;;  %v2095_v21 = vpack.c.bf16 %v3040_v8, %v3039_v52  ;;  %v386_v39 = vand.u32 4294901760, %v385_v28  ;;  %v392_v33 = vsub.f32 %v2688_v27, %v391_v34  ;;  %v399_v46 = vsub.f32 %v2693_v29, %v398_v58  ;;  %1998 = vmatpush3.bf16.msra.mxu1 %v1995_v30 }
  0x38   :  { %v3041_v4 = vand.u32 4294901760, %v2614_v40  ;;  %v244_v44 = vand.u32 4294901760, %v243_v3  ;;  %v263_v8 = vsub.f32 %v2702_v61, %v262_v19  ;;  %v282_v52 = vand.u32 4294901760, %v2731_v59  ;;  %2094 = vmatpush3.bf16.msra.mxu0 %v2091_v62  ;;  %1658 = vmatprep.mubr.f32.mxu1 %v234_v12 }
  0x39   :  { %v3042_v41 = vand.u32 4294901760, %v2626_v60  ;;  %v254_v37 = vand.u32 4294901760, %v253_v24  ;;  %v273_v7 = vsub.f32 %v2721_v51, %v272_v20  ;;  %2000 = vmatprep.subr.bf16.mxu1 %v1999_v38  ;;  %2096 = vmatprep.subr.bf16.mxu0 %v2095_v21  ;;  %v2003_v28 = vpack.c.bf16 %v386_v39, %v379_v2 }
  0x3a   :  { %1824 = vmatmul.mubr.f32.gmra.mrb[8].mxu0 %v3041_v4  ;;  %v3043_v31 = vand.u32 4294901760, %v2640_v55  ;;  %v393_v3 = vand.u32 4294901760, %v392_v33  ;;  %v400_v23 = vand.u32 4294901760, %v399_v46  ;;  %1659 = vmatmul.mubr.f32.gmra.mrb[10].mxu1 %v244_v44  ;;  %v264_v61 = vand.u32 4294901760, %v263_v8 }
  0x3b   :  { %1826 = vmatprep.mubr.f32.mxu0 %v3042_v41  ;;  %v283_v30 = vsub.f32 %v2731_v59, %v282_v52  ;;  %2002 = vmatpush3.bf16.msra.mxu1 %v1999_v38  ;;  %v274_v62 = vand.u32 4294901760, %v273_v7  ;;  %v2103_v24 = vpack.c.bf16 %v398_v58, %v391_v34 }
  0x3c   :  { %v2099_v4 = vpack.c.bf16 %v384_v32, %v3043_v31  ;;  %2098 = vmatpush3.bf16.msra.mxu0 %v2095_v21  ;;  %1661 = vmatprep.mubr.f32.mxu1 %v254_v37  ;;  %v2007_v12 = vpack.c.bf16 %v400_v23, %v393_v3  ;;  %v3055_v23 = vld [vmem:[#allocation4_spill] sm:$0xff] }
  0x3d   :  { %2004 = vmatprep.subr.bf16.mxu1 %v2003_v28  ;;  %v284_v2 = vand.u32 4294901760, %v283_v30  ;;  %v3057_v32 = vld [vmem:[#allocation8_spill] sm:$0xff] }
  0x3e   :  { %1827 = vmatmul.mubr.f32.gmra.mrb[10].mxu0 %v242_v25  ;;  %2100 = vmatprep.subr.bf16.mxu0 %v2099_v4  ;;  %v2011_v25 = vpack.c.bf16 %v2351_v36, %v2349_v35  ;;  %v2019_v35 = vpack.c.bf16 %v2444_v6, %v2439_v5  ;;  %v3044_v36 = vld [vmem:[#allocation12_spill] sm:$0xff]  ;;  %v2031_v5 = vpack.c.bf16 %v2605_v50, %v2594_v15  ;;  %v3049_v6 = vld [vmem:[#allocation7_spill] sm:$0xff]  ;;  %v3052_v50 = vld [vmem:[#allocation21_spill] sm:$0xff] }
  0x3f   :  { %1829 = vmatprep.mubr.f32.mxu0 %v252_v16  ;;  %1662 = vmatmul.mubr.f32.gmra.mrb[12].mxu1 %v264_v61  ;;  %v2015_v61 = vpack.c.bf16 %v2394_v49, %v2392_v48  ;;  %v2027_v48 = vpack.c.bf16 %v2544_v11, %v2539_v56  ;;  %v3046_v49 = vld [vmem:[#allocation14_spill] sm:$0xff]  ;;  %v2035_v11 = vpack.c.bf16 %v2649_v9, %v2640_v55  ;;  %v3051_v15 = vld [vmem:[#allocation19_spill] sm:$0xff] }
  0x40   :  { %2006 = vmatpush3.bf16.msra.mxu1 %v2003_v28  ;;  %2102 = vmatpush3.bf16.msra.mxu0 %v2099_v4  ;;  %v2039_v56 = vpack.c.bf16 %v2693_v29, %v2688_v27  ;;  %v3053_v9 = vld [vmem:[#allocation10_spill] sm:$0xff]  ;;  %v3058_v27 = vld [vmem:[#allocation11_spill] sm:$0xff]  ;;  %v3059_v29 = vld [vmem:[#allocation13_spill] sm:$0xff] }
  0x41   :  { %1664 = vmatprep.mubr.f32.mxu1 %v274_v62  ;;  %2008 = vmatprep.subr.bf16.mxu1 %v2007_v12  ;;  %v3054_v55 = vld [vmem:[#allocation2_spill] sm:$0xff] }
  0x42   :  { %1830 = vmatmul.mubr.f32.gmra.mrb[12].mxu0 %v262_v19  ;;  %2104 = vmatprep.subr.bf16.mxu0 %v2103_v24 }
  0x43   :  { %1832 = vmatprep.mubr.f32.mxu0 %v272_v20  ;;  %1665 = vmatmul.mubr.f32.gmra.mrb[14].mxu1 %v284_v2  ;;  %v3056_v20 = vld [vmem:[#allocation6_spill] sm:$0xff] }
  0x44   :  { %2010 = vmatpush3.bf16.msra.mxu1 %v2007_v12  ;;  %2106 = vmatpush3.bf16.msra.mxu0 %v2103_v24 }
  0x45   :  { %1699 = vmatprep.mubr.f32.mxu1 %v2289_v17  ;;  %2012 = vmatprep.subr.bf16.mxu1 %v2011_v25 }
  0x46   :  { %1833 = vmatmul.mubr.f32.gmra.mrb[14].mxu0 %v282_v52  ;;  %2108 = vmatprep.subr.bf16.mxu0 %v2266_v10 }
  0x47   :  { %1867 = vmatprep.mubr.f32.mxu0 %v2289_v17  ;;  %1700 = vmatmul.mubr.f32.vlgmr.msra.gmra.mrb[0].mxu1 %v2320_v26 }
  0x48   :  { %2014 = vmatpush3.bf16.msra.mxu1 %v2011_v25  ;;  %1702 = vmatprep.mubr.f32.mxu1 %v2369_v42 }
  0x49   :  { %2016 = vmatprep.subr.bf16.mxu1 %v2015_v61 }
  0x4a   :  { %1868 = vmatmul.mubr.f32.vlgmr.msra.gmra.mrb[0].mxu0 %v2320_v26 }
  0x4b   :  { %2110 = vmatpush3.bf16.msra.mxu0 %v2266_v10  ;;  %1870 = vmatprep.mubr.f32.mxu0 %v2369_v42  ;;  %v2023_v10 = vpack.c.bf16 %v2504_v14, %v2487_v57  ;;  %v3047_v57 = vld [vmem:[#allocation17_spill] sm:$0xff] }
  0x4c   :  { %2112 = vmatprep.subr.bf16.mxu0 %v2270_v13  ;;  %1703 = vmatmul.mubr.f32.gmra.mrb[2].mxu1 %v2390_v47  ;;  %v3050_v14 = vld [vmem:[#allocation9_spill] sm:$0xff] }
  0x4d   :  { %2018 = vmatpush3.bf16.msra.mxu1 %v2015_v61  ;;  %1705 = vmatprep.mubr.f32.mxu1 %v2426_v63 }
  0x4e   :  { %1871 = vmatmul.mubr.f32.gmra.mrb[2].mxu0 %v2390_v47  ;;  %2020 = vmatprep.subr.bf16.mxu1 %v2019_v35 }
  0x4f   :  { %2114 = vmatpush3.bf16.msra.mxu0 %v2270_v13  ;;  %1873 = vmatprep.mubr.f32.mxu0 %v2426_v63  ;;  %v3045_v13 = vld [vmem:[#allocation3_spill] sm:$0xff] }
  0x50   :  { %2116 = vmatprep.subr.bf16.mxu0 %v2297_v18  ;;  %1706 = vmatmul.mubr.f32.gmra.mrb[4].mxu1 %v2429_v1 }
  0x51   :  { %2022 = vmatpush3.bf16.msra.mxu1 %v2019_v35  ;;  %1708 = vmatprep.mubr.f32.mxu1 %v3044_v36 }
  0x52   :  { %1874 = vmatmul.mubr.f32.gmra.mrb[4].mxu0 %v2429_v1  ;;  %2024 = vmatprep.subr.bf16.mxu1 %v2023_v10 }
  0x53   :  { %2118 = vmatpush3.bf16.msra.mxu0 %v2297_v18  ;;  %1876 = vmatprep.mubr.f32.mxu0 %v3044_v36  ;;  %v3048_v18 = vld [vmem:[#allocation5_spill] sm:$0xff] }
  0x54   :  { %2120 = vmatprep.subr.bf16.mxu0 %v3045_v13  ;;  %1709 = vmatmul.mubr.f32.gmra.mrb[6].mxu1 %v3046_v49 }
  0x55   :  { %2026 = vmatpush3.bf16.msra.mxu1 %v2023_v10  ;;  %1711 = vmatprep.mubr.f32.mxu1 %v3047_v57 }
  0x56   :  { %1877 = vmatmul.mubr.f32.gmra.mrb[6].mxu0 %v3046_v49  ;;  %2028 = vmatprep.subr.bf16.mxu1 %v2027_v48 }
  0x57   :  { %2122 = vmatpush3.bf16.msra.mxu0 %v3045_v13  ;;  %1879 = vmatprep.mubr.f32.mxu0 %v3047_v57 }
  0x58   :  { %2124 = vmatprep.subr.bf16.mxu0 %v3048_v18  ;;  %1712 = vmatmul.mubr.f32.gmra.mrb[8].mxu1 %v2570_v43 }
  0x59   :  { %2030 = vmatpush3.bf16.msra.mxu1 %v2027_v48  ;;  %1714 = vmatprep.mubr.f32.mxu1 %v2577_v53 }
  0x5a   :  { %1880 = vmatmul.mubr.f32.gmra.mrb[8].mxu0 %v2570_v43  ;;  %2032 = vmatprep.subr.bf16.mxu1 %v2031_v5 }
  0x5b   :  { %2126 = vmatpush3.bf16.msra.mxu0 %v3048_v18  ;;  %1882 = vmatprep.mubr.f32.mxu0 %v2577_v53 }
  0x5c   :  { %2128 = vmatprep.subr.bf16.mxu0 %v3049_v6  ;;  %1715 = vmatmul.mubr.f32.gmra.mrb[10].mxu1 %v2616_v0 }
  0x5d   :  { %2034 = vmatpush3.bf16.msra.mxu1 %v2031_v5  ;;  %1717 = vmatprep.mubr.f32.mxu1 %v2635_v54 }
  0x5e   :  { %1883 = vmatmul.mubr.f32.gmra.mrb[10].mxu0 %v2616_v0  ;;  %2036 = vmatprep.subr.bf16.mxu1 %v2035_v11 }
  0x5f   :  { %2130 = vmatpush3.bf16.msra.mxu0 %v3049_v6  ;;  %1885 = vmatprep.mubr.f32.mxu0 %v2635_v54 }
  0x60   :  { %2132 = vmatprep.subr.bf16.mxu0 %v3050_v14  ;;  %1718 = vmatmul.mubr.f32.gmra.mrb[12].mxu1 %v3051_v15 }
  0x61   :  { %2038 = vmatpush3.bf16.msra.mxu1 %v2035_v11  ;;  %1720 = vmatprep.mubr.f32.mxu1 %v3052_v50 }
  0x62   :  { %1886 = vmatmul.mubr.f32.gmra.mrb[12].mxu0 %v3051_v15  ;;  %2040 = vmatprep.subr.bf16.mxu1 %v2039_v56 }
  0x63   :  { %2134 = vmatpush3.bf16.msra.mxu0 %v3050_v14  ;;  %1888 = vmatprep.mubr.f32.mxu0 %v3052_v50 }
  0x64   :  { %2136 = vmatprep.subr.bf16.mxu0 %v3053_v9  ;;  %1721 = vmatmul.mubr.f32.gmra.mrb[14].mxu1 %v2704_v45 }
  0x65   :  { %2042 = vmatpush3.bf16.msra.mxu1 %v2039_v56  ;;  %1755 = vmatprep.mubr.f32.mxu1 %v3054_v55 }
  0x66   :  { %1889 = vmatmul.mubr.f32.gmra.mrb[14].mxu0 %v2704_v45 }
  0x67   :  { %2138 = vmatpush3.bf16.msra.mxu0 %v3053_v9  ;;  %1923 = vmatprep.mubr.f32.mxu0 %v2289_v17  ;;  %v3060_v17 = vld [vmem:[#allocation15_spill] sm:$0xff] }
  0x68   :  { %1756 = vmatmul.mubr.f32.vlgmr.msra.gmra.mrb[0].mxu1 %v3055_v23 }
  0x69   :  { %1758 = vmatprep.mubr.f32.mxu1 %v3056_v20 }
  0x6a   :  { %1924 = vmatmul.mubr.f32.vlgmr.msra.gmra.mrb[0].mxu0 %v2320_v26  ;;  %v3061_v26 = vld [vmem:[#allocation16_spill] sm:$0xff] }
  0x6b   :  { %1926 = vmatprep.mubr.f32.mxu0 %v2369_v42  ;;  %v3062_v42 = vld [vmem:[#allocation18_spill] sm:$0xff] }
  0x6c   :  { %1759 = vmatmul.mubr.f32.gmra.mrb[2].mxu1 %v3057_v32 }
  0x6d   :  { %1761 = vmatprep.mubr.f32.mxu1 %v3058_v27 }
  0x6e   :  { %1927 = vmatmul.mubr.f32.gmra.mrb[2].mxu0 %v2390_v47  ;;  %v3063_v47 = vld [vmem:[#allocation20_spill] sm:$0xff] }
  0x6f   :  { %1929 = vmatprep.mubr.f32.mxu0 %v2426_v63  ;;  %v3064_v63 = vld [vmem:[#allocation22_spill] sm:$0xff] }
  0x70   :  { %1762 = vmatmul.mubr.f32.gmra.mrb[4].mxu1 %v3059_v29 }
  0x71   :  { %1764 = vmatprep.mubr.f32.mxu1 %v3060_v17 }
  0x72   :  { %1930 = vmatmul.mubr.f32.gmra.mrb[4].mxu0 %v2429_v1 }
  0x73   :  { %1932 = vmatprep.mubr.f32.mxu0 %v3044_v36 }
  0x74   :  { %1765 = vmatmul.mubr.f32.gmra.mrb[6].mxu1 %v3061_v26 }
  0x75   :  { %1767 = vmatprep.mubr.f32.mxu1 %v2568_v22  ;;  %v2852_v22 = vld [vmem:[%s2941_s2] ss:$0 sm:$0xff] }
  0x76   :  { %1933 = vmatmul.mubr.f32.gmra.mrb[6].mxu0 %v3046_v49 }
  0x77   :  { %1935 = vmatprep.mubr.f32.mxu0 %v3047_v57 }
  0x78   :  { %1768 = vmatmul.mubr.f32.gmra.mrb[8].mxu1 %v2614_v40 }
  0x79   :  { %1770 = vmatprep.mubr.f32.mxu1 %v2626_v60  ;;  %v2857_v60 = vld [vmem:[%s2942_s3] ss:$0 sm:$0xff] }
  0x7a   :  { %1936 = vmatmul.mubr.f32.gmra.mrb[8].mxu0 %v2570_v43 }
  0x7b   :  { %1938 = vmatprep.mubr.f32.mxu0 %v2577_v53 }
  0x7c   :  { %1771 = vmatmul.mubr.f32.gmra.mrb[10].mxu1 %v3062_v42 }
  0x7d   :  { %1773 = vmatprep.mubr.f32.mxu1 %v3063_v47 }
  0x7e   :  { %1939 = vmatmul.mubr.f32.gmra.mrb[10].mxu0 %v2616_v0 }
  0x7f   :  { %1941 = vmatprep.mubr.f32.mxu0 %v2635_v54 }
  0x80   :  { %1774 = vmatmul.mubr.f32.gmra.mrb[12].mxu1 %v3064_v63 }
  0x81   :  { %1776 = vmatprep.mubr.f32.mxu1 %v2721_v51 }
  0x82   :  { %1942 = vmatmul.mubr.f32.gmra.mrb[12].mxu0 %v3051_v15 }
  0x83   :  { %1944 = vmatprep.mubr.f32.mxu0 %v3052_v50 }
  0x84   :  { %1777 = vmatmul.mubr.f32.gmra.mrb[14].mxu1 %v2731_v59 }
  0x86   :  { %1945 = vmatmul.mubr.f32.gmra.mrb[14].mxu0 %v2704_v45 }
 0x13b   :  { %v1757_v43 = vpop.f32.mrb[0].mxu1 }
 0x13c   :  { %v631_v40 = vpop.f32.mrb[1].mxu1 }
 0x13d   :  { %v1925_v1 = vpop.f32.mrb[0].mxu0 }
 0x13e   :  { %v2139_v53 = vadd.f32 %v1925_v1, %v1757_v43  ;;  %v1241_v0 = vpop.f32.mrb[1].mxu0 }
 0x13f   :  { %v2140_v54 = vadd.f32 %v1241_v0, %v631_v40  ;;  %v1760_v51 = vpop.f32.mrb[2].mxu1 }
 0x140   :  { %v1343_v16 = vmul.f32 %v2139_v53, %v2852_v22  ;;  %v645_v59 = vpop.f32.mrb[3].mxu1 }
 0x141   :  { %v1342_v45 = vmul.f32 %v2140_v54, %v2852_v22  ;;  %v1928_v34 = vpop.f32.mrb[2].mxu0 }
 0x142   :  { %v1366_v58 = vadd.f32 %v2857_v60, %v1343_v16  ;;  %v2141_v19 = vadd.f32 %v1928_v34, %v1760_v51  ;;  %v1253_v21 = vpop.f32.mrb[3].mxu0 }
 0x143   :  { %v1365_v38 = vadd.f32 %v2857_v60, %v1342_v45  ;;  %v2142_v39 = vadd.f32 %v1253_v21, %v645_v59  ;;  %v1763_v52 = vpop.f32.mrb[4].mxu1 }
 0x144   :  { %v1382_v33 = vmax.f32 %v1366_v58, 0.0  ;;  %v1345_v46 = vmul.f32 %v2141_v19, %v2852_v22  ;;  %v659_v28 = vpop.f32.mrb[5].mxu1 }
 0x145   :  { %v1381_v44 = vmax.f32 %v1365_v38, 0.0  ;;  %v1344_v8 = vmul.f32 %v2142_v39, %v2852_v22  ;;  %v1931_v41 = vpop.f32.mrb[4].mxu0 }
 0x146   :  { %1398 = vst [vmem:[%s2943_s4 + $0x8] sm:$0xff] %v1382_v33  ;;  %v1368_v37 = vadd.f32 %v2857_v60, %v1345_v46  ;;  %v2143_v7 = vadd.f32 %v1931_v41, %v1763_v52  ;;  %v1265_v31 = vpop.f32.mrb[5].mxu0 }
 0x147   :  { %1397 = vst [vmem:[%s2943_s4] sm:$0xff] %v1381_v44  ;;  %v1367_v4 = vadd.f32 %v2857_v60, %v1344_v8  ;;  %v2144_v3 = vadd.f32 %v1265_v31, %v659_v28  ;;  %v1766_v2 = vpop.f32.mrb[6].mxu1 }
 0x148   :  { %v1384_v30 = vmax.f32 %v1368_v37, 0.0  ;;  %v1347_v62 = vmul.f32 %v2143_v7, %v2852_v22  ;;  %v673_v10 = vpop.f32.mrb[7].mxu1 }
 0x149   :  { %v1383_v12 = vmax.f32 %v1367_v4, 0.0  ;;  %v1346_v24 = vmul.f32 %v2144_v3, %v2852_v22  ;;  %v1934_v25 = vpop.f32.mrb[6].mxu0 }
 0x14a   :  { %1400 = vst [vmem:[%s2943_s4 + $0x18] sm:$0xff] %v1384_v30  ;;  %v1370_v61 = vadd.f32 %v2857_v60, %v1347_v62  ;;  %v2145_v35 = vadd.f32 %v1934_v25, %v1766_v2  ;;  %v1277_v36 = vpop.f32.mrb[7].mxu0 }
 0x14b   :  { %1399 = vst [vmem:[%s2943_s4 + $0x10] sm:$0xff] %v1383_v12  ;;  %v1369_v13 = vadd.f32 %v2857_v60, %v1346_v24  ;;  %v2146_v48 = vadd.f32 %v1277_v36, %v673_v10  ;;  %v1769_v6 = vpop.f32.mrb[8].mxu1 }
 0x14c   :  { %v1386_v49 = vmax.f32 %v1370_v61, 0.0  ;;  %v1349_v57 = vmul.f32 %v2145_v35, %v2852_v22  ;;  %v687_v15 = vpop.f32.mrb[9].mxu1 }
 0x14d   :  { %v1385_v18 = vmax.f32 %v1369_v13, 0.0  ;;  %v1348_v5 = vmul.f32 %v2146_v48, %v2852_v22  ;;  %v1937_v11 = vpop.f32.mrb[8].mxu0 }
 0x14e   :  { %1402 = vst [vmem:[%s2943_s4 + $0x28] sm:$0xff] %v1386_v49  ;;  %v1372_v14 = vadd.f32 %v2857_v60, %v1349_v57  ;;  %v2147_v56 = vadd.f32 %v1937_v11, %v1769_v6  ;;  %v1289_v50 = vpop.f32.mrb[9].mxu0 }
 0x14f   :  { %1401 = vst [vmem:[%s2943_s4 + $0x20] sm:$0xff] %v1385_v18  ;;  %v1371_v9 = vadd.f32 %v2857_v60, %v1348_v5  ;;  %v2148_v55 = vadd.f32 %v1289_v50, %v687_v15  ;;  %v1772_v29 = vpop.f32.mrb[10].mxu1 }
 0x150   :  { %v1388_v23 = vmax.f32 %v1372_v14, 0.0  ;;  %v1351_v20 = vmul.f32 %v2147_v56, %v2852_v22  ;;  %v701_v47 = vpop.f32.mrb[11].mxu1 }
 0x151   :  { %v1387_v32 = vmax.f32 %v1371_v9, 0.0  ;;  %v1350_v27 = vmul.f32 %v2148_v55, %v2852_v22  ;;  %v1940_v17 = vpop.f32.mrb[10].mxu0 }
 0x152   :  { %1404 = vst [vmem:[%s2943_s4 + $0x38] sm:$0xff] %v1388_v23  ;;  %v1374_v26 = vadd.f32 %v2857_v60, %v1351_v20  ;;  %v2149_v42 = vadd.f32 %v1940_v17, %v1772_v29  ;;  %v1301_v63 = vpop.f32.mrb[11].mxu0 }
 0x153   :  { %1403 = vst [vmem:[%s2943_s4 + $0x30] sm:$0xff] %v1387_v32  ;;  %v1373_v43 = vadd.f32 %v2857_v60, %v1350_v27  ;;  %v2150_v1 = vadd.f32 %v1301_v63, %v701_v47  ;;  %v1775_v16 = vpop.f32.mrb[12].mxu1 }
 0x154   :  { %v1390_v53 = vmax.f32 %v1374_v26, 0.0  ;;  %v1353_v40 = vmul.f32 %v2149_v42, %v2852_v22  ;;  %v715_v58 = vpop.f32.mrb[13].mxu1 }
 0x155   :  { %v1389_v0 = vmax.f32 %v1373_v43, 0.0  ;;  %v1352_v54 = vmul.f32 %v2150_v1, %v2852_v22  ;;  %v1943_v45 = vpop.f32.mrb[12].mxu0 }
 0x156   :  { %1406 = vst [vmem:[%s2943_s4 + $0x48] sm:$0xff] %v1390_v53  ;;  %v1376_v51 = vadd.f32 %v2857_v60, %v1353_v40  ;;  %v2151_v34 = vadd.f32 %v1943_v45, %v1775_v16  ;;  %v1313_v19 = vpop.f32.mrb[13].mxu0 }
 0x157   :  { %1405 = vst [vmem:[%s2943_s4 + $0x40] sm:$0xff] %v1389_v0  ;;  %v1375_v59 = vadd.f32 %v2857_v60, %v1352_v54  ;;  %v2152_v21 = vadd.f32 %v1313_v19, %v715_v58  ;;  %v1778_v44 = vpop.f32.mrb[14].mxu1 }
 0x158   :  { %v1392_v38 = vmax.f32 %v1376_v51, 0.0  ;;  %v1355_v39 = vmul.f32 %v2151_v34, %v2852_v22  ;;  %v729_v37 = vpop.f32.mrb[15].mxu1 }
 0x159   :  { %v1391_v33 = vmax.f32 %v1375_v59, 0.0  ;;  %v1354_v46 = vmul.f32 %v2152_v21, %v2852_v22  ;;  %v1946_v8 = vpop.f32.mrb[14].mxu0 }
 0x15a   :  { %1408 = vst [vmem:[%s2943_s4 + $0x58] sm:$0xff] %v1392_v38  ;;  %v1378_v52 = vadd.f32 %v2857_v60, %v1355_v39  ;;  %v2153_v41 = vadd.f32 %v1946_v8, %v1778_v44  ;;  %v1325_v7 = vpop.f32.mrb[15].mxu0 }
 0x15b   :  { %1407 = vst [vmem:[%s2943_s4 + $0x50] sm:$0xff] %v1391_v33  ;;  %v1377_v28 = vadd.f32 %v2857_v60, %v1354_v46  ;;  %v2154_v31 = vadd.f32 %v1325_v7, %v729_v37 }
 0x15c   :  { %v1394_v4 = vmax.f32 %v1378_v52, 0.0  ;;  %v1357_v3 = vmul.f32 %v2153_v41, %v2852_v22 }
 0x15d   :  { %v1393_v30 = vmax.f32 %v1377_v28, 0.0  ;;  %v1356_v62 = vmul.f32 %v2154_v31, %v2852_v22 }
 0x15e   :  { %1410 = vst [vmem:[%s2943_s4 + $0x68] sm:$0xff] %v1394_v4  ;;  %v1380_v12 = vadd.f32 %v2857_v60, %v1357_v3 }
 0x15f   :  { %1409 = vst [vmem:[%s2943_s4 + $0x60] sm:$0xff] %v1393_v30  ;;  %v1379_v24 = vadd.f32 %v2857_v60, %v1356_v62 }
 0x160   :  { %v1396_v2 = vmax.f32 %v1380_v12, 0.0 }
 0x161   :  { %v1395_v25 = vmax.f32 %v1379_v24, 0.0 }
 0x162   :  { %1412 = vst [vmem:[%s2943_s4 + $0x78] sm:$0xff] %v1396_v2 }
 0x163   :  { %1411 = vst [vmem:[%s2943_s4 + $0x70] sm:$0xff] %v1395_v25 }

// kernel: residual_block_forward.5
= control target key start
LH: loop header
LB: loop body
LE: loop exit
PB: predicated region body
PF: predicated region fallthrough
CT: control target
= control target key end

     0   :  { %s15114_s15 = smov 0   ;;  %s19568_s0 = inlined_call_operand.vmem [shape: f32[2,1,10,10,128], index: 0, kind: input, shape index: {}]   ;;  %s19569_s1 = inlined_call_operand.vmem [shape: f32[9,128,128], index: 1, kind: input, shape index: {}]   ;;  %s19570_s2 = inlined_call_operand.vmem [shape: f32[1,128], index: 2, kind: input, shape index: {}]   ;;  %s19571_s3 = inlined_call_operand.vmem [shape: f32[1,128], index: 3, kind: input, shape index: {}]   ;;  %s19572_s4 = inlined_call_operand.vmem [shape: f32[2,8,8,128], index: 4, kind: output, shape index: {}]  }
   0x1 LB: > { %s9059_s16 = sadd.s32 4294967295, %s15087_s15   ;;  %p9063_p0 = scmp.ge.s32.totalorder %s15087_s15, 1  ;;  %s15087_s15 = sphi %s15114_s15, %s14_s15  }
   0x2   : > { %p162_p1 = scmp.lt.s32.totalorder %s15087_s15, 3 }
   0x4   : > { %p163_p2 = pnand %p9063_p0, %p162_p1 }
   0x6   : > { %166 = sbr.rel (%p163_p2) target bundleno = 1123 (0x463), region = 36 }
   0xd   : > { %v15125_v0 = vld [vmem:[%s19569_s1 + $0x80] sm:$0xff]  ;;  %v15130_v1 = vld [vmem:[%s19569_s1 + $0x88] sm:$0xff]  ;;  %p15139_p3 = scmp.lt.s32.totalorder %s9059_s16, 1  ;;  %v15154_v7 = vld [vmem:[%s19569_s1 + $0x90] sm:$0xff] }
   0xe   : > { %v15135_v2 = vld [vmem:[%s19569_s1 + $0x200] sm:$0xff]  ;;  %v248_v3 = vand.u32 4294901760, %v15125_v0  ;;  %v251_v4 = vand.u32 4294901760, %v15130_v1  ;;  %v15148_v5 = vld [vmem:[%s19569_s1 + $0x208] sm:$0xff]  ;;  %v15159_v8 = vld [vmem:[%s19569_s1 + $0x98] sm:$0xff]  ;;  %v254_v10 = vand.u32 4294901760, %v15154_v7 }
   0xf   : > { %v4108_v6 = vand.u32 4294901760, %v15135_v2  ;;  %v4111_v9 = vand.u32 4294901760, %v15148_v5  ;;  %v257_v11 = vand.u32 4294901760, %v15159_v8  ;;  %v15167_v12 = vld [vmem:[%s19569_s1 + $0x210] sm:$0xff]  ;;  %v15172_v13 = vld [vmem:[%s19569_s1 + $0x218] sm:$0xff]  ;;  %v15177_v14 = vld [vmem:[%s19569_s1 + $0xa0] sm:$0xff] }
  0x10   : > { %v15183_v15 = vpack.c.bf16 %v251_v4, %v248_v3  ;;  %v19585_v16 = vand.u32 4294901760, %v15167_v12  ;;  %v19583_v17 = vand.u32 4294901760, %v15172_v13  ;;  %v15190_v18 = vld [vmem:[%s19569_s1 + $0xa8] sm:$0xff]  ;;  %v19586_v19 = vand.u32 4294901760, %v15177_v14  ;;  %v15196_v20 = vld [vmem:[%s19569_s1 + $0x220] sm:$0xff]  ;;  %v15220_v26 = vld [vmem:[%s19569_s1 + $0xb0] sm:$0xff] }
  0x11   : > { %v15201_v21 = vld [vmem:[%s19569_s1 + $0x228] sm:$0xff]  ;;  %v15207_v22 = vpack.c.bf16 %v4111_v9, %v4108_v6  ;;  %v15213_v23 = vpack.c.bf16 %v257_v11, %v254_v10  ;;  %v19584_v24 = vand.u32 4294901760, %v15190_v18  ;;  %v19582_v25 = vand.u32 4294901760, %v15196_v20  ;;  %v15225_v27 = vld [vmem:[%s19569_s1 + $0xb8] sm:$0xff]  ;;  %v15230_v28 = vld [vmem:[%s19569_s1 + $0x230] sm:$0xff]  ;;  %s21096_s16 = smov (!%p15139_p3, %s9059_s16), 1 }
  0x12   : > { %20134 = vst [vmem:[#allocation2_spill] sm:$0xff] %v15183_v15  ;;  %12921 = vmatprep.subr.bf16.mxu1 %v15183_v15  ;;  %v15243_v29 = vpack.c.bf16 %v19583_v17, %v19585_v16  ;;  %v19577_v30 = vand.u32 4294901760, %v15201_v21  ;;  %v15249_v31 = vld [vmem:[%s19569_s1 + $0x238] sm:$0xff]  ;;  %v15254_v32 = vld [vmem:[%s19569_s1 + $0xc0] sm:$0xff]  ;;  %v15259_v33 = vld [vmem:[%s19569_s1 + $0xc8] sm:$0xff]  ;;  %v19579_v34 = vand.u32 4294901760, %v15220_v26  ;;  %v15445_v16 = vsub.f32 %v15154_v7, %v254_v10 }
  0x13   : > { %20135 = vst [vmem:[#allocation3_spill] sm:$0xff] %v15207_v22  ;;  %20136 = vst [vmem:[#allocation4_spill] sm:$0xff] %v15213_v23  ;;  %13785 = vmatprep.subr.bf16.mxu0 %v15207_v22  ;;  %12923 = vmatpush3.bf16.msra.mxu1 %v15183_v15  ;;  %v19578_v35 = vand.u32 4294901760, %v15225_v27  ;;  %v19575_v36 = vand.u32 4294901760, %v15230_v28  ;;  %v19574_v37 = vand.u32 4294901760, %v15249_v31  ;;  %v15270_v38 = vld [vmem:[%s19569_s1 + $0x240] sm:$0xff]  ;;  %v15283_v40 = vpack.c.bf16 %v19584_v24, %v19586_v19 }
  0x14   : > { %20137 = vst [vmem:[#allocation5_spill] sm:$0xff] %v15243_v29  ;;  %v15275_v39 = vld [vmem:[%s19569_s1 + $0x248] sm:$0xff]  ;;  %13787 = vmatpush3.bf16.msra.mxu0 %v15207_v22  ;;  %12925 = vmatprep.subr.bf16.mxu1 %v15213_v23  ;;  %v19576_v41 = vand.u32 4294901760, %v15254_v32  ;;  %v19573_v42 = vand.u32 4294901760, %v15259_v33  ;;  %v15290_v43 = vld [vmem:[%s19569_s1 + $0xd0] sm:$0xff]  ;;  %s15072_s10 = smul.u32 160, %s21096_s16  ;;  %v15298_v44 = vpack.c.bf16 %v19577_v30, %v19582_v25  ;;  %v15464_v10 = vsub.f32 %v15159_v8, %v257_v11 }
  0x15   : > { %20138 = vst [vmem:[#allocation6_spill] sm:$0xff] %v15283_v40  ;;  %13789 = vmatprep.subr.bf16.mxu0 %v15243_v29  ;;  %v19581_v45 = vand.u32 4294901760, %v15270_v38  ;;  %v19580_v46 = vand.u32 4294901760, %v15275_v39  ;;  %v15305_v47 = vld [vmem:[%s19569_s1 + $0xd8] sm:$0xff]  ;;  %v15310_v48 = vld [vmem:[%s19569_s1 + $0x250] sm:$0xff]  ;;  %v15320_v50 = vld [vmem:[%s19569_s1 + $0xe0] sm:$0xff]  ;;  %v15337_v52 = vpack.c.bf16 %v19578_v35, %v19579_v34  ;;  %v15343_v53 = vpack.c.bf16 %v19574_v37, %v19575_v36 }
  0x16   : > { %20139 = vst [vmem:[#allocation7_spill] sm:$0xff] %v15298_v44  ;;  %v15315_v49 = vld [vmem:[%s19569_s1 + $0x258] sm:$0xff]  ;;  %v15325_v51 = vld [vmem:[%s19569_s1 + $0xe8] sm:$0xff]  ;;  %s15330_s26 = scalar_lea.vmem %s19568_s0, %s15072_s10  ;;  %v19590_v54 = vand.u32 4294901760, %v15290_v43  ;;  %v15349_v55 = vld [vmem:[%s19569_s1 + $0x260] sm:$0xff]  ;;  %v15363_v58 = vpack.c.bf16 %v19573_v42, %v19576_v41  ;;  %v19589_v59 = vand.u32 4294901760, %v15305_v47 }
  0x17   : > { %12927 = vmatpush3.bf16.msra.mxu1 %v15213_v23  ;;  %20140 = vst [vmem:[#allocation8_spill] sm:$0xff] %v15337_v52  ;;  %20141 = vst [vmem:[#allocation9_spill] sm:$0xff] %v15343_v53  ;;  %v15354_v56 = vld [vmem:[%s19569_s1 + $0x268] sm:$0xff]  ;;  %v19593_v60 = vand.u32 4294901760, %v15310_v48  ;;  %v19592_v61 = vand.u32 4294901760, %v15315_v49  ;;  %v15371_v62 = vld [vmem:[%s19569_s1 + $0xf0] sm:$0xff]  ;;  %v15379_v42 = vpack.c.bf16 %v19580_v46, %v19581_v45  ;;  %v15395_v46 = vsub.f32 %v15125_v0, %v248_v3 }
  0x18   : > { %v222_v57 = vld [vmem:[%s15330_s26 + $0x1] sm:$0xff]  ;;  %13791 = vmatpush3.bf16.msra.mxu0 %v15243_v29  ;;  %12929 = vmatprep.subr.bf16.mxu1 %v15283_v40  ;;  %20142 = vst [vmem:[#allocation10_spill] sm:$0xff] %v15363_v58  ;;  %v9123_v63 = vld [vmem:[%s15330_s26 + $0x11] sm:$0xff]  ;;  %v15400_v45 = vsub.f32 %v15130_v1, %v251_v4  ;;  %v15423_v4 = vsub.f32 %v15135_v2, %v4108_v6  ;;  %v20154_v7 = vand.u32 4294901760, %v15325_v51  ;;  %v20156_v36 = vand.u32 4294901760, %v15349_v55  ;;  %s9247_s9 = sshll.u32 %s21096_s16, 6 }
  0x19   : > { %13793 = vmatprep.subr.bf16.mxu0 %v15298_v44  ;;  %20143 = vst [vmem:[#allocation11_spill] sm:$0xff] %v15379_v42  ;;  %v15386_v41 = vld [vmem:[%s19569_s1 + $0xf8] sm:$0xff]  ;;  %v15388_v30 = vand.u32 4294901760, %v222_v57  ;;  %v9124_v25 = vld [vmem:[%s15330_s26 + $0x21] sm:$0xff]  ;;  %v15408_v24 = vld [vmem:[%s19569_s1 + $0x270] sm:$0xff]  ;;  %v15418_v1 = vand.u32 4294901760, %v9123_v63  ;;  %v15483_v8 = vpack.c.bf16 %v19592_v61, %v19593_v60  ;;  %s19555_s12 = scalar_lea.vmem %s19572_s4, %s9247_s9 }
  0x1a   : > { %v15413_v0 = vld [vmem:[%s19569_s1 + $0x278] sm:$0xff]  ;;  %20145 = vst [vmem:[#allocation13_spill] sm:$0xff] %v15423_v4  ;;  %v19587_v19 = vand.u32 4294901760, %v15395_v46  ;;  %v19591_v17 = vand.u32 4294901760, %v15400_v45  ;;  %v15440_v34 = vand.u32 4294901760, %v9124_v25  ;;  %v20157_v35 = vand.u32 4294901760, %v15354_v56 }
  0x1b   : > { %12931 = vmatpush3.bf16.msra.mxu1 %v15283_v40  ;;  %v15416_v3 = vsub.f32 %v222_v57, %v15388_v30  ;;  %20144 = vst [vmem:[#allocation12_spill] sm:$0xff] %v15418_v1  ;;  %v15433_v57 = vsub.f32 %v15148_v5, %v4111_v9  ;;  %v15438_v6 = vsub.f32 %v9123_v63, %v15418_v1  ;;  %20151 = vst [vmem:[#allocation19_spill] sm:$0xff] %v15483_v8 }
  0x1c   : > { %13795 = vmatpush3.bf16.msra.mxu0 %v15298_v44  ;;  %12933 = vmatprep.subr.bf16.mxu1 %v15337_v52  ;;  %20148 = vst [vmem:[#allocation16_spill] sm:$0xff] %v15440_v34  ;;  %v412_v5 = vsub.f32 %v15395_v46, %v19587_v19  ;;  %v15472_v19 = vpack.c.bf16 %v19589_v59, %v19590_v54  ;;  %v20160_v60 = vand.u32 4294901760, %v15386_v41  ;;  %v20162_v54 = vand.u32 4294901760, %v15408_v24 }
  0x1d   : > { %20146 = vst [vmem:[#allocation14_spill] sm:$0xff] %v15433_v57  ;;  %13797 = vmatprep.subr.bf16.mxu0 %v15343_v53  ;;  %v19588_v2 = vand.u32 4294901760, %v15416_v3  ;;  %20147 = vst [vmem:[#allocation15_spill] sm:$0xff] %v15438_v6  ;;  %v15458_v37 = vand.u32 4294901760, %v15438_v6  ;;  %v15487_v59 = vsub.f32 %v9124_v25, %v15440_v34  ;;  %v15500_v61 = vpack.c.bf16 %v20157_v35, %v20156_v36 }
  0x1e   : > { %20150 = vst [vmem:[#allocation18_spill] sm:$0xff] %v15472_v19  ;;  %v20165_v40 = vand.u32 4294901760, %v15423_v4  ;;  %v20166_v35 = vand.u32 4294901760, %v15433_v57  ;;  %v20167_v23 = vand.u32 4294901760, %v15177_v14  ;;  %v20178_v4 = vand.u32 4294901760, %v15220_v26 }
  0x1f   : > { %12935 = vmatpush3.bf16.msra.mxu1 %v15337_v52  ;;  %v331_v63 = vsub.f32 %v15416_v3, %v19588_v2  ;;  %20149 = vst [vmem:[#allocation17_spill] sm:$0xff] %v15458_v37  ;;  %v419_v2 = vsub.f32 %v15400_v45, %v19591_v17  ;;  %11764 = vmatprep.mubr.f32.mxu0 %v15458_v37  ;;  %20152 = vst [vmem:[#allocation20_spill] sm:$0xff] %v15487_v59  ;;  %v20153_v17 = vand.u32 4294901760, %v15320_v50 }
  0x20   : > { %13799 = vmatpush3.bf16.msra.mxu0 %v15343_v53  ;;  %12937 = vmatprep.subr.bf16.mxu1 %v15363_v58  ;;  %20158 = vst [vmem:[#allocation22_spill] sm:$0xff] %v15500_v61  ;;  %v20163_v52 = vand.u32 4294901760, %v15413_v0  ;;  %v15519_v36 = vpack.c.bf16 %v20166_v35, %v20165_v40  ;;  %v20171_v40 = vand.u32 4294901760, %v15190_v18 }
  0x21   : > { %13801 = vmatprep.subr.bf16.mxu0 %v15379_v42  ;;  %v332_v11 = vand.u32 4294901760, %v331_v63  ;;  %v15494_v9 = vpack.c.bf16 %v20154_v7, %v20153_v17  ;;  %v20159_v63 = vand.u32 4294901760, %v15371_v62  ;;  %v413_v7 = vand.u32 4294901760, %v412_v5 }
  0x22   : > { %v15513_v17 = vpack.c.bf16 %v20163_v52, %v20162_v54  ;;  %v20168_v52 = vand.u32 4294901760, %v15445_v16  ;;  %v20169_v5 = vand.u32 4294901760, %v15167_v12  ;;  %v15539_v35 = vsub.f32 %v15190_v18, %v20171_v40 }
  0x23   : > { %20155 = vst [vmem:[#allocation21_spill] sm:$0xff] %v15494_v9  ;;  %v15506_v25 = vpack.c.bf16 %v20160_v60, %v20159_v63  ;;  %12939 = vmatpush3.bf16.msra.mxu1 %v15363_v58  ;;  %10576 = vmatprep.mubr.f32.mxu1 %v332_v11  ;;  %v15524_v60 = vsub.f32 %v15177_v14, %v20167_v23  ;;  %v420_v63 = vand.u32 4294901760, %v419_v2  ;;  %v15543_v14 = vand.u32 4294901760, %v15487_v59 }
  0x24   : > { %20164 = vst [vmem:[#allocation24_spill] sm:$0xff] %v15513_v17  ;;  %13803 = vmatpush3.bf16.msra.mxu0 %v15379_v42  ;;  %12941 = vmatprep.subr.bf16.mxu1 %v15472_v19  ;;  %v426_v54 = vsub.f32 %v15445_v16, %v20168_v52  ;;  %v15534_v11 = vsub.f32 %v15167_v12, %v20169_v5  ;;  %v20173_v23 = vand.u32 4294901760, %v15464_v10  ;;  %v20174_v52 = vand.u32 4294901760, %v15172_v13 }
  0x25   : > { %20161 = vst [vmem:[#allocation23_spill] sm:$0xff] %v15506_v25  ;;  %13805 = vmatprep.subr.bf16.mxu0 %v15483_v8  ;;  %20172 = vst [vmem:[#allocation26_spill] sm:$0xff] %v15543_v14  ;;  %v19609_v12 = vand.u32 4294901760, %v15524_v60  ;;  %v19614_v5 = vand.u32 4294901760, %v15539_v35  ;;  %v20176_v18 = vand.u32 4294901760, %v15196_v20  ;;  %v15563_v58 = vsub.f32 %v15220_v26, %v20178_v4 }
  0x26   : > { %20170 = vst [vmem:[#allocation25_spill] sm:$0xff] %v15534_v11  ;;  %v433_v2 = vsub.f32 %v15464_v10, %v20173_v23  ;;  %v15551_v57 = vsub.f32 %v15172_v13, %v20174_v52  ;;  %v20179_v23 = vand.u32 4294901760, %v15225_v27  ;;  %v4191_v13 = vsub.f32 %v15438_v6, %v15458_v37 }
  0x27   : > { %v15558_v40 = vsub.f32 %v15196_v20, %v20176_v18  ;;  %12943 = vmatpush3.bf16.msra.mxu1 %v15472_v19  ;;  %v4201_v52 = vsub.f32 %v15487_v59, %v15543_v14  ;;  %v440_v20 = vsub.f32 %v15524_v60, %v19609_v12  ;;  %v20180_v26 = vand.u32 4294901760, %v15201_v21 }
  0x28   : > { %20175 = vst [vmem:[#allocation27_spill] sm:$0xff] %v15551_v57  ;;  %v15568_v15 = vsub.f32 %v15225_v27, %v20179_v23  ;;  %13807 = vmatpush3.bf16.msra.mxu0 %v15483_v8  ;;  %12945 = vmatprep.subr.bf16.mxu1 %v15494_v9  ;;  %v427_v27 = vand.u32 4294901760, %v426_v54  ;;  %v447_v23 = vsub.f32 %v15539_v35, %v19614_v5  ;;  %v434_v12 = vand.u32 4294901760, %v433_v2 }
  0x29   : > { %20177 = vst [vmem:[#allocation28_spill] sm:$0xff] %v15558_v40  ;;  %v15581_v4 = vsub.f32 %v15201_v21, %v20180_v26  ;;  %13809 = vmatprep.subr.bf16.mxu0 %v15500_v61  ;;  %v20182_v26 = vand.u32 4294901760, %v15254_v32  ;;  %v12952_v54 = vpack.c.bf16 %v420_v63, %v413_v7  ;;  %v20183_v5 = vand.u32 4294901760, %v15230_v28 }
  0x2a   : > { %v20185_v2 = vand.u32 4294901760, %v15249_v31  ;;  %v441_v21 = vand.u32 4294901760, %v440_v20  ;;  %v448_v6 = vand.u32 4294901760, %v447_v23  ;;  %v20187_v7 = vand.u32 4294901760, %v15259_v33 }
  0x2b   : > { %20181 = vst [vmem:[#allocation29_spill] sm:$0xff] %v15581_v4  ;;  %v15596_v59 = vsub.f32 %v15254_v32, %v20182_v26  ;;  %v15602_v37 = vsub.f32 %v15230_v28, %v20183_v5  ;;  %12947 = vmatpush3.bf16.msra.mxu1 %v15494_v9  ;;  %v15618_v28 = vand.u32 4294901760, %v4191_v13  ;;  %v20190_v5 = vand.u32 4294901760, %v15563_v58  ;;  %v9125_v26 = vld [vmem:[%s15330_s26 + $0x31] sm:$0xff] }
  0x2c   : > { %v15607_v19 = vsub.f32 %v15249_v31, %v20185_v2  ;;  %v15614_v63 = vsub.f32 %v15259_v33, %v20187_v7  ;;  %13811 = vmatpush3.bf16.msra.mxu0 %v15500_v61  ;;  %12949 = vmatprep.subr.bf16.mxu1 %v15506_v25  ;;  %v15620_v31 = vand.u32 4294901760, %v4201_v52  ;;  %v12956_v33 = vpack.c.bf16 %v434_v12, %v427_v27 }
  0x2d   : > { %20184 = vst [vmem:[#allocation30_spill] sm:$0xff] %v15602_v37  ;;  %20188 = vst [vmem:[#allocation32_spill] sm:$0xff] %v15618_v28  ;;  %v454_v20 = vsub.f32 %v15563_v58, %v20190_v5  ;;  %13813 = vmatprep.subr.bf16.mxu0 %v15513_v17  ;;  %v20191_v2 = vand.u32 4294901760, %v15534_v11  ;;  %v20192_v7 = vand.u32 4294901760, %v15551_v57  ;;  %v20193_v13 = vand.u32 4294901760, %v15568_v15 }
  0x2e   : > { %20186 = vst [vmem:[#allocation31_spill] sm:$0xff] %v15607_v19  ;;  %20189 = vst [vmem:[#allocation33_spill] sm:$0xff] %v15620_v31  ;;  %v20194_v23 = vand.u32 4294901760, %v15290_v43  ;;  %v20195_v12 = vand.u32 4294901760, %v15305_v47  ;;  %v20197_v9 = vand.u32 4294901760, %v15581_v4  ;;  %v20198_v18 = vand.u32 4294901760, %v15270_v38 }
  0x2f   : > { %v13820_v32 = vpack.c.bf16 %v20192_v7, %v20191_v2  ;;  %v461_v52 = vsub.f32 %v15568_v15, %v20193_v13  ;;  %v9126_v2 = vld [vmem:[%s15330_s26 + $0x41] sm:$0xff]  ;;  %12951 = vmatpush3.bf16.msra.mxu1 %v15506_v25  ;;  %v15650_v7 = vpack.c.bf16 %v448_v6, %v441_v21  ;;  %v20196_v13 = vand.u32 4294901760, %v15558_v40 }
  0x30   : > { %v15641_v61 = vsub.f32 %v15290_v43, %v20194_v23  ;;  %v15646_v27 = vsub.f32 %v15305_v47, %v20195_v12  ;;  %v15661_v43 = vsub.f32 %v15270_v38, %v20198_v18  ;;  %v15663_v23 = vand.u32 4294901760, %v9125_v26  ;;  %13815 = vmatpush3.bf16.msra.mxu0 %v15513_v17  ;;  %12953 = vmatprep.subr.bf16.mxu1 %v12952_v54 }
  0x31   : > { %v15656_v5 = vpack.c.bf16 %v20197_v9, %v20196_v13  ;;  %v455_v47 = vand.u32 4294901760, %v454_v20  ;;  %v20201_v6 = vand.u32 4294901760, %v15596_v59  ;;  %v20202_v12 = vand.u32 4294901760, %v15614_v63  ;;  %13817 = vmatprep.subr.bf16.mxu0 %v15519_v36 }
  0x32   : > { %20199 = vst [vmem:[#allocation34_spill] sm:$0xff] %v15661_v43  ;;  %20200 = vst [vmem:[#allocation35_spill] sm:$0xff] %v15663_v23  ;;  %v462_v38 = vand.u32 4294901760, %v461_v52  ;;  %v15676_v4 = vsub.f32 %v9125_v26, %v15663_v23  ;;  %v15678_v40 = vand.u32 4294901760, %v9126_v2  ;;  %10577 = vmatmul.mubr.f32.vlgmr.msra.gmra.mrb[0].mxu1 %v15618_v28  ;;  %v20205_v20 = vand.u32 4294901760, %v15602_v37  ;;  %v9127_v37 = vld [vmem:[%s15330_s26 + $0x51] sm:$0xff] }
  0x33   : > { %v468_v21 = vsub.f32 %v15596_v59, %v20201_v6  ;;  %v475_v9 = vsub.f32 %v15614_v63, %v20202_v12  ;;  %v20206_v6 = vand.u32 4294901760, %v15607_v19  ;;  %v20207_v12 = vand.u32 4294901760, %v15275_v39  ;;  %12955 = vmatpush3.bf16.msra.mxu1 %v12952_v54  ;;  %11765 = vmatmul.mubr.f32.vlgmr.msra.gmra.mrb[0].mxu0 %v15543_v14 }
  0x34   : > { %20203 = vst [vmem:[#allocation36_spill] sm:$0xff] %v15676_v4  ;;  %20204 = vst [vmem:[#allocation37_spill] sm:$0xff] %v15678_v40  ;;  %v20209_v52 = vand.u32 4294901760, %v15310_v48  ;;  %v20211_v18 = vand.u32 4294901760, %v15320_v50  ;;  %13819 = vmatpush3.bf16.msra.mxu0 %v15519_v36  ;;  %12957 = vmatprep.subr.bf16.mxu1 %v12956_v33 }
  0x35   : > { %v15685_v57 = vpack.c.bf16 %v20206_v6, %v20205_v20  ;;  %v15690_v13 = vsub.f32 %v15275_v39, %v20207_v12  ;;  %v15706_v39 = vand.u32 4294901760, %v15676_v4  ;;  %v15709_v6 = vsub.f32 %v9126_v2, %v15678_v40  ;;  %13821 = vmatprep.subr.bf16.mxu0 %v13820_v32  ;;  %10579 = vmatprep.mubr.f32.mxu1 %v15620_v31 }
  0x36   : > { %v15695_v26 = vsub.f32 %v15310_v48, %v20209_v52  ;;  %v15700_v11 = vsub.f32 %v15320_v50, %v20211_v18  ;;  %v20214_v48 = vand.u32 4294901760, %v15325_v51  ;;  %v469_v50 = vand.u32 4294901760, %v468_v21 }
  0x37   : > { %20208 = vst [vmem:[#allocation38_spill] sm:$0xff] %v15690_v13  ;;  %20212 = vst [vmem:[#allocation40_spill] sm:$0xff] %v15706_v39  ;;  %v476_v54 = vand.u32 4294901760, %v475_v9  ;;  %v20215_v18 = vand.u32 4294901760, %v15641_v61  ;;  %v20216_v20 = vand.u32 4294901760, %v15315_v49  ;;  %v361_v36 = vsub.f32 %v15676_v4, %v15706_v39  ;;  %11767 = vmatprep.mubr.f32.mxu0 %v15706_v39  ;;  %12959 = vmatpush3.bf16.msra.mxu1 %v12956_v33 }
  0x38   : > { %20210 = vst [vmem:[#allocation39_spill] sm:$0xff] %v15695_v26  ;;  %20213 = vst [vmem:[#allocation41_spill] sm:$0xff] %v15709_v6  ;;  %v15714_v12 = vsub.f32 %v15325_v51, %v20214_v48  ;;  %v20218_v51 = vand.u32 4294901760, %v15646_v27  ;;  %v15732_v21 = vand.u32 4294901760, %v15709_v6  ;;  %v15734_v9 = vand.u32 4294901760, %v9127_v37  ;;  %v9128_v48 = vld [vmem:[%s15330_s26 + $0x61] sm:$0xff]  ;;  %13823 = vmatpush3.bf16.msra.mxu0 %v13820_v32  ;;  %12961 = vmatprep.subr.bf16.mxu1 %v15650_v7 }
  0x39   : > { %v482_v52 = vsub.f32 %v15641_v61, %v20215_v18  ;;  %v15723_v19 = vsub.f32 %v15315_v49, %v20216_v20  ;;  %v12964_v18 = vpack.c.bf16 %v462_v38, %v455_v47  ;;  %v9129_v38 = vld [vmem:[%s15330_s26 + $0x71] sm:$0xff]  ;;  %v12968_v20 = vpack.c.bf16 %v476_v54, %v469_v50  ;;  %13825 = vmatprep.subr.bf16.mxu0 %v15656_v5 }
  0x3a   : > { %v489_v2 = vsub.f32 %v15646_v27, %v20218_v51  ;;  %20219 = vst [vmem:[#allocation43_spill] sm:$0xff] %v15732_v21  ;;  %20220 = vst [vmem:[#allocation44_spill] sm:$0xff] %v15734_v9  ;;  %v15741_v51 = vand.u32 4294901760, %v361_v36  ;;  %11768 = vmatmul.mubr.f32.gmra.mrb[2].mxu0 %v15732_v21  ;;  %v371_v28 = vsub.f32 %v15709_v6, %v15732_v21  ;;  %v15753_v36 = vand.u32 4294901760, %v9128_v48 }
  0x3b   : > { %20217 = vst [vmem:[#allocation42_spill] sm:$0xff] %v15723_v19  ;;  %v15748_v47 = vsub.f32 %v9127_v37, %v15734_v9  ;;  %v483_v49 = vand.u32 4294901760, %v482_v52  ;;  %v20225_v32 = vand.u32 4294901760, %v15371_v62  ;;  %v20226_v50 = vand.u32 4294901760, %v15700_v11  ;;  %12963 = vmatpush3.bf16.msra.mxu1 %v15650_v7 }
  0x3c   : > { %20221 = vst [vmem:[#allocation45_spill] sm:$0xff] %v15741_v51  ;;  %20223 = vst [vmem:[#allocation47_spill] sm:$0xff] %v15753_v36  ;;  %v490_v31 = vand.u32 4294901760, %v489_v2  ;;  %10580 = vmatmul.mubr.f32.gmra.mrb[2].mxu1 %v15741_v51  ;;  %v15757_v14 = vand.u32 4294901760, %v371_v28  ;;  %v15771_v52 = vsub.f32 %v9128_v48, %v15753_v36  ;;  %v20228_v2 = vand.u32 4294901760, %v15386_v41  ;;  %v9130_v51 = vld [vmem:[%s15330_s26 + $0x81] sm:$0xff]  ;;  %13827 = vmatpush3.bf16.msra.mxu0 %v15656_v5 }
  0x3d   : > { %20222 = vst [vmem:[#allocation46_spill] sm:$0xff] %v15748_v47  ;;  %v15760_v37 = vand.u32 4294901760, %v15748_v47  ;;  %v15765_v21 = vsub.f32 %v15371_v62, %v20225_v32  ;;  %v496_v54 = vsub.f32 %v15700_v11, %v20226_v50  ;;  %v15778_v33 = vand.u32 4294901760, %v9129_v38  ;;  %12965 = vmatprep.subr.bf16.mxu1 %v12964_v18  ;;  %13829 = vmatprep.subr.bf16.mxu0 %v15685_v57 }
  0x3e   : > { %20224 = vst [vmem:[#allocation48_spill] sm:$0xff] %v15757_v14  ;;  %20227 = vst [vmem:[#allocation49_spill] sm:$0xff] %v15771_v52  ;;  %v15776_v28 = vsub.f32 %v15386_v41, %v20228_v2  ;;  %10582 = vmatprep.mubr.f32.mxu1 %v15757_v14  ;;  %v20230_v62 = vand.u32 4294901760, %v15714_v12  ;;  %v20231_v50 = vand.u32 4294901760, %v15349_v55  ;;  %v15795_v2 = vand.u32 4294901760, %v15771_v52 }
  0x3f   : > { %20229 = vst [vmem:[#allocation50_spill] sm:$0xff] %v15778_v33  ;;  %v381_v41 = vsub.f32 %v15748_v47, %v15760_v37  ;;  %11770 = vmatprep.mubr.f32.mxu0 %v15760_v37  ;;  %v20236_v5 = vand.u32 4294901760, %v15354_v56  ;;  %v15815_v14 = vand.u32 4294901760, %v9130_v51  ;;  %v20240_v47 = vand.u32 4294901760, %v15695_v26  ;;  %12967 = vmatpush3.bf16.msra.mxu1 %v12964_v18  ;;  %v20283_v26 = vld [vmem:[#allocation41_spill] sm:$0xff] }
  0x40   : > { %v503_v32 = vsub.f32 %v15714_v12, %v20230_v62  ;;  %v15789_v48 = vsub.f32 %v15349_v55, %v20231_v50  ;;  %v15800_v62 = vsub.f32 %v9129_v38, %v15778_v33  ;;  %v20234_v55 = vand.u32 4294901760, %v15661_v43  ;;  %11771 = vmatmul.mubr.f32.gmra.mrb[4].mxu0 %v15795_v2  ;;  %12969 = vmatprep.subr.bf16.mxu1 %v12968_v20 }
  0x41   : > { %v20235_v50 = vand.u32 4294901760, %v15690_v13  ;;  %v15811_v25 = vsub.f32 %v15354_v56, %v20236_v5  ;;  %v15813_v7 = vand.u32 4294901760, %v381_v41  ;;  %20239 = vst [vmem:[#allocation55_spill] sm:$0xff] %v15815_v14  ;;  %v12972_v38 = vpack.c.bf16 %v490_v31, %v483_v49  ;;  %13831 = vmatpush3.bf16.msra.mxu0 %v15685_v57 }
  0x42   : > { %20232 = vst [vmem:[#allocation51_spill] sm:$0xff] %v15789_v48  ;;  %20233 = vst [vmem:[#allocation52_spill] sm:$0xff] %v15800_v62  ;;  %v20241_v6 = vand.u32 4294901760, %v15723_v19  ;;  %v497_v56 = vand.u32 4294901760, %v496_v54  ;;  %v504_v41 = vand.u32 4294901760, %v503_v32  ;;  %v15829_v31 = vsub.f32 %v9130_v51, %v15815_v14 }
  0x43   : > { %v13832_v39 = vpack.c.bf16 %v20235_v50, %v20234_v55  ;;  %20237 = vst [vmem:[#allocation53_spill] sm:$0xff] %v15811_v25  ;;  %20238 = vst [vmem:[#allocation54_spill] sm:$0xff] %v15813_v7  ;;  %v391_v55 = vsub.f32 %v15771_v52, %v15795_v2  ;;  %v15825_v50 = vand.u32 4294901760, %v15800_v62  ;;  %v20244_v49 = vand.u32 4294901760, %v15765_v21  ;;  %10583 = vmatmul.mubr.f32.gmra.mrb[4].mxu1 %v15813_v7 }
  0x44   : > { %v13836_v43 = vpack.c.bf16 %v20241_v6, %v20240_v47  ;;  %20242 = vst [vmem:[#allocation56_spill] sm:$0xff] %v15829_v31  ;;  %v20245_v19 = vand.u32 4294901760, %v15776_v28  ;;  %v20246_v57 = vand.u32 4294901760, %v15408_v24  ;;  %12971 = vmatpush3.bf16.msra.mxu1 %v12968_v20  ;;  %v20253_v20 = vand.u32 4294901760, %v15395_v46 }
  0x45   : > { %v15832_v6 = vand.u32 4294901760, %v391_v55  ;;  %v510_v47 = vsub.f32 %v15765_v21, %v20244_v49  ;;  %v401_v54 = vsub.f32 %v15800_v62, %v15825_v50  ;;  %13833 = vmatprep.subr.bf16.mxu0 %v13832_v39  ;;  %v20248_v55 = vand.u32 4294901760, %v15413_v0  ;;  %11773 = vmatprep.mubr.f32.mxu0 %v15825_v50 }
  0x46   : > { %v517_v18 = vsub.f32 %v15776_v28, %v20245_v19  ;;  %v15847_v32 = vsub.f32 %v15408_v24, %v20246_v57  ;;  %v19654_v19 = vand.u32 4294901760, %v15829_v31  ;;  %13835 = vmatpush3.bf16.msra.mxu0 %v13832_v39  ;;  %12973 = vmatprep.subr.bf16.mxu1 %v12972_v38  ;;  %v12976_v24 = vpack.c.bf16 %v504_v41, %v497_v56 }
  0x47   : > { %20243 = vst [vmem:[#allocation57_spill] sm:$0xff] %v15832_v6  ;;  %v15852_v49 = vsub.f32 %v15413_v0, %v20248_v55  ;;  %10585 = vmatprep.mubr.f32.mxu1 %v15832_v6  ;;  %v15857_v5 = vand.u32 4294901760, %v401_v54  ;;  %v511_v57 = vand.u32 4294901760, %v510_v47  ;;  %13837 = vmatprep.subr.bf16.mxu0 %v13836_v43  ;;  %v20251_v0 = vand.u32 4294901760, %v15789_v48  ;;  %v9166_v48 = vld [vmem:[%s19569_s1 + $0x2d8] sm:$0xff] }
  0x48   : > { %20247 = vst [vmem:[#allocation58_spill] sm:$0xff] %v15847_v32  ;;  %11774 = vmatmul.mubr.f32.gmra.mrb[6].mxu0 %v19654_v19  ;;  %v518_v51 = vand.u32 4294901760, %v517_v18  ;;  %v20252_v55 = vand.u32 4294901760, %v15811_v25  ;;  %v19653_v6 = vand.u32 4294901760, %v15847_v32  ;;  %12975 = vmatpush3.bf16.msra.mxu1 %v12972_v38  ;;  %v20254_v56 = vand.u32 4294901760, %v15400_v45  ;;  %v20279_v32 = vld [vmem:[#allocation20_spill] sm:$0xff] }
  0x49   : > { %20249 = vst [vmem:[#allocation59_spill] sm:$0xff] %v15852_v49  ;;  %20250 = vst [vmem:[#allocation60_spill] sm:$0xff] %v15857_v5  ;;  %v19652_v54 = vand.u32 4294901760, %v15852_v49  ;;  %10586 = vmatmul.mubr.f32.gmra.mrb[6].mxu1 %v15857_v5  ;;  %11808 = vmatprep.mubr.f32.mxu0 %v15418_v1  ;;  %v20255_v18 = vand.u32 4294901760, %v15445_v16  ;;  %v9164_v49 = vld [vmem:[%s19569_s1 + $0x2c8] sm:$0xff] }
  0x4a   : > { %v13840_v7 = vpack.c.bf16 %v20252_v55, %v20251_v0  ;;  %10620 = vmatprep.mubr.f32.mxu1 %v15388_v30  ;;  %13839 = vmatpush3.bf16.msra.mxu0 %v13836_v43  ;;  %v12980_v39 = vpack.c.bf16 %v518_v51, %v511_v57  ;;  %v15874_v41 = vpack.c.bf16 %v20254_v56, %v20253_v20  ;;  %v20256_v0 = vand.u32 4294901760, %v15464_v10 }
  0x4b   : > { %12977 = vmatprep.subr.bf16.mxu1 %v12976_v24  ;;  %v13844_v47 = vpack.c.bf16 %v19652_v54, %v19653_v6  ;;  %v12984_v43 = vpack.c.bf16 %v15400_v45, %v15395_v46  ;;  %v20257_v51 = vand.u32 4294901760, %v15524_v60  ;;  %v20258_v57 = vand.u32 4294901760, %v15539_v35  ;;  %v20275_v54 = vld [vmem:[#allocation15_spill] sm:$0xff] }
  0x4c   : > { %13841 = vmatprep.subr.bf16.mxu0 %v13840_v7  ;;  %v15884_v38 = vpack.c.bf16 %v20256_v0, %v20255_v18  ;;  %12979 = vmatpush3.bf16.msra.mxu1 %v12976_v24  ;;  %v12988_v20 = vpack.c.bf16 %v15464_v10, %v15445_v16  ;;  %v20260_v24 = vand.u32 4294901760, %v15568_v15  ;;  %v20261_v46 = vand.u32 4294901760, %v15596_v59 }
  0x4d   : > { %12981 = vmatprep.subr.bf16.mxu1 %v12980_v39  ;;  %v15892_v55 = vpack.c.bf16 %v20258_v57, %v20257_v51  ;;  %v12992_v16 = vpack.c.bf16 %v15539_v35, %v15524_v60  ;;  %v20263_v10 = vand.u32 4294901760, %v15641_v61  ;;  %v12996_v60 = vpack.c.bf16 %v15568_v15, %v15563_v58 }
  0x4e   : > { %13843 = vmatpush3.bf16.msra.mxu0 %v13840_v7  ;;  %v20259_v7 = vand.u32 4294901760, %v15563_v58  ;;  %v20265_v35 = vand.u32 4294901760, %v15700_v11  ;;  %v20266_v0 = vand.u32 4294901760, %v15714_v12  ;;  %v13000_v15 = vpack.c.bf16 %v15614_v63, %v15596_v59 }
  0x4f   : > { %13845 = vmatprep.subr.bf16.mxu0 %v13844_v47  ;;  %v20267_v58 = vand.u32 4294901760, %v15765_v21  ;;  %v20268_v51 = vand.u32 4294901760, %v15776_v28  ;;  %v13004_v59 = vpack.c.bf16 %v15646_v27, %v15641_v61  ;;  %v9155_v61 = vld [vmem:[%s19569_s1 + $0x280] sm:$0xff]  ;;  %v5110_v25 = vand.u32 4294901760, %v9164_v49 }
  0x50   : > { %12983 = vmatpush3.bf16.msra.mxu1 %v12980_v39  ;;  %v15901_v45 = vpack.c.bf16 %v20260_v24, %v20259_v7  ;;  %v20262_v39 = vand.u32 4294901760, %v15614_v63  ;;  %v13008_v63 = vpack.c.bf16 %v15714_v12, %v15700_v11  ;;  %v5083_v7 = vand.u32 4294901760, %v9155_v61  ;;  %v20269_v11 = vld [vmem:[#allocation22_spill] sm:$0xff]  ;;  %v9157_v12 = vld [vmem:[%s19569_s1 + $0x290] sm:$0xff] }
  0x51   : > { %12985 = vmatprep.subr.bf16.mxu1 %v12984_v43  ;;  %v15948_v57 = vpack.c.bf16 %v20268_v51, %v20267_v58 }
  0x52   : > { %13847 = vmatpush3.bf16.msra.mxu0 %v13844_v47  ;;  %v15909_v56 = vpack.c.bf16 %v20262_v39, %v20261_v46  ;;  %v20264_v47 = vand.u32 4294901760, %v15646_v27  ;;  %v9156_v27 = vld [vmem:[%s19569_s1 + $0x288] sm:$0xff]  ;;  %v9158_v46 = vld [vmem:[%s19569_s1 + $0x298] sm:$0xff] }
  0x53   : > { %13849 = vmatprep.subr.bf16.mxu0 %v15207_v22  ;;  %10621 = vmatmul.mubr.f32.vlgmr.msra.gmra.mrb[0].mxu1 %v15418_v1  ;;  %v5086_v24 = vand.u32 4294901760, %v9156_v27  ;;  %v9147_v39 = vld [vmem:[%s15330_s26 + $0x12] sm:$0xff] }
  0x54   : > { %12987 = vmatpush3.bf16.msra.mxu1 %v12984_v43  ;;  %10623 = vmatprep.mubr.f32.mxu1 %v15440_v34  ;;  %v15920_v18 = vpack.c.bf16 %v20264_v47, %v20263_v10  ;;  %v15936_v43 = vpack.c.bf16 %v20266_v0, %v20265_v35  ;;  %v9160_v35 = vld [vmem:[%s19569_s1 + $0x2a8] sm:$0xff]  ;;  %v15994_v0 = vand.u32 4294901760, %v9147_v39 }
  0x55   : > { %11809 = vmatmul.mubr.f32.vlgmr.msra.gmra.mrb[0].mxu0 %v15440_v34  ;;  %12989 = vmatprep.subr.bf16.mxu1 %v12988_v20  ;;  %v15982_v10 = vsub.f32 %v9156_v27, %v5086_v24  ;;  %v15986_v47 = vpack.c.bf16 %v5086_v24, %v5083_v7  ;;  %v5098_v27 = vand.u32 4294901760, %v9160_v35 }
  0x56   : > { %13851 = vmatpush3.bf16.msra.mxu0 %v15207_v22  ;;  %11811 = vmatprep.mubr.f32.mxu0 %v15663_v23 }
  0x57   : > { %13853 = vmatprep.subr.bf16.mxu0 %v15243_v29  ;;  %10624 = vmatmul.mubr.f32.gmra.mrb[2].mxu1 %v15663_v23  ;;  %20270 = vst [vmem:[#allocation61_spill] sm:$0xff] %v15986_v47  ;;  %v19655_v58 = vand.u32 4294901760, %v15982_v10 }
  0x58   : > { %12991 = vmatpush3.bf16.msra.mxu1 %v12988_v20  ;;  %10626 = vmatprep.mubr.f32.mxu1 %v15678_v40  ;;  %v13012_v20 = vpack.c.bf16 %v15776_v28, %v15765_v21  ;;  %v5089_v21 = vand.u32 4294901760, %v9157_v12  ;;  %v5092_v28 = vand.u32 4294901760, %v9158_v46 }
  0x59   : > { %11812 = vmatmul.mubr.f32.gmra.mrb[2].mxu0 %v15678_v40  ;;  %12993 = vmatprep.subr.bf16.mxu1 %v12992_v16 }
  0x5a   : > { %13855 = vmatpush3.bf16.msra.mxu0 %v15243_v29  ;;  %11814 = vmatprep.mubr.f32.mxu0 %v15734_v9  ;;  %v15998_v51 = vsub.f32 %v9157_v12, %v5089_v21  ;;  %v16011_v24 = vpack.c.bf16 %v5092_v28, %v5089_v21  ;;  %v9162_v12 = vld [vmem:[%s19569_s1 + $0x2b8] sm:$0xff]  ;;  %v16027_v21 = vsub.f32 %v9160_v35, %v5098_v27  ;;  %v9163_v35 = vld [vmem:[%s19569_s1 + $0x2c0] sm:$0xff] }
  0x5b   : > { %13857 = vmatprep.subr.bf16.mxu0 %v15298_v44  ;;  %10627 = vmatmul.mubr.f32.gmra.mrb[4].mxu1 %v15734_v9  ;;  %v5107_v5 = vand.u32 4294901760, %v9163_v35  ;;  %v9150_v29 = vld [vmem:[%s15330_s26 + $0x42] sm:$0xff] }
  0x5c   : > { %12995 = vmatpush3.bf16.msra.mxu1 %v12992_v16  ;;  %10629 = vmatprep.mubr.f32.mxu1 %v15753_v36  ;;  %v15980_v16 = vsub.f32 %v9155_v61, %v5083_v7  ;;  %20273 = vst [vmem:[#allocation62_spill] sm:$0xff] %v16011_v24  ;;  %v19663_v6 = vand.u32 4294901760, %v15998_v51 }
  0x5d   : > { %11815 = vmatmul.mubr.f32.gmra.mrb[4].mxu0 %v15753_v36  ;;  %12997 = vmatprep.subr.bf16.mxu1 %v12996_v60  ;;  %v16085_v13 = vsub.f32 %v9163_v35, %v5107_v5 }
  0x5e   : > { %13859 = vmatpush3.bf16.msra.mxu0 %v15298_v44  ;;  %11817 = vmatprep.mubr.f32.mxu0 %v15778_v33 }
  0x5f   : > { %13861 = vmatprep.subr.bf16.mxu0 %v15343_v53  ;;  %10630 = vmatmul.mubr.f32.gmra.mrb[6].mxu1 %v15778_v33 }
  0x60   : > { %12999 = vmatpush3.bf16.msra.mxu1 %v12996_v60  ;;  %10664 = vmatprep.mubr.f32.mxu1 %v15416_v3  ;;  %v9159_v60 = vld [vmem:[%s19569_s1 + $0x2a0] sm:$0xff] }
  0x61   : > { %11818 = vmatmul.mubr.f32.gmra.mrb[6].mxu0 %v15815_v14  ;;  %13001 = vmatprep.subr.bf16.mxu1 %v13000_v15  ;;  %v5095_v61 = vand.u32 4294901760, %v9159_v60 }
  0x62   : > { %13863 = vmatpush3.bf16.msra.mxu0 %v15343_v53  ;;  %11852 = vmatprep.mubr.f32.mxu0 %v15418_v1 }
  0x63   : > { %13865 = vmatprep.subr.bf16.mxu0 %v15379_v42 }
  0x64   : > { %13003 = vmatpush3.bf16.msra.mxu1 %v13000_v15  ;;  %v19656_v15 = vand.u32 4294901760, %v15980_v16 }
  0x65   : > { %13005 = vmatprep.subr.bf16.mxu1 %v13004_v59 }
  0x66   : > { %13867 = vmatpush3.bf16.msra.mxu0 %v15379_v42  ;;  %v16008_v7 = vpack.c.bf16 %v19655_v58, %v19656_v15  ;;  %v16025_v58 = vsub.f32 %v9159_v60, %v5095_v61  ;;  %v5104_v15 = vand.u32 4294901760, %v9162_v12  ;;  %v16040_v60 = vpack.c.bf16 %v5098_v27, %v5095_v61  ;;  %v9168_v42 = vld [vmem:[%s19569_s1 + $0x2e8] sm:$0xff] }
  0x67   : > { %13869 = vmatprep.subr.bf16.mxu0 %v15483_v8  ;;  %v19673_v61 = vand.u32 4294901760, %v16027_v21 }
  0x68   : > { %13007 = vmatpush3.bf16.msra.mxu1 %v13004_v59  ;;  %v16000_v59 = vsub.f32 %v9158_v46, %v5092_v28  ;;  %v16020_v46 = vsub.f32 %v9147_v39, %v15994_v0  ;;  %v20276_v28 = vld [vmem:[#allocation4_spill] sm:$0xff]  ;;  %20278 = vst [vmem:[#allocation64_spill] sm:$0xff] %v16040_v60 }
  0x69   : > { %13009 = vmatprep.subr.bf16.mxu1 %v13008_v63 }
  0x6a   : > { %13871 = vmatpush3.bf16.msra.mxu0 %v15483_v8  ;;  %20274 = vst [vmem:[#allocation63_spill] sm:$0xff] %v16020_v46  ;;  %v19662_v19 = vand.u32 4294901760, %v16000_v59  ;;  %v20284_v31 = vand.u32 4294901760, %v16020_v46  ;;  %v9167_v8 = vld [vmem:[%s19569_s1 + $0x2e0] sm:$0xff] }
  0x6b   : > { %13873 = vmatprep.subr.bf16.mxu0 %v20269_v11 }
  0x6c   : > { %13011 = vmatpush3.bf16.msra.mxu1 %v13008_v63  ;;  %v20271_v63 = vld [vmem:[#allocation2_spill] sm:$0xff] }
  0x6d   : > { %13013 = vmatprep.subr.bf16.mxu1 %v13012_v20  ;;  %20272 = vst [vmem:[#allocation2_spill] sm:$0xff] %v16008_v7 }
  0x6e   : > { %13875 = vmatpush3.bf16.msra.mxu0 %v20269_v11  ;;  %v5116_v11 = vand.u32 4294901760, %v9166_v48 }
  0x6f   : > { %13877 = vmatprep.subr.bf16.mxu0 %v15513_v17 }
  0x70   : > { %13015 = vmatpush3.bf16.msra.mxu1 %v13012_v20  ;;  %v9161_v20 = vld [vmem:[%s19569_s1 + $0x2b0] sm:$0xff]  ;;  %v16117_v44 = vsub.f32 %v9166_v48, %v5116_v11 }
  0x71   : > { %13017 = vmatprep.subr.bf16.mxu1 %v20271_v63  ;;  %v5101_v39 = vand.u32 4294901760, %v9161_v20 }
  0x72   : > { %13879 = vmatpush3.bf16.msra.mxu0 %v15513_v17  ;;  %v16087_v17 = vsub.f32 %v9164_v49, %v5110_v25  ;;  %v16101_v49 = vpack.c.bf16 %v5110_v25, %v5107_v5  ;;  %v9149_v5 = vld [vmem:[%s15330_s26 + $0x32] sm:$0xff]  ;;  %v20290_v25 = vand.u32 4294901760, %v16085_v13 }
  0x73   : > { %13881 = vmatprep.subr.bf16.mxu0 %v15986_v47  ;;  %10665 = vmatmul.mubr.f32.vlgmr.msra.gmra.mrb[0].mxu1 %v20275_v54  ;;  %v16037_v54 = vpack.c.bf16 %v19662_v19, %v19663_v6  ;;  %v19674_v19 = vand.u32 4294901760, %v16025_v58  ;;  %v16054_v27 = vsub.f32 %v9161_v20, %v5101_v39  ;;  %v16056_v6 = vsub.f32 %v9162_v12, %v5104_v15  ;;  %v9165_v12 = vld [vmem:[%s19569_s1 + $0x2d0] sm:$0xff] }
  0x74   : > { %13019 = vmatpush3.bf16.msra.mxu1 %v20271_v63  ;;  %10667 = vmatprep.mubr.f32.mxu1 %v20279_v32  ;;  %v20280_v32 = vld [vmem:[#allocation6_spill] sm:$0xff]  ;;  %v16069_v20 = vpack.c.bf16 %v5104_v15, %v5101_v39  ;;  %20288 = vst [vmem:[#allocation68_spill] sm:$0xff] %v16101_v49 }
  0x75   : > { %11853 = vmatmul.mubr.f32.vlgmr.msra.gmra.mrb[0].mxu0 %v15440_v34  ;;  %13021 = vmatprep.subr.bf16.mxu1 %v20276_v28  ;;  %20277 = vst [vmem:[#allocation4_spill] sm:$0xff] %v16037_v54  ;;  %v19687_v15 = vand.u32 4294901760, %v16054_v27  ;;  %v19686_v39 = vand.u32 4294901760, %v16056_v6  ;;  %v16143_v54 = vand.u32 4294901760, %v9149_v5 }
  0x76   : > { %13883 = vmatpush3.bf16.msra.mxu0 %v15986_v47  ;;  %11855 = vmatprep.mubr.f32.mxu0 %v15663_v23  ;;  %20282 = vst [vmem:[#allocation66_spill] sm:$0xff] %v16069_v20 }
  0x77   : > { %13885 = vmatprep.subr.bf16.mxu0 %v16011_v24  ;;  %10668 = vmatmul.mubr.f32.gmra.mrb[2].mxu1 %v15676_v4  ;;  %v16066_v4 = vpack.c.bf16 %v19673_v61, %v19674_v19  ;;  %v5166_v61 = vsub.f32 %v16020_v46, %v20284_v31  ;;  %v20285_v19 = vld [vmem:[#allocation46_spill] sm:$0xff]  ;;  %v5113_v31 = vand.u32 4294901760, %v9165_v12  ;;  %v16098_v35 = vpack.c.bf16 %v19686_v39, %v19687_v15 }
  0x78   : > { %13023 = vmatpush3.bf16.msra.mxu1 %v20276_v28  ;;  %10670 = vmatprep.mubr.f32.mxu1 %v20283_v26  ;;  %v20286_v26 = vld [vmem:[#allocation8_spill] sm:$0xff]  ;;  %v5122_v39 = vand.u32 4294901760, %v9168_v42 }
  0x79   : > { %11856 = vmatmul.mubr.f32.gmra.mrb[2].mxu0 %v15678_v40  ;;  %13025 = vmatprep.subr.bf16.mxu1 %v20280_v32  ;;  %20281 = vst [vmem:[#allocation65_spill] sm:$0xff] %v16066_v4  ;;  %20287 = vst [vmem:[#allocation67_spill] sm:$0xff] %v16098_v35  ;;  %v5167_v53 = vand.u32 4294901760, %v5166_v61  ;;  %v16115_v15 = vsub.f32 %v9165_v12, %v5113_v31  ;;  %v20289_v61 = vld [vmem:[#allocation10_spill] sm:$0xff]  ;;  %v20291_v12 = vand.u32 4294901760, %v16087_v17  ;;  %v9170_v35 = vld [vmem:[%s19569_s1 + $0x2f8] sm:$0xff] }
  0x7a   : > { %13887 = vmatpush3.bf16.msra.mxu0 %v16011_v24  ;;  %11858 = vmatprep.mubr.f32.mxu0 %v15734_v9  ;;  %v16133_v22 = vpack.c.bf16 %v5116_v11, %v5113_v31  ;;  %v20294_v4 = vand.u32 4294901760, %v15416_v3  ;;  %v9151_v31 = vld [vmem:[%s15330_s26 + $0x52] sm:$0xff]  ;;  %v16156_v3 = vand.u32 4294901760, %v9150_v29  ;;  %v5128_v11 = vand.u32 4294901760, %v9170_v35 }
  0x7b   : > { %13889 = vmatprep.subr.bf16.mxu0 %v16040_v60  ;;  %10671 = vmatmul.mubr.f32.gmra.mrb[4].mxu1 %v20285_v19  ;;  %v9148_v19 = vld [vmem:[%s15330_s26 + $0x22] sm:$0xff]  ;;  %v16130_v48 = vpack.c.bf16 %v20291_v12, %v20290_v25  ;;  %v20303_v24 = vand.u32 4294901760, %v15982_v10  ;;  %v16179_v47 = vand.u32 4294901760, %v9151_v31  ;;  %v20317_v40 = vand.u32 4294901760, %v16025_v58 }
  0x7c   : > { %13027 = vmatpush3.bf16.msra.mxu1 %v20280_v32  ;;  %10673 = vmatprep.mubr.f32.mxu1 %v15771_v52  ;;  %v16121_v52 = vand.u32 4294901760, %v9148_v19  ;;  %20293 = vst [vmem:[#allocation70_spill] sm:$0xff] %v16133_v22  ;;  %20296 = vst [vmem:[#allocation72_spill] sm:$0xff] %v16156_v3 }
  0x7d   : > { %11859 = vmatmul.mubr.f32.gmra.mrb[4].mxu0 %v15753_v36  ;;  %13029 = vmatprep.subr.bf16.mxu1 %v20286_v26  ;;  %20292 = vst [vmem:[#allocation69_spill] sm:$0xff] %v16130_v48  ;;  %v16150_v48 = vsub.f32 %v9168_v42, %v5122_v39  ;;  %v20299_v42 = vand.u32 4294901760, %v16115_v15  ;;  %20304 = vst [vmem:[#allocation75_spill] sm:$0xff] %v16179_v47  ;;  %v16215_v9 = vsub.f32 %v9151_v31, %v16179_v47  ;;  %v20316_v31 = vld [vmem:[#allocation23_spill] sm:$0xff] }
  0x7e   : > { %13891 = vmatpush3.bf16.msra.mxu0 %v16040_v60  ;;  %11861 = vmatprep.mubr.f32.mxu0 %v15778_v33  ;;  %v16154_v7 = vsub.f32 %v9148_v19, %v16121_v52  ;;  %v20302_v19 = vand.u32 4294901760, %v15980_v16  ;;  %v20306_v33 = vld [vmem:[#allocation21_spill] sm:$0xff] }
  0x7f   : > { %13893 = vmatprep.subr.bf16.mxu0 %v16069_v20  ;;  %10674 = vmatmul.mubr.f32.gmra.mrb[6].mxu1 %v15800_v62  ;;  %v5119_v62 = vand.u32 4294901760, %v9167_v8 }
  0x80   : > { %13031 = vmatpush3.bf16.msra.mxu1 %v20286_v26  ;;  %10708 = vmatprep.mubr.f32.mxu1 %v20294_v4  ;;  %20295 = vst [vmem:[#allocation71_spill] sm:$0xff] %v16154_v7  ;;  %v20297_v4 = vld [vmem:[#allocation18_spill] sm:$0xff] }
  0x81   : > { %11862 = vmatmul.mubr.f32.gmra.mrb[6].mxu0 %v15815_v14  ;;  %13033 = vmatprep.subr.bf16.mxu1 %v20289_v61  ;;  %v9169_v14 = vld [vmem:[%s19569_s1 + $0x2f0] sm:$0xff]  ;;  %v16148_v12 = vsub.f32 %v9167_v8, %v5119_v62  ;;  %v9152_v8 = vld [vmem:[%s15330_s26 + $0x62] sm:$0xff] }
  0x82   : > { %13895 = vmatpush3.bf16.msra.mxu0 %v16069_v20  ;;  %11896 = vmatprep.mubr.f32.mxu0 %v5167_v53  ;;  %v16160_v53 = vpack.c.bf16 %v5122_v39, %v5119_v62  ;;  %v5125_v25 = vand.u32 4294901760, %v9169_v14  ;;  %v20300_v20 = vand.u32 4294901760, %v16117_v44  ;;  %v5254_v62 = vsub.f32 %v15982_v10, %v20303_v24 }
  0x83   : > { %13897 = vmatprep.subr.bf16.mxu0 %v16101_v49  ;;  %v16177_v39 = vsub.f32 %v9149_v5, %v16143_v54  ;;  %v16190_v24 = vsub.f32 %v9150_v29, %v16156_v3  ;;  %v9153_v5 = vld [vmem:[%s15330_s26 + $0x72] sm:$0xff] }
  0x84   : > { %13035 = vmatpush3.bf16.msra.mxu1 %v20289_v61  ;;  %20298 = vst [vmem:[#allocation73_spill] sm:$0xff] %v16160_v53  ;;  %v16167_v60 = vpack.c.bf16 %v20300_v20, %v20299_v42  ;;  %v16183_v42 = vsub.f32 %v9169_v14, %v5125_v25  ;;  %v16192_v61 = vand.u32 4294901760, %v9152_v8  ;;  %v16197_v46 = vpack.c.bf16 %v5128_v11, %v5125_v25  ;;  %v9154_v20 = vld [vmem:[%s15330_s26 + $0x82] sm:$0xff] }
  0x85   : > { %13037 = vmatprep.subr.bf16.mxu1 %v20297_v4  ;;  %v20308_v14 = vand.u32 4294901760, %v15998_v51  ;;  %v5255_v26 = vand.u32 4294901760, %v5254_v62  ;;  %v20322_v47 = vand.u32 4294901760, %v16177_v39 }
  0x86   : > { %13899 = vmatpush3.bf16.msra.mxu0 %v16101_v49  ;;  %20301 = vst [vmem:[#allocation74_spill] sm:$0xff] %v16167_v60  ;;  %v5247_v49 = vsub.f32 %v15980_v16, %v20302_v19  ;;  %v16185_v60 = vsub.f32 %v9170_v35, %v5128_v11  ;;  %20305 = vst [vmem:[#allocation76_spill] sm:$0xff] %v16192_v61  ;;  %v20310_v19 = vand.u32 4294901760, %v16150_v48  ;;  %v16229_v11 = vand.u32 4294901760, %v9154_v20 }
  0x87   : > { %13901 = vmatprep.subr.bf16.mxu0 %v16133_v22  ;;  %20307 = vst [vmem:[#allocation77_spill] sm:$0xff] %v16197_v46  ;;  %v5261_v35 = vsub.f32 %v15998_v51, %v20308_v14  ;;  %v16217_v14 = vand.u32 4294901760, %v9153_v5  ;;  %v5186_v32 = vsub.f32 %v16177_v39, %v20322_v47 }
  0x88   : > { %13039 = vmatpush3.bf16.msra.mxu1 %v20297_v4  ;;  %v20309_v4 = vand.u32 4294901760, %v16148_v12  ;;  %v5248_v36 = vand.u32 4294901760, %v5247_v49  ;;  %v20314_v49 = vand.u32 4294901760, %v16154_v7  ;;  %20315 = vst [vmem:[#allocation80_spill] sm:$0xff] %v16229_v11 }
  0x89   : > { %13041 = vmatprep.subr.bf16.mxu1 %v20306_v33  ;;  %20313 = vst [vmem:[#allocation79_spill] sm:$0xff] %v16217_v14  ;;  %v16251_v3 = vsub.f32 %v9153_v5, %v16217_v14 }
  0x8a   : > { %13903 = vmatpush3.bf16.msra.mxu0 %v16133_v22  ;;  %v16207_v29 = vpack.c.bf16 %v20310_v19, %v20309_v4  ;;  %v20312_v22 = vand.u32 4294901760, %v16000_v59  ;;  %v5176_v62 = vsub.f32 %v16154_v7, %v20314_v49  ;;  %v5275_v4 = vsub.f32 %v16025_v58, %v20317_v40 }
  0x8b   : > { %13905 = vmatprep.subr.bf16.mxu0 %v16160_v53  ;;  %v20319_v49 = vand.u32 4294901760, %v16183_v42  ;;  %v20320_v19 = vand.u32 4294901760, %v16185_v60  ;;  %v13912_v7 = vpack.c.bf16 %v5255_v26, %v5248_v36  ;;  %v16259_v36 = vsub.f32 %v9154_v20, %v16229_v11  ;;  %v20326_v26 = vld [vmem:[#allocation17_spill] sm:$0xff] }
  0x8c   : > { %20311 = vst [vmem:[#allocation78_spill] sm:$0xff] %v16207_v29  ;;  %v5268_v25 = vsub.f32 %v16000_v59, %v20312_v22  ;;  %13043 = vmatpush3.bf16.msra.mxu1 %v20306_v33  ;;  %v16227_v22 = vsub.f32 %v9152_v8, %v16192_v61  ;;  %v20318_v29 = vand.u32 4294901760, %v16027_v21  ;;  %v5276_v47 = vand.u32 4294901760, %v5275_v4 }
  0x8d   : > { %13045 = vmatprep.subr.bf16.mxu1 %v20316_v31  ;;  %v16243_v8 = vpack.c.bf16 %v20320_v19, %v20319_v49  ;;  %v20323_v19 = vand.u32 4294901760, %v16190_v24  ;;  %v20325_v40 = vand.u32 4294901760, %v16056_v6  ;;  %v5187_v20 = vand.u32 4294901760, %v5186_v32 }
  0x8e   : > { %13907 = vmatpush3.bf16.msra.mxu0 %v16160_v53  ;;  %v5282_v33 = vsub.f32 %v16027_v21, %v20318_v29  ;;  %v5262_v53 = vand.u32 4294901760, %v5261_v35  ;;  %v5269_v61 = vand.u32 4294901760, %v5268_v25  ;;  %v5177_v29 = vand.u32 4294901760, %v5176_v62 }
  0x8f   : > { %20321 = vst [vmem:[#allocation23_spill] sm:$0xff] %v16243_v8  ;;  %13909 = vmatprep.subr.bf16.mxu0 %v16197_v46  ;;  %v5196_v49 = vsub.f32 %v16190_v24, %v20323_v19  ;;  %v20324_v25 = vand.u32 4294901760, %v16054_v27  ;;  %v5296_v19 = vsub.f32 %v16056_v6, %v20325_v40  ;;  %v20327_v8 = vand.u32 4294901760, %v16215_v9 }
  0x90   : > { %13047 = vmatpush3.bf16.msra.mxu1 %v20316_v31  ;;  %v5283_v35 = vand.u32 4294901760, %v5282_v33  ;;  %v13916_v5 = vpack.c.bf16 %v5269_v61, %v5262_v53  ;;  %v20328_v61 = vand.u32 4294901760, %v16227_v22 }
  0x91   : > { %13049 = vmatprep.subr.bf16.mxu1 %v15874_v41  ;;  %v5289_v62 = vsub.f32 %v16054_v27, %v20324_v25  ;;  %v5197_v33 = vand.u32 4294901760, %v5196_v49  ;;  %v20331_v49 = vld [vmem:[#allocation26_spill] sm:$0xff]  ;;  %v20333_v25 = vand.u32 4294901760, %v16251_v3 }
  0x92   : > { %13911 = vmatpush3.bf16.msra.mxu0 %v16197_v46  ;;  %v5206_v46 = vsub.f32 %v16215_v9, %v20327_v8  ;;  %v5216_v53 = vsub.f32 %v16227_v22, %v20328_v61  ;;  %v13920_v32 = vpack.c.bf16 %v5283_v35, %v5276_v47  ;;  %v20329_v8 = vand.u32 4294901760, %v16085_v13  ;;  %v20332_v61 = vld [vmem:[#allocation40_spill] sm:$0xff] }
  0x93   : > { %13913 = vmatprep.subr.bf16.mxu0 %v13912_v7  ;;  %10709 = vmatmul.mubr.f32.vlgmr.msra.gmra.mrb[0].mxu1 %v20326_v26  ;;  %v5290_v40 = vand.u32 4294901760, %v5289_v62  ;;  %v5297_v26 = vand.u32 4294901760, %v5296_v19  ;;  %v5226_v47 = vsub.f32 %v16251_v3, %v20333_v25  ;;  %v20334_v62 = vand.u32 4294901760, %v16259_v36 }
  0x94   : > { %13051 = vmatpush3.bf16.msra.mxu1 %v15874_v41  ;;  %v5303_v4 = vsub.f32 %v16085_v13, %v20329_v8  ;;  %v20330_v41 = vand.u32 4294901760, %v16087_v17  ;;  %10711 = vmatprep.mubr.f32.mxu1 %v20331_v49  ;;  %v5217_v35 = vand.u32 4294901760, %v5216_v53  ;;  %v20337_v53 = vld [vmem:[#allocation43_spill] sm:$0xff] }
  0x95   : > { %11897 = vmatmul.mubr.f32.vlgmr.msra.gmra.mrb[0].mxu0 %v5177_v29  ;;  %13053 = vmatprep.subr.bf16.mxu1 %v15884_v38  ;;  %v5236_v19 = vsub.f32 %v16259_v36, %v20334_v62  ;;  %v13924_v25 = vpack.c.bf16 %v5297_v26, %v5290_v40  ;;  %v20339_v26 = vand.u32 4294901760, %v16150_v48 }
  0x96   : > { %13915 = vmatpush3.bf16.msra.mxu0 %v13912_v7  ;;  %v5310_v29 = vsub.f32 %v16087_v17, %v20330_v41  ;;  %11899 = vmatprep.mubr.f32.mxu0 %v5187_v20  ;;  %v5207_v7 = vand.u32 4294901760, %v5206_v46  ;;  %v20335_v20 = vand.u32 4294901760, %v16115_v15  ;;  %v20336_v46 = vand.u32 4294901760, %v16117_v44 }
  0x97   : > { %13917 = vmatprep.subr.bf16.mxu0 %v13916_v5  ;;  %10712 = vmatmul.mubr.f32.gmra.mrb[2].mxu1 %v20332_v61  ;;  %v5237_v49 = vand.u32 4294901760, %v5236_v19 }
  0x98   : > { %13055 = vmatpush3.bf16.msra.mxu1 %v15884_v38  ;;  %v5317_v8 = vsub.f32 %v16115_v15, %v20335_v20  ;;  %v5324_v41 = vsub.f32 %v16117_v44, %v20336_v46  ;;  %v5304_v38 = vand.u32 4294901760, %v5303_v4  ;;  %10714 = vmatprep.mubr.f32.mxu1 %v20337_v53  ;;  %v20338_v4 = vand.u32 4294901760, %v16148_v12  ;;  %v20349_v46 = vld [vmem:[#allocation47_spill] sm:$0xff]  ;;  %v16396_v53 = vld [vmem:[%s19569_s1 + $0x18] sm:$0xff] }
  0x99   : > { %11900 = vmatmul.mubr.f32.gmra.mrb[2].mxu0 %v5197_v33  ;;  %13057 = vmatprep.subr.bf16.mxu1 %v15892_v55  ;;  %v5311_v33 = vand.u32 4294901760, %v5310_v29 }
  0x9a   : > { %13919 = vmatpush3.bf16.msra.mxu0 %v13916_v5  ;;  %11902 = vmatprep.mubr.f32.mxu0 %v5207_v7  ;;  %v5227_v5 = vand.u32 4294901760, %v5226_v47  ;;  %v5318_v61 = vand.u32 4294901760, %v5317_v8  ;;  %v5325_v62 = vand.u32 4294901760, %v5324_v41  ;;  %v5331_v40 = vsub.f32 %v16148_v12, %v20338_v4 }
  0x9b   : > { %13921 = vmatprep.subr.bf16.mxu0 %v13920_v32  ;;  %10715 = vmatmul.mubr.f32.gmra.mrb[4].mxu1 %v15760_v37  ;;  %v13928_v20 = vpack.c.bf16 %v5311_v33, %v5304_v38  ;;  %v5338_v37 = vsub.f32 %v16150_v48, %v20339_v26  ;;  %v20340_v7 = vand.u32 4294901760, %v16183_v42  ;;  %v13964_v41 = vpack.c.bf16 %v16117_v44, %v16115_v15  ;;  %v16375_v38 = vld [vmem:[%s19569_s1] sm:$0xff]  ;;  %v20354_v44 = vld [vmem:[#allocation21_spill] sm:$0xff] }
  0x9c   : > { %13059 = vmatpush3.bf16.msra.mxu1 %v15892_v55  ;;  %10717 = vmatprep.mubr.f32.mxu1 %v15795_v2  ;;  %v13932_v55 = vpack.c.bf16 %v5325_v62, %v5318_v61  ;;  %v1190_v15 = vand.u32 4294901760, %v16375_v38  ;;  %v16408_v61 = vld [vmem:[%s19569_s1 + $0x20] sm:$0xff]  ;;  %v16413_v62 = vld [vmem:[%s19569_s1 + $0x28] sm:$0xff] }
  0x9d   : > { %11903 = vmatmul.mubr.f32.gmra.mrb[4].mxu0 %v5217_v35  ;;  %13061 = vmatprep.subr.bf16.mxu1 %v15901_v45  ;;  %v5339_v29 = vand.u32 4294901760, %v5338_v37  ;;  %v5345_v47 = vsub.f32 %v16183_v42, %v20340_v7  ;;  %v20341_v35 = vand.u32 4294901760, %v16185_v60  ;;  %v19751_v26 = vand.u32 4294901760, %v16413_v62  ;;  %v20357_v37 = vld [vmem:[#allocation61_spill] sm:$0xff] }
  0x9e   : > { %13923 = vmatpush3.bf16.msra.mxu0 %v13920_v32  ;;  %11905 = vmatprep.mubr.f32.mxu0 %v5227_v5  ;;  %v5332_v32 = vand.u32 4294901760, %v5331_v40  ;;  %v198_v5 = vld [vmem:[%s15330_s26] sm:$0xff]  ;;  %v19752_v40 = vand.u32 4294901760, %v16408_v61 }
  0x9f   : > { %13925 = vmatprep.subr.bf16.mxu0 %v13924_v25  ;;  %10718 = vmatmul.mubr.f32.gmra.mrb[6].mxu1 %v15825_v50  ;;  %v5352_v2 = vsub.f32 %v16185_v60, %v20341_v35 }
  0xa0   : > { %13063 = vmatpush3.bf16.msra.mxu1 %v15901_v45  ;;  %10752 = vmatprep.mubr.f32.mxu1 %v15388_v30  ;;  %v13936_v50 = vpack.c.bf16 %v5339_v29, %v5332_v32  ;;  %v5346_v45 = vand.u32 4294901760, %v5345_v47  ;;  %v20359_v29 = vld [vmem:[#allocation71_spill] sm:$0xff]  ;;  %v16450_v7 = vpack.c.bf16 %v19751_v26, %v19752_v40 }
  0xa1   : > { %11906 = vmatmul.mubr.f32.gmra.mrb[6].mxu0 %v5237_v49  ;;  %13065 = vmatprep.subr.bf16.mxu1 %v15909_v56  ;;  %v5353_v19 = vand.u32 4294901760, %v5352_v2  ;;  %v20361_v2 = vld [vmem:[#allocation62_spill] sm:$0xff] }
  0xa2   : > { %13927 = vmatpush3.bf16.msra.mxu0 %v13924_v25  ;;  %11940 = vmatprep.mubr.f32.mxu0 %v15994_v0  ;;  %v13968_v25 = vpack.c.bf16 %v16150_v48, %v16148_v12  ;;  %v13972_v48 = vpack.c.bf16 %v16185_v60, %v16183_v42  ;;  %v16391_v12 = vld [vmem:[%s19569_s1 + $0x10] sm:$0xff]  ;;  %v1199_v42 = vand.u32 4294901760, %v16396_v53  ;;  %20360 = vst [vmem:[#allocation43_spill] sm:$0xff] %v16450_v7 }
  0xa3   : > { %13929 = vmatprep.subr.bf16.mxu0 %v13928_v20  ;;  %v13940_v8 = vpack.c.bf16 %v5353_v19, %v5346_v45  ;;  %v1196_v60 = vand.u32 4294901760, %v16391_v12  ;;  %v16463_v45 = vld [vmem:[%s19569_s1 + $0x48] sm:$0xff] }
  0xa4   : > { %13067 = vmatpush3.bf16.msra.mxu1 %v15909_v56  ;;  %v13944_v56 = vpack.c.bf16 %v15982_v10, %v15980_v16  ;;  %v20343_v16 = vld [vmem:[#allocation6_spill] sm:$0xff]  ;;  %v13956_v10 = vpack.c.bf16 %v16056_v6, %v16054_v27 }
  0xa5   : > { %13069 = vmatprep.subr.bf16.mxu1 %v15920_v18  ;;  %v20350_v6 = vld [vmem:[#allocation50_spill] sm:$0xff]  ;;  %v16423_v4 = vpack.c.bf16 %v1199_v42, %v1196_v60  ;;  %v16565_v40 = vsub.f32 %v16391_v12, %v1196_v60 }
  0xa6   : > { %13931 = vmatpush3.bf16.msra.mxu0 %v13928_v20  ;;  %v20351_v27 = vld [vmem:[#allocation10_spill] sm:$0xff]  ;;  %v16415_v20 = vand.u32 4294901760, %v198_v5 }
  0xa7   : > { %13933 = vmatprep.subr.bf16.mxu0 %v13932_v55  ;;  %20356 = vst [vmem:[#allocation26_spill] sm:$0xff] %v16423_v4  ;;  %v202_v12 = vld [vmem:[%s15330_s26 + $0x40] sm:$0xff] }
  0xa8   : > { %13071 = vmatpush3.bf16.msra.mxu1 %v15920_v18  ;;  %v13948_v18 = vpack.c.bf16 %v16000_v59, %v15998_v51  ;;  %v20344_v51 = vld [vmem:[#allocation37_spill] sm:$0xff]  ;;  %v20346_v59 = vld [vmem:[#allocation44_spill] sm:$0xff]  ;;  %v16439_v32 = vsub.f32 %v198_v5, %v16415_v20  ;;  %v16525_v5 = vld [vmem:[%s19569_s1 + $0x68] sm:$0xff] }
  0xa9   : > { %13073 = vmatprep.subr.bf16.mxu1 %v15936_v43  ;;  %v20372_v60 = vand.u32 4294901760, %v16525_v5 }
  0xaa   : > { %13935 = vmatpush3.bf16.msra.mxu0 %v13932_v55  ;;  %v16431_v55 = vld [vmem:[%s19569_s1 + $0x30] sm:$0xff]  ;;  %20358 = vst [vmem:[#allocation40_spill] sm:$0xff] %v16439_v32  ;;  %v19744_v19 = vand.u32 4294901760, %v16439_v32 }
  0xab   : > { %13937 = vmatprep.subr.bf16.mxu0 %v13936_v50  ;;  %v19748_v47 = vand.u32 4294901760, %v16431_v55 }
  0xac   : > { %13075 = vmatpush3.bf16.msra.mxu1 %v15936_v43  ;;  %v13952_v43 = vpack.c.bf16 %v16027_v21, %v16025_v58  ;;  %v20345_v58 = vld [vmem:[#allocation75_spill] sm:$0xff]  ;;  %v20348_v21 = vld [vmem:[#allocation8_spill] sm:$0xff] }
  0xad   : > { %13077 = vmatprep.subr.bf16.mxu1 %v15948_v57 }
  0xae   : > { %13939 = vmatpush3.bf16.msra.mxu0 %v13936_v50  ;;  %v16458_v50 = vld [vmem:[%s19569_s1 + $0x40] sm:$0xff] }
  0xaf   : > { %13941 = vmatprep.subr.bf16.mxu0 %v13940_v8 }
  0xb0   : > { %13079 = vmatpush3.bf16.msra.mxu1 %v15948_v57  ;;  %v20342_v57 = vld [vmem:[#allocation72_spill] sm:$0xff] }
  0xb1   : > { %13081 = vmatprep.subr.bf16.mxu1 %v20271_v63 }
  0xb2   : > { %13943 = vmatpush3.bf16.msra.mxu0 %v13940_v8 }
  0xb3   : > { %13945 = vmatprep.subr.bf16.mxu0 %v13944_v56  ;;  %10753 = vmatmul.mubr.f32.vlgmr.msra.gmra.mrb[0].mxu1 %v15418_v1 }
  0xb4   : > { %13083 = vmatpush3.bf16.msra.mxu1 %v20271_v63  ;;  %10755 = vmatprep.mubr.f32.mxu1 %v15440_v34  ;;  %v20347_v63 = vld [vmem:[#allocation76_spill] sm:$0xff] }
  0xb5   : > { %11941 = vmatmul.mubr.f32.vlgmr.msra.gmra.mrb[0].mxu0 %v16121_v52  ;;  %13085 = vmatprep.subr.bf16.mxu1 %v20276_v28 }
  0xb6   : > { %13947 = vmatpush3.bf16.msra.mxu0 %v13944_v56  ;;  %11943 = vmatprep.mubr.f32.mxu0 %v16143_v54  ;;  %v19746_v56 = vand.u32 4294901760, %v16458_v50 }
  0xb7   : > { %13949 = vmatprep.subr.bf16.mxu0 %v13948_v18  ;;  %10756 = vmatmul.mubr.f32.gmra.mrb[2].mxu1 %v15663_v23 }
  0xb8   : > { %13087 = vmatpush3.bf16.msra.mxu1 %v20276_v28  ;;  %10758 = vmatprep.mubr.f32.mxu1 %v20344_v51  ;;  %v13960_v28 = vpack.c.bf16 %v16087_v17, %v16085_v13  ;;  %v20352_v17 = vld [vmem:[#allocation63_spill] sm:$0xff]  ;;  %v20353_v13 = vld [vmem:[#allocation18_spill] sm:$0xff] }
  0xb9   : > { %11944 = vmatmul.mubr.f32.gmra.mrb[2].mxu0 %v20342_v57  ;;  %13089 = vmatprep.subr.bf16.mxu1 %v20343_v16 }
  0xba   : > { %13951 = vmatpush3.bf16.msra.mxu0 %v13948_v18  ;;  %11946 = vmatprep.mubr.f32.mxu0 %v20345_v58  ;;  %v19745_v18 = vand.u32 4294901760, %v16463_v45 }
  0xbb   : > { %13953 = vmatprep.subr.bf16.mxu0 %v13952_v43  ;;  %10759 = vmatmul.mubr.f32.gmra.mrb[4].mxu1 %v20346_v59 }
  0xbc   : > { %13091 = vmatpush3.bf16.msra.mxu1 %v20343_v16  ;;  %10761 = vmatprep.mubr.f32.mxu1 %v20349_v46  ;;  %v16489_v16 = vld [vmem:[%s19569_s1 + $0x58] sm:$0xff] }
  0xbd   : > { %11947 = vmatmul.mubr.f32.gmra.mrb[4].mxu0 %v20347_v63  ;;  %13093 = vmatprep.subr.bf16.mxu1 %v20348_v21 }
  0xbe   : > { %13955 = vmatpush3.bf16.msra.mxu0 %v13952_v43  ;;  %11949 = vmatprep.mubr.f32.mxu0 %v16217_v14  ;;  %v16484_v43 = vld [vmem:[%s19569_s1 + $0x50] sm:$0xff] }
  0xbf   : > { %13957 = vmatprep.subr.bf16.mxu0 %v13956_v10  ;;  %10762 = vmatmul.mubr.f32.gmra.mrb[6].mxu1 %v20350_v6 }
  0xc0   : > { %13095 = vmatpush3.bf16.msra.mxu1 %v20348_v21  ;;  %10796 = vmatprep.mubr.f32.mxu1 %v15388_v30  ;;  %v16380_v30 = vld [vmem:[%s19569_s1 + $0x8] sm:$0xff]  ;;  %v1273_v21 = vsub.f32 %v16439_v32, %v19744_v19  ;;  %v200_v19 = vld [vmem:[%s15330_s26 + $0x20] sm:$0xff] }
  0xc1   : > { %11950 = vmatmul.mubr.f32.gmra.mrb[6].mxu0 %v16229_v11  ;;  %13097 = vmatprep.subr.bf16.mxu1 %v20351_v27  ;;  %v1193_v33 = vand.u32 4294901760, %v16380_v30 }
  0xc2   : > { %13959 = vmatpush3.bf16.msra.mxu0 %v13956_v10  ;;  %11984 = vmatprep.mubr.f32.mxu0 %v20352_v17  ;;  %v20363_v10 = vld [vmem:[#allocation64_spill] sm:$0xff] }
  0xc3   : > { %13961 = vmatprep.subr.bf16.mxu0 %v13960_v28  ;;  %v16401_v49 = vpack.c.bf16 %v1193_v33, %v1190_v15 }
  0xc4   : > { %13099 = vmatpush3.bf16.msra.mxu1 %v20351_v27  ;;  %v19750_v27 = vand.u32 4294901760, %v16484_v43 }
  0xc5   : > { %13101 = vmatprep.subr.bf16.mxu1 %v20353_v13  ;;  %20355 = vst [vmem:[#allocation17_spill] sm:$0xff] %v16401_v49 }
  0xc6   : > { %13963 = vmatpush3.bf16.msra.mxu0 %v13960_v28  ;;  %v199_v28 = vld [vmem:[%s15330_s26 + $0x10] sm:$0xff] }
  0xc7   : > { %13965 = vmatprep.subr.bf16.mxu0 %v13964_v41 }
  0xc8   : > { %13103 = vmatpush3.bf16.msra.mxu1 %v20353_v13  ;;  %v16505_v13 = vld [vmem:[%s19569_s1 + $0x60] sm:$0xff] }
  0xc9   : > { %13105 = vmatprep.subr.bf16.mxu1 %v20354_v44 }
  0xca   : > { %13967 = vmatpush3.bf16.msra.mxu0 %v13964_v41  ;;  %v19749_v41 = vand.u32 4294901760, %v16489_v16 }
  0xcb   : > { %13969 = vmatprep.subr.bf16.mxu0 %v13968_v25 }
  0xcc   : > { %13107 = vmatpush3.bf16.msra.mxu1 %v20354_v44  ;;  %v16512_v44 = vsub.f32 %v16380_v30, %v1193_v33  ;;  %v1274_v30 = vand.u32 4294901760, %v1273_v21  ;;  %v16546_v21 = vld [vmem:[%s19569_s1 + $0x70] sm:$0xff] }
  0xcd   : > { %13109 = vmatprep.subr.bf16.mxu1 %v20316_v31 }
  0xce   : > { %13971 = vmatpush3.bf16.msra.mxu0 %v13968_v25  ;;  %v16509_v25 = vsub.f32 %v16375_v38, %v1190_v15  ;;  %v16527_v38 = vand.u32 4294901760, %v199_v28  ;;  %v20365_v15 = vld [vmem:[#allocation66_spill] sm:$0xff] }
  0xcf   : > { %13973 = vmatprep.subr.bf16.mxu0 %v13972_v48 }
  0xd0   : > { %13111 = vmatpush3.bf16.msra.mxu1 %v20316_v31  ;;  %v16436_v31 = vld [vmem:[%s19569_s1 + $0x38] sm:$0xff]  ;;  %v16560_v26 = vsub.f32 %v199_v28, %v16527_v38  ;;  %v20375_v28 = vand.u32 4294901760, %v16512_v44 }
  0xd1   : > { %13113 = vmatprep.subr.bf16.mxu1 %v16401_v49  ;;  %v19747_v35 = vand.u32 4294901760, %v16436_v31 }
  0xd2   : > { %13975 = vmatpush3.bf16.msra.mxu0 %v13972_v48  ;;  %v16520_v48 = vpack.c.bf16 %v19745_v18, %v19746_v56  ;;  %v16540_v18 = vpack.c.bf16 %v19749_v41, %v19750_v27  ;;  %v201_v27 = vld [vmem:[%s15330_s26 + $0x30] sm:$0xff]  ;;  %20367 = vst [vmem:[#allocation8_spill] sm:$0xff] %v16560_v26  ;;  %v16573_v56 = vand.u32 4294901760, %v200_v19 }
  0xd3   : > { %13977 = vmatprep.subr.bf16.mxu0 %v20357_v37  ;;  %10797 = vmatmul.mubr.f32.vlgmr.msra.gmra.mrb[0].mxu1 %v15418_v1  ;;  %v16477_v8 = vpack.c.bf16 %v19747_v35, %v19748_v47  ;;  %v16551_v35 = vld [vmem:[%s19569_s1 + $0x78] sm:$0xff]  ;;  %v16570_v47 = vsub.f32 %v16396_v53, %v1199_v42  ;;  %v20368_v41 = vld [vmem:[#allocation68_spill] sm:$0xff]  ;;  %v20371_v53 = vand.u32 4294901760, %v16505_v13 }
  0xd4   : > { %13115 = vmatpush3.bf16.msra.mxu1 %v16401_v49  ;;  %10799 = vmatprep.mubr.f32.mxu1 %v15440_v34  ;;  %20364 = vst [vmem:[#allocation6_spill] sm:$0xff] %v16520_v48  ;;  %20366 = vst [vmem:[#allocation75_spill] sm:$0xff] %v16540_v18  ;;  %v20378_v34 = vld [vmem:[#allocation70_spill] sm:$0xff]  ;;  %v16618_v1 = vsub.f32 %v200_v19, %v16573_v56  ;;  %v205_v49 = vld [vmem:[%s15330_s26 + $0x70] sm:$0xff] }
  0xd5   : > { %11985 = vmatmul.mubr.f32.vlgmr.msra.gmra.mrb[0].mxu0 %v20359_v29  ;;  %13117 = vmatprep.subr.bf16.mxu1 %v16423_v4  ;;  %20362 = vst [vmem:[#allocation72_spill] sm:$0xff] %v16477_v8  ;;  %v16587_v42 = vpack.c.bf16 %v20372_v60, %v20371_v53  ;;  %v16620_v53 = vand.u32 4294901760, %v202_v12  ;;  %v20382_v60 = vand.u32 4294901760, %v16546_v21 }
  0xd6   : > { %13979 = vmatpush3.bf16.msra.mxu0 %v20357_v37  ;;  %11987 = vmatprep.mubr.f32.mxu0 %v16177_v39  ;;  %20380 = vst [vmem:[#allocation18_spill] sm:$0xff] %v16618_v1 }
  0xd7   : > { %13981 = vmatprep.subr.bf16.mxu0 %v20361_v2  ;;  %10800 = vmatmul.mubr.f32.gmra.mrb[2].mxu1 %v15663_v23  ;;  %20373 = vst [vmem:[#allocation63_spill] sm:$0xff] %v16587_v42  ;;  %20381 = vst [vmem:[#allocation21_spill] sm:$0xff] %v16620_v53  ;;  %v16660_v32 = vsub.f32 %v202_v12, %v16620_v53 }
  0xd8   : > { %13119 = vmatpush3.bf16.msra.mxu1 %v16423_v4  ;;  %10802 = vmatprep.mubr.f32.mxu1 %v20344_v51  ;;  %v203_v51 = vld [vmem:[%s15330_s26 + $0x50] sm:$0xff] }
  0xd9   : > { %11988 = vmatmul.mubr.f32.gmra.mrb[2].mxu0 %v16190_v24  ;;  %13121 = vmatprep.subr.bf16.mxu1 %v16450_v7  ;;  %20393 = vst [vmem:[#allocation81_spill] sm:$0xff] %v16660_v32 }
  0xda   : > { %13983 = vmatpush3.bf16.msra.mxu0 %v20361_v2  ;;  %11990 = vmatprep.mubr.f32.mxu0 %v16215_v9 }
  0xdb   : > { %13985 = vmatprep.subr.bf16.mxu0 %v20363_v10  ;;  %10803 = vmatmul.mubr.f32.gmra.mrb[4].mxu1 %v20346_v59 }
  0xdc   : > { %13123 = vmatpush3.bf16.msra.mxu1 %v16450_v7  ;;  %10805 = vmatprep.mubr.f32.mxu1 %v20349_v46  ;;  %v16579_v46 = vand.u32 4294901760, %v201_v27  ;;  %v20387_v7 = vand.u32 4294901760, %v16436_v31 }
  0xdd   : > { %11991 = vmatmul.mubr.f32.gmra.mrb[4].mxu0 %v16227_v22  ;;  %13125 = vmatprep.subr.bf16.mxu1 %v16477_v8 }
  0xde   : > { %13987 = vmatpush3.bf16.msra.mxu0 %v20363_v10  ;;  %11993 = vmatprep.mubr.f32.mxu0 %v16251_v3  ;;  %20370 = vst [vmem:[#allocation10_spill] sm:$0xff] %v16579_v46  ;;  %v16639_v4 = vsub.f32 %v16436_v31, %v20387_v7  ;;  %v20391_v7 = vld [vmem:[#allocation73_spill] sm:$0xff] }
  0xdf   : > { %13989 = vmatprep.subr.bf16.mxu0 %v20365_v15  ;;  %10806 = vmatmul.mubr.f32.gmra.mrb[6].mxu1 %v20350_v6  ;;  %v20369_v6 = vand.u32 4294901760, %v20352_v17  ;;  %v1361_v17 = vsub.f32 %v16512_v44, %v20375_v28  ;;  %v20377_v28 = vand.u32 4294901760, %v16413_v62 }
  0xe0   : > { %13127 = vmatpush3.bf16.msra.mxu1 %v16477_v8  ;;  %10840 = vmatprep.mubr.f32.mxu1 %v1274_v30  ;;  %v20374_v30 = vand.u32 4294901760, %v16509_v25  ;;  %v204_v8 = vld [vmem:[%s15330_s26 + $0x60] sm:$0xff] }
  0xe1   : > { %11994 = vmatmul.mubr.f32.gmra.mrb[6].mxu0 %v16259_v36  ;;  %13129 = vmatprep.subr.bf16.mxu1 %v16520_v48  ;;  %v16609_v23 = vsub.f32 %v16413_v62, %v20377_v28  ;;  %v16629_v62 = vsub.f32 %v201_v27, %v16579_v46  ;;  %v16631_v28 = vand.u32 4294901760, %v203_v51  ;;  %v20388_v27 = vand.u32 4294901760, %v16560_v26 }
  0xe2   : > { %13991 = vmatpush3.bf16.msra.mxu0 %v20365_v15  ;;  %12028 = vmatprep.mubr.f32.mxu0 %v20369_v6  ;;  %v1354_v33 = vsub.f32 %v16509_v25, %v20374_v30  ;;  %v20376_v6 = vand.u32 4294901760, %v16408_v61  ;;  %v20383_v30 = vand.u32 4294901760, %v16551_v35 }
  0xe3   : > { %13993 = vmatprep.subr.bf16.mxu0 %v20368_v41  ;;  %20385 = vst [vmem:[#allocation71_spill] sm:$0xff] %v16629_v62  ;;  %20386 = vst [vmem:[#allocation62_spill] sm:$0xff] %v16631_v28  ;;  %v16673_v31 = vsub.f32 %v203_v51, %v16631_v28 }
  0xe4   : > { %13131 = vmatpush3.bf16.msra.mxu1 %v16520_v48  ;;  %v16598_v59 = vsub.f32 %v16408_v61, %v20376_v6  ;;  %v20379_v61 = vand.u32 4294901760, %v16431_v55  ;;  %v16626_v48 = vpack.c.bf16 %v20383_v30, %v20382_v60  ;;  %v1283_v60 = vsub.f32 %v16560_v26, %v20388_v27 }
  0xe5   : > { %13133 = vmatprep.subr.bf16.mxu1 %v16540_v18  ;;  %v20389_v30 = vand.u32 4294901760, %v16565_v40  ;;  %v16662_v27 = vand.u32 4294901760, %v204_v8  ;;  %20397 = vst [vmem:[#allocation84_spill] sm:$0xff] %v16673_v31 }
  0xe6   : > { %13995 = vmatpush3.bf16.msra.mxu0 %v20368_v41  ;;  %v16615_v6 = vsub.f32 %v16431_v55, %v20379_v61  ;;  %20384 = vst [vmem:[#allocation61_spill] sm:$0xff] %v16626_v48  ;;  %v1355_v55 = vand.u32 4294901760, %v1354_v33  ;;  %v1362_v61 = vand.u32 4294901760, %v1361_v17  ;;  %v20390_v17 = vand.u32 4294901760, %v16570_v47 }
  0xe7   : > { %13997 = vmatprep.subr.bf16.mxu0 %v20378_v34  ;;  %v1368_v33 = vsub.f32 %v16565_v40, %v20389_v30  ;;  %20394 = vst [vmem:[#allocation82_spill] sm:$0xff] %v16662_v27  ;;  %v20395_v30 = vand.u32 4294901760, %v16458_v50  ;;  %v20399_v12 = vand.u32 4294901760, %v16598_v59  ;;  %v1284_v51 = vand.u32 4294901760, %v1283_v60 }
  0xe8   : > { %13135 = vmatpush3.bf16.msra.mxu1 %v16540_v18  ;;  %v1375_v19 = vsub.f32 %v16570_v47, %v20390_v17  ;;  %v16670_v17 = vand.u32 4294901760, %v16629_v62  ;;  %v16675_v18 = vand.u32 4294901760, %v205_v49  ;;  %v13144_v41 = vpack.c.bf16 %v1362_v61, %v1355_v55 }
  0xe9   : > { %13137 = vmatprep.subr.bf16.mxu1 %v16587_v42  ;;  %v16667_v26 = vsub.f32 %v16458_v50, %v20395_v30  ;;  %v1382_v11 = vsub.f32 %v16598_v59, %v20399_v12  ;;  %v20400_v50 = vand.u32 4294901760, %v16463_v45  ;;  %v1369_v15 = vand.u32 4294901760, %v1368_v33 }
  0xea   : > { %13999 = vmatpush3.bf16.msra.mxu0 %v20378_v34  ;;  %v16657_v34 = vand.u32 4294901760, %v16618_v1  ;;  %20396 = vst [vmem:[#allocation83_spill] sm:$0xff] %v16670_v17  ;;  %20398 = vst [vmem:[#allocation85_spill] sm:$0xff] %v16675_v18  ;;  %v1376_v63 = vand.u32 4294901760, %v1375_v19  ;;  %v20401_v55 = vand.u32 4294901760, %v16609_v23  ;;  %v20403_v12 = vand.u32 4294901760, %v16615_v6 }
  0xeb   : > { %14001 = vmatprep.subr.bf16.mxu0 %v20391_v7  ;;  %v16685_v30 = vsub.f32 %v16463_v45, %v20400_v50  ;;  %v16699_v50 = vand.u32 4294901760, %v16660_v32  ;;  %v16702_v60 = vsub.f32 %v204_v8, %v16662_v27  ;;  %v1303_v33 = vsub.f32 %v16629_v62, %v16670_v17  ;;  %v20410_v27 = vld [vmem:[#allocation2_spill] sm:$0xff] }
  0xec   : > { %20392 = vst [vmem:[#allocation64_spill] sm:$0xff] %v16657_v34  ;;  %13139 = vmatpush3.bf16.msra.mxu1 %v16587_v42  ;;  %v1389_v61 = vsub.f32 %v16609_v23, %v20401_v55  ;;  %v20402_v42 = vld [vmem:[#allocation77_spill] sm:$0xff]  ;;  %v1396_v14 = vsub.f32 %v16615_v6, %v20403_v12  ;;  %v1293_v45 = vsub.f32 %v16618_v1, %v16657_v34  ;;  %v16708_v55 = vand.u32 4294901760, %v16673_v31 }
  0xed   : > { %13141 = vmatprep.subr.bf16.mxu1 %v16626_v48  ;;  %20404 = vst [vmem:[#allocation86_spill] sm:$0xff] %v16702_v60  ;;  %v20407_v12 = vand.u32 4294901760, %v16639_v4  ;;  %v20408_v1 = vand.u32 4294901760, %v16484_v43  ;;  %v20409_v17 = vand.u32 4294901760, %v16489_v16 }
  0xee   : > { %14003 = vmatpush3.bf16.msra.mxu0 %v20391_v7  ;;  %20405 = vst [vmem:[#allocation87_spill] sm:$0xff] %v16708_v55  ;;  %v16711_v7 = vsub.f32 %v205_v49, %v16675_v18  ;;  %v13148_v49 = vpack.c.bf16 %v1376_v63, %v1369_v15  ;;  %v1390_v18 = vand.u32 4294901760, %v1389_v61  ;;  %v16730_v8 = vand.u32 4294901760, %v1293_v45 }
  0xef   : > { %14005 = vmatprep.subr.bf16.mxu0 %v20402_v42  ;;  %v1403_v34 = vsub.f32 %v16639_v4, %v20407_v12  ;;  %v16721_v19 = vsub.f32 %v16484_v43, %v20408_v1  ;;  %v16726_v62 = vsub.f32 %v16489_v16, %v20409_v17  ;;  %v1397_v12 = vand.u32 4294901760, %v1396_v14 }
  0xf0   : > { %20406 = vst [vmem:[#allocation88_spill] sm:$0xff] %v16711_v7  ;;  %13143 = vmatpush3.bf16.msra.mxu1 %v16626_v48  ;;  %v1383_v48 = vand.u32 4294901760, %v1382_v11  ;;  %v1313_v1 = vsub.f32 %v16660_v32, %v16699_v50  ;;  %v16735_v43 = vand.u32 4294901760, %v16702_v60  ;;  %v20411_v16 = vand.u32 4294901760, %v16667_v26 }
  0xf1   : > { %13145 = vmatprep.subr.bf16.mxu1 %v13144_v41  ;;  %v1323_v11 = vsub.f32 %v16673_v31, %v16708_v55  ;;  %v16745_v14 = vand.u32 4294901760, %v16711_v7  ;;  %v20412_v63 = vand.u32 4294901760, %v20359_v29  ;;  %v1404_v15 = vand.u32 4294901760, %v1403_v34 }
  0xf2   : > { %14007 = vmatpush3.bf16.msra.mxu0 %v20402_v42  ;;  %v1410_v17 = vsub.f32 %v16667_v26, %v20411_v16  ;;  %v16740_v42 = vand.u32 4294901760, %v1303_v33  ;;  %v20413_v61 = vand.u32 4294901760, %v16685_v30  ;;  %v19804_v45 = vand.u32 4294901760, %v16721_v19 }
  0xf3   : > { %14009 = vmatprep.subr.bf16.mxu0 %v20410_v27  ;;  %10841 = vmatmul.mubr.f32.vlgmr.msra.gmra.mrb[0].mxu1 %v1284_v51  ;;  %v19803_v33 = vand.u32 4294901760, %v16726_v62  ;;  %v13152_v16 = vpack.c.bf16 %v1390_v18, %v1383_v48  ;;  %v20414_v55 = vand.u32 4294901760, %v16505_v13  ;;  %v20415_v29 = vand.u32 4294901760, %v16525_v5 }
  0xf4   : > { %13147 = vmatpush3.bf16.msra.mxu1 %v13144_v41  ;;  %v1417_v51 = vsub.f32 %v16685_v30, %v20413_v61  ;;  %10843 = vmatprep.mubr.f32.mxu1 %v16730_v8  ;;  %v16767_v61 = vand.u32 4294901760, %v1313_v1  ;;  %v1411_v18 = vand.u32 4294901760, %v1410_v17  ;;  %v20417_v48 = vand.u32 4294901760, %v16177_v39 }
  0xf5   : > { %12029 = vmatmul.mubr.f32.vlgmr.msra.gmra.mrb[0].mxu0 %v20412_v63  ;;  %13149 = vmatprep.subr.bf16.mxu1 %v13148_v49  ;;  %v16758_v41 = vsub.f32 %v16505_v13, %v20414_v55  ;;  %v16763_v34 = vsub.f32 %v16525_v5, %v20415_v29  ;;  %v20416_v63 = vld [vmem:[#allocation4_spill] sm:$0xff]  ;;  %v16774_v13 = vand.u32 4294901760, %v1323_v11  ;;  %v1343_v5 = vsub.f32 %v16711_v7, %v16745_v14 }
  0xf6   : > { %14011 = vmatpush3.bf16.msra.mxu0 %v20410_v27  ;;  %v1333_v27 = vsub.f32 %v16702_v60, %v16735_v43  ;;  %12031 = vmatprep.mubr.f32.mxu0 %v20417_v48  ;;  %v13156_v55 = vpack.c.bf16 %v1404_v15, %v1397_v12  ;;  %v1418_v29 = vand.u32 4294901760, %v1417_v51  ;;  %v1424_v1 = vsub.f32 %v16721_v19, %v19804_v45 }
  0xf7   : > { %14013 = vmatprep.subr.bf16.mxu0 %v20416_v63  ;;  %10844 = vmatmul.mubr.f32.gmra.mrb[2].mxu1 %v16740_v42  ;;  %v1431_v17 = vsub.f32 %v16726_v62, %v19803_v33  ;;  %v20418_v39 = vand.u32 4294901760, %v16190_v24  ;;  %v19808_v11 = vand.u32 4294901760, %v16758_v41  ;;  %v20419_v12 = vand.u32 4294901760, %v16546_v21  ;;  %v20421_v33 = vld [vmem:[#allocation65_spill] sm:$0xff] }
  0xf8   : > { %13151 = vmatpush3.bf16.msra.mxu1 %v13148_v49  ;;  %v19807_v49 = vand.u32 4294901760, %v16763_v34  ;;  %v20420_v51 = vand.u32 4294901760, %v16551_v35  ;;  %10846 = vmatprep.mubr.f32.mxu1 %v16767_v61  ;;  %v16801_v24 = vand.u32 4294901760, %v1333_v27 }
  0xf9   : > { %12032 = vmatmul.mubr.f32.gmra.mrb[2].mxu0 %v20418_v39  ;;  %13153 = vmatprep.subr.bf16.mxu1 %v13152_v16  ;;  %v16792_v15 = vsub.f32 %v16546_v21, %v20419_v12  ;;  %v16806_v39 = vand.u32 4294901760, %v1343_v5  ;;  %v13160_v21 = vpack.c.bf16 %v1418_v29, %v1411_v18  ;;  %v1425_v12 = vand.u32 4294901760, %v1424_v1  ;;  %v20424_v18 = vld [vmem:[#allocation67_spill] sm:$0xff] }
  0xfa   : > { %14015 = vmatpush3.bf16.msra.mxu0 %v20416_v63  ;;  %v16797_v48 = vsub.f32 %v16551_v35, %v20420_v51  ;;  %v20422_v63 = vand.u32 4294901760, %v16215_v9  ;;  %v1432_v45 = vand.u32 4294901760, %v1431_v17  ;;  %v20423_v35 = vand.u32 4294901760, %v16227_v22 }
  0xfb   : > { %14017 = vmatprep.subr.bf16.mxu0 %v20421_v33  ;;  %10847 = vmatmul.mubr.f32.gmra.mrb[4].mxu1 %v16774_v13  ;;  %v1438_v27 = vsub.f32 %v16758_v41, %v19808_v11  ;;  %v1445_v9 = vsub.f32 %v16763_v34, %v19807_v49  ;;  %v19806_v5 = vand.u32 4294901760, %v16792_v15  ;;  %v20425_v22 = vand.u32 4294901760, %v16251_v3  ;;  %v20445_v49 = vld [vmem:[#allocation8_spill] sm:$0xff]  ;;  %v20446_v11 = vld [vmem:[#allocation26_spill] sm:$0xff] }
  0xfc   : > { %12034 = vmatprep.mubr.f32.mxu0 %v20422_v63  ;;  %13155 = vmatpush3.bf16.msra.mxu1 %v13152_v16  ;;  %v19805_v16 = vand.u32 4294901760, %v16797_v48  ;;  %v20426_v29 = vand.u32 4294901760, %v16259_v36  ;;  %v20427_v63 = vld [vmem:[#allocation69_spill] sm:$0xff] }
  0xfd   : > { %12035 = vmatmul.mubr.f32.gmra.mrb[4].mxu0 %v20423_v35  ;;  %13157 = vmatprep.subr.bf16.mxu1 %v13156_v55  ;;  %v1439_v1 = vand.u32 4294901760, %v1438_v27  ;;  %v1446_v17 = vand.u32 4294901760, %v1445_v9  ;;  %v1452_v51 = vsub.f32 %v16792_v15, %v19806_v5  ;;  %v20429_v27 = vld [vmem:[#allocation78_spill] sm:$0xff]  ;;  %v20430_v9 = vld [vmem:[#allocation23_spill] sm:$0xff] }
  0xfe   : > { %14019 = vmatpush3.bf16.msra.mxu0 %v20421_v33  ;;  %10849 = vmatprep.mubr.f32.mxu1 %v16801_v24  ;;  %v13164_v33 = vpack.c.bf16 %v1432_v45, %v1425_v12  ;;  %v1459_v3 = vsub.f32 %v16797_v48, %v19805_v16  ;;  %v20428_v12 = vld [vmem:[#allocation74_spill] sm:$0xff] }
  0xff   : > { %14021 = vmatprep.subr.bf16.mxu0 %v20424_v18  ;;  %12037 = vmatprep.mubr.f32.mxu0 %v20425_v22  ;;  %v13168_v36 = vpack.c.bf16 %v1446_v17, %v1439_v1  ;;  %v1453_v45 = vand.u32 4294901760, %v1452_v51  ;;  %v13184_v22 = vpack.c.bf16 %v16609_v23, %v16598_v59  ;;  %v20433_v1 = vld [vmem:[#allocation82_spill] sm:$0xff]  ;;  %v20434_v17 = vld [vmem:[#allocation79_spill] sm:$0xff]  ;;  %v20435_v51 = vld [vmem:[#allocation85_spill] sm:$0xff] }
 0x100   : > { %10850 = vmatmul.mubr.f32.gmra.mrb[6].mxu1 %v16806_v39 }
 0x101   : > { %13159 = vmatpush3.bf16.msra.mxu1 %v13156_v55  ;;  %12038 = vmatmul.mubr.f32.gmra.mrb[6].mxu0 %v20426_v29  ;;  %v1460_v55 = vand.u32 4294901760, %v1459_v3  ;;  %v20432_v29 = vld [vmem:[#allocation66_spill] sm:$0xff]  ;;  %v20436_v3 = vld [vmem:[#allocation80_spill] sm:$0xff] }
 0x102   : > { %14023 = vmatpush3.bf16.msra.mxu0 %v20424_v18  ;;  %13161 = vmatprep.subr.bf16.mxu1 %v13160_v21  ;;  %v13180_v18 = vpack.c.bf16 %v16570_v47, %v16565_v40 }
 0x103   : > { %14025 = vmatprep.subr.bf16.mxu0 %v20427_v63  ;;  %10884 = vmatprep.mubr.f32.mxu1 %v16415_v20  ;;  %v13172_v35 = vpack.c.bf16 %v1460_v55, %v1453_v45  ;;  %v13200_v45 = vpack.c.bf16 %v16763_v34, %v16758_v41  ;;  %v20439_v55 = vld [vmem:[#allocation70_spill] sm:$0xff] }
 0x104   : > { %12072 = vmatprep.mubr.f32.mxu0 %v15994_v0 }
 0x105   : > { %13163 = vmatpush3.bf16.msra.mxu1 %v13160_v21  ;;  %v13176_v21 = vpack.c.bf16 %v16512_v44, %v16509_v25 }
 0x106   : > { %14027 = vmatpush3.bf16.msra.mxu0 %v20427_v63  ;;  %13165 = vmatprep.subr.bf16.mxu1 %v13164_v33  ;;  %v20437_v63 = vld [vmem:[#allocation68_spill] sm:$0xff] }
 0x107   : > { %14029 = vmatprep.subr.bf16.mxu0 %v20428_v12 }
 0x109   : > { %13167 = vmatpush3.bf16.msra.mxu1 %v13164_v33  ;;  %v20431_v33 = vld [vmem:[#allocation76_spill] sm:$0xff] }
 0x10a   : > { %14031 = vmatpush3.bf16.msra.mxu0 %v20428_v12  ;;  %13169 = vmatprep.subr.bf16.mxu1 %v13168_v36  ;;  %v9179_v12 = vld [vmem:[%s19569_s1 + $0x300] sm:$0xff] }
 0x10b   : > { %14033 = vmatprep.subr.bf16.mxu0 %v20429_v27 }
 0x10d   : > { %13171 = vmatpush3.bf16.msra.mxu1 %v13168_v36  ;;  %v20438_v36 = vld [vmem:[#allocation40_spill] sm:$0xff] }
 0x10e   : > { %14035 = vmatpush3.bf16.msra.mxu0 %v20429_v27  ;;  %13173 = vmatprep.subr.bf16.mxu1 %v13172_v35  ;;  %v20440_v27 = vld [vmem:[#allocation73_spill] sm:$0xff] }
 0x10f   : > { %14037 = vmatprep.subr.bf16.mxu0 %v20430_v9 }
 0x111   : > { %13175 = vmatpush3.bf16.msra.mxu1 %v13172_v35  ;;  %v9180_v35 = vld [vmem:[%s19569_s1 + $0x308] sm:$0xff] }
 0x112   : > { %14039 = vmatpush3.bf16.msra.mxu0 %v20430_v9  ;;  %13177 = vmatprep.subr.bf16.mxu1 %v13176_v21  ;;  %v6062_v9 = vand.u32 4294901760, %v9180_v35 }
 0x113   : > { %14041 = vmatprep.subr.bf16.mxu0 %v20357_v37 }
 0x114   : > { %10885 = vmatmul.mubr.f32.vlgmr.msra.gmra.mrb[0].mxu1 %v16527_v38 }
 0x115   : > { %13179 = vmatpush3.bf16.msra.mxu1 %v13176_v21  ;;  %12073 = vmatmul.mubr.f32.vlgmr.msra.gmra.mrb[0].mxu0 %v16121_v52  ;;  %v6059_v21 = vand.u32 4294901760, %v9179_v12 }
 0x116   : > { %14043 = vmatpush3.bf16.msra.mxu0 %v20357_v37  ;;  %13181 = vmatprep.subr.bf16.mxu1 %v13180_v18  ;;  %v13188_v37 = vpack.c.bf16 %v16639_v4, %v16615_v6 }
 0x117   : > { %14045 = vmatprep.subr.bf16.mxu0 %v20361_v2  ;;  %10887 = vmatprep.mubr.f32.mxu1 %v16573_v56 }
 0x118   : > { %12075 = vmatprep.mubr.f32.mxu0 %v16143_v54  ;;  %10888 = vmatmul.mubr.f32.gmra.mrb[2].mxu1 %v16579_v46 }
 0x119   : > { %13183 = vmatpush3.bf16.msra.mxu1 %v13180_v18  ;;  %12076 = vmatmul.mubr.f32.gmra.mrb[2].mxu0 %v20342_v57  ;;  %v16897_v18 = vld [vmem:[%s19569_s1 + $0x310] sm:$0xff] }
 0x11a   : > { %14047 = vmatpush3.bf16.msra.mxu0 %v20361_v2  ;;  %13185 = vmatprep.subr.bf16.mxu1 %v13184_v22  ;;  %v13192_v2 = vpack.c.bf16 %v16685_v30, %v16667_v26 }
 0x11b   : > { %14049 = vmatprep.subr.bf16.mxu0 %v20363_v10  ;;  %10890 = vmatprep.mubr.f32.mxu1 %v16620_v53 }
 0x11c   : > { %12078 = vmatprep.mubr.f32.mxu0 %v20345_v58  ;;  %10891 = vmatmul.mubr.f32.gmra.mrb[4].mxu1 %v16631_v28 }
 0x11d   : > { %13187 = vmatpush3.bf16.msra.mxu1 %v13184_v22  ;;  %12079 = vmatmul.mubr.f32.gmra.mrb[4].mxu0 %v20431_v33  ;;  %v16902_v22 = vld [vmem:[%s19569_s1 + $0x318] sm:$0xff] }
 0x11e   : > { %14051 = vmatpush3.bf16.msra.mxu0 %v20363_v10  ;;  %13189 = vmatprep.subr.bf16.mxu1 %v13188_v37  ;;  %v13196_v10 = vpack.c.bf16 %v16726_v62, %v16721_v19 }
 0x11f   : > { %14053 = vmatprep.subr.bf16.mxu0 %v20432_v29  ;;  %10893 = vmatprep.mubr.f32.mxu1 %v20433_v1  ;;  %v20448_v1 = vld [vmem:[#allocation18_spill] sm:$0xff] }
 0x120   : > { %12081 = vmatprep.mubr.f32.mxu0 %v20434_v17  ;;  %10894 = vmatmul.mubr.f32.gmra.mrb[6].mxu1 %v20435_v51 }
 0x121   : > { %13191 = vmatpush3.bf16.msra.mxu1 %v13188_v37  ;;  %12082 = vmatmul.mubr.f32.gmra.mrb[6].mxu0 %v20436_v3  ;;  %v20441_v37 = vld [vmem:[#allocation77_spill] sm:$0xff] }
 0x122   : > { %14055 = vmatpush3.bf16.msra.mxu0 %v20432_v29  ;;  %13193 = vmatprep.subr.bf16.mxu1 %v13192_v2  ;;  %v19810_v29 = vand.u32 4294901760, %v16897_v18 }
 0x123   : > { %14057 = vmatprep.subr.bf16.mxu0 %v20437_v63  ;;  %10928 = vmatprep.mubr.f32.mxu1 %v20438_v36 }
 0x124   : > { %12116 = vmatprep.mubr.f32.mxu0 %v15994_v0  ;;  %v13204_v0 = vpack.c.bf16 %v16797_v48, %v16792_v15 }
 0x125   : > { %13195 = vmatpush3.bf16.msra.mxu1 %v13192_v2  ;;  %v16906_v2 = vpack.c.bf16 %v6062_v9, %v6059_v21 }
 0x126   : > { %14059 = vmatpush3.bf16.msra.mxu0 %v20437_v63  ;;  %13197 = vmatprep.subr.bf16.mxu1 %v13196_v10  ;;  %v16913_v63 = vld [vmem:[%s19569_s1 + $0x320] sm:$0xff] }
 0x127   : > { %14061 = vmatprep.subr.bf16.mxu0 %v20439_v55  ;;  %20442 = vst [vmem:[#allocation2_spill] sm:$0xff] %v16906_v2  ;;  %v19814_v16 = vand.u32 4294901760, %v16913_v63 }
 0x129   : > { %13199 = vmatpush3.bf16.msra.mxu1 %v13196_v10  ;;  %v19809_v10 = vand.u32 4294901760, %v16902_v22 }
 0x12a   : > { %14063 = vmatpush3.bf16.msra.mxu0 %v20439_v55  ;;  %13201 = vmatprep.subr.bf16.mxu1 %v13200_v45  ;;  %v20443_v55 = vld [vmem:[#allocation17_spill] sm:$0xff] }
 0x12b   : > { %14065 = vmatprep.subr.bf16.mxu0 %v20440_v27 }
 0x12d   : > { %13203 = vmatpush3.bf16.msra.mxu1 %v13200_v45  ;;  %v16918_v45 = vld [vmem:[%s19569_s1 + $0x328] sm:$0xff] }
 0x12e   : > { %14067 = vmatpush3.bf16.msra.mxu0 %v20440_v27  ;;  %13205 = vmatprep.subr.bf16.mxu1 %v13204_v0  ;;  %v16927_v27 = vpack.c.bf16 %v19809_v10, %v19810_v29  ;;  %v19813_v5 = vand.u32 4294901760, %v16918_v45 }
 0x12f   : > { %14069 = vmatprep.subr.bf16.mxu0 %v20441_v37 }
 0x130   : > { %20444 = vst [vmem:[#allocation4_spill] sm:$0xff] %v16927_v27  ;;  %v16951_v10 = vpack.c.bf16 %v19813_v5, %v19814_v16  ;;  %v20449_v5 = vld [vmem:[#allocation71_spill] sm:$0xff] }
 0x131   : > { %13207 = vmatpush3.bf16.msra.mxu1 %v13204_v0  ;;  %v16935_v0 = vld [vmem:[%s19569_s1 + $0x330] sm:$0xff]  ;;  %v20450_v16 = vld [vmem:[#allocation43_spill] sm:$0xff] }
 0x132   : > { %14071 = vmatpush3.bf16.msra.mxu0 %v20441_v37  ;;  %13209 = vmatprep.subr.bf16.mxu1 %v20443_v55  ;;  %v16940_v37 = vld [vmem:[%s19569_s1 + $0x338] sm:$0xff]  ;;  %20447 = vst [vmem:[#allocation65_spill] sm:$0xff] %v16951_v10  ;;  %v19818_v29 = vand.u32 4294901760, %v16935_v0 }
 0x133   : > { %14073 = vmatprep.subr.bf16.mxu0 %v16906_v2  ;;  %v19817_v51 = vand.u32 4294901760, %v16940_v37 }
 0x134   : > { %10929 = vmatmul.mubr.f32.vlgmr.msra.gmra.mrb[0].mxu1 %v20445_v49 }
 0x135   : > { %13211 = vmatpush3.bf16.msra.mxu1 %v20443_v55  ;;  %12117 = vmatmul.mubr.f32.vlgmr.msra.gmra.mrb[0].mxu0 %v16121_v52  ;;  %v16959_v52 = vld [vmem:[%s19569_s1 + $0x340] sm:$0xff] }
 0x136   : > { %14075 = vmatpush3.bf16.msra.mxu0 %v16906_v2  ;;  %13213 = vmatprep.subr.bf16.mxu1 %v20446_v11  ;;  %v16964_v2 = vld [vmem:[%s19569_s1 + $0x348] sm:$0xff]  ;;  %v20481_v28 = vand.u32 4294901760, %v16959_v52 }
 0x137   : > { %14077 = vmatprep.subr.bf16.mxu0 %v16927_v27  ;;  %10931 = vmatprep.mubr.f32.mxu1 %v20448_v1  ;;  %v16977_v1 = vpack.c.bf16 %v19817_v51, %v19818_v29  ;;  %v20452_v51 = vld [vmem:[#allocation72_spill] sm:$0xff]  ;;  %v17001_v29 = vld [vmem:[%s19569_s1 + $0x360] sm:$0xff] }
 0x138   : > { %12119 = vmatprep.mubr.f32.mxu0 %v16143_v54  ;;  %10932 = vmatmul.mubr.f32.gmra.mrb[2].mxu1 %v20449_v5  ;;  %v17006_v5 = vld [vmem:[%s19569_s1 + $0x368] sm:$0xff]  ;;  %v17010_v54 = vsub.f32 %v9180_v35, %v6062_v9  ;;  %v20459_v9 = vand.u32 4294901760, %v16897_v18 }
 0x139   : > { %13215 = vmatpush3.bf16.msra.mxu1 %v20446_v11  ;;  %12120 = vmatmul.mubr.f32.gmra.mrb[2].mxu0 %v20342_v57  ;;  %20451 = vst [vmem:[#allocation67_spill] sm:$0xff] %v16977_v1  ;;  %v16985_v57 = vld [vmem:[%s19569_s1 + $0x350] sm:$0xff] }
 0x13a   : > { %14079 = vmatpush3.bf16.msra.mxu0 %v16927_v27  ;;  %13217 = vmatprep.subr.bf16.mxu1 %v20450_v16  ;;  %v16990_v27 = vld [vmem:[%s19569_s1 + $0x358] sm:$0xff]  ;;  %v17054_v35 = vsub.f32 %v16897_v18, %v20459_v9  ;;  %v20463_v18 = vld [vmem:[#allocation75_spill] sm:$0xff] }
 0x13b   : > { %14081 = vmatprep.subr.bf16.mxu0 %v16951_v10  ;;  %10934 = vmatprep.mubr.f32.mxu1 %v16660_v32  ;;  %v19825_v32 = vand.u32 4294901760, %v16985_v57 }
 0x13c   : > { %12122 = vmatprep.mubr.f32.mxu0 %v20345_v58  ;;  %10935 = vmatmul.mubr.f32.gmra.mrb[4].mxu1 %v16673_v31  ;;  %v17008_v58 = vsub.f32 %v9179_v12, %v6059_v21  ;;  %v19829_v12 = vand.u32 4294901760, %v17001_v29  ;;  %v20456_v21 = vld [vmem:[#allocation6_spill] sm:$0xff] }
 0x13d   : > { %13219 = vmatpush3.bf16.msra.mxu1 %v20450_v16  ;;  %12123 = vmatmul.mubr.f32.gmra.mrb[4].mxu0 %v20431_v33  ;;  %v20453_v33 = vand.u32 4294901760, %v16959_v52  ;;  %v19824_v16 = vand.u32 4294901760, %v16990_v27 }
 0x13e   : > { %14083 = vmatpush3.bf16.msra.mxu0 %v16951_v10  ;;  %13221 = vmatprep.subr.bf16.mxu1 %v20452_v51  ;;  %v20454_v10 = vand.u32 4294901760, %v16964_v2 }
 0x13f   : > { %14085 = vmatprep.subr.bf16.mxu0 %v16977_v1  ;;  %10937 = vmatprep.mubr.f32.mxu1 %v16702_v60 }
 0x140   : > { %v17017_v31 = vpack.c.bf16 %v20454_v10, %v20453_v33  ;;  %12125 = vmatprep.mubr.f32.mxu0 %v20434_v17  ;;  %10938 = vmatmul.mubr.f32.gmra.mrb[6].mxu1 %v16711_v7  ;;  %v17037_v17 = vpack.c.bf16 %v19824_v16, %v19825_v32  ;;  %v17047_v33 = vld [vmem:[%s19569_s1 + $0x378] sm:$0xff]  ;;  %v20458_v10 = vand.u32 4294901760, %v20438_v36  ;;  %v20460_v16 = vand.u32 4294901760, %v16902_v22 }
 0x141   : > { %13223 = vmatpush3.bf16.msra.mxu1 %v20452_v51  ;;  %12126 = vmatmul.mubr.f32.gmra.mrb[6].mxu0 %v20436_v3  ;;  %v17042_v3 = vld [vmem:[%s19569_s1 + $0x370] sm:$0xff] }
 0x142   : > { %20455 = vst [vmem:[#allocation69_spill] sm:$0xff] %v17017_v31  ;;  %14087 = vmatpush3.bf16.msra.mxu0 %v16977_v1  ;;  %13225 = vmatprep.subr.bf16.mxu1 %v20456_v21  ;;  %20457 = vst [vmem:[#allocation74_spill] sm:$0xff] %v17037_v17  ;;  %v17059_v32 = vsub.f32 %v16902_v22, %v20460_v16  ;;  %v20461_v1 = vand.u32 4294901760, %v17006_v5  ;;  %v20464_v22 = vand.u32 4294901760, %v17008_v58  ;;  %v20467_v16 = vand.u32 4294901760, %v16918_v45 }
 0x143   : > { %14089 = vmatprep.subr.bf16.mxu0 %v17017_v31  ;;  %10972 = vmatprep.mubr.f32.mxu1 %v20458_v10  ;;  %v20465_v10 = vand.u32 4294901760, %v17010_v54 }
 0x144   : > { %12160 = vmatprep.mubr.f32.mxu0 %v16730_v8  ;;  %v17067_v36 = vpack.c.bf16 %v20461_v1, %v19829_v12  ;;  %v6223_v8 = vsub.f32 %v17008_v58, %v20464_v22  ;;  %v17090_v22 = vsub.f32 %v16918_v45, %v20467_v16  ;;  %v20469_v1 = vand.u32 4294901760, %v16940_v37 }
 0x145   : > { %13227 = vmatpush3.bf16.msra.mxu1 %v20456_v21  ;;  %v6230_v7 = vsub.f32 %v17010_v54, %v20465_v10  ;;  %v20468_v10 = vand.u32 4294901760, %v16935_v0  ;;  %v9177_v21 = vld [vmem:[%s15330_s26 + $0x80] sm:$0xff]  ;;  %v20472_v45 = vand.u32 4294901760, %v17047_v33 }
 0x146   : > { %20462 = vst [vmem:[#allocation78_spill] sm:$0xff] %v17067_v36  ;;  %14091 = vmatpush3.bf16.msra.mxu0 %v17017_v31  ;;  %13229 = vmatprep.subr.bf16.mxu1 %v20463_v18  ;;  %v20466_v31 = vand.u32 4294901760, %v16913_v63  ;;  %v17101_v12 = vsub.f32 %v16940_v37, %v20469_v1  ;;  %v20475_v1 = vand.u32 4294901760, %v17059_v32  ;;  %v17122_v11 = vand.u32 4294901760, %v9177_v21 }
 0x147   : > { %14093 = vmatprep.subr.bf16.mxu0 %v17037_v17  ;;  %v17096_v60 = vsub.f32 %v16935_v0, %v20468_v10  ;;  %v6231_v51 = vand.u32 4294901760, %v6230_v7  ;;  %v9178_v0 = vld [vmem:[%s15330_s26 + $0x90] sm:$0xff]  ;;  %v20474_v10 = vand.u32 4294901760, %v17054_v35  ;;  %v20477_v7 = vand.u32 4294901760, %v16509_v25 }
 0x148   : > { %v17085_v9 = vsub.f32 %v16913_v63, %v20466_v31  ;;  %v20470_v31 = vld [vmem:[#allocation63_spill] sm:$0xff]  ;;  %v20471_v63 = vand.u32 4294901760, %v17042_v3  ;;  %20476 = vst [vmem:[#allocation76_spill] sm:$0xff] %v17122_v11  ;;  %v17131_v46 = vand.u32 4294901760, %v9178_v0  ;;  %v20482_v25 = vand.u32 4294901760, %v16964_v2 }
 0x149   : > { %13231 = vmatpush3.bf16.msra.mxu1 %v20463_v18  ;;  %v6224_v18 = vand.u32 4294901760, %v6223_v8  ;;  %v6237_v37 = vsub.f32 %v17054_v35, %v20474_v10  ;;  %v20478_v8 = vand.u32 4294901760, %v16512_v44 }
 0x14a   : > { %14095 = vmatpush3.bf16.msra.mxu0 %v17037_v17  ;;  %13233 = vmatprep.subr.bf16.mxu1 %v20470_v31  ;;  %v17110_v16 = vpack.c.bf16 %v20472_v45, %v20471_v63  ;;  %v6244_v17 = vsub.f32 %v17059_v32, %v20475_v1  ;;  %20479 = vst [vmem:[#allocation66_spill] sm:$0xff] %v17131_v46  ;;  %v20480_v1 = vld [vmem:[#allocation61_spill] sm:$0xff]  ;;  %v20483_v10 = vand.u32 4294901760, %v17085_v9 }
 0x14b   : > { %14097 = vmatprep.subr.bf16.mxu0 %v17067_v36  ;;  %v13240_v63 = vpack.c.bf16 %v20478_v8, %v20477_v7  ;;  %v14104_v53 = vpack.c.bf16 %v6231_v51, %v6224_v18  ;;  %v17143_v44 = vsub.f32 %v16964_v2, %v20482_v25  ;;  %v6238_v7 = vand.u32 4294901760, %v6237_v37 }
 0x14c   : > { %20473 = vst [vmem:[#allocation23_spill] sm:$0xff] %v17110_v16  ;;  %v6245_v8 = vand.u32 4294901760, %v6244_v17  ;;  %v6251_v45 = vsub.f32 %v17085_v9, %v20483_v10  ;;  %v20484_v51 = vand.u32 4294901760, %v17090_v22  ;;  %v20485_v2 = vand.u32 4294901760, %v16565_v40 }
 0x14d   : > { %13235 = vmatpush3.bf16.msra.mxu1 %v20470_v31  ;;  %v17138_v31 = vsub.f32 %v16959_v52, %v20481_v28  ;;  %v17153_v28 = vsub.f32 %v9177_v21, %v17122_v11  ;;  %v20486_v52 = vand.u32 4294901760, %v16570_v47  ;;  %v20487_v17 = vand.u32 4294901760, %v17096_v60 }
 0x14e   : > { %14099 = vmatpush3.bf16.msra.mxu0 %v17067_v36  ;;  %13237 = vmatprep.subr.bf16.mxu1 %v20480_v1  ;;  %v6258_v18 = vsub.f32 %v17090_v22, %v20484_v51  ;;  %v20488_v10 = vand.u32 4294901760, %v17101_v12  ;;  %v17167_v51 = vsub.f32 %v9178_v0, %v17131_v46  ;;  %v20489_v47 = vand.u32 4294901760, %v16985_v57 }
 0x14f   : > { %14101 = vmatprep.subr.bf16.mxu0 %v17110_v16  ;;  %v13244_v25 = vpack.c.bf16 %v20486_v52, %v20485_v2  ;;  %v6265_v37 = vsub.f32 %v17096_v60, %v20487_v17  ;;  %v20490_v52 = vand.u32 4294901760, %v16990_v27  ;;  %v14108_v0 = vpack.c.bf16 %v6245_v8, %v6238_v7  ;;  %v20496_v7 = vld [vmem:[#allocation64_spill] sm:$0xff] }
 0x150   : > { %v6272_v36 = vsub.f32 %v17101_v12, %v20488_v10  ;;  %v17175_v2 = vsub.f32 %v16985_v57, %v20489_v47  ;;  %v6252_v10 = vand.u32 4294901760, %v6251_v45  ;;  %v19860_v21 = vand.u32 4294901760, %v17153_v28 }
 0x151   : > { %13239 = vmatpush3.bf16.msra.mxu1 %v20480_v1  ;;  %v17180_v17 = vsub.f32 %v16990_v27, %v20490_v52  ;;  %v6259_v1 = vand.u32 4294901760, %v6258_v18  ;;  %v20492_v57 = vand.u32 4294901760, %v16598_v59  ;;  %v20493_v47 = vand.u32 4294901760, %v16609_v23 }
 0x152   : > { %14103 = vmatpush3.bf16.msra.mxu0 %v17110_v16  ;;  %13241 = vmatprep.subr.bf16.mxu1 %v13240_v63  ;;  %v20491_v16 = vand.u32 4294901760, %v20445_v49  ;;  %v6266_v46 = vand.u32 4294901760, %v6265_v37  ;;  %v6273_v27 = vand.u32 4294901760, %v6272_v36  ;;  %v19859_v52 = vand.u32 4294901760, %v17167_v51  ;;  %v20499_v37 = vld [vmem:[#allocation83_spill] sm:$0xff] }
 0x153   : > { %14105 = vmatprep.subr.bf16.mxu0 %v14104_v53  ;;  %v13248_v40 = vpack.c.bf16 %v20493_v47, %v20492_v57  ;;  %v20494_v45 = vand.u32 4294901760, %v17138_v31  ;;  %v19857_v59 = vand.u32 4294901760, %v17180_v17  ;;  %v14112_v23 = vpack.c.bf16 %v6259_v1, %v6252_v10 }
 0x154   : > { %10973 = vmatmul.mubr.f32.vlgmr.msra.gmra.mrb[0].mxu1 %v20491_v16  ;;  %v20495_v16 = vand.u32 4294901760, %v17143_v44  ;;  %v20497_v36 = vand.u32 4294901760, %v17001_v29  ;;  %v20498_v8 = vand.u32 4294901760, %v17006_v5  ;;  %v6202_v1 = vsub.f32 %v17153_v28, %v19860_v21  ;;  %v20537_v21 = vld [vmem:[#allocation65_spill] sm:$0xff] }
 0x155   : > { %13243 = vmatpush3.bf16.msra.mxu1 %v13240_v63  ;;  %12161 = vmatmul.mubr.f32.vlgmr.msra.gmra.mrb[0].mxu0 %v16740_v42  ;;  %v6279_v49 = vsub.f32 %v17138_v31, %v20494_v45  ;;  %v19858_v42 = vand.u32 4294901760, %v17175_v2  ;;  %v20500_v10 = vand.u32 4294901760, %v16615_v6  ;;  %v20501_v57 = vand.u32 4294901760, %v16639_v4 }
 0x156   : > { %14107 = vmatpush3.bf16.msra.mxu0 %v14104_v53  ;;  %13245 = vmatprep.subr.bf16.mxu1 %v13244_v25  ;;  %v6286_v63 = vsub.f32 %v17143_v44, %v20495_v16  ;;  %v17203_v53 = vsub.f32 %v17001_v29, %v20497_v36  ;;  %v17208_v18 = vsub.f32 %v17006_v5, %v20498_v8  ;;  %v20504_v16 = vld [vmem:[#allocation87_spill] sm:$0xff]  ;;  %v20505_v8 = vand.u32 4294901760, %v16667_v26 }
 0x157   : > { %14109 = vmatprep.subr.bf16.mxu0 %v14108_v0  ;;  %10975 = vmatprep.mubr.f32.mxu1 %v20496_v7  ;;  %v13252_v29 = vpack.c.bf16 %v20501_v57, %v20500_v10  ;;  %v14116_v47 = vpack.c.bf16 %v6273_v27, %v6266_v46  ;;  %v6212_v5 = vsub.f32 %v17167_v51, %v19859_v52  ;;  %v20503_v27 = vand.u32 4294901760, %v17047_v33  ;;  %v2132_v52 = vld [vmem:[%s15330_s26 + $0x12] sm:$0xff] }
 0x158   : > { %12163 = vmatprep.mubr.f32.mxu0 %v16767_v61  ;;  %10976 = vmatmul.mubr.f32.gmra.mrb[2].mxu1 %v20499_v37  ;;  %v6280_v61 = vand.u32 4294901760, %v6279_v49  ;;  %v6287_v45 = vand.u32 4294901760, %v6286_v63  ;;  %v6300_v4 = vsub.f32 %v17180_v17, %v19857_v59  ;;  %v19856_v46 = vand.u32 4294901760, %v17203_v53 }
 0x159   : > { %13247 = vmatpush3.bf16.msra.mxu1 %v13244_v25  ;;  %12164 = vmatmul.mubr.f32.gmra.mrb[2].mxu0 %v16774_v13  ;;  %v6293_v25 = vsub.f32 %v17175_v2, %v19858_v42  ;;  %v19855_v6 = vand.u32 4294901760, %v17208_v18  ;;  %v20502_v13 = vand.u32 4294901760, %v17042_v3  ;;  %v17240_v49 = vsub.f32 %v17047_v33, %v20503_v27 }
 0x15a   : > { %14111 = vmatpush3.bf16.msra.mxu0 %v14108_v0  ;;  %13249 = vmatprep.subr.bf16.mxu1 %v13248_v40  ;;  %v6203_v63 = vand.u32 4294901760, %v6202_v1  ;;  %v6213_v36 = vand.u32 4294901760, %v6212_v5  ;;  %v14120_v57 = vpack.c.bf16 %v6287_v45, %v6280_v61  ;;  %v6301_v33 = vand.u32 4294901760, %v6300_v4 }
 0x15b   : > { %14113 = vmatprep.subr.bf16.mxu0 %v14112_v23  ;;  %10978 = vmatprep.mubr.f32.mxu1 %v16699_v50  ;;  %v17235_v0 = vsub.f32 %v17042_v3, %v20502_v13  ;;  %v20506_v3 = vand.u32 4294901760, %v16685_v30  ;;  %v6294_v13 = vand.u32 4294901760, %v6293_v25  ;;  %v19853_v26 = vand.u32 4294901760, %v17240_v49 }
 0x15c   : > { %12166 = vmatprep.mubr.f32.mxu0 %v16801_v24  ;;  %10979 = vmatmul.mubr.f32.gmra.mrb[4].mxu1 %v20504_v16  ;;  %v6307_v24 = vsub.f32 %v17203_v53, %v19856_v46  ;;  %v20507_v30 = vand.u32 4294901760, %v16721_v19  ;;  %v20510_v19 = vand.u32 4294901760, %v16763_v34  ;;  %v14140_v34 = vpack.c.bf16 %v17059_v32, %v17054_v35  ;;  %v20535_v46 = vld [vmem:[#allocation84_spill] sm:$0xff] }
 0x15d   : > { %13251 = vmatpush3.bf16.msra.mxu1 %v13248_v40  ;;  %12167 = vmatmul.mubr.f32.gmra.mrb[4].mxu0 %v16806_v39  ;;  %v13256_v10 = vpack.c.bf16 %v20506_v3, %v20505_v8  ;;  %v6314_v39 = vsub.f32 %v17208_v18, %v19855_v6  ;;  %v19854_v40 = vand.u32 4294901760, %v17235_v0  ;;  %v14124_v5 = vpack.c.bf16 %v6301_v33, %v6294_v13  ;;  %v20515_v13 = vld [vmem:[#allocation21_spill] sm:$0xff]  ;;  %v20516_v33 = vld [vmem:[#allocation62_spill] sm:$0xff] }
 0x15e   : > { %14115 = vmatpush3.bf16.msra.mxu0 %v14112_v23  ;;  %13253 = vmatprep.subr.bf16.mxu1 %v13252_v29  ;;  %v20508_v23 = vand.u32 4294901760, %v16726_v62  ;;  %v6308_v61 = vand.u32 4294901760, %v6307_v24  ;;  %v20509_v62 = vand.u32 4294901760, %v16758_v41  ;;  %v20512_v8 = vand.u32 4294901760, %v16797_v48  ;;  %v20514_v48 = vld [vmem:[#allocation26_spill] sm:$0xff]  ;;  %v20534_v6 = vld [vmem:[#allocation81_spill] sm:$0xff] }
 0x15f   : > { %14117 = vmatprep.subr.bf16.mxu0 %v14116_v47  ;;  %10981 = vmatprep.mubr.f32.mxu1 %v16735_v43  ;;  %v6315_v45 = vand.u32 4294901760, %v6314_v39  ;;  %v6321_v25 = vsub.f32 %v17235_v0, %v19854_v40  ;;  %v14136_v41 = vpack.c.bf16 %v17010_v54, %v17008_v58  ;;  %v14148_v24 = vpack.c.bf16 %v17101_v12, %v17096_v60  ;;  %v20518_v39 = vld [vmem:[#allocation82_spill] sm:$0xff] }
 0x160   : > { %12169 = vmatprep.mubr.f32.mxu0 %v6203_v63  ;;  %10982 = vmatmul.mubr.f32.gmra.mrb[6].mxu1 %v16745_v14  ;;  %v13260_v1 = vpack.c.bf16 %v20508_v23, %v20507_v30  ;;  %v20519_v30 = vld [vmem:[#allocation85_spill] sm:$0xff]  ;;  %v20520_v23 = vld [vmem:[#allocation72_spill] sm:$0xff] }
 0x161   : > { %13255 = vmatpush3.bf16.msra.mxu1 %v13252_v29  ;;  %12170 = vmatmul.mubr.f32.gmra.mrb[6].mxu0 %v6213_v36  ;;  %v6328_v29 = vsub.f32 %v17240_v49, %v19853_v26  ;;  %v14128_v4 = vpack.c.bf16 %v6315_v45, %v6308_v61  ;;  %v6322_v27 = vand.u32 4294901760, %v6321_v25  ;;  %v20511_v36 = vand.u32 4294901760, %v16792_v15  ;;  %v20513_v15 = vld [vmem:[#allocation10_spill] sm:$0xff]  ;;  %v17411_v26 = vld [vmem:[%s19569_s1 + $0x148] sm:$0xff] }
 0x162   : > { %14119 = vmatpush3.bf16.msra.mxu0 %v14116_v47  ;;  %13257 = vmatprep.subr.bf16.mxu1 %v13256_v10  ;;  %v13264_v47 = vpack.c.bf16 %v20510_v19, %v20509_v62  ;;  %v20522_v61 = vld [vmem:[#allocation6_spill] sm:$0xff]  ;;  %v14156_v45 = vpack.c.bf16 %v17180_v17, %v17175_v2  ;;  %v14160_v62 = vpack.c.bf16 %v17208_v18, %v17203_v53 }
 0x163   : > { %14121 = vmatprep.subr.bf16.mxu0 %v14120_v57  ;;  %11016 = vmatprep.mubr.f32.mxu1 %v16415_v20  ;;  %v6329_v63 = vand.u32 4294901760, %v6328_v29  ;;  %v13268_v3 = vpack.c.bf16 %v20512_v8, %v20511_v36  ;;  %v20523_v25 = vld [vmem:[#allocation18_spill] sm:$0xff]  ;;  %v20524_v29 = vld [vmem:[#allocation75_spill] sm:$0xff]  ;;  %v17339_v36 = vld [vmem:[%s19569_s1 + $0x110] sm:$0xff] }
 0x164   : > { %12204 = vmatprep.mubr.f32.mxu0 %v16573_v56  ;;  %v17323_v19 = vld [vmem:[%s19569_s1 + $0x100] sm:$0xff]  ;;  %v17344_v8 = vld [vmem:[%s19569_s1 + $0x118] sm:$0xff] }
 0x165   : > { %13259 = vmatpush3.bf16.msra.mxu1 %v13256_v10  ;;  %v14132_v10 = vpack.c.bf16 %v6329_v63, %v6322_v27  ;;  %v14164_v63 = vpack.c.bf16 %v17240_v49, %v17235_v0 }
 0x166   : > { %14123 = vmatpush3.bf16.msra.mxu0 %v14120_v57  ;;  %13261 = vmatprep.subr.bf16.mxu1 %v13260_v1  ;;  %v14144_v57 = vpack.c.bf16 %v17090_v22, %v17085_v9 }
 0x167   : > { %14125 = vmatprep.subr.bf16.mxu0 %v14124_v5 }
 0x169   : > { %13263 = vmatpush3.bf16.msra.mxu1 %v13260_v1  ;;  %v14152_v1 = vpack.c.bf16 %v17143_v44, %v17138_v31 }
 0x16a   : > { %14127 = vmatpush3.bf16.msra.mxu0 %v14124_v5  ;;  %13265 = vmatprep.subr.bf16.mxu1 %v13264_v47  ;;  %v20521_v5 = vld [vmem:[#allocation66_spill] sm:$0xff] }
 0x16b   : > { %14129 = vmatprep.subr.bf16.mxu0 %v14128_v4 }
 0x16d   : > { %13267 = vmatpush3.bf16.msra.mxu1 %v13264_v47  ;;  %v20525_v47 = vld [vmem:[#allocation63_spill] sm:$0xff] }
 0x16e   : > { %14131 = vmatpush3.bf16.msra.mxu0 %v14128_v4  ;;  %13269 = vmatprep.subr.bf16.mxu1 %v13268_v3  ;;  %v2157_v4 = vand.u32 4294901760, %v17323_v19 }
 0x16f   : > { %14133 = vmatprep.subr.bf16.mxu0 %v14132_v10 }
 0x171   : > { %13271 = vmatpush3.bf16.msra.mxu1 %v13268_v3  ;;  %v2131_v3 = vld [vmem:[%s15330_s26 + $0x2] sm:$0xff] }
 0x172   : > { %14135 = vmatpush3.bf16.msra.mxu0 %v14132_v10  ;;  %13273 = vmatprep.subr.bf16.mxu1 %v20443_v55  ;;  %v20526_v10 = vld [vmem:[#allocation61_spill] sm:$0xff] }
 0x173   : > { %14137 = vmatprep.subr.bf16.mxu0 %v14136_v41 }
 0x174   : > { %11017 = vmatmul.mubr.f32.vlgmr.msra.gmra.mrb[0].mxu1 %v16527_v38 }
 0x175   : > { %13275 = vmatpush3.bf16.msra.mxu1 %v20443_v55  ;;  %12205 = vmatmul.mubr.f32.vlgmr.msra.gmra.mrb[0].mxu0 %v20513_v15  ;;  %v20517_v55 = vld [vmem:[#allocation43_spill] sm:$0xff] }
 0x176   : > { %14139 = vmatpush3.bf16.msra.mxu0 %v14136_v41  ;;  %13277 = vmatprep.subr.bf16.mxu1 %v20514_v48 }
 0x177   : > { %14141 = vmatprep.subr.bf16.mxu0 %v14140_v34  ;;  %11019 = vmatprep.mubr.f32.mxu1 %v16573_v56 }
 0x178   : > { %12207 = vmatprep.mubr.f32.mxu0 %v20515_v13  ;;  %11020 = vmatmul.mubr.f32.gmra.mrb[2].mxu1 %v20513_v15 }
 0x179   : > { %13279 = vmatpush3.bf16.msra.mxu1 %v20514_v48  ;;  %12208 = vmatmul.mubr.f32.gmra.mrb[2].mxu0 %v20516_v33  ;;  %v19865_v48 = vand.u32 4294901760, %v17344_v8 }
 0x17a   : > { %14143 = vmatpush3.bf16.msra.mxu0 %v14140_v34  ;;  %13281 = vmatprep.subr.bf16.mxu1 %v20517_v55  ;;  %v19866_v34 = vand.u32 4294901760, %v17339_v36 }
 0x17b   : > { %14145 = vmatprep.subr.bf16.mxu0 %v14144_v57  ;;  %11022 = vmatprep.mubr.f32.mxu1 %v20515_v13 }
 0x17c   : > { %12210 = vmatprep.mubr.f32.mxu0 %v20518_v39  ;;  %11023 = vmatmul.mubr.f32.gmra.mrb[4].mxu1 %v20516_v33 }
 0x17d   : > { %13283 = vmatpush3.bf16.msra.mxu1 %v20517_v55  ;;  %12211 = vmatmul.mubr.f32.gmra.mrb[4].mxu0 %v20519_v30  ;;  %v17361_v55 = vld [vmem:[%s19569_s1 + $0x128] sm:$0xff] }
 0x17e   : > { %14147 = vmatpush3.bf16.msra.mxu0 %v14144_v57  ;;  %13285 = vmatprep.subr.bf16.mxu1 %v20520_v23  ;;  %v17356_v57 = vld [vmem:[%s19569_s1 + $0x120] sm:$0xff] }
 0x17f   : > { %14149 = vmatprep.subr.bf16.mxu0 %v14148_v24  ;;  %11025 = vmatprep.mubr.f32.mxu1 %v20518_v39 }
 0x180   : > { %12213 = vmatprep.mubr.f32.mxu0 %v17122_v11  ;;  %11026 = vmatmul.mubr.f32.gmra.mrb[6].mxu1 %v20519_v30  ;;  %v20549_v11 = vand.u32 4294901760, %v17339_v36 }
 0x181   : > { %13287 = vmatpush3.bf16.msra.mxu1 %v20520_v23  ;;  %12214 = vmatmul.mubr.f32.gmra.mrb[6].mxu0 %v20521_v5  ;;  %v17371_v23 = vpack.c.bf16 %v19865_v48, %v19866_v34  ;;  %v20539_v48 = vld [vmem:[#allocation88_spill] sm:$0xff]  ;;  %v17455_v34 = vsub.f32 %v17323_v19, %v2157_v4 }
 0x182   : > { %14151 = vmatpush3.bf16.msra.mxu0 %v14148_v24  ;;  %13289 = vmatprep.subr.bf16.mxu1 %v20522_v61  ;;  %v17363_v24 = vand.u32 4294901760, %v2131_v3  ;;  %v17488_v19 = vld [vmem:[%s19569_s1 + $0x170] sm:$0xff] }
 0x183   : > { %14153 = vmatprep.subr.bf16.mxu0 %v14152_v1  ;;  %11060 = vmatprep.mubr.f32.mxu1 %v16415_v20  ;;  %v17328_v20 = vld [vmem:[%s19569_s1 + $0x108] sm:$0xff]  ;;  %20528 = vst [vmem:[#allocation80_spill] sm:$0xff] %v17371_v23 }
 0x184   : > { %12248 = vmatprep.mubr.f32.mxu0 %v20523_v25  ;;  %v2160_v27 = vand.u32 4294901760, %v17328_v20  ;;  %v17379_v25 = vld [vmem:[%s19569_s1 + $0x130] sm:$0xff] }
 0x185   : > { %13291 = vmatpush3.bf16.msra.mxu1 %v20522_v61  ;;  %v19861_v61 = vand.u32 4294901760, %v17361_v55 }
 0x186   : > { %14155 = vmatpush3.bf16.msra.mxu0 %v14152_v1  ;;  %13293 = vmatprep.subr.bf16.mxu1 %v20524_v29  ;;  %v17349_v41 = vpack.c.bf16 %v2160_v27, %v2157_v4  ;;  %v19864_v1 = vand.u32 4294901760, %v17356_v57  ;;  %v20544_v4 = vld [vmem:[#allocation67_spill] sm:$0xff] }
 0x187   : > { %14157 = vmatprep.subr.bf16.mxu0 %v14156_v45 }
 0x188   : > { %20527 = vst [vmem:[#allocation79_spill] sm:$0xff] %v17349_v41 }
 0x189   : > { %13295 = vmatpush3.bf16.msra.mxu1 %v20524_v29  ;;  %v17384_v29 = vld [vmem:[%s19569_s1 + $0x138] sm:$0xff] }
 0x18a   : > { %14159 = vmatpush3.bf16.msra.mxu0 %v14156_v45  ;;  %13297 = vmatprep.subr.bf16.mxu1 %v20525_v47  ;;  %v20529_v45 = vld [vmem:[#allocation2_spill] sm:$0xff] }
 0x18b   : > { %14161 = vmatprep.subr.bf16.mxu0 %v14160_v62 }
 0x18d   : > { %13299 = vmatpush3.bf16.msra.mxu1 %v20525_v47  ;;  %v20531_v47 = vld [vmem:[#allocation71_spill] sm:$0xff] }
 0x18e   : > { %14163 = vmatpush3.bf16.msra.mxu0 %v14160_v62  ;;  %13301 = vmatprep.subr.bf16.mxu1 %v20526_v10  ;;  %v17387_v62 = vsub.f32 %v2131_v3, %v17363_v24  ;;  %v19862_v3 = vand.u32 4294901760, %v17384_v29 }
 0x18f   : > { %14165 = vmatprep.subr.bf16.mxu0 %v14164_v63 }
 0x190   : > { %20530 = vst [vmem:[#allocation68_spill] sm:$0xff] %v17387_v62  ;;  %v19867_v40 = vand.u32 4294901760, %v17387_v62 }
 0x191   : > { %13303 = vmatpush3.bf16.msra.mxu1 %v20526_v10  ;;  %v19863_v10 = vand.u32 4294901760, %v17379_v25 }
 0x192   : > { %14167 = vmatpush3.bf16.msra.mxu0 %v14164_v63  ;;  %13305 = vmatprep.subr.bf16.mxu1 %v17349_v41  ;;  %v17398_v63 = vpack.c.bf16 %v19861_v61, %v19864_v1  ;;  %v17439_v61 = vld [vmem:[%s19569_s1 + $0x158] sm:$0xff]  ;;  %v17451_v1 = vld [vmem:[%s19569_s1 + $0x160] sm:$0xff] }
 0x193   : > { %14169 = vmatprep.subr.bf16.mxu0 %v20529_v45  ;;  %v17425_v59 = vpack.c.bf16 %v19862_v3, %v19863_v10  ;;  %v2240_v3 = vsub.f32 %v17387_v62, %v19867_v40  ;;  %v20538_v10 = vld [vmem:[#allocation86_spill] sm:$0xff]  ;;  %v17460_v40 = vand.u32 4294901760, %v2132_v52  ;;  %v20547_v62 = vand.u32 4294901760, %v17439_v61 }
 0x194   : > { %11061 = vmatmul.mubr.f32.vlgmr.msra.gmra.mrb[0].mxu1 %v16527_v38  ;;  %20532 = vst [vmem:[#allocation40_spill] sm:$0xff] %v17398_v63  ;;  %v20533_v38 = vld [vmem:[#allocation4_spill] sm:$0xff] }
 0x195   : > { %13307 = vmatpush3.bf16.msra.mxu1 %v17349_v41  ;;  %12249 = vmatmul.mubr.f32.vlgmr.msra.gmra.mrb[0].mxu0 %v20531_v47  ;;  %v17406_v47 = vld [vmem:[%s19569_s1 + $0x140] sm:$0xff]  ;;  %20536 = vst [vmem:[#allocation70_spill] sm:$0xff] %v17425_v59  ;;  %20541 = vst [vmem:[#allocation77_spill] sm:$0xff] %v17460_v40 }
 0x196   : > { %14171 = vmatpush3.bf16.msra.mxu0 %v20529_v45  ;;  %13309 = vmatprep.subr.bf16.mxu1 %v17371_v23  ;;  %v19872_v42 = vand.u32 4294901760, %v17406_v47  ;;  %v20573_v45 = vand.u32 4294901760, %v17008_v58 }
 0x197   : > { %14173 = vmatprep.subr.bf16.mxu0 %v20533_v38  ;;  %11063 = vmatprep.mubr.f32.mxu1 %v16573_v56 }
 0x198   : > { %12251 = vmatprep.mubr.f32.mxu0 %v20534_v6  ;;  %11064 = vmatmul.mubr.f32.gmra.mrb[2].mxu1 %v20513_v15  ;;  %v17458_v6 = vsub.f32 %v17328_v20, %v2160_v27  ;;  %v17475_v20 = vld [vmem:[%s19569_s1 + $0x168] sm:$0xff]  ;;  %v2241_v27 = vand.u32 4294901760, %v2240_v3  ;;  %v17493_v3 = vld [vmem:[%s19569_s1 + $0x178] sm:$0xff] }
 0x199   : > { %13311 = vmatpush3.bf16.msra.mxu1 %v17371_v23  ;;  %12252 = vmatmul.mubr.f32.gmra.mrb[2].mxu0 %v20535_v46  ;;  %v17434_v46 = vld [vmem:[%s19569_s1 + $0x150] sm:$0xff]  ;;  %v17513_v23 = vsub.f32 %v17339_v36, %v20549_v11  ;;  %v2135_v11 = vld [vmem:[%s15330_s26 + $0x42] sm:$0xff]  ;;  %v20554_v36 = vand.u32 4294901760, %v17451_v1 }
 0x19a   : > { %14175 = vmatpush3.bf16.msra.mxu0 %v20533_v38  ;;  %13313 = vmatprep.subr.bf16.mxu1 %v17398_v63  ;;  %20540 = vst [vmem:[#allocation73_spill] sm:$0xff] %v17458_v6  ;;  %v20546_v41 = vand.u32 4294901760, %v17434_v46 }
 0x19b   : > { %14177 = vmatprep.subr.bf16.mxu0 %v20537_v21  ;;  %11066 = vmatprep.mubr.f32.mxu1 %v20515_v13  ;;  %v20561_v13 = vand.u32 4294901760, %v17361_v55 }
 0x19c   : > { %12254 = vmatprep.mubr.f32.mxu0 %v20538_v10  ;;  %11067 = vmatmul.mubr.f32.gmra.mrb[4].mxu1 %v20516_v33  ;;  %v20542_v10 = vand.u32 4294901760, %v17411_v26  ;;  %v17508_v5 = vpack.c.bf16 %v20547_v62, %v20546_v41  ;;  %v2136_v33 = vld [vmem:[%s15330_s26 + $0x52] sm:$0xff] }
 0x19d   : > { %13315 = vmatpush3.bf16.msra.mxu1 %v17398_v63  ;;  %12255 = vmatmul.mubr.f32.gmra.mrb[4].mxu0 %v20539_v48 }
 0x19e   : > { %14179 = vmatpush3.bf16.msra.mxu0 %v20537_v21  ;;  %13317 = vmatprep.subr.bf16.mxu1 %v17425_v59  ;;  %v17468_v63 = vpack.c.bf16 %v20542_v10, %v19872_v42  ;;  %v2133_v10 = vld [vmem:[%s15330_s26 + $0x22] sm:$0xff]  ;;  %v2134_v42 = vld [vmem:[%s15330_s26 + $0x32] sm:$0xff]  ;;  %20548 = vst [vmem:[#allocation64_spill] sm:$0xff] %v17508_v5 }
 0x19f   : > { %14181 = vmatprep.subr.bf16.mxu0 %v20544_v4  ;;  %11069 = vmatprep.mubr.f32.mxu1 %v20518_v39  ;;  %v17526_v62 = vand.u32 4294901760, %v2134_v42  ;;  %v20558_v39 = vand.u32 4294901760, %v17458_v6 }
 0x1a0   : > { %20543 = vst [vmem:[#allocation17_spill] sm:$0xff] %v17468_v63  ;;  %12257 = vmatprep.mubr.f32.mxu0 %v17153_v28  ;;  %11070 = vmatmul.mubr.f32.gmra.mrb[6].mxu1 %v20519_v30  ;;  %v17521_v30 = vand.u32 4294901760, %v2133_v10 }
 0x1a1   : > { %13319 = vmatpush3.bf16.msra.mxu1 %v17425_v59  ;;  %12258 = vmatmul.mubr.f32.gmra.mrb[6].mxu0 %v17167_v51  ;;  %v17499_v59 = vsub.f32 %v2132_v52, %v17460_v40  ;;  %v20550_v52 = vand.u32 4294901760, %v17344_v8  ;;  %20553 = vst [vmem:[#allocation87_spill] sm:$0xff] %v17526_v62  ;;  %v2328_v41 = vsub.f32 %v17458_v6, %v20558_v39 }
 0x1a2   : > { %14183 = vmatpush3.bf16.msra.mxu0 %v20544_v4  ;;  %13321 = vmatprep.subr.bf16.mxu1 %v17468_v63  ;;  %v20551_v4 = vld [vmem:[#allocation69_spill] sm:$0xff]  ;;  %20552 = vst [vmem:[#allocation83_spill] sm:$0xff] %v17521_v30  ;;  %v17556_v39 = vsub.f32 %v17361_v55, %v20561_v13  ;;  %v20570_v13 = vand.u32 4294901760, %v17384_v29  ;;  %v17581_v40 = vsub.f32 %v2134_v42, %v17526_v62  ;;  %v20576_v42 = vand.u32 4294901760, %v17513_v23 }
 0x1a3   : > { %20545 = vst [vmem:[#allocation8_spill] sm:$0xff] %v17499_v59  ;;  %v17518_v48 = vsub.f32 %v17344_v8, %v20550_v52  ;;  %14185 = vmatprep.subr.bf16.mxu0 %v20551_v4  ;;  %11104 = vmatprep.mubr.f32.mxu1 %v2241_v27  ;;  %v20555_v8 = vand.u32 4294901760, %v17475_v20  ;;  %v20557_v27 = vand.u32 4294901760, %v17455_v34  ;;  %v20575_v6 = vand.u32 4294901760, %v17499_v59 }
 0x1a4   : > { %12292 = vmatprep.mubr.f32.mxu0 %v20496_v7  ;;  %20562 = vst [vmem:[#allocation72_spill] sm:$0xff] %v17556_v39  ;;  %v20563_v7 = vld [vmem:[#allocation74_spill] sm:$0xff]  ;;  %v17578_v55 = vsub.f32 %v17384_v29, %v20570_v13  ;;  %20571 = vst [vmem:[#allocation63_spill] sm:$0xff] %v17581_v40  ;;  %v2138_v13 = vld [vmem:[%s15330_s26 + $0x72] sm:$0xff] }
 0x1a5   : > { %13323 = vmatpush3.bf16.msra.mxu1 %v17468_v63  ;;  %v17534_v52 = vpack.c.bf16 %v20555_v8, %v20554_v36  ;;  %v2321_v21 = vsub.f32 %v17455_v34, %v20557_v27  ;;  %v20559_v8 = vand.u32 4294901760, %v17356_v57  ;;  %v17565_v36 = vsub.f32 %v2133_v10, %v17521_v30 }
 0x1a6   : > { %14187 = vmatpush3.bf16.msra.mxu0 %v20551_v4  ;;  %13325 = vmatprep.subr.bf16.mxu1 %v17508_v5  ;;  %v20564_v4 = vand.u32 4294901760, %v17379_v25  ;;  %v17567_v63 = vand.u32 4294901760, %v2135_v11  ;;  %v2329_v30 = vand.u32 4294901760, %v2328_v41  ;;  %v2250_v29 = vsub.f32 %v17499_v59, %v20575_v6 }
 0x1a7   : > { %20556 = vst [vmem:[#allocation26_spill] sm:$0xff] %v17534_v52  ;;  %v17551_v27 = vsub.f32 %v17356_v57, %v20559_v8  ;;  %14189 = vmatprep.subr.bf16.mxu0 %v20563_v7  ;;  %20565 = vst [vmem:[#allocation6_spill] sm:$0xff] %v17565_v36  ;;  %v20567_v57 = vand.u32 4294901760, %v17488_v19  ;;  %v20568_v8 = vand.u32 4294901760, %v17493_v3  ;;  %v2322_v10 = vand.u32 4294901760, %v2321_v21 }
 0x1a8   : > { %v17562_v38 = vsub.f32 %v17379_v25, %v20564_v4  ;;  %20566 = vst [vmem:[#allocation18_spill] sm:$0xff] %v17567_v63  ;;  %v17583_v25 = vand.u32 4294901760, %v2136_v33  ;;  %v2137_v4 = vld [vmem:[%s15330_s26 + $0x62] sm:$0xff]  ;;  %v2335_v21 = vsub.f32 %v17513_v23, %v20576_v42  ;;  %v20577_v41 = vand.u32 4294901760, %v17518_v48 }
 0x1a9   : > { %20560 = vst [vmem:[#allocation43_spill] sm:$0xff] %v17551_v27  ;;  %v17573_v15 = vpack.c.bf16 %v20568_v8, %v20567_v57  ;;  %13327 = vmatpush3.bf16.msra.mxu1 %v17508_v5  ;;  %v20574_v57 = vand.u32 4294901760, %v17010_v54  ;;  %v17611_v59 = vsub.f32 %v2135_v11, %v17567_v63  ;;  %v17620_v54 = vand.u32 4294901760, %v2138_v13 }
 0x1aa   : > { %20572 = vst [vmem:[#allocation61_spill] sm:$0xff] %v17583_v25  ;;  %14191 = vmatpush3.bf16.msra.mxu0 %v20563_v7  ;;  %13329 = vmatprep.subr.bf16.mxu1 %v17534_v52  ;;  %v2342_v58 = vsub.f32 %v17518_v48, %v20577_v41  ;;  %v17613_v7 = vand.u32 4294901760, %v2137_v4  ;;  %v17618_v41 = vsub.f32 %v2136_v33, %v17583_v25  ;;  %v2251_v6 = vand.u32 4294901760, %v2250_v29 }
 0x1ab   : > { %20569 = vst [vmem:[#allocation75_spill] sm:$0xff] %v17573_v15  ;;  %v17591_v8 = vpack.c.bf16 %v20574_v57, %v20573_v45  ;;  %v20578_v57 = vld [vmem:[#allocation78_spill] sm:$0xff]  ;;  %20580 = vst [vmem:[#allocation81_spill] sm:$0xff] %v17620_v54  ;;  %v13336_v45 = vpack.c.bf16 %v2329_v30, %v2322_v10  ;;  %v20581_v5 = vand.u32 4294901760, %v17406_v47  ;;  %v20582_v63 = vand.u32 4294901760, %v17411_v26 }
 0x1ac   : > { %14193 = vmatprep.subr.bf16.mxu0 %v20578_v57  ;;  %20579 = vst [vmem:[#allocation71_spill] sm:$0xff] %v17613_v7  ;;  %v2336_v33 = vand.u32 4294901760, %v2335_v21  ;;  %v2343_v62 = vand.u32 4294901760, %v2342_v58  ;;  %v20584_v10 = vand.u32 4294901760, %v17556_v39  ;;  %v20586_v29 = vand.u32 4294901760, %v17562_v38 }
 0x1ad   : > { %13331 = vmatpush3.bf16.msra.mxu1 %v17534_v52  ;;  %v17626_v11 = vsub.f32 %v17406_v47, %v20581_v5  ;;  %v17631_v42 = vsub.f32 %v17411_v26, %v20582_v63  ;;  %v20583_v52 = vand.u32 4294901760, %v17551_v27  ;;  %v20585_v47 = vld [vmem:[#allocation23_spill] sm:$0xff]  ;;  %v20587_v63 = vand.u32 4294901760, %v17565_v36 }
 0x1ae   : > { %14195 = vmatpush3.bf16.msra.mxu0 %v20578_v57  ;;  %13333 = vmatprep.subr.bf16.mxu1 %v17573_v15  ;;  %v2356_v5 = vsub.f32 %v17556_v39, %v20584_v10  ;;  %v2363_v26 = vsub.f32 %v17562_v38, %v20586_v29  ;;  %v17650_v58 = vsub.f32 %v2137_v4, %v17613_v7  ;;  %v20589_v10 = vand.u32 4294901760, %v17581_v40 }
 0x1af   : > { %v2349_v30 = vsub.f32 %v17551_v27, %v20583_v52  ;;  %14197 = vmatprep.subr.bf16.mxu0 %v20585_v47  ;;  %v2260_v57 = vsub.f32 %v17565_v36, %v20587_v63  ;;  %v20588_v52 = vand.u32 4294901760, %v17578_v55  ;;  %v17660_v29 = vsub.f32 %v2138_v13, %v17620_v54 }
 0x1b0   : > { %v2270_v39 = vsub.f32 %v17581_v40, %v20589_v10  ;;  %v20590_v21 = vand.u32 4294901760, %v17434_v46  ;;  %v13340_v13 = vpack.c.bf16 %v2343_v62, %v2336_v33  ;;  %v20592_v27 = vand.u32 4294901760, %v17054_v35 }
 0x1b1   : > { %v2370_v25 = vsub.f32 %v17578_v55, %v20588_v52  ;;  %13335 = vmatpush3.bf16.msra.mxu1 %v17573_v15  ;;  %v20591_v52 = vand.u32 4294901760, %v17439_v61  ;;  %v20593_v63 = vand.u32 4294901760, %v17059_v32  ;;  %v2350_v4 = vand.u32 4294901760, %v2349_v30 }
 0x1b2   : > { %v17668_v36 = vsub.f32 %v17434_v46, %v20590_v21  ;;  %14199 = vmatpush3.bf16.msra.mxu0 %v20585_v47  ;;  %13337 = vmatprep.subr.bf16.mxu1 %v13336_v45  ;;  %v2357_v40 = vand.u32 4294901760, %v2356_v5  ;;  %v2364_v46 = vand.u32 4294901760, %v2363_v26  ;;  %v2261_v21 = vand.u32 4294901760, %v2260_v57 }
 0x1b3   : > { %v17673_v10 = vsub.f32 %v17439_v61, %v20591_v52  ;;  %v14204_v15 = vpack.c.bf16 %v20593_v63, %v20592_v27  ;;  %14201 = vmatprep.subr.bf16.mxu0 %v17591_v8  ;;  %v20594_v54 = vand.u32 4294901760, %v17611_v59  ;;  %v19933_v52 = vand.u32 4294901760, %v17650_v58 }
 0x1b4   : > { %11105 = vmatmul.mubr.f32.vlgmr.msra.gmra.mrb[0].mxu1 %v2251_v6  ;;  %v2371_v47 = vand.u32 4294901760, %v2370_v25  ;;  %v2271_v62 = vand.u32 4294901760, %v2270_v39  ;;  %v20595_v35 = vand.u32 4294901760, %v17618_v41  ;;  %v19932_v27 = vand.u32 4294901760, %v17660_v29 }
 0x1b5   : > { %v2280_v61 = vsub.f32 %v17611_v59, %v20594_v54  ;;  %13339 = vmatpush3.bf16.msra.mxu1 %v13336_v45  ;;  %12293 = vmatmul.mubr.f32.vlgmr.msra.gmra.mrb[0].mxu0 %v20499_v37  ;;  %v20596_v57 = vand.u32 4294901760, %v17626_v11  ;;  %v20597_v54 = vand.u32 4294901760, %v17631_v42  ;;  %v19931_v25 = vand.u32 4294901760, %v17668_v36 }
 0x1b6   : > { %v2290_v32 = vsub.f32 %v17618_v41, %v20595_v35  ;;  %v19930_v39 = vand.u32 4294901760, %v17673_v10  ;;  %14203 = vmatpush3.bf16.msra.mxu0 %v17591_v8  ;;  %13341 = vmatprep.subr.bf16.mxu1 %v13340_v13  ;;  %v13344_v6 = vpack.c.bf16 %v2357_v40, %v2350_v4  ;;  %v20598_v45 = vand.u32 4294901760, %v17451_v1 }
 0x1b7   : > { %v2377_v33 = vsub.f32 %v17626_v11, %v20596_v57  ;;  %v2384_v30 = vsub.f32 %v17631_v42, %v20597_v54  ;;  %v20599_v5 = vand.u32 4294901760, %v17475_v20  ;;  %14205 = vmatprep.subr.bf16.mxu0 %v14204_v15  ;;  %v20600_v63 = vand.u32 4294901760, %v17085_v9  ;;  %11107 = vmatprep.mubr.f32.mxu1 %v2261_v21 }
 0x1b8   : > { %v17702_v37 = vsub.f32 %v17451_v1, %v20598_v45  ;;  %v20601_v35 = vand.u32 4294901760, %v17090_v22  ;;  %v2281_v8 = vand.u32 4294901760, %v2280_v61  ;;  %v2300_v40 = vsub.f32 %v17650_v58, %v19933_v52  ;;  %12295 = vmatprep.mubr.f32.mxu0 %v16699_v50  ;;  %11108 = vmatmul.mubr.f32.gmra.mrb[2].mxu1 %v2271_v62  ;;  %v9196_v52 = vld [vmem:[%s15330_s26 + $0x31] sm:$0xff] }
 0x1b9   : > { %v17707_v26 = vsub.f32 %v17475_v20, %v20599_v5  ;;  %v13348_v4 = vpack.c.bf16 %v2371_v47, %v2364_v46  ;;  %v2291_v1 = vand.u32 4294901760, %v2290_v32  ;;  %v2310_v20 = vsub.f32 %v17660_v29, %v19932_v27  ;;  %13343 = vmatpush3.bf16.msra.mxu1 %v13340_v13  ;;  %12296 = vmatmul.mubr.f32.gmra.mrb[2].mxu0 %v20504_v16  ;;  %v20649_v27 = vld [vmem:[#allocation63_spill] sm:$0xff] }
 0x1ba   : > { %v14208_v57 = vpack.c.bf16 %v20601_v35, %v20600_v63  ;;  %v2378_v9 = vand.u32 4294901760, %v2377_v33  ;;  %v2385_v54 = vand.u32 4294901760, %v2384_v30  ;;  %v2391_v22 = vsub.f32 %v17668_v36, %v19931_v25  ;;  %14207 = vmatpush3.bf16.msra.mxu0 %v14204_v15  ;;  %13345 = vmatprep.subr.bf16.mxu1 %v13344_v6  ;;  %v17908_v25 = vld [vmem:[%s19569_s1 + $0x3c8] sm:$0xff] }
 0x1bb   : > { %v2398_v21 = vsub.f32 %v17673_v10, %v19930_v39  ;;  %v19929_v50 = vand.u32 4294901760, %v17702_v37  ;;  %v19928_v47 = vand.u32 4294901760, %v17707_v26  ;;  %v20602_v13 = vand.u32 4294901760, %v17488_v19  ;;  %11110 = vmatprep.mubr.f32.mxu1 %v2281_v8  ;;  %12298 = vmatprep.mubr.f32.mxu0 %v16735_v43  ;;  %v20648_v39 = vld [vmem:[#allocation6_spill] sm:$0xff] }
 0x1bc   : > { %v20603_v61 = vand.u32 4294901760, %v17493_v3  ;;  %14209 = vmatprep.subr.bf16.mxu0 %v14208_v57  ;;  %v20604_v32 = vand.u32 4294901760, %v17096_v60  ;;  %v20605_v16 = vand.u32 4294901760, %v17101_v12  ;;  %v2301_v33 = vand.u32 4294901760, %v2300_v40  ;;  %11111 = vmatmul.mubr.f32.gmra.mrb[4].mxu1 %v2291_v1 }
 0x1bd   : > { %v17732_v46 = vsub.f32 %v17488_v19, %v20602_v13  ;;  %v2311_v30 = vand.u32 4294901760, %v2310_v20  ;;  %13347 = vmatpush3.bf16.msra.mxu1 %v13344_v6  ;;  %v13352_v19 = vpack.c.bf16 %v2385_v54, %v2378_v9  ;;  %v2392_v45 = vand.u32 4294901760, %v2391_v22  ;;  %12299 = vmatmul.mubr.f32.gmra.mrb[4].mxu0 %v16745_v14 }
 0x1be   : > { %v17737_v62 = vsub.f32 %v17493_v3, %v20603_v61  ;;  %v14212_v15 = vpack.c.bf16 %v20605_v16, %v20604_v32  ;;  %v2399_v5 = vand.u32 4294901760, %v2398_v21  ;;  %14211 = vmatpush3.bf16.msra.mxu0 %v14208_v57  ;;  %13349 = vmatprep.subr.bf16.mxu1 %v13348_v4  ;;  %v2405_v60 = vsub.f32 %v17702_v37, %v19929_v50  ;;  %v20616_v16 = vld [vmem:[#allocation73_spill] sm:$0xff] }
 0x1bf   : > { %v2412_v12 = vsub.f32 %v17707_v26, %v19928_v47  ;;  %v19927_v43 = vand.u32 4294901760, %v17732_v46  ;;  %v20606_v6 = vand.u32 4294901760, %v17138_v31  ;;  %v20607_v63 = vand.u32 4294901760, %v17143_v44  ;;  %11113 = vmatprep.mubr.f32.mxu1 %v2301_v33  ;;  %v20618_v33 = vld [vmem:[#allocation77_spill] sm:$0xff] }
 0x1c0   : > { %v19926_v3 = vand.u32 4294901760, %v17737_v62  ;;  %14213 = vmatprep.subr.bf16.mxu0 %v14212_v15  ;;  %v20608_v35 = vand.u32 4294901760, %v17153_v28  ;;  %11114 = vmatmul.mubr.f32.gmra.mrb[6].mxu1 %v2311_v30  ;;  %v13356_v57 = vpack.c.bf16 %v2399_v5, %v2392_v45  ;;  %v20609_v8 = vand.u32 4294901760, %v17167_v51  ;;  %v20621_v30 = vld [vmem:[#allocation72_spill] sm:$0xff]  ;;  %v20623_v5 = vld [vmem:[#allocation83_spill] sm:$0xff] }
 0x1c1   : > { %v14216_v14 = vpack.c.bf16 %v20607_v63, %v20606_v6  ;;  %13351 = vmatpush3.bf16.msra.mxu1 %v13348_v4  ;;  %v2406_v40 = vand.u32 4294901760, %v2405_v60  ;;  %v2413_v1 = vand.u32 4294901760, %v2412_v12  ;;  %v2419_v31 = vsub.f32 %v17732_v46, %v19927_v43  ;;  %11148 = vmatprep.mubr.f32.mxu1 %v17363_v24  ;;  %v20622_v45 = vld [vmem:[#allocation4_spill] sm:$0xff]  ;;  %v20624_v60 = vld [vmem:[#allocation21_spill] sm:$0xff]  ;;  %v20625_v12 = vld [vmem:[#allocation87_spill] sm:$0xff] }
 0x1c2   : > { %12301 = vmatprep.mubr.f32.mxu0 %v20608_v35  ;;  %14215 = vmatpush3.bf16.msra.mxu0 %v14212_v15  ;;  %v2426_v44 = vsub.f32 %v17737_v62, %v19926_v3  ;;  %v20610_v28 = vand.u32 4294901760, %v17175_v2  ;;  %v20611_v4 = vand.u32 4294901760, %v17180_v17  ;;  %v20612_v22 = vand.u32 4294901760, %v17203_v53  ;;  %v20626_v6 = vld [vmem:[#allocation62_spill] sm:$0xff]  ;;  %v20646_v43 = vld [vmem:[#allocation80_spill] sm:$0xff] }
 0x1c3   : > { %12302 = vmatmul.mubr.f32.gmra.mrb[6].mxu0 %v20609_v8  ;;  %13353 = vmatprep.subr.bf16.mxu1 %v13352_v19  ;;  %v13360_v51 = vpack.c.bf16 %v2413_v1, %v2406_v40  ;;  %v2420_v9 = vand.u32 4294901760, %v2419_v31  ;;  %v20613_v21 = vand.u32 4294901760, %v17208_v18  ;;  %v20614_v17 = vand.u32 4294901760, %v17235_v0  ;;  %v20617_v18 = vld [vmem:[#allocation2_spill] sm:$0xff]  ;;  %v20630_v8 = vld [vmem:[#allocation61_spill] sm:$0xff]  ;;  %v20632_v31 = vld [vmem:[#allocation67_spill] sm:$0xff] }
 0x1c4   : > { %14217 = vmatprep.subr.bf16.mxu0 %v14216_v14  ;;  %v14220_v20 = vpack.c.bf16 %v20611_v4, %v20610_v28  ;;  %12336 = vmatprep.mubr.f32.mxu0 %v16573_v56  ;;  %v2427_v54 = vand.u32 4294901760, %v2426_v44  ;;  %v20615_v61 = vand.u32 4294901760, %v17240_v49  ;;  %v13368_v15 = vpack.c.bf16 %v20616_v16, %v17455_v34  ;;  %v20619_v0 = vld [vmem:[#allocation10_spill] sm:$0xff]  ;;  %v20620_v49 = vld [vmem:[#allocation43_spill] sm:$0xff]  ;;  %v20631_v40 = vld [vmem:[#allocation85_spill] sm:$0xff] }
 0x1c5   : > { %13355 = vmatpush3.bf16.msra.mxu1 %v13352_v19  ;;  %v14224_v13 = vpack.c.bf16 %v20613_v21, %v20612_v22  ;;  %v13372_v53 = vpack.c.bf16 %v17518_v48, %v17513_v23  ;;  %v13376_v19 = vpack.c.bf16 %v20621_v30, %v20620_v49  ;;  %v13380_v63 = vpack.c.bf16 %v17578_v55, %v17562_v38  ;;  %v20628_v35 = vld [vmem:[#allocation18_spill] sm:$0xff]  ;;  %v20633_v44 = vld [vmem:[#allocation76_spill] sm:$0xff]  ;;  %v20634_v28 = vld [vmem:[#allocation81_spill] sm:$0xff] }
 0x1c6   : > { %14219 = vmatpush3.bf16.msra.mxu0 %v14216_v14  ;;  %13357 = vmatprep.subr.bf16.mxu1 %v13356_v57  ;;  %v13364_v2 = vpack.c.bf16 %v2427_v54, %v2420_v9  ;;  %v14228_v32 = vpack.c.bf16 %v20615_v61, %v20614_v17  ;;  %v20627_v14 = vld [vmem:[#allocation65_spill] sm:$0xff]  ;;  %v13384_v1 = vpack.c.bf16 %v17631_v42, %v17626_v11  ;;  %v20635_v4 = vld [vmem:[#allocation66_spill] sm:$0xff]  ;;  %v20637_v9 = vld [vmem:[#allocation68_spill] sm:$0xff] }
 0x1c7   : > { %14221 = vmatprep.subr.bf16.mxu0 %v14220_v20  ;;  %v13392_v54 = vpack.c.bf16 %v17707_v26, %v17702_v37  ;;  %v20638_v22 = vld [vmem:[#allocation74_spill] sm:$0xff] }
 0x1c8   : > { %v9203_v21 = vld [vmem:[%s19569_s1 + $0x380] sm:$0xff] }
 0x1c9   : > { %13359 = vmatpush3.bf16.msra.mxu1 %v13356_v57  ;;  %v20629_v57 = vld [vmem:[#allocation82_spill] sm:$0xff]  ;;  %v7034_v17 = vand.u32 4294901760, %v9203_v21 }
 0x1ca   : > { %14223 = vmatpush3.bf16.msra.mxu0 %v14220_v20  ;;  %13361 = vmatprep.subr.bf16.mxu1 %v13360_v51  ;;  %v13388_v20 = vpack.c.bf16 %v17673_v10, %v17668_v36 }
 0x1cb   : > { %14225 = vmatprep.subr.bf16.mxu0 %v14224_v13 }
 0x1cd   : > { %13363 = vmatpush3.bf16.msra.mxu1 %v13360_v51  ;;  %v20636_v51 = vld [vmem:[#allocation69_spill] sm:$0xff] }
 0x1ce   : > { %14227 = vmatpush3.bf16.msra.mxu0 %v14224_v13  ;;  %13365 = vmatprep.subr.bf16.mxu1 %v13364_v2  ;;  %v9204_v13 = vld [vmem:[%s19569_s1 + $0x388] sm:$0xff] }
 0x1cf   : > { %14229 = vmatprep.subr.bf16.mxu0 %v14228_v32  ;;  %v7037_v61 = vand.u32 4294901760, %v9204_v13 }
 0x1d1   : > { %13367 = vmatpush3.bf16.msra.mxu1 %v13364_v2  ;;  %v20639_v2 = vld [vmem:[#allocation78_spill] sm:$0xff] }
 0x1d2   : > { %14231 = vmatpush3.bf16.msra.mxu0 %v14228_v32  ;;  %13369 = vmatprep.subr.bf16.mxu1 %v13368_v15  ;;  %v17835_v32 = vld [vmem:[%s19569_s1 + $0x390] sm:$0xff] }
 0x1d3   : > { %14233 = vmatprep.subr.bf16.mxu0 %v20617_v18 }
 0x1d4   : > { %11149 = vmatmul.mubr.f32.vlgmr.msra.gmra.mrb[0].mxu1 %v20618_v33 }
 0x1d5   : > { %13371 = vmatpush3.bf16.msra.mxu1 %v13368_v15  ;;  %12337 = vmatmul.mubr.f32.vlgmr.msra.gmra.mrb[0].mxu0 %v20619_v0  ;;  %v17840_v15 = vld [vmem:[%s19569_s1 + $0x398] sm:$0xff] }
 0x1d6   : > { %14235 = vmatpush3.bf16.msra.mxu0 %v20617_v18  ;;  %13373 = vmatprep.subr.bf16.mxu1 %v13372_v53  ;;  %v20640_v18 = vld [vmem:[#allocation23_spill] sm:$0xff] }
 0x1d7   : > { %14237 = vmatprep.subr.bf16.mxu0 %v20622_v45  ;;  %11151 = vmatprep.mubr.f32.mxu1 %v20623_v5 }
 0x1d8   : > { %12339 = vmatprep.mubr.f32.mxu0 %v20624_v60  ;;  %11152 = vmatmul.mubr.f32.gmra.mrb[2].mxu1 %v20625_v12 }
 0x1d9   : > { %13375 = vmatpush3.bf16.msra.mxu1 %v13372_v53  ;;  %12340 = vmatmul.mubr.f32.gmra.mrb[2].mxu0 %v20626_v6  ;;  %v9195_v53 = vld [vmem:[%s15330_s26 + $0x21] sm:$0xff] }
 0x1da   : > { %14239 = vmatpush3.bf16.msra.mxu0 %v20622_v45  ;;  %13377 = vmatprep.subr.bf16.mxu1 %v13376_v19  ;;  %v19937_v45 = vand.u32 4294901760, %v17835_v32 }
 0x1db   : > { %14241 = vmatprep.subr.bf16.mxu0 %v20627_v14  ;;  %11154 = vmatprep.mubr.f32.mxu1 %v20628_v35  ;;  %v20665_v35 = vand.u32 4294901760, %v20637_v9 }
 0x1dc   : > { %12342 = vmatprep.mubr.f32.mxu0 %v20629_v57  ;;  %11155 = vmatmul.mubr.f32.gmra.mrb[4].mxu1 %v20630_v8 }
 0x1dd   : > { %13379 = vmatpush3.bf16.msra.mxu1 %v13376_v19  ;;  %12343 = vmatmul.mubr.f32.gmra.mrb[4].mxu0 %v20631_v40  ;;  %v17845_v19 = vpack.c.bf16 %v7037_v61, %v7034_v17 }
 0x1de   : > { %14243 = vmatpush3.bf16.msra.mxu0 %v20627_v14  ;;  %13381 = vmatprep.subr.bf16.mxu1 %v13380_v63  ;;  %v17852_v14 = vld [vmem:[%s19569_s1 + $0x3a0] sm:$0xff] }
 0x1df   : > { %14245 = vmatprep.subr.bf16.mxu0 %v20632_v31  ;;  %11157 = vmatprep.mubr.f32.mxu1 %v17613_v7  ;;  %20641 = vst [vmem:[#allocation84_spill] sm:$0xff] %v17845_v19 }
 0x1e0   : > { %12345 = vmatprep.mubr.f32.mxu0 %v20633_v44  ;;  %11158 = vmatmul.mubr.f32.gmra.mrb[6].mxu1 %v20634_v28  ;;  %v9198_v28 = vld [vmem:[%s15330_s26 + $0x51] sm:$0xff] }
 0x1e1   : > { %13383 = vmatpush3.bf16.msra.mxu1 %v13380_v63  ;;  %12346 = vmatmul.mubr.f32.gmra.mrb[6].mxu0 %v20635_v4  ;;  %v19936_v63 = vand.u32 4294901760, %v17840_v15 }
 0x1e2   : > { %14247 = vmatpush3.bf16.msra.mxu0 %v20632_v31  ;;  %13385 = vmatprep.subr.bf16.mxu1 %v13384_v1  ;;  %v17859_v31 = vand.u32 4294901760, %v9195_v53 }
 0x1e3   : > { %14249 = vmatprep.subr.bf16.mxu0 %v20636_v51  ;;  %11192 = vmatprep.mubr.f32.mxu1 %v20637_v9  ;;  %v9200_v9 = vld [vmem:[%s15330_s26 + $0x71] sm:$0xff] }
 0x1e4   : > { %12380 = vmatprep.mubr.f32.mxu0 %v16573_v56  ;;  %v13396_v56 = vpack.c.bf16 %v17737_v62, %v17732_v46  ;;  %v17884_v3 = vsub.f32 %v9195_v53, %v17859_v31 }
 0x1e5   : > { %13387 = vmatpush3.bf16.msra.mxu1 %v13384_v1  ;;  %v17857_v1 = vld [vmem:[%s19569_s1 + $0x3a8] sm:$0xff] }
 0x1e6   : > { %14251 = vmatpush3.bf16.msra.mxu0 %v20636_v51  ;;  %13389 = vmatprep.subr.bf16.mxu1 %v13388_v20  ;;  %v17868_v51 = vpack.c.bf16 %v19936_v63, %v19937_v45  ;;  %20645 = vst [vmem:[#allocation88_spill] sm:$0xff] %v17884_v3  ;;  %v17957_v45 = vand.u32 4294901760, %v9196_v52 }
 0x1e7   : > { %14253 = vmatprep.subr.bf16.mxu0 %v20638_v22 }
 0x1e8   : > { %20643 = vst [vmem:[#allocation86_spill] sm:$0xff] %v17868_v51  ;;  %20655 = vst [vmem:[#allocation43_spill] sm:$0xff] %v17957_v45 }
 0x1e9   : > { %13391 = vmatpush3.bf16.msra.mxu1 %v13388_v20  ;;  %v20642_v20 = vld [vmem:[#allocation79_spill] sm:$0xff] }
 0x1ea   : > { %14255 = vmatpush3.bf16.msra.mxu0 %v20638_v22  ;;  %13393 = vmatprep.subr.bf16.mxu1 %v13392_v54  ;;  %v19934_v22 = vand.u32 4294901760, %v17857_v1 }
 0x1eb   : > { %14257 = vmatprep.subr.bf16.mxu0 %v20639_v2 }
 0x1ed   : > { %13395 = vmatpush3.bf16.msra.mxu1 %v13392_v54  ;;  %v19935_v54 = vand.u32 4294901760, %v17852_v14 }
 0x1ee   : > { %14259 = vmatpush3.bf16.msra.mxu0 %v20639_v2  ;;  %13397 = vmatprep.subr.bf16.mxu1 %v13396_v56  ;;  %v20644_v2 = vld [vmem:[#allocation8_spill] sm:$0xff] }
 0x1ef   : > { %14261 = vmatprep.subr.bf16.mxu0 %v20640_v18  ;;  %v17895_v47 = vpack.c.bf16 %v19934_v22, %v19935_v54  ;;  %v20650_v22 = vld [vmem:[#allocation40_spill] sm:$0xff]  ;;  %v17917_v54 = vsub.f32 %v9203_v21, %v7034_v17  ;;  %v17940_v17 = vld [vmem:[%s19569_s1 + $0x3d8] sm:$0xff] }
 0x1f0   : > { %v17935_v21 = vld [vmem:[%s19569_s1 + $0x3d0] sm:$0xff] }
 0x1f1   : > { %13399 = vmatpush3.bf16.msra.mxu1 %v13396_v56  ;;  %v17876_v56 = vld [vmem:[%s19569_s1 + $0x3b0] sm:$0xff]  ;;  %20647 = vst [vmem:[#allocation73_spill] sm:$0xff] %v17895_v47  ;;  %v20662_v7 = vand.u32 4294901760, %v17935_v21 }
 0x1f2   : > { %14263 = vmatpush3.bf16.msra.mxu0 %v20640_v18  ;;  %13401 = vmatprep.subr.bf16.mxu1 %v20642_v20  ;;  %v17881_v18 = vld [vmem:[%s19569_s1 + $0x3b8] sm:$0xff]  ;;  %v19939_v50 = vand.u32 4294901760, %v17876_v56 }
 0x1f3   : > { %14265 = vmatprep.subr.bf16.mxu0 %v17845_v19  ;;  %v19938_v53 = vand.u32 4294901760, %v17881_v18 }
 0x1f4   : > { %11193 = vmatmul.mubr.f32.vlgmr.msra.gmra.mrb[0].mxu1 %v20644_v2 }
 0x1f5   : > { %13403 = vmatpush3.bf16.msra.mxu1 %v20642_v20  ;;  %12381 = vmatmul.mubr.f32.vlgmr.msra.gmra.mrb[0].mxu0 %v20619_v0  ;;  %v17903_v0 = vld [vmem:[%s19569_s1 + $0x3c0] sm:$0xff] }
 0x1f6   : > { %14267 = vmatpush3.bf16.msra.mxu0 %v17845_v19  ;;  %13405 = vmatprep.subr.bf16.mxu1 %v20646_v43  ;;  %v19946_v63 = vand.u32 4294901760, %v17903_v0  ;;  %v17971_v19 = vld [vmem:[%s19569_s1 + $0x3e8] sm:$0xff] }
 0x1f7   : > { %14269 = vmatprep.subr.bf16.mxu0 %v17868_v51  ;;  %11195 = vmatprep.mubr.f32.mxu1 %v20648_v39 }
 0x1f8   : > { %12383 = vmatprep.mubr.f32.mxu0 %v20624_v60  ;;  %11196 = vmatmul.mubr.f32.gmra.mrb[2].mxu1 %v20649_v27  ;;  %v17924_v60 = vpack.c.bf16 %v19938_v53, %v19939_v50  ;;  %v20653_v53 = vand.u32 4294901760, %v17884_v3  ;;  %v17954_v50 = vld [vmem:[%s19569_s1 + $0x3e0] sm:$0xff] }
 0x1f9   : > { %13407 = vmatpush3.bf16.msra.mxu1 %v20646_v43  ;;  %12384 = vmatmul.mubr.f32.gmra.mrb[2].mxu0 %v20626_v6  ;;  %v17929_v6 = vsub.f32 %v9204_v13, %v7037_v61  ;;  %v20654_v61 = vld [vmem:[#allocation70_spill] sm:$0xff]  ;;  %v20671_v12 = vand.u32 4294901760, %v17954_v50  ;;  %v20674_v43 = vand.u32 4294901760, %v17852_v14 }
 0x1fa   : > { %14271 = vmatpush3.bf16.msra.mxu0 %v17868_v51  ;;  %13409 = vmatprep.subr.bf16.mxu1 %v20650_v22  ;;  %20651 = vst [vmem:[#allocation2_spill] sm:$0xff] %v17924_v60  ;;  %v7117_v13 = vsub.f32 %v17884_v3, %v20653_v53  ;;  %v9197_v51 = vld [vmem:[%s15330_s26 + $0x41] sm:$0xff]  ;;  %v20661_v3 = vand.u32 4294901760, %v17835_v32 }
 0x1fb   : > { %14273 = vmatprep.subr.bf16.mxu0 %v17895_v47  ;;  %11198 = vmatprep.mubr.f32.mxu1 %v17611_v59  ;;  %20652 = vst [vmem:[#allocation10_spill] sm:$0xff] %v17929_v6 }
 0x1fc   : > { %12386 = vmatprep.mubr.f32.mxu0 %v20629_v57  ;;  %11199 = vmatmul.mubr.f32.gmra.mrb[4].mxu1 %v17618_v41  ;;  %v17998_v57 = vsub.f32 %v9196_v52, %v17957_v45  ;;  %v20666_v52 = vand.u32 4294901760, %v17929_v6  ;;  %v18047_v45 = vsub.f32 %v17852_v14, %v20674_v43 }
 0x1fd   : > { %13411 = vmatpush3.bf16.msra.mxu1 %v20650_v22  ;;  %12387 = vmatmul.mubr.f32.gmra.mrb[4].mxu0 %v20631_v40  ;;  %v20656_v40 = vand.u32 4294901760, %v17908_v25  ;;  %v18023_v22 = vand.u32 4294901760, %v9197_v51 }
 0x1fe   : > { %14275 = vmatpush3.bf16.msra.mxu0 %v17895_v47  ;;  %13413 = vmatprep.subr.bf16.mxu1 %v20654_v61  ;;  %v20658_v47 = vld [vmem:[#allocation17_spill] sm:$0xff]  ;;  %20660 = vst [vmem:[#allocation4_spill] sm:$0xff] %v17998_v57  ;;  %v20689_v33 = vand.u32 4294901760, %v17998_v57 }
 0x1ff   : > { %14277 = vmatprep.subr.bf16.mxu0 %v17924_v60  ;;  %v17964_v53 = vpack.c.bf16 %v20656_v40, %v19946_v63  ;;  %11201 = vmatprep.mubr.f32.mxu1 %v17650_v58  ;;  %v7118_v40 = vand.u32 4294901760, %v7117_v13  ;;  %v17992_v13 = vld [vmem:[%s19569_s1 + $0x3f8] sm:$0xff]  ;;  %v20659_v63 = vand.u32 4294901760, %v17917_v54  ;;  %20668 = vst [vmem:[#allocation62_spill] sm:$0xff] %v18023_v22 }
 0x200   : > { %12389 = vmatprep.mubr.f32.mxu0 %v20633_v44  ;;  %11202 = vmatmul.mubr.f32.gmra.mrb[6].mxu1 %v17660_v29  ;;  %v17987_v44 = vld [vmem:[%s19569_s1 + $0x3f0] sm:$0xff]  ;;  %v20681_v14 = vand.u32 4294901760, %v17992_v13 }
 0x201   : > { %20657 = vst [vmem:[#allocation72_spill] sm:$0xff] %v17964_v53  ;;  %13415 = vmatpush3.bf16.msra.mxu1 %v20654_v61  ;;  %12390 = vmatmul.mubr.f32.gmra.mrb[6].mxu0 %v20635_v4  ;;  %v7198_v4 = vsub.f32 %v17917_v54, %v20659_v63  ;;  %v20663_v61 = vand.u32 4294901760, %v17940_v17  ;;  %v7205_v63 = vsub.f32 %v17929_v6, %v20666_v52  ;;  %v20670_v52 = vld [vmem:[#allocation64_spill] sm:$0xff]  ;;  %v20680_v43 = vand.u32 4294901760, %v17987_v44 }
 0x202   : > { %14279 = vmatpush3.bf16.msra.mxu0 %v17924_v60  ;;  %13417 = vmatprep.subr.bf16.mxu1 %v20658_v47  ;;  %v18003_v60 = vsub.f32 %v17835_v32, %v20661_v3  ;;  %v20667_v3 = vand.u32 4294901760, %v17840_v15 }
 0x203   : > { %14281 = vmatprep.subr.bf16.mxu0 %v17964_v53  ;;  %v18011_v8 = vpack.c.bf16 %v20663_v61, %v20662_v7  ;;  %11236 = vmatprep.mubr.f32.mxu1 %v20665_v35  ;;  %v18028_v35 = vand.u32 4294901760, %v9198_v28  ;;  %v9199_v61 = vld [vmem:[%s15330_s26 + $0x61] sm:$0xff]  ;;  %v7206_v5 = vand.u32 4294901760, %v7205_v63  ;;  %v18060_v63 = vsub.f32 %v9197_v51, %v18023_v22 }
 0x204   : > { %v18021_v32 = vsub.f32 %v17840_v15, %v20667_v3  ;;  %12424 = vmatprep.mubr.f32.mxu0 %v7118_v40  ;;  %v20672_v15 = vand.u32 4294901760, %v17971_v19  ;;  %v7199_v3 = vand.u32 4294901760, %v7198_v4  ;;  %v18079_v51 = vand.u32 4294901760, %v9200_v9 }
 0x205   : > { %20664 = vst [vmem:[#allocation21_spill] sm:$0xff] %v18011_v8  ;;  %13419 = vmatpush3.bf16.msra.mxu1 %v20658_v47  ;;  %20669 = vst [vmem:[#allocation65_spill] sm:$0xff] %v18028_v35  ;;  %v18069_v47 = vpack.c.bf16 %v20681_v14, %v20680_v43  ;;  %v20687_v22 = vand.u32 4294901760, %v17455_v34  ;;  %v20688_v43 = vand.u32 4294901760, %v20616_v16  ;;  %v20695_v16 = vand.u32 4294901760, %v17903_v0 }
 0x206   : > { %14283 = vmatpush3.bf16.msra.mxu0 %v17964_v53  ;;  %13421 = vmatprep.subr.bf16.mxu1 %v20670_v52  ;;  %v18037_v40 = vpack.c.bf16 %v20672_v15, %v20671_v12  ;;  %v20675_v12 = vand.u32 4294901760, %v17857_v1  ;;  %v20676_v15 = vand.u32 4294901760, %v17876_v56  ;;  %20678 = vst [vmem:[#allocation67_spill] sm:$0xff] %v18060_v63  ;;  %v18062_v53 = vand.u32 4294901760, %v9199_v61  ;;  %20685 = vst [vmem:[#allocation68_spill] sm:$0xff] %v18079_v51 }
 0x207   : > { %14285 = vmatprep.subr.bf16.mxu0 %v18011_v8  ;;  %20682 = vst [vmem:[#allocation66_spill] sm:$0xff] %v18069_v47  ;;  %v13432_v14 = vpack.c.bf16 %v20688_v43, %v20687_v22  ;;  %v14296_v20 = vpack.c.bf16 %v7206_v5, %v7199_v3  ;;  %v20694_v22 = vld [vmem:[#allocation75_spill] sm:$0xff]  ;;  %v20696_v5 = vand.u32 4294901760, %v17908_v25 }
 0x208   : > { %20673 = vst [vmem:[#allocation82_spill] sm:$0xff] %v18037_v40  ;;  %v18052_v4 = vsub.f32 %v17857_v1, %v20675_v12  ;;  %v18057_v7 = vsub.f32 %v17876_v56, %v20676_v15  ;;  %20679 = vst [vmem:[#allocation76_spill] sm:$0xff] %v18062_v53  ;;  %v20683_v1 = vand.u32 4294901760, %v17881_v18  ;;  %v18077_v56 = vsub.f32 %v9198_v28, %v18028_v35  ;;  %v9201_v15 = vld [vmem:[%s15330_s26 + $0x81] sm:$0xff]  ;;  %v9202_v35 = vld [vmem:[%s15330_s26 + $0x91] sm:$0xff] }
 0x209   : > { %13423 = vmatpush3.bf16.msra.mxu1 %v20670_v52  ;;  %v20686_v52 = vld [vmem:[#allocation26_spill] sm:$0xff]  ;;  %v18104_v43 = vsub.f32 %v9199_v61, %v18062_v53  ;;  %v18114_v34 = vand.u32 4294901760, %v9202_v35  ;;  %v18126_v3 = vsub.f32 %v17908_v25, %v20696_v5  ;;  %v20702_v5 = vand.u32 4294901760, %v18060_v63 }
 0x20a   : > { %20677 = vst [vmem:[#allocation85_spill] sm:$0xff] %v18057_v7  ;;  %v18074_v12 = vsub.f32 %v17881_v18, %v20683_v1  ;;  %20684 = vst [vmem:[#allocation69_spill] sm:$0xff] %v18077_v56  ;;  %14287 = vmatpush3.bf16.msra.mxu0 %v18011_v8  ;;  %13425 = vmatprep.subr.bf16.mxu1 %v20686_v52  ;;  %v7127_v18 = vsub.f32 %v17998_v57, %v20689_v33  ;;  %v20690_v1 = vand.u32 4294901760, %v18003_v60 }
 0x20b   : > { %14289 = vmatprep.subr.bf16.mxu0 %v18037_v40  ;;  %v20691_v8 = vand.u32 4294901760, %v18021_v32  ;;  %20693 = vst [vmem:[#allocation78_spill] sm:$0xff] %v18114_v34  ;;  %v18121_v57 = vsub.f32 %v17903_v0, %v20695_v16  ;;  %v20700_v0 = vand.u32 4294901760, %v18052_v4  ;;  %v20701_v53 = vand.u32 4294901760, %v18057_v7 }
 0x20c   : > { %v7212_v28 = vsub.f32 %v18003_v60, %v20690_v1  ;;  %v18106_v1 = vand.u32 4294901760, %v9201_v15  ;;  %v7128_v33 = vand.u32 4294901760, %v7127_v18  ;;  %v20699_v18 = vand.u32 4294901760, %v18047_v45 }
 0x20d   : > { %v7219_v6 = vsub.f32 %v18021_v32, %v20691_v8  ;;  %13427 = vmatpush3.bf16.msra.mxu1 %v20686_v52  ;;  %v18112_v8 = vsub.f32 %v9200_v9, %v18079_v51  ;;  %v20697_v9 = vand.u32 4294901760, %v17513_v23  ;;  %v7233_v16 = vsub.f32 %v18052_v4, %v20700_v0 }
 0x20e   : > { %20692 = vst [vmem:[#allocation74_spill] sm:$0xff] %v18106_v1  ;;  %14291 = vmatpush3.bf16.msra.mxu0 %v18037_v40  ;;  %13429 = vmatprep.subr.bf16.mxu1 %v20694_v22  ;;  %v7213_v61 = vand.u32 4294901760, %v7212_v28  ;;  %v20698_v40 = vand.u32 4294901760, %v17518_v48  ;;  %v7226_v28 = vsub.f32 %v18047_v45, %v20699_v18  ;;  %v7240_v25 = vsub.f32 %v18057_v7, %v20701_v53 }
 0x20f   : > { %14293 = vmatprep.subr.bf16.mxu0 %v18069_v47  ;;  %v7220_v51 = vand.u32 4294901760, %v7219_v6  ;;  %v7137_v23 = vsub.f32 %v18060_v63, %v20702_v5  ;;  %v18147_v6 = vsub.f32 %v9201_v15, %v18106_v1  ;;  %v20704_v18 = vand.u32 4294901760, %v18077_v56 }
 0x210   : > { %v13436_v52 = vpack.c.bf16 %v20698_v40, %v20697_v9  ;;  %v20703_v40 = vand.u32 4294901760, %v18074_v12  ;;  %v18158_v7 = vsub.f32 %v9202_v35, %v18114_v34  ;;  %v20705_v48 = vand.u32 4294901760, %v17935_v21 }
 0x211   : > { %13431 = vmatpush3.bf16.msra.mxu1 %v20694_v22  ;;  %v7147_v0 = vsub.f32 %v18077_v56, %v20704_v18  ;;  %v20706_v63 = vand.u32 4294901760, %v17940_v17  ;;  %v14300_v35 = vpack.c.bf16 %v7220_v51, %v7213_v61  ;;  %v20707_v53 = vand.u32 4294901760, %v20620_v49 }
 0x212   : > { %v7247_v9 = vsub.f32 %v18074_v12, %v20703_v40  ;;  %14295 = vmatpush3.bf16.msra.mxu0 %v18069_v47  ;;  %13433 = vmatprep.subr.bf16.mxu1 %v13432_v14  ;;  %v18166_v40 = vsub.f32 %v17935_v21, %v20705_v48  ;;  %v20708_v47 = vand.u32 4294901760, %v20621_v30  ;;  %v7227_v15 = vand.u32 4294901760, %v7226_v28 }
 0x213   : > { %v18171_v18 = vsub.f32 %v17940_v17, %v20706_v63  ;;  %14297 = vmatprep.subr.bf16.mxu0 %v14296_v20  ;;  %v7234_v22 = vand.u32 4294901760, %v7233_v16  ;;  %v20709_v5 = vand.u32 4294901760, %v20644_v2  ;;  %v7241_v34 = vand.u32 4294901760, %v7240_v25 }
 0x214   : > { %v13440_v56 = vpack.c.bf16 %v20708_v47, %v20707_v53  ;;  %v7138_v21 = vand.u32 4294901760, %v7137_v23  ;;  %v20710_v48 = vand.u32 4294901760, %v18104_v43  ;;  %v20000_v17 = vand.u32 4294901760, %v18147_v6 }
 0x215   : > { %11237 = vmatmul.mubr.f32.vlgmr.msra.gmra.mrb[0].mxu1 %v20709_v5  ;;  %12425 = vmatmul.mubr.f32.vlgmr.msra.gmra.mrb[0].mxu0 %v7128_v33  ;;  %v7248_v63 = vand.u32 4294901760, %v7247_v9  ;;  %v7148_v49 = vand.u32 4294901760, %v7147_v0  ;;  %v20711_v30 = vand.u32 4294901760, %v18112_v8  ;;  %v19999_v51 = vand.u32 4294901760, %v18158_v7 }
 0x216   : > { %v7157_v1 = vsub.f32 %v18104_v43, %v20710_v48  ;;  %13435 = vmatpush3.bf16.msra.mxu1 %v13432_v14  ;;  %14299 = vmatpush3.bf16.msra.mxu0 %v14296_v20  ;;  %v20712_v2 = vand.u32 4294901760, %v18121_v57  ;;  %v20713_v28 = vand.u32 4294901760, %v18126_v3  ;;  %v19998_v14 = vand.u32 4294901760, %v18166_v40 }
 0x217   : > { %v7167_v47 = vsub.f32 %v18112_v8, %v20711_v30  ;;  %13437 = vmatprep.subr.bf16.mxu1 %v13436_v52  ;;  %v19997_v33 = vand.u32 4294901760, %v18171_v18  ;;  %14301 = vmatprep.subr.bf16.mxu0 %v14300_v35  ;;  %v14304_v25 = vpack.c.bf16 %v7234_v22, %v7227_v15  ;;  %v20714_v23 = vand.u32 4294901760, %v20648_v39 }
 0x218   : > { %v7254_v61 = vsub.f32 %v18121_v57, %v20712_v2  ;;  %v7261_v16 = vsub.f32 %v18126_v3, %v20713_v28  ;;  %v20715_v20 = vand.u32 4294901760, %v17954_v50  ;;  %v20716_v0 = vand.u32 4294901760, %v17971_v19  ;;  %12427 = vmatprep.mubr.f32.mxu0 %v7138_v21 }
 0x219   : > { %11239 = vmatprep.mubr.f32.mxu1 %v20714_v23  ;;  %v20717_v5 = vand.u32 4294901760, %v20649_v27  ;;  %v7158_v48 = vand.u32 4294901760, %v7157_v1  ;;  %v7177_v39 = vsub.f32 %v18147_v6, %v20000_v17  ;;  %v20718_v22 = vand.u32 4294901760, %v17562_v38  ;;  %12428 = vmatmul.mubr.f32.gmra.mrb[2].mxu0 %v7148_v49  ;;  %v20767_v17 = vld [vmem:[#allocation69_spill] sm:$0xff] }
 0x21a   : > { %v18200_v9 = vsub.f32 %v17954_v50, %v20715_v20  ;;  %v18205_v53 = vsub.f32 %v17971_v19, %v20716_v0  ;;  %13439 = vmatpush3.bf16.msra.mxu1 %v13436_v52  ;;  %v20719_v50 = vand.u32 4294901760, %v17578_v55  ;;  %v14308_v30 = vpack.c.bf16 %v7248_v63, %v7241_v34  ;;  %14303 = vmatpush3.bf16.msra.mxu0 %v14300_v35 }
 0x21b   : > { %11240 = vmatmul.mubr.f32.gmra.mrb[2].mxu1 %v20717_v5  ;;  %v7168_v2 = vand.u32 4294901760, %v7167_v47  ;;  %v7187_v19 = vsub.f32 %v18158_v7, %v19999_v51  ;;  %13441 = vmatprep.subr.bf16.mxu1 %v13440_v56  ;;  %v7255_v27 = vand.u32 4294901760, %v7254_v61  ;;  %v7262_v1 = vand.u32 4294901760, %v7261_v16  ;;  %v20766_v51 = vld [vmem:[#allocation67_spill] sm:$0xff] }
 0x21c   : > { %v13444_v15 = vpack.c.bf16 %v20719_v50, %v20718_v22  ;;  %v7268_v52 = vsub.f32 %v18166_v40, %v19998_v14  ;;  %v7275_v38 = vsub.f32 %v18171_v18, %v19997_v33  ;;  %14305 = vmatprep.subr.bf16.mxu0 %v14304_v25  ;;  %v20720_v55 = vand.u32 4294901760, %v17611_v59  ;;  %12430 = vmatprep.mubr.f32.mxu0 %v7158_v48  ;;  %v18409_v33 = vld [vmem:[%s19569_s1 + $0x1c8] sm:$0xff]  ;;  %v18437_v14 = vld [vmem:[%s19569_s1 + $0x1d8] sm:$0xff] }
 0x21d   : > { %v19996_v34 = vand.u32 4294901760, %v18200_v9  ;;  %v19995_v21 = vand.u32 4294901760, %v18205_v53  ;;  %v20721_v35 = vand.u32 4294901760, %v17987_v44  ;;  %v20722_v49 = vand.u32 4294901760, %v17992_v13  ;;  %12431 = vmatmul.mubr.f32.gmra.mrb[4].mxu0 %v7168_v2 }
 0x21e   : > { %11242 = vmatprep.mubr.f32.mxu1 %v20720_v55  ;;  %v20723_v61 = vand.u32 4294901760, %v17618_v41  ;;  %v7178_v59 = vand.u32 4294901760, %v7177_v39  ;;  %13443 = vmatpush3.bf16.msra.mxu1 %v13440_v56  ;;  %v7188_v28 = vand.u32 4294901760, %v7187_v19  ;;  %v20724_v16 = vand.u32 4294901760, %v17626_v11 }
 0x21f   : > { %v18232_v63 = vsub.f32 %v17987_v44, %v20721_v35  ;;  %v18237_v47 = vsub.f32 %v17992_v13, %v20722_v49  ;;  %14307 = vmatpush3.bf16.msra.mxu0 %v14304_v25  ;;  %13445 = vmatprep.subr.bf16.mxu1 %v13444_v15  ;;  %v20725_v44 = vand.u32 4294901760, %v17631_v42  ;;  %v14312_v20 = vpack.c.bf16 %v7262_v1, %v7255_v27  ;;  %v20735_v49 = vld [vmem:[#allocation79_spill] sm:$0xff] }
 0x220   : > { %11243 = vmatmul.mubr.f32.gmra.mrb[4].mxu1 %v20723_v61  ;;  %v7269_v0 = vand.u32 4294901760, %v7268_v52  ;;  %v7276_v5 = vand.u32 4294901760, %v7275_v38  ;;  %14309 = vmatprep.subr.bf16.mxu0 %v14308_v30  ;;  %v7282_v41 = vsub.f32 %v18200_v9, %v19996_v34  ;;  %v7289_v13 = vsub.f32 %v18205_v53, %v19995_v21  ;;  %v20736_v61 = vld [vmem:[#allocation77_spill] sm:$0xff]  ;;  %v18404_v34 = vld [vmem:[%s19569_s1 + $0x1c0] sm:$0xff] }
 0x221   : > { %v13448_v23 = vpack.c.bf16 %v20725_v44, %v20724_v16  ;;  %v20726_v56 = vand.u32 4294901760, %v17650_v58  ;;  %v19994_v11 = vand.u32 4294901760, %v18232_v63  ;;  %v19993_v42 = vand.u32 4294901760, %v18237_v47  ;;  %12433 = vmatprep.mubr.f32.mxu0 %v7178_v59  ;;  %v20738_v59 = vld [vmem:[#allocation80_spill] sm:$0xff]  ;;  %v20739_v16 = vld [vmem:[#allocation83_spill] sm:$0xff]  ;;  %v20740_v44 = vld [vmem:[#allocation62_spill] sm:$0xff] }
 0x222   : > { %v20727_v25 = vand.u32 4294901760, %v17660_v29  ;;  %13447 = vmatpush3.bf16.msra.mxu1 %v13444_v15  ;;  %12434 = vmatmul.mubr.f32.gmra.mrb[6].mxu0 %v7188_v28  ;;  %v20728_v48 = vand.u32 4294901760, %v17668_v36  ;;  %v20729_v39 = vand.u32 4294901760, %v17673_v10  ;;  %v14316_v50 = vpack.c.bf16 %v7276_v5, %v7269_v0  ;;  %v20743_v0 = vld [vmem:[#allocation40_spill] sm:$0xff]  ;;  %v20744_v5 = vld [vmem:[#allocation85_spill] sm:$0xff] }
 0x223   : > { %11245 = vmatprep.mubr.f32.mxu1 %v20726_v56  ;;  %14311 = vmatpush3.bf16.msra.mxu0 %v14308_v30  ;;  %v7283_v58 = vand.u32 4294901760, %v7282_v41  ;;  %v7290_v2 = vand.u32 4294901760, %v7289_v13  ;;  %v7296_v19 = vsub.f32 %v18232_v63, %v19994_v11  ;;  %v7303_v29 = vsub.f32 %v18237_v47, %v19993_v42  ;;  %v20745_v13 = vld [vmem:[#allocation18_spill] sm:$0xff]  ;;  %v20746_v56 = vld [vmem:[#allocation76_spill] sm:$0xff] }
 0x224   : > { %11246 = vmatmul.mubr.f32.gmra.mrb[6].mxu1 %v20727_v25  ;;  %13449 = vmatprep.subr.bf16.mxu1 %v13448_v23  ;;  %v13452_v22 = vpack.c.bf16 %v20729_v39, %v20728_v48  ;;  %v20730_v36 = vand.u32 4294901760, %v17702_v37  ;;  %v20731_v10 = vand.u32 4294901760, %v17707_v26  ;;  %v20732_v52 = vand.u32 4294901760, %v17732_v46  ;;  %v20734_v37 = vld [vmem:[#allocation10_spill] sm:$0xff]  ;;  %v20747_v25 = vld [vmem:[#allocation61_spill] sm:$0xff]  ;;  %v20748_v48 = vld [vmem:[#allocation68_spill] sm:$0xff] }
 0x225   : > { %14313 = vmatprep.subr.bf16.mxu0 %v14312_v20  ;;  %11280 = vmatprep.mubr.f32.mxu1 %v17363_v24  ;;  %v14320_v30 = vpack.c.bf16 %v7290_v2, %v7283_v58  ;;  %v7297_v27 = vand.u32 4294901760, %v7296_v19  ;;  %v7304_v1 = vand.u32 4294901760, %v7303_v29  ;;  %v20733_v38 = vand.u32 4294901760, %v17737_v62  ;;  %v20737_v62 = vld [vmem:[#allocation43_spill] sm:$0xff]  ;;  %v20749_v39 = vld [vmem:[#allocation70_spill] sm:$0xff]  ;;  %v20752_v2 = vld [vmem:[#allocation81_spill] sm:$0xff] }
 0x226   : > { %12468 = vmatprep.mubr.f32.mxu0 %v17859_v31  ;;  %13451 = vmatpush3.bf16.msra.mxu1 %v13448_v23  ;;  %v13456_v15 = vpack.c.bf16 %v20731_v10, %v20730_v36  ;;  %v14328_v26 = vpack.c.bf16 %v20734_v37, %v17917_v54  ;;  %v14332_v46 = vpack.c.bf16 %v18021_v32, %v18003_v60  ;;  %v20741_v23 = vld [vmem:[#allocation87_spill] sm:$0xff]  ;;  %v20751_v58 = vld [vmem:[#allocation74_spill] sm:$0xff]  ;;  %v20754_v29 = vld [vmem:[#allocation17_spill] sm:$0xff] }
 0x227   : > { %14315 = vmatpush3.bf16.msra.mxu0 %v14312_v20  ;;  %13453 = vmatprep.subr.bf16.mxu1 %v13452_v22  ;;  %v13460_v55 = vpack.c.bf16 %v20733_v38, %v20732_v52  ;;  %v14324_v35 = vpack.c.bf16 %v7304_v1, %v7297_v27  ;;  %v14336_v28 = vpack.c.bf16 %v18052_v4, %v18047_v45  ;;  %v20742_v20 = vld [vmem:[#allocation65_spill] sm:$0xff]  ;;  %v20753_v19 = vld [vmem:[#allocation78_spill] sm:$0xff]  ;;  %v20755_v10 = vld [vmem:[#allocation88_spill] sm:$0xff] }
 0x228   : > { %14317 = vmatprep.subr.bf16.mxu0 %v14316_v50  ;;  %v14340_v41 = vpack.c.bf16 %v18074_v12, %v20744_v5  ;;  %v14348_v36 = vpack.c.bf16 %v18171_v18, %v18166_v40  ;;  %v18321_v27 = vld [vmem:[%s19569_s1 + $0x180] sm:$0xff]  ;;  %v20763_v42 = vld [vmem:[#allocation4_spill] sm:$0xff] }
 0x229   : > { %v20757_v1 = vld [vmem:[#allocation26_spill] sm:$0xff]  ;;  %v3133_v52 = vand.u32 4294901760, %v18321_v27 }
 0x22a   : > { %13455 = vmatpush3.bf16.msra.mxu1 %v13452_v22  ;;  %v14344_v22 = vpack.c.bf16 %v18126_v3, %v18121_v57 }
 0x22b   : > { %14319 = vmatpush3.bf16.msra.mxu0 %v14316_v50  ;;  %13457 = vmatprep.subr.bf16.mxu1 %v13456_v15  ;;  %v20750_v50 = vld [vmem:[#allocation71_spill] sm:$0xff] }
 0x22c   : > { %14321 = vmatprep.subr.bf16.mxu0 %v14320_v30 }
 0x22e   : > { %13459 = vmatpush3.bf16.msra.mxu1 %v13456_v15  ;;  %v20756_v15 = vld [vmem:[#allocation64_spill] sm:$0xff] }
 0x22f   : > { %14323 = vmatpush3.bf16.msra.mxu0 %v14320_v30  ;;  %13461 = vmatprep.subr.bf16.mxu1 %v13460_v55  ;;  %v14352_v30 = vpack.c.bf16 %v18205_v53, %v18200_v9 }
 0x230   : > { %14325 = vmatprep.subr.bf16.mxu0 %v14324_v35 }
 0x232   : > { %13463 = vmatpush3.bf16.msra.mxu1 %v13460_v55  ;;  %v14356_v55 = vpack.c.bf16 %v18237_v47, %v18232_v63 }
 0x233   : > { %14327 = vmatpush3.bf16.msra.mxu0 %v14324_v35  ;;  %13465 = vmatprep.subr.bf16.mxu1 %v20735_v49  ;;  %v18337_v35 = vld [vmem:[%s19569_s1 + $0x190] sm:$0xff] }
 0x234   : > { %14329 = vmatprep.subr.bf16.mxu0 %v14328_v26 }
 0x235   : > { %11281 = vmatmul.mubr.f32.vlgmr.msra.gmra.mrb[0].mxu1 %v20736_v61 }
 0x236   : > { %13467 = vmatpush3.bf16.msra.mxu1 %v20735_v49  ;;  %12469 = vmatmul.mubr.f32.vlgmr.msra.gmra.mrb[0].mxu0 %v20737_v62  ;;  %v9099_v49 = vld [vmem:[%s15330_s26 + $0x10] sm:$0xff] }
 0x237   : > { %14331 = vmatpush3.bf16.msra.mxu0 %v14328_v26  ;;  %13469 = vmatprep.subr.bf16.mxu1 %v20738_v59  ;;  %v18342_v26 = vld [vmem:[%s19569_s1 + $0x198] sm:$0xff] }
 0x238   : > { %14333 = vmatprep.subr.bf16.mxu0 %v14332_v46  ;;  %11283 = vmatprep.mubr.f32.mxu1 %v20739_v16 }
 0x239   : > { %12471 = vmatprep.mubr.f32.mxu0 %v20740_v44  ;;  %11284 = vmatmul.mubr.f32.gmra.mrb[2].mxu1 %v20741_v23 }
 0x23a   : > { %13471 = vmatpush3.bf16.msra.mxu1 %v20738_v59  ;;  %12472 = vmatmul.mubr.f32.gmra.mrb[2].mxu0 %v20742_v20  ;;  %v9104_v20 = vld [vmem:[%s15330_s26 + $0x60] sm:$0xff] }
 0x23b   : > { %14335 = vmatpush3.bf16.msra.mxu0 %v14332_v46  ;;  %13473 = vmatprep.subr.bf16.mxu1 %v20743_v0  ;;  %v20758_v46 = vld [vmem:[#allocation75_spill] sm:$0xff] }
 0x23c   : > { %14337 = vmatprep.subr.bf16.mxu0 %v14336_v28  ;;  %11286 = vmatprep.mubr.f32.mxu1 %v20745_v13 }
 0x23d   : > { %12474 = vmatprep.mubr.f32.mxu0 %v20746_v56  ;;  %11287 = vmatmul.mubr.f32.gmra.mrb[4].mxu1 %v20747_v25 }
 0x23e   : > { %13475 = vmatpush3.bf16.msra.mxu1 %v20743_v0  ;;  %12475 = vmatmul.mubr.f32.gmra.mrb[4].mxu0 %v20748_v48  ;;  %v20003_v0 = vand.u32 4294901760, %v18342_v26 }
 0x23f   : > { %14339 = vmatpush3.bf16.msra.mxu0 %v14336_v28  ;;  %13477 = vmatprep.subr.bf16.mxu1 %v20749_v39  ;;  %v20004_v28 = vand.u32 4294901760, %v18337_v35 }
 0x240   : > { %14341 = vmatprep.subr.bf16.mxu0 %v14340_v41  ;;  %11289 = vmatprep.mubr.f32.mxu1 %v20750_v50 }
 0x241   : > { %12477 = vmatprep.mubr.f32.mxu0 %v20751_v58  ;;  %11290 = vmatmul.mubr.f32.gmra.mrb[6].mxu1 %v20752_v2  ;;  %v20780_v58 = vand.u32 4294901760, %v18337_v35 }
 0x242   : > { %13479 = vmatpush3.bf16.msra.mxu1 %v20749_v39  ;;  %12478 = vmatmul.mubr.f32.gmra.mrb[6].mxu0 %v20753_v19  ;;  %v18359_v39 = vld [vmem:[%s19569_s1 + $0x1a8] sm:$0xff] }
 0x243   : > { %14343 = vmatpush3.bf16.msra.mxu0 %v14340_v41  ;;  %13481 = vmatprep.subr.bf16.mxu1 %v20754_v29  ;;  %v18354_v41 = vld [vmem:[%s19569_s1 + $0x1a0] sm:$0xff]  ;;  %v20793_v44 = vand.u32 4294901760, %v18359_v39 }
 0x244   : > { %14345 = vmatprep.subr.bf16.mxu0 %v14344_v22  ;;  %11324 = vmatprep.mubr.f32.mxu1 %v17363_v24  ;;  %v18326_v24 = vld [vmem:[%s19569_s1 + $0x188] sm:$0xff] }
 0x245   : > { %12512 = vmatprep.mubr.f32.mxu0 %v20755_v10  ;;  %v3136_v38 = vand.u32 4294901760, %v18326_v24 }
 0x246   : > { %13483 = vmatpush3.bf16.msra.mxu1 %v20754_v29  ;;  %v18369_v29 = vpack.c.bf16 %v20003_v0, %v20004_v28  ;;  %v9100_v0 = vld [vmem:[%s15330_s26 + $0x20] sm:$0xff]  ;;  %v18432_v28 = vld [vmem:[%s19569_s1 + $0x1d0] sm:$0xff] }
 0x247   : > { %14347 = vmatpush3.bf16.msra.mxu0 %v14344_v22  ;;  %13485 = vmatprep.subr.bf16.mxu1 %v20756_v15  ;;  %v18347_v59 = vpack.c.bf16 %v3136_v38, %v3133_v52  ;;  %v18361_v22 = vand.u32 4294901760, %v9099_v49 }
 0x248   : > { %14349 = vmatprep.subr.bf16.mxu0 %v14348_v36  ;;  %20760 = vst [vmem:[#allocation8_spill] sm:$0xff] %v18369_v29 }
 0x249   : > { %20759 = vst [vmem:[#allocation23_spill] sm:$0xff] %v18347_v59 }
 0x24a   : > { %13487 = vmatpush3.bf16.msra.mxu1 %v20756_v15  ;;  %v20001_v15 = vand.u32 4294901760, %v18359_v39 }
 0x24b   : > { %14351 = vmatpush3.bf16.msra.mxu0 %v14348_v36  ;;  %13489 = vmatprep.subr.bf16.mxu1 %v20757_v1  ;;  %v20002_v36 = vand.u32 4294901760, %v18354_v41 }
 0x24c   : > { %14353 = vmatprep.subr.bf16.mxu0 %v14352_v30 }
 0x24d   : > { %v18396_v11 = vpack.c.bf16 %v20001_v15, %v20002_v36  ;;  %v18449_v36 = vld [vmem:[%s19569_s1 + $0x1e0] sm:$0xff] }
 0x24e   : > { %13491 = vmatpush3.bf16.msra.mxu1 %v20757_v1  ;;  %v18377_v1 = vld [vmem:[%s19569_s1 + $0x1b0] sm:$0xff] }
 0x24f   : > { %14355 = vmatpush3.bf16.msra.mxu0 %v14352_v30  ;;  %13493 = vmatprep.subr.bf16.mxu1 %v20758_v46  ;;  %v20761_v30 = vld [vmem:[#allocation84_spill] sm:$0xff]  ;;  %20764 = vst [vmem:[#allocation63_spill] sm:$0xff] %v18396_v11  ;;  %v20006_v21 = vand.u32 4294901760, %v18377_v1 }
 0x250   : > { %14357 = vmatprep.subr.bf16.mxu0 %v14356_v55 }
 0x252   : > { %13495 = vmatpush3.bf16.msra.mxu1 %v20758_v46  ;;  %v18385_v46 = vsub.f32 %v9099_v49, %v18361_v22 }
 0x253   : > { %14359 = vmatpush3.bf16.msra.mxu0 %v14356_v55  ;;  %13497 = vmatprep.subr.bf16.mxu1 %v18347_v59  ;;  %v18382_v55 = vld [vmem:[%s19569_s1 + $0x1b8] sm:$0xff] }
 0x254   : > { %14361 = vmatprep.subr.bf16.mxu0 %v20761_v30  ;;  %20762 = vst [vmem:[#allocation6_spill] sm:$0xff] %v18385_v46  ;;  %v20005_v49 = vand.u32 4294901760, %v18382_v55 }
 0x255   : > { %11325 = vmatmul.mubr.f32.vlgmr.msra.gmra.mrb[0].mxu1 %v20736_v61  ;;  %v20765_v61 = vld [vmem:[#allocation86_spill] sm:$0xff] }
 0x256   : > { %13499 = vmatpush3.bf16.msra.mxu1 %v18347_v59  ;;  %12513 = vmatmul.mubr.f32.vlgmr.msra.gmra.mrb[0].mxu0 %v20763_v42  ;;  %v18423_v15 = vpack.c.bf16 %v20005_v49, %v20006_v21  ;;  %v20770_v49 = vand.u32 4294901760, %v18385_v46  ;;  %v20018_v59 = vand.u32 4294901760, %v18432_v28 }
 0x257   : > { %14363 = vmatpush3.bf16.msra.mxu0 %v20761_v30  ;;  %13501 = vmatprep.subr.bf16.mxu1 %v18369_v29  ;;  %v20805_v30 = vand.u32 4294901760, %v17917_v54 }
 0x258   : > { %14365 = vmatprep.subr.bf16.mxu0 %v20765_v61  ;;  %11327 = vmatprep.mubr.f32.mxu1 %v20739_v16  ;;  %20768 = vst [vmem:[#allocation10_spill] sm:$0xff] %v18423_v15  ;;  %v3216_v21 = vsub.f32 %v18385_v46, %v20770_v49  ;;  %v18456_v16 = vsub.f32 %v18326_v24, %v3136_v38  ;;  %v18458_v49 = vand.u32 4294901760, %v9100_v0  ;;  %v18473_v24 = vld [vmem:[%s19569_s1 + $0x1e8] sm:$0xff] }
 0x259   : > { %12515 = vmatprep.mubr.f32.mxu0 %v20766_v51  ;;  %11328 = vmatmul.mubr.f32.gmra.mrb[2].mxu1 %v20741_v23  ;;  %v20769_v23 = vld [vmem:[#allocation73_spill] sm:$0xff] }
 0x25a   : > { %13503 = vmatpush3.bf16.msra.mxu1 %v18369_v29  ;;  %12516 = vmatmul.mubr.f32.gmra.mrb[2].mxu0 %v20767_v17  ;;  %20771 = vst [vmem:[#allocation79_spill] sm:$0xff] %v18456_v16  ;;  %20772 = vst [vmem:[#allocation77_spill] sm:$0xff] %v18458_v49  ;;  %v3217_v38 = vand.u32 4294901760, %v3216_v21  ;;  %v18491_v21 = vld [vmem:[%s19569_s1 + $0x1f8] sm:$0xff]  ;;  %v18497_v46 = vsub.f32 %v9100_v0, %v18458_v49  ;;  %v20781_v0 = vand.u32 4294901760, %v18342_v26 }
 0x25b   : > { %14367 = vmatpush3.bf16.msra.mxu0 %v20765_v61  ;;  %13505 = vmatprep.subr.bf16.mxu1 %v18396_v11 }
 0x25c   : > { %14369 = vmatprep.subr.bf16.mxu0 %v20769_v23  ;;  %11330 = vmatprep.mubr.f32.mxu1 %v20745_v13  ;;  %v18453_v13 = vsub.f32 %v18321_v27, %v3133_v52  ;;  %v20776_v52 = vld [vmem:[#allocation2_spill] sm:$0xff]  ;;  %v18486_v27 = vld [vmem:[%s19569_s1 + $0x1f0] sm:$0xff]  ;;  %20777 = vst [vmem:[#allocation83_spill] sm:$0xff] %v18497_v46 }
 0x25d   : > { %12518 = vmatprep.mubr.f32.mxu0 %v18104_v43  ;;  %11331 = vmatmul.mubr.f32.gmra.mrb[4].mxu1 %v20747_v25  ;;  %v20773_v25 = vand.u32 4294901760, %v18404_v34 }
 0x25e   : > { %13507 = vmatpush3.bf16.msra.mxu1 %v18396_v11  ;;  %12519 = vmatmul.mubr.f32.gmra.mrb[4].mxu0 %v18112_v8  ;;  %v20774_v11 = vand.u32 4294901760, %v18409_v33 }
 0x25f   : > { %14371 = vmatpush3.bf16.msra.mxu0 %v20769_v23  ;;  %13509 = vmatprep.subr.bf16.mxu1 %v18423_v15 }
 0x260   : > { %v18466_v29 = vpack.c.bf16 %v20774_v11, %v20773_v25  ;;  %14373 = vmatprep.subr.bf16.mxu0 %v20776_v52  ;;  %11333 = vmatprep.mubr.f32.mxu1 %v20750_v50  ;;  %v9101_v11 = vld [vmem:[%s15330_s26 + $0x30] sm:$0xff]  ;;  %v9102_v25 = vld [vmem:[%s15330_s26 + $0x40] sm:$0xff]  ;;  %v18511_v50 = vsub.f32 %v18337_v35, %v20780_v58  ;;  %v20786_v35 = vand.u32 4294901760, %v18449_v36 }
 0x261   : > { %12521 = vmatprep.mubr.f32.mxu0 %v18147_v6  ;;  %11334 = vmatmul.mubr.f32.gmra.mrb[6].mxu1 %v20752_v2  ;;  %v18516_v2 = vsub.f32 %v18342_v26, %v20781_v0  ;;  %v18519_v48 = vand.u32 4294901760, %v9101_v11  ;;  %v18525_v23 = vand.u32 4294901760, %v9102_v25  ;;  %v9103_v58 = vld [vmem:[%s15330_s26 + $0x50] sm:$0xff]  ;;  %v20787_v26 = vand.u32 4294901760, %v18473_v24 }
 0x262   : > { %20775 = vst [vmem:[#allocation80_spill] sm:$0xff] %v18466_v29  ;;  %13511 = vmatpush3.bf16.msra.mxu1 %v18423_v15  ;;  %12522 = vmatmul.mubr.f32.gmra.mrb[6].mxu0 %v18158_v7  ;;  %v20778_v15 = vand.u32 4294901760, %v18437_v14 }
 0x263   : > { %14375 = vmatpush3.bf16.msra.mxu0 %v20776_v52  ;;  %13513 = vmatprep.subr.bf16.mxu1 %v18466_v29  ;;  %v20782_v52 = vld [vmem:[#allocation72_spill] sm:$0xff]  ;;  %20783 = vst [vmem:[#allocation40_spill] sm:$0xff] %v18519_v48  ;;  %20785 = vst [vmem:[#allocation85_spill] sm:$0xff] %v18525_v23  ;;  %v18533_v0 = vpack.c.bf16 %v20787_v26, %v20786_v35  ;;  %v20791_v26 = vand.u32 4294901760, %v18354_v41  ;;  %v18564_v35 = vsub.f32 %v9101_v11, %v18519_v48 }
 0x264   : > { %v18506_v19 = vpack.c.bf16 %v20778_v15, %v20018_v59  ;;  %14377 = vmatprep.subr.bf16.mxu0 %v20782_v52  ;;  %11368 = vmatprep.mubr.f32.mxu1 %v3217_v38  ;;  %v20784_v59 = vand.u32 4294901760, %v20755_v10  ;;  %v20789_v38 = vand.u32 4294901760, %v18453_v13  ;;  %v20790_v15 = vand.u32 4294901760, %v18456_v16 }
 0x265   : > { %20788 = vst [vmem:[#allocation18_spill] sm:$0xff] %v18533_v0  ;;  %20797 = vst [vmem:[#allocation71_spill] sm:$0xff] %v18564_v35  ;;  %v18580_v49 = vsub.f32 %v9102_v25, %v18525_v23  ;;  %v20808_v25 = vand.u32 4294901760, %v18511_v50 }
 0x266   : > { %20779 = vst [vmem:[#allocation87_spill] sm:$0xff] %v18506_v19  ;;  %12556 = vmatprep.mubr.f32.mxu0 %v20784_v59  ;;  %13515 = vmatpush3.bf16.msra.mxu1 %v18466_v29  ;;  %v3297_v56 = vsub.f32 %v18453_v13, %v20789_v38  ;;  %v3304_v10 = vsub.f32 %v18456_v16, %v20790_v15  ;;  %v20795_v59 = vld [vmem:[#allocation21_spill] sm:$0xff]  ;;  %v18566_v29 = vand.u32 4294901760, %v9103_v58  ;;  %v20807_v16 = vand.u32 4294901760, %v18497_v46 }
 0x267   : > { %14379 = vmatpush3.bf16.msra.mxu0 %v20782_v52  ;;  %13517 = vmatprep.subr.bf16.mxu1 %v18506_v19  ;;  %v18550_v38 = vsub.f32 %v18354_v41, %v20791_v26  ;;  %v18555_v15 = vsub.f32 %v18359_v39, %v20793_v44  ;;  %v20796_v52 = vand.u32 4294901760, %v18377_v1  ;;  %v20799_v41 = vand.u32 4294901760, %v18486_v27  ;;  %20803 = vst [vmem:[#allocation88_spill] sm:$0xff] %v18580_v49 }
 0x268   : > { %14381 = vmatprep.subr.bf16.mxu0 %v20795_v59  ;;  %20798 = vst [vmem:[#allocation81_spill] sm:$0xff] %v18566_v29  ;;  %v20800_v26 = vand.u32 4294901760, %v18491_v21  ;;  %v20802_v44 = vand.u32 4294901760, %v18382_v55  ;;  %v3298_v11 = vand.u32 4294901760, %v3297_v56  ;;  %v3305_v48 = vand.u32 4294901760, %v3304_v10 }
 0x269   : > { %20792 = vst [vmem:[#allocation61_spill] sm:$0xff] %v18550_v38  ;;  %20794 = vst [vmem:[#allocation70_spill] sm:$0xff] %v18555_v15  ;;  %v18561_v61 = vsub.f32 %v18377_v1, %v20796_v52  ;;  %v18582_v1 = vand.u32 4294901760, %v9104_v20  ;;  %v9105_v52 = vld [vmem:[%s15330_s26 + $0x70] sm:$0xff]  ;;  %v3311_v56 = vsub.f32 %v18511_v50, %v20808_v25  ;;  %v20809_v10 = vand.u32 4294901760, %v18516_v2 }
 0x26a   : > { %v18572_v62 = vpack.c.bf16 %v20800_v26, %v20799_v41  ;;  %v18577_v39 = vsub.f32 %v18382_v55, %v20802_v44  ;;  %13519 = vmatpush3.bf16.msra.mxu1 %v18506_v19  ;;  %v20806_v41 = vand.u32 4294901760, %v20734_v37  ;;  %v3226_v55 = vsub.f32 %v18497_v46, %v20807_v16  ;;  %v9106_v44 = vld [vmem:[%s15330_s26 + $0x80] sm:$0xff] }
 0x26b   : > { %20804 = vst [vmem:[#allocation64_spill] sm:$0xff] %v18582_v1  ;;  %14383 = vmatpush3.bf16.msra.mxu0 %v20795_v59  ;;  %13521 = vmatprep.subr.bf16.mxu1 %v18533_v0  ;;  %v3318_v54 = vsub.f32 %v18516_v2, %v20809_v10  ;;  %v18610_v46 = vsub.f32 %v9103_v58, %v18566_v29  ;;  %v18612_v59 = vand.u32 4294901760, %v9105_v52  ;;  %v18619_v37 = vand.u32 4294901760, %v9106_v44 }
 0x26c   : > { %20801 = vst [vmem:[#allocation17_spill] sm:$0xff] %v18572_v62  ;;  %v18590_v26 = vpack.c.bf16 %v20806_v41, %v20805_v30  ;;  %v20810_v41 = vld [vmem:[#allocation82_spill] sm:$0xff]  ;;  %v18617_v10 = vsub.f32 %v9104_v20, %v18582_v1  ;;  %v13528_v30 = vpack.c.bf16 %v3305_v48, %v3298_v11  ;;  %v3227_v16 = vand.u32 4294901760, %v3226_v55 }
 0x26d   : > { %14385 = vmatprep.subr.bf16.mxu0 %v20810_v41  ;;  %20811 = vst [vmem:[#allocation26_spill] sm:$0xff] %v18612_v59  ;;  %20812 = vst [vmem:[#allocation75_spill] sm:$0xff] %v18619_v37  ;;  %v20813_v19 = vand.u32 4294901760, %v18404_v34  ;;  %v20814_v29 = vand.u32 4294901760, %v18409_v33  ;;  %v3312_v20 = vand.u32 4294901760, %v3311_v56  ;;  %v3319_v23 = vand.u32 4294901760, %v3318_v54 }
 0x26e   : > { %13523 = vmatpush3.bf16.msra.mxu1 %v18533_v0  ;;  %v20815_v0 = vand.u32 4294901760, %v18550_v38  ;;  %v20816_v11 = vand.u32 4294901760, %v18555_v15  ;;  %v20818_v55 = vand.u32 4294901760, %v18561_v61  ;;  %v18649_v54 = vsub.f32 %v9105_v52, %v18612_v59 }
 0x26f   : > { %v18625_v58 = vsub.f32 %v18404_v34, %v20813_v19  ;;  %v18630_v25 = vsub.f32 %v18409_v33, %v20814_v29  ;;  %14387 = vmatpush3.bf16.msra.mxu0 %v20810_v41  ;;  %13525 = vmatprep.subr.bf16.mxu1 %v18572_v62  ;;  %v20817_v19 = vld [vmem:[#allocation66_spill] sm:$0xff]  ;;  %v20819_v29 = vand.u32 4294901760, %v18564_v35  ;;  %v20822_v56 = vand.u32 4294901760, %v18432_v28 }
 0x270   : > { %v3325_v48 = vsub.f32 %v18550_v38, %v20815_v0  ;;  %v3332_v34 = vsub.f32 %v18555_v15, %v20816_v11  ;;  %14389 = vmatprep.subr.bf16.mxu0 %v20817_v19  ;;  %v3339_v33 = vsub.f32 %v18561_v61, %v20818_v55  ;;  %v20820_v0 = vand.u32 4294901760, %v18577_v39 }
 0x271   : > { %v3236_v41 = vsub.f32 %v18564_v35, %v20819_v29  ;;  %v20821_v11 = vand.u32 4294901760, %v18580_v49  ;;  %v18659_v55 = vsub.f32 %v9106_v44, %v18619_v37  ;;  %v18667_v35 = vsub.f32 %v18432_v28, %v20822_v56 }
 0x272   : > { %v3346_v1 = vsub.f32 %v18577_v39, %v20820_v0  ;;  %13527 = vmatpush3.bf16.msra.mxu1 %v18572_v62  ;;  %v20823_v0 = vand.u32 4294901760, %v18437_v14  ;;  %v13532_v44 = vpack.c.bf16 %v3319_v23, %v3312_v20  ;;  %v20824_v38 = vand.u32 4294901760, %v18003_v60 }
 0x273   : > { %v3246_v15 = vsub.f32 %v18580_v49, %v20821_v11  ;;  %14391 = vmatpush3.bf16.msra.mxu0 %v20817_v19  ;;  %13529 = vmatprep.subr.bf16.mxu1 %v13528_v30  ;;  %v20825_v29 = vand.u32 4294901760, %v18021_v32  ;;  %v3326_v52 = vand.u32 4294901760, %v3325_v48  ;;  %v3333_v49 = vand.u32 4294901760, %v3332_v34 }
 0x274   : > { %v18672_v11 = vsub.f32 %v18437_v14, %v20823_v0  ;;  %14393 = vmatprep.subr.bf16.mxu0 %v18590_v26  ;;  %v3340_v28 = vand.u32 4294901760, %v3339_v33  ;;  %v3237_v56 = vand.u32 4294901760, %v3236_v41  ;;  %v20826_v37 = vand.u32 4294901760, %v18610_v46 }
 0x275   : > { %v14396_v62 = vpack.c.bf16 %v20825_v29, %v20824_v38  ;;  %v20065_v0 = vand.u32 4294901760, %v18649_v54  ;;  %11369 = vmatmul.mubr.f32.vlgmr.msra.gmra.mrb[0].mxu1 %v3227_v16  ;;  %v3347_v19 = vand.u32 4294901760, %v3346_v1  ;;  %v3247_v23 = vand.u32 4294901760, %v3246_v15 }
 0x276   : > { %v3256_v14 = vsub.f32 %v18610_v46, %v20826_v37  ;;  %v20827_v60 = vand.u32 4294901760, %v18617_v10  ;;  %v20064_v38 = vand.u32 4294901760, %v18659_v55  ;;  %13531 = vmatpush3.bf16.msra.mxu1 %v13528_v30  ;;  %v20828_v20 = vand.u32 4294901760, %v20763_v42  ;;  %11371 = vmatprep.mubr.f32.mxu1 %v3237_v56 }
 0x277   : > { %v20829_v41 = vand.u32 4294901760, %v18625_v58  ;;  %v20830_v37 = vand.u32 4294901760, %v18630_v25  ;;  %v20063_v15 = vand.u32 4294901760, %v18667_v35  ;;  %v20062_v1 = vand.u32 4294901760, %v18672_v11  ;;  %13533 = vmatprep.subr.bf16.mxu1 %v13532_v44 }
 0x278   : > { %v3266_v32 = vsub.f32 %v18617_v10, %v20827_v60  ;;  %12557 = vmatmul.mubr.f32.vlgmr.msra.gmra.mrb[0].mxu0 %v20828_v20  ;;  %v13536_v34 = vpack.c.bf16 %v3333_v49, %v3326_v52  ;;  %v20831_v30 = vand.u32 4294901760, %v18449_v36  ;;  %v20832_v33 = vand.u32 4294901760, %v18473_v24 }
 0x279   : > { %v3353_v48 = vsub.f32 %v18625_v58, %v20829_v41  ;;  %v3360_v16 = vsub.f32 %v18630_v25, %v20830_v37  ;;  %14395 = vmatpush3.bf16.msra.mxu0 %v18590_v26  ;;  %v20833_v60 = vand.u32 4294901760, %v18047_v45  ;;  %v20834_v20 = vand.u32 4294901760, %v18052_v4  ;;  %11372 = vmatmul.mubr.f32.gmra.mrb[2].mxu1 %v3247_v23 }
 0x27a   : > { %v18702_v42 = vsub.f32 %v18449_v36, %v20831_v30  ;;  %v18707_v29 = vsub.f32 %v18473_v24, %v20832_v33  ;;  %14397 = vmatprep.subr.bf16.mxu0 %v14396_v62  ;;  %v3257_v26 = vand.u32 4294901760, %v3256_v14  ;;  %v3276_v49 = vsub.f32 %v18649_v54, %v20065_v0  ;;  %13535 = vmatpush3.bf16.msra.mxu1 %v13532_v44  ;;  %v9220_v0 = vld [vmem:[%s15330_s26 + $0x32] sm:$0xff] }
 0x27b   : > { %v14400_v41 = vpack.c.bf16 %v20834_v20, %v20833_v60  ;;  %v13540_v52 = vpack.c.bf16 %v3347_v19, %v3340_v28  ;;  %v20835_v36 = vand.u32 4294901760, %v20766_v51  ;;  %v3267_v37 = vand.u32 4294901760, %v3266_v32  ;;  %13537 = vmatprep.subr.bf16.mxu1 %v13536_v34 }
 0x27c   : > { %v3286_v24 = vsub.f32 %v18659_v55, %v20064_v38  ;;  %v3354_v45 = vand.u32 4294901760, %v3353_v48  ;;  %v3361_v4 = vand.u32 4294901760, %v3360_v16  ;;  %v3367_v56 = vsub.f32 %v18667_v35, %v20063_v15  ;;  %11374 = vmatprep.mubr.f32.mxu1 %v3257_v26  ;;  %v18912_v15 = vld [vmem:[%s19569_s1 + $0x448] sm:$0xff]  ;;  %v20886_v38 = vld [vmem:[#allocation88_spill] sm:$0xff] }
 0x27d   : > { %12559 = vmatprep.mubr.f32.mxu0 %v20835_v36  ;;  %v3374_v19 = vsub.f32 %v18672_v11, %v20062_v1  ;;  %v20836_v51 = vand.u32 4294901760, %v20767_v17  ;;  %14399 = vmatpush3.bf16.msra.mxu0 %v14396_v62  ;;  %v20061_v28 = vand.u32 4294901760, %v18702_v42  ;;  %v20060_v14 = vand.u32 4294901760, %v18707_v29  ;;  %v20885_v1 = vld [vmem:[#allocation71_spill] sm:$0xff] }
 0x27e   : > { %v20837_v44 = vand.u32 4294901760, %v18486_v27  ;;  %v20838_v32 = vand.u32 4294901760, %v18491_v21  ;;  %14401 = vmatprep.subr.bf16.mxu0 %v14400_v41  ;;  %v20839_v17 = vand.u32 4294901760, %v20744_v5  ;;  %v20840_v62 = vand.u32 4294901760, %v18074_v12  ;;  %11375 = vmatmul.mubr.f32.gmra.mrb[4].mxu1 %v3267_v37 }
 0x27f   : > { %12560 = vmatmul.mubr.f32.gmra.mrb[2].mxu0 %v20836_v51  ;;  %v3277_v30 = vand.u32 4294901760, %v3276_v49  ;;  %v20841_v33 = vand.u32 4294901760, %v18104_v43  ;;  %v3287_v60 = vand.u32 4294901760, %v3286_v24  ;;  %13539 = vmatpush3.bf16.msra.mxu1 %v13536_v34  ;;  %v3368_v20 = vand.u32 4294901760, %v3367_v56 }
 0x280   : > { %v18734_v23 = vsub.f32 %v18486_v27, %v20837_v44  ;;  %v18739_v48 = vsub.f32 %v18491_v21, %v20838_v32  ;;  %v14404_v16 = vpack.c.bf16 %v20840_v62, %v20839_v17  ;;  %v13544_v27 = vpack.c.bf16 %v3361_v4, %v3354_v45  ;;  %13541 = vmatprep.subr.bf16.mxu1 %v13540_v52 }
 0x281   : > { %12562 = vmatprep.mubr.f32.mxu0 %v20841_v33  ;;  %v3375_v36 = vand.u32 4294901760, %v3374_v19  ;;  %v20842_v21 = vand.u32 4294901760, %v18112_v8  ;;  %14403 = vmatpush3.bf16.msra.mxu0 %v14400_v41  ;;  %v3381_v12 = vsub.f32 %v18702_v42, %v20061_v28  ;;  %v3388_v43 = vsub.f32 %v18707_v29, %v20060_v14 }
 0x282   : > { %v20059_v5 = vand.u32 4294901760, %v18734_v23  ;;  %v20058_v34 = vand.u32 4294901760, %v18739_v48  ;;  %14405 = vmatprep.subr.bf16.mxu0 %v14404_v16  ;;  %v20843_v26 = vand.u32 4294901760, %v18121_v57  ;;  %v20844_v8 = vand.u32 4294901760, %v18126_v3  ;;  %11377 = vmatprep.mubr.f32.mxu1 %v3277_v30  ;;  %v20853_v30 = vld [vmem:[#allocation79_spill] sm:$0xff] }
 0x283   : > { %12563 = vmatmul.mubr.f32.gmra.mrb[4].mxu0 %v20842_v21  ;;  %v20845_v41 = vand.u32 4294901760, %v18147_v6  ;;  %11378 = vmatmul.mubr.f32.gmra.mrb[6].mxu1 %v3287_v60  ;;  %v13548_v37 = vpack.c.bf16 %v3375_v36, %v3368_v20  ;;  %v20846_v24 = vand.u32 4294901760, %v18158_v7  ;;  %v3382_v45 = vand.u32 4294901760, %v3381_v12  ;;  %v20855_v60 = vld [vmem:[#allocation77_spill] sm:$0xff]  ;;  %v20859_v36 = vld [vmem:[#allocation86_spill] sm:$0xff]  ;;  %v20860_v21 = vld [vmem:[#allocation40_spill] sm:$0xff] }
 0x284   : > { %v14408_v49 = vpack.c.bf16 %v20844_v8, %v20843_v26  ;;  %13543 = vmatpush3.bf16.msra.mxu1 %v13540_v52  ;;  %v3389_v4 = vand.u32 4294901760, %v3388_v43  ;;  %v3395_v57 = vsub.f32 %v18734_v23, %v20059_v5  ;;  %v3402_v3 = vsub.f32 %v18739_v48, %v20058_v34  ;;  %11412 = vmatprep.mubr.f32.mxu1 %v18361_v22  ;;  %v20861_v12 = vld [vmem:[#allocation62_spill] sm:$0xff]  ;;  %v20862_v43 = vld [vmem:[#allocation85_spill] sm:$0xff]  ;;  %v20883_v5 = vld [vmem:[#allocation8_spill] sm:$0xff] }
 0x285   : > { %12565 = vmatprep.mubr.f32.mxu0 %v20845_v41  ;;  %14407 = vmatpush3.bf16.msra.mxu0 %v14404_v16  ;;  %v20847_v6 = vand.u32 4294901760, %v18166_v40  ;;  %v20848_v52 = vand.u32 4294901760, %v18171_v18  ;;  %v20849_v44 = vand.u32 4294901760, %v18200_v9  ;;  %v20850_v32 = vand.u32 4294901760, %v18205_v53  ;;  %v20854_v53 = vld [vmem:[#allocation84_spill] sm:$0xff]  ;;  %v20863_v26 = vld [vmem:[#allocation65_spill] sm:$0xff] }
 0x286   : > { %13545 = vmatprep.subr.bf16.mxu1 %v13544_v27  ;;  %14409 = vmatprep.subr.bf16.mxu0 %v14408_v49  ;;  %v13552_v7 = vpack.c.bf16 %v3389_v4, %v3382_v45  ;;  %v3396_v19 = vand.u32 4294901760, %v3395_v57  ;;  %v3403_v51 = vand.u32 4294901760, %v3402_v3  ;;  %v20851_v18 = vand.u32 4294901760, %v18232_v63  ;;  %v20856_v63 = vld [vmem:[#allocation43_spill] sm:$0xff]  ;;  %v20865_v41 = vld [vmem:[#allocation81_spill] sm:$0xff]  ;;  %v20868_v45 = vld [vmem:[#allocation68_spill] sm:$0xff] }
 0x287   : > { %12566 = vmatmul.mubr.f32.gmra.mrb[6].mxu0 %v20846_v24  ;;  %v14412_v56 = vpack.c.bf16 %v20848_v52, %v20847_v6  ;;  %v14416_v17 = vpack.c.bf16 %v20850_v32, %v20849_v44  ;;  %v20852_v62 = vand.u32 4294901760, %v18237_v47  ;;  %v13560_v33 = vpack.c.bf16 %v20853_v30, %v18453_v13  ;;  %v20857_v47 = vld [vmem:[#allocation61_spill] sm:$0xff]  ;;  %v20867_v24 = vld [vmem:[#allocation64_spill] sm:$0xff]  ;;  %v20869_v57 = vld [vmem:[#allocation2_spill] sm:$0xff] }
 0x288   : > { %12600 = vmatprep.mubr.f32.mxu0 %v17859_v31  ;;  %13547 = vmatpush3.bf16.msra.mxu1 %v13544_v27  ;;  %v13556_v40 = vpack.c.bf16 %v3403_v51, %v3396_v19  ;;  %v13564_v9 = vpack.c.bf16 %v18516_v2, %v18511_v50  ;;  %v20858_v27 = vld [vmem:[#allocation70_spill] sm:$0xff]  ;;  %v13572_v8 = vpack.c.bf16 %v18577_v39, %v18561_v61  ;;  %v20871_v6 = vld [vmem:[#allocation75_spill] sm:$0xff]  ;;  %v20875_v44 = vld [vmem:[#allocation21_spill] sm:$0xff] }
 0x289   : > { %14411 = vmatpush3.bf16.msra.mxu0 %v14408_v49  ;;  %13549 = vmatprep.subr.bf16.mxu1 %v13548_v37  ;;  %v14420_v16 = vpack.c.bf16 %v20852_v62, %v20851_v18  ;;  %v13568_v20 = vpack.c.bf16 %v20858_v27, %v20857_v47  ;;  %v20864_v49 = vld [vmem:[#allocation73_spill] sm:$0xff]  ;;  %v13576_v4 = vpack.c.bf16 %v18630_v25, %v18625_v58  ;;  %v20870_v3 = vld [vmem:[#allocation74_spill] sm:$0xff] }
 0x28a   : > { %14413 = vmatprep.subr.bf16.mxu0 %v14412_v56  ;;  %v20872_v52 = vld [vmem:[#allocation78_spill] sm:$0xff]  ;;  %v13584_v51 = vpack.c.bf16 %v18707_v29, %v18702_v42 }
 0x28b   : > { %v20874_v19 = vld [vmem:[#allocation6_spill] sm:$0xff] }
 0x28c   : > { %13551 = vmatpush3.bf16.msra.mxu1 %v13548_v37  ;;  %v20866_v37 = vld [vmem:[#allocation76_spill] sm:$0xff]  ;;  %v9227_v32 = vld [vmem:[%s19569_s1 + $0x400] sm:$0xff] }
 0x28d   : > { %14415 = vmatpush3.bf16.msra.mxu0 %v14412_v56  ;;  %13553 = vmatprep.subr.bf16.mxu1 %v13552_v7  ;;  %v13580_v56 = vpack.c.bf16 %v18672_v11, %v18667_v35  ;;  %v8009_v18 = vand.u32 4294901760, %v9227_v32 }
 0x28e   : > { %14417 = vmatprep.subr.bf16.mxu0 %v14416_v17 }
 0x290   : > { %13555 = vmatpush3.bf16.msra.mxu1 %v13552_v7  ;;  %v20873_v7 = vld [vmem:[#allocation72_spill] sm:$0xff] }
 0x291   : > { %14419 = vmatpush3.bf16.msra.mxu0 %v14416_v17  ;;  %13557 = vmatprep.subr.bf16.mxu1 %v13556_v40  ;;  %v9228_v17 = vld [vmem:[%s19569_s1 + $0x408] sm:$0xff] }
 0x292   : > { %14421 = vmatprep.subr.bf16.mxu0 %v14420_v16  ;;  %v8012_v62 = vand.u32 4294901760, %v9228_v17 }
 0x294   : > { %13559 = vmatpush3.bf16.msra.mxu1 %v13556_v40  ;;  %v20876_v40 = vld [vmem:[#allocation82_spill] sm:$0xff] }
 0x295   : > { %14423 = vmatpush3.bf16.msra.mxu0 %v14420_v16  ;;  %13561 = vmatprep.subr.bf16.mxu1 %v13560_v33  ;;  %v18839_v16 = vld [vmem:[%s19569_s1 + $0x410] sm:$0xff] }
 0x296   : > { %14425 = vmatprep.subr.bf16.mxu0 %v20854_v53 }
 0x297   : > { %11413 = vmatmul.mubr.f32.vlgmr.msra.gmra.mrb[0].mxu1 %v20855_v60 }
 0x298   : > { %13563 = vmatpush3.bf16.msra.mxu1 %v13560_v33  ;;  %12601 = vmatmul.mubr.f32.vlgmr.msra.gmra.mrb[0].mxu0 %v20856_v63  ;;  %v18844_v33 = vld [vmem:[%s19569_s1 + $0x418] sm:$0xff] }
 0x299   : > { %14427 = vmatpush3.bf16.msra.mxu0 %v20854_v53  ;;  %13565 = vmatprep.subr.bf16.mxu1 %v13564_v9  ;;  %v20877_v53 = vld [vmem:[#allocation66_spill] sm:$0xff] }
 0x29a   : > { %14429 = vmatprep.subr.bf16.mxu0 %v20859_v36  ;;  %11415 = vmatprep.mubr.f32.mxu1 %v20860_v21 }
 0x29b   : > { %12603 = vmatprep.mubr.f32.mxu0 %v20861_v12  ;;  %11416 = vmatmul.mubr.f32.gmra.mrb[2].mxu1 %v20862_v43 }
 0x29c   : > { %13567 = vmatpush3.bf16.msra.mxu1 %v13564_v9  ;;  %12604 = vmatmul.mubr.f32.gmra.mrb[2].mxu0 %v20863_v26  ;;  %v9219_v9 = vld [vmem:[%s15330_s26 + $0x22] sm:$0xff] }
 0x29d   : > { %14431 = vmatpush3.bf16.msra.mxu0 %v20859_v36  ;;  %13569 = vmatprep.subr.bf16.mxu1 %v13568_v20  ;;  %v20069_v36 = vand.u32 4294901760, %v18839_v16 }
 0x29e   : > { %14433 = vmatprep.subr.bf16.mxu0 %v20864_v49  ;;  %11418 = vmatprep.mubr.f32.mxu1 %v20865_v41  ;;  %v20902_v41 = vand.u32 4294901760, %v20874_v19 }
 0x29f   : > { %12606 = vmatprep.mubr.f32.mxu0 %v20866_v37  ;;  %11419 = vmatmul.mubr.f32.gmra.mrb[4].mxu1 %v20867_v24 }
 0x2a0   : > { %13571 = vmatpush3.bf16.msra.mxu1 %v13568_v20  ;;  %12607 = vmatmul.mubr.f32.gmra.mrb[4].mxu0 %v20868_v45  ;;  %v18849_v20 = vpack.c.bf16 %v8012_v62, %v8009_v18 }
 0x2a1   : > { %14435 = vmatpush3.bf16.msra.mxu0 %v20864_v49  ;;  %13573 = vmatprep.subr.bf16.mxu1 %v13572_v8  ;;  %v18856_v49 = vld [vmem:[%s19569_s1 + $0x420] sm:$0xff] }
 0x2a2   : > { %14437 = vmatprep.subr.bf16.mxu0 %v20869_v57  ;;  %11421 = vmatprep.mubr.f32.mxu1 %v18612_v59  ;;  %20878 = vst [vmem:[#allocation4_spill] sm:$0xff] %v18849_v20 }
 0x2a3   : > { %12609 = vmatprep.mubr.f32.mxu0 %v20870_v3  ;;  %11422 = vmatmul.mubr.f32.gmra.mrb[6].mxu1 %v20871_v6  ;;  %v9222_v6 = vld [vmem:[%s15330_s26 + $0x52] sm:$0xff] }
 0x2a4   : > { %13575 = vmatpush3.bf16.msra.mxu1 %v13572_v8  ;;  %12610 = vmatmul.mubr.f32.gmra.mrb[6].mxu0 %v20872_v52  ;;  %v20068_v8 = vand.u32 4294901760, %v18844_v33 }
 0x2a5   : > { %14439 = vmatpush3.bf16.msra.mxu0 %v20869_v57  ;;  %13577 = vmatprep.subr.bf16.mxu1 %v13576_v4  ;;  %v18863_v57 = vand.u32 4294901760, %v9219_v9 }
 0x2a6   : > { %14441 = vmatprep.subr.bf16.mxu0 %v20873_v7  ;;  %11456 = vmatprep.mubr.f32.mxu1 %v20874_v19  ;;  %v9224_v19 = vld [vmem:[%s15330_s26 + $0x72] sm:$0xff] }
 0x2a7   : > { %12644 = vmatprep.mubr.f32.mxu0 %v17859_v31  ;;  %v13588_v31 = vpack.c.bf16 %v18739_v48, %v18734_v23  ;;  %v18888_v34 = vsub.f32 %v9219_v9, %v18863_v57 }
 0x2a8   : > { %13579 = vmatpush3.bf16.msra.mxu1 %v13576_v4  ;;  %v18861_v4 = vld [vmem:[%s19569_s1 + $0x428] sm:$0xff] }
 0x2a9   : > { %14443 = vmatpush3.bf16.msra.mxu0 %v20873_v7  ;;  %13581 = vmatprep.subr.bf16.mxu1 %v13580_v56  ;;  %v18872_v7 = vpack.c.bf16 %v20068_v8, %v20069_v36  ;;  %20882 = vst [vmem:[#allocation69_spill] sm:$0xff] %v18888_v34  ;;  %v18961_v36 = vand.u32 4294901760, %v9220_v0 }
 0x2aa   : > { %14445 = vmatprep.subr.bf16.mxu0 %v20875_v44 }
 0x2ab   : > { %20880 = vst [vmem:[#allocation67_spill] sm:$0xff] %v18872_v7  ;;  %20892 = vst [vmem:[#allocation61_spill] sm:$0xff] %v18961_v36 }
 0x2ac   : > { %13583 = vmatpush3.bf16.msra.mxu1 %v13580_v56  ;;  %v20879_v56 = vld [vmem:[#allocation23_spill] sm:$0xff] }
 0x2ad   : > { %14447 = vmatpush3.bf16.msra.mxu0 %v20875_v44  ;;  %13585 = vmatprep.subr.bf16.mxu1 %v13584_v51  ;;  %v20066_v44 = vand.u32 4294901760, %v18861_v4 }
 0x2ae   : > { %14449 = vmatprep.subr.bf16.mxu0 %v20876_v40 }
 0x2b0   : > { %13587 = vmatpush3.bf16.msra.mxu1 %v13584_v51  ;;  %v20067_v51 = vand.u32 4294901760, %v18856_v49 }
 0x2b1   : > { %14451 = vmatpush3.bf16.msra.mxu0 %v20876_v40  ;;  %13589 = vmatprep.subr.bf16.mxu1 %v13588_v31  ;;  %v20881_v40 = vld [vmem:[#allocation83_spill] sm:$0xff] }
 0x2b2   : > { %14453 = vmatprep.subr.bf16.mxu0 %v20877_v53  ;;  %v18899_v14 = vpack.c.bf16 %v20066_v44, %v20067_v51  ;;  %v20887_v44 = vld [vmem:[#allocation63_spill] sm:$0xff]  ;;  %v18921_v51 = vsub.f32 %v9227_v32, %v8009_v18  ;;  %v18939_v32 = vld [vmem:[%s19569_s1 + $0x450] sm:$0xff]  ;;  %v18944_v18 = vld [vmem:[%s19569_s1 + $0x458] sm:$0xff] }
 0x2b3   : > { %v20899_v59 = vand.u32 4294901760, %v18939_v32 }
 0x2b4   : > { %13591 = vmatpush3.bf16.msra.mxu1 %v13588_v31  ;;  %v18880_v31 = vld [vmem:[%s19569_s1 + $0x430] sm:$0xff]  ;;  %20884 = vst [vmem:[#allocation79_spill] sm:$0xff] %v18899_v14 }
 0x2b5   : > { %14455 = vmatpush3.bf16.msra.mxu0 %v20877_v53  ;;  %13593 = vmatprep.subr.bf16.mxu1 %v20879_v56  ;;  %v18885_v53 = vld [vmem:[%s19569_s1 + $0x438] sm:$0xff]  ;;  %v20071_v28 = vand.u32 4294901760, %v18880_v31 }
 0x2b6   : > { %14457 = vmatprep.subr.bf16.mxu0 %v18849_v20  ;;  %v20070_v9 = vand.u32 4294901760, %v18885_v53 }
 0x2b7   : > { %11457 = vmatmul.mubr.f32.vlgmr.msra.gmra.mrb[0].mxu1 %v20881_v40 }
 0x2b8   : > { %13595 = vmatpush3.bf16.msra.mxu1 %v20879_v56  ;;  %12645 = vmatmul.mubr.f32.vlgmr.msra.gmra.mrb[0].mxu0 %v20856_v63  ;;  %v18907_v63 = vld [vmem:[%s19569_s1 + $0x440] sm:$0xff] }
 0x2b9   : > { %14459 = vmatpush3.bf16.msra.mxu0 %v18849_v20  ;;  %13597 = vmatprep.subr.bf16.mxu1 %v20883_v5  ;;  %v20078_v8 = vand.u32 4294901760, %v18907_v63  ;;  %v18975_v20 = vld [vmem:[%s19569_s1 + $0x468] sm:$0xff] }
 0x2ba   : > { %14461 = vmatprep.subr.bf16.mxu0 %v18872_v7  ;;  %11459 = vmatprep.mubr.f32.mxu1 %v20885_v1 }
 0x2bb   : > { %12647 = vmatprep.mubr.f32.mxu0 %v20861_v12  ;;  %11460 = vmatmul.mubr.f32.gmra.mrb[2].mxu1 %v20886_v38  ;;  %v18928_v12 = vpack.c.bf16 %v20070_v9, %v20071_v28  ;;  %v20890_v9 = vand.u32 4294901760, %v18888_v34  ;;  %v18958_v28 = vld [vmem:[%s19569_s1 + $0x460] sm:$0xff] }
 0x2bc   : > { %13599 = vmatpush3.bf16.msra.mxu1 %v20883_v5  ;;  %12648 = vmatmul.mubr.f32.gmra.mrb[2].mxu0 %v20863_v26  ;;  %v18933_v26 = vsub.f32 %v9228_v17, %v8012_v62  ;;  %v20891_v62 = vld [vmem:[#allocation10_spill] sm:$0xff]  ;;  %v20908_v43 = vand.u32 4294901760, %v18958_v28  ;;  %v20911_v5 = vand.u32 4294901760, %v18856_v49 }
 0x2bd   : > { %14463 = vmatpush3.bf16.msra.mxu0 %v18872_v7  ;;  %13601 = vmatprep.subr.bf16.mxu1 %v20887_v44  ;;  %20888 = vst [vmem:[#allocation84_spill] sm:$0xff] %v18928_v12  ;;  %v8092_v17 = vsub.f32 %v18888_v34, %v20890_v9  ;;  %v9221_v7 = vld [vmem:[%s15330_s26 + $0x42] sm:$0xff]  ;;  %v20898_v34 = vand.u32 4294901760, %v18839_v16 }
 0x2be   : > { %14465 = vmatprep.subr.bf16.mxu0 %v18899_v14  ;;  %11462 = vmatprep.mubr.f32.mxu1 %v18610_v46  ;;  %20889 = vst [vmem:[#allocation43_spill] sm:$0xff] %v18933_v26 }
 0x2bf   : > { %12650 = vmatprep.mubr.f32.mxu0 %v20866_v37  ;;  %11463 = vmatmul.mubr.f32.gmra.mrb[4].mxu1 %v18617_v10  ;;  %v19002_v37 = vsub.f32 %v9220_v0, %v18961_v36  ;;  %v20903_v0 = vand.u32 4294901760, %v18933_v26  ;;  %v19051_v36 = vsub.f32 %v18856_v49, %v20911_v5 }
 0x2c0   : > { %13603 = vmatpush3.bf16.msra.mxu1 %v20887_v44  ;;  %12651 = vmatmul.mubr.f32.gmra.mrb[4].mxu0 %v20868_v45  ;;  %v20893_v45 = vand.u32 4294901760, %v18912_v15  ;;  %v19027_v44 = vand.u32 4294901760, %v9221_v7 }
 0x2c1   : > { %14467 = vmatpush3.bf16.msra.mxu0 %v18899_v14  ;;  %13605 = vmatprep.subr.bf16.mxu1 %v20891_v62  ;;  %v20895_v14 = vld [vmem:[#allocation80_spill] sm:$0xff]  ;;  %20897 = vst [vmem:[#allocation86_spill] sm:$0xff] %v19002_v37  ;;  %v20926_v60 = vand.u32 4294901760, %v19002_v37 }
 0x2c2   : > { %14469 = vmatprep.subr.bf16.mxu0 %v18928_v12  ;;  %v18968_v9 = vpack.c.bf16 %v20893_v45, %v20078_v8  ;;  %11465 = vmatprep.mubr.f32.mxu1 %v18649_v54  ;;  %v8093_v45 = vand.u32 4294901760, %v8092_v17  ;;  %v18996_v17 = vld [vmem:[%s19569_s1 + $0x478] sm:$0xff]  ;;  %v20896_v8 = vand.u32 4294901760, %v18921_v51  ;;  %20905 = vst [vmem:[#allocation65_spill] sm:$0xff] %v19027_v44 }
 0x2c3   : > { %12653 = vmatprep.mubr.f32.mxu0 %v20870_v3  ;;  %11466 = vmatmul.mubr.f32.gmra.mrb[6].mxu1 %v18659_v55  ;;  %v18991_v3 = vld [vmem:[%s19569_s1 + $0x470] sm:$0xff]  ;;  %v20918_v49 = vand.u32 4294901760, %v18996_v17 }
 0x2c4   : > { %20894 = vst [vmem:[#allocation70_spill] sm:$0xff] %v18968_v9  ;;  %13607 = vmatpush3.bf16.msra.mxu1 %v20891_v62  ;;  %12654 = vmatmul.mubr.f32.gmra.mrb[6].mxu0 %v20872_v52  ;;  %v8173_v52 = vsub.f32 %v18921_v51, %v20896_v8  ;;  %v20900_v62 = vand.u32 4294901760, %v18944_v18  ;;  %v8180_v8 = vsub.f32 %v18933_v26, %v20903_v0  ;;  %v20907_v0 = vld [vmem:[#allocation87_spill] sm:$0xff]  ;;  %v20917_v5 = vand.u32 4294901760, %v18991_v3 }
 0x2c5   : > { %14471 = vmatpush3.bf16.msra.mxu0 %v18928_v12  ;;  %13609 = vmatprep.subr.bf16.mxu1 %v20895_v14  ;;  %v19007_v12 = vsub.f32 %v18839_v16, %v20898_v34  ;;  %v20904_v34 = vand.u32 4294901760, %v18844_v33 }
 0x2c6   : > { %14473 = vmatprep.subr.bf16.mxu0 %v18968_v9  ;;  %v19015_v24 = vpack.c.bf16 %v20900_v62, %v20899_v59  ;;  %11500 = vmatprep.mubr.f32.mxu1 %v20902_v41  ;;  %v19032_v41 = vand.u32 4294901760, %v9222_v6  ;;  %v9223_v62 = vld [vmem:[%s15330_s26 + $0x62] sm:$0xff]  ;;  %v8181_v21 = vand.u32 4294901760, %v8180_v8  ;;  %v19064_v8 = vsub.f32 %v9221_v7, %v19027_v44 }
 0x2c7   : > { %v19025_v16 = vsub.f32 %v18844_v33, %v20904_v34  ;;  %12688 = vmatprep.mubr.f32.mxu0 %v8093_v45  ;;  %v20909_v33 = vand.u32 4294901760, %v18975_v20  ;;  %v8174_v34 = vand.u32 4294901760, %v8173_v52  ;;  %v19083_v7 = vand.u32 4294901760, %v9224_v19 }
 0x2c8   : > { %20901 = vst [vmem:[#allocation62_spill] sm:$0xff] %v19015_v24  ;;  %13611 = vmatpush3.bf16.msra.mxu1 %v20895_v14  ;;  %20906 = vst [vmem:[#allocation73_spill] sm:$0xff] %v19032_v41  ;;  %v19073_v14 = vpack.c.bf16 %v20918_v49, %v20917_v5  ;;  %v20924_v44 = vand.u32 4294901760, %v18453_v13  ;;  %v20925_v5 = vand.u32 4294901760, %v20853_v30  ;;  %v20932_v30 = vand.u32 4294901760, %v18907_v63 }
 0x2c9   : > { %14475 = vmatpush3.bf16.msra.mxu0 %v18968_v9  ;;  %13613 = vmatprep.subr.bf16.mxu1 %v20907_v0  ;;  %v19041_v45 = vpack.c.bf16 %v20909_v33, %v20908_v43  ;;  %v20912_v43 = vand.u32 4294901760, %v18861_v4  ;;  %v20913_v33 = vand.u32 4294901760, %v18880_v31  ;;  %20915 = vst [vmem:[#allocation2_spill] sm:$0xff] %v19064_v8  ;;  %v19066_v9 = vand.u32 4294901760, %v9223_v62  ;;  %20922 = vst [vmem:[#allocation6_spill] sm:$0xff] %v19083_v7 }
 0x2ca   : > { %14477 = vmatprep.subr.bf16.mxu0 %v19015_v24  ;;  %20919 = vst [vmem:[#allocation78_spill] sm:$0xff] %v19073_v14  ;;  %v13624_v49 = vpack.c.bf16 %v20925_v5, %v20924_v44  ;;  %v14488_v56 = vpack.c.bf16 %v8181_v21, %v8174_v34  ;;  %v20931_v44 = vld [vmem:[#allocation17_spill] sm:$0xff]  ;;  %v20933_v21 = vand.u32 4294901760, %v18912_v15 }
 0x2cb   : > { %20910 = vst [vmem:[#allocation76_spill] sm:$0xff] %v19041_v45  ;;  %v19056_v52 = vsub.f32 %v18861_v4, %v20912_v43  ;;  %v19061_v59 = vsub.f32 %v18880_v31, %v20913_v33  ;;  %20916 = vst [vmem:[#allocation74_spill] sm:$0xff] %v19066_v9  ;;  %v20920_v4 = vand.u32 4294901760, %v18885_v53  ;;  %v19081_v31 = vsub.f32 %v9222_v6, %v19032_v41  ;;  %v9225_v33 = vld [vmem:[%s15330_s26 + $0x82] sm:$0xff]  ;;  %v9226_v41 = vld [vmem:[%s15330_s26 + $0x92] sm:$0xff] }
 0x2cc   : > { %13615 = vmatpush3.bf16.msra.mxu1 %v20907_v0  ;;  %v20923_v0 = vld [vmem:[#allocation18_spill] sm:$0xff]  ;;  %v19108_v5 = vsub.f32 %v9223_v62, %v19066_v9  ;;  %v19118_v13 = vand.u32 4294901760, %v9226_v41  ;;  %v19130_v34 = vsub.f32 %v18912_v15, %v20933_v21  ;;  %v20939_v21 = vand.u32 4294901760, %v19064_v8 }
 0x2cd   : > { %20914 = vst [vmem:[#allocation68_spill] sm:$0xff] %v19061_v59  ;;  %v19078_v43 = vsub.f32 %v18885_v53, %v20920_v4  ;;  %20921 = vst [vmem:[#allocation72_spill] sm:$0xff] %v19081_v31  ;;  %14479 = vmatpush3.bf16.msra.mxu0 %v19015_v24  ;;  %13617 = vmatprep.subr.bf16.mxu1 %v20923_v0  ;;  %v8102_v53 = vsub.f32 %v19002_v37, %v20926_v60  ;;  %v20927_v4 = vand.u32 4294901760, %v19007_v12 }
 0x2ce   : > { %14481 = vmatprep.subr.bf16.mxu0 %v19041_v45  ;;  %v20928_v24 = vand.u32 4294901760, %v19025_v16  ;;  %20930 = vst [vmem:[#allocation82_spill] sm:$0xff] %v19118_v13  ;;  %v19125_v37 = vsub.f32 %v18907_v63, %v20932_v30  ;;  %v20937_v63 = vand.u32 4294901760, %v19056_v52  ;;  %v20938_v9 = vand.u32 4294901760, %v19061_v59 }
 0x2cf   : > { %v8187_v6 = vsub.f32 %v19007_v12, %v20927_v4  ;;  %v19110_v4 = vand.u32 4294901760, %v9225_v33  ;;  %v8103_v60 = vand.u32 4294901760, %v8102_v53  ;;  %v20936_v53 = vand.u32 4294901760, %v19051_v36 }
 0x2d0   : > { %v8194_v26 = vsub.f32 %v19025_v16, %v20928_v24  ;;  %13619 = vmatpush3.bf16.msra.mxu1 %v20923_v0  ;;  %v19116_v24 = vsub.f32 %v9224_v19, %v19083_v7  ;;  %v20934_v19 = vand.u32 4294901760, %v18511_v50  ;;  %v8208_v30 = vsub.f32 %v19056_v52, %v20937_v63 }
 0x2d1   : > { %20929 = vst [vmem:[#allocation21_spill] sm:$0xff] %v19110_v4  ;;  %14483 = vmatpush3.bf16.msra.mxu0 %v19041_v45  ;;  %13621 = vmatprep.subr.bf16.mxu1 %v20931_v44  ;;  %v8188_v62 = vand.u32 4294901760, %v8187_v6  ;;  %v20935_v45 = vand.u32 4294901760, %v18516_v2  ;;  %v8201_v6 = vsub.f32 %v19051_v36, %v20936_v53  ;;  %v8215_v15 = vsub.f32 %v19061_v59, %v20938_v9 }
 0x2d2   : > { %14485 = vmatprep.subr.bf16.mxu0 %v19073_v14  ;;  %v8195_v7 = vand.u32 4294901760, %v8194_v26  ;;  %v8112_v50 = vsub.f32 %v19064_v8, %v20939_v21  ;;  %v19151_v26 = vsub.f32 %v9225_v33, %v19110_v4  ;;  %v20941_v53 = vand.u32 4294901760, %v19081_v31 }
 0x2d3   : > { %v13628_v0 = vpack.c.bf16 %v20935_v45, %v20934_v19  ;;  %v20940_v45 = vand.u32 4294901760, %v19078_v43  ;;  %v19162_v59 = vsub.f32 %v9226_v41, %v19118_v13  ;;  %v20942_v2 = vand.u32 4294901760, %v18939_v32 }
 0x2d4   : > { %13623 = vmatpush3.bf16.msra.mxu1 %v20931_v44  ;;  %v8122_v63 = vsub.f32 %v19081_v31, %v20941_v53  ;;  %v20943_v8 = vand.u32 4294901760, %v18944_v18  ;;  %v14492_v41 = vpack.c.bf16 %v8195_v7, %v8188_v62  ;;  %v20944_v9 = vand.u32 4294901760, %v20857_v47 }
 0x2d5   : > { %v8222_v19 = vsub.f32 %v19078_v43, %v20940_v45  ;;  %14487 = vmatpush3.bf16.msra.mxu0 %v19073_v14  ;;  %13625 = vmatprep.subr.bf16.mxu1 %v13624_v49  ;;  %v19170_v45 = vsub.f32 %v18939_v32, %v20942_v2  ;;  %v20945_v14 = vand.u32 4294901760, %v20858_v27  ;;  %v8202_v33 = vand.u32 4294901760, %v8201_v6 }
 0x2d6   : > { %v19175_v53 = vsub.f32 %v18944_v18, %v20943_v8  ;;  %14489 = vmatprep.subr.bf16.mxu0 %v14488_v56  ;;  %v8209_v44 = vand.u32 4294901760, %v8208_v30  ;;  %v20946_v21 = vand.u32 4294901760, %v20881_v40  ;;  %v8216_v13 = vand.u32 4294901760, %v8215_v15 }
 0x2d7   : > { %v13632_v31 = vpack.c.bf16 %v20945_v14, %v20944_v9  ;;  %v8113_v32 = vand.u32 4294901760, %v8112_v50  ;;  %v20947_v2 = vand.u32 4294901760, %v19108_v5  ;;  %v20132_v18 = vand.u32 4294901760, %v19151_v26 }
 0x2d8   : > { %11501 = vmatmul.mubr.f32.vlgmr.msra.gmra.mrb[0].mxu1 %v20946_v21  ;;  %12689 = vmatmul.mubr.f32.vlgmr.msra.gmra.mrb[0].mxu0 %v8103_v60  ;;  %v8223_v8 = vand.u32 4294901760, %v8222_v19  ;;  %v8123_v47 = vand.u32 4294901760, %v8122_v63  ;;  %v20948_v27 = vand.u32 4294901760, %v19116_v24  ;;  %v20131_v7 = vand.u32 4294901760, %v19162_v59 }
 0x2d9   : > { %v8132_v4 = vsub.f32 %v19108_v5, %v20947_v2  ;;  %13627 = vmatpush3.bf16.msra.mxu1 %v13624_v49  ;;  %14491 = vmatpush3.bf16.msra.mxu0 %v14488_v56  ;;  %v20949_v40 = vand.u32 4294901760, %v19125_v37  ;;  %v20950_v6 = vand.u32 4294901760, %v19130_v34  ;;  %v20130_v49 = vand.u32 4294901760, %v19170_v45 }
 0x2da   : > { %v8142_v14 = vsub.f32 %v19116_v24, %v20948_v27  ;;  %13629 = vmatprep.subr.bf16.mxu1 %v13628_v0  ;;  %v20129_v60 = vand.u32 4294901760, %v19175_v53  ;;  %14493 = vmatprep.subr.bf16.mxu0 %v14492_v41  ;;  %v14496_v15 = vpack.c.bf16 %v8209_v44, %v8202_v33  ;;  %v20951_v50 = vand.u32 4294901760, %v20885_v1 }
 0x2db   : > { %v8229_v62 = vsub.f32 %v19125_v37, %v20949_v40  ;;  %v8236_v30 = vsub.f32 %v19130_v34, %v20950_v6  ;;  %v20952_v56 = vand.u32 4294901760, %v18958_v28  ;;  %v20953_v63 = vand.u32 4294901760, %v18975_v20  ;;  %12691 = vmatprep.mubr.f32.mxu0 %v8113_v32 }
 0x2dc   : > { %11503 = vmatprep.mubr.f32.mxu1 %v20951_v50  ;;  %v20954_v21 = vand.u32 4294901760, %v20886_v38  ;;  %v8133_v2 = vand.u32 4294901760, %v8132_v4  ;;  %v8152_v1 = vsub.f32 %v19151_v26, %v20132_v18  ;;  %v20955_v44 = vand.u32 4294901760, %v18561_v61  ;;  %12692 = vmatmul.mubr.f32.gmra.mrb[2].mxu0 %v8123_v47  ;;  %v21041_v18 = vld [vmem:[#allocation38_spill] sm:$0xff] }
 0x2dd   : > { %v19204_v19 = vsub.f32 %v18958_v28, %v20952_v56  ;;  %v19209_v9 = vsub.f32 %v18975_v20, %v20953_v63  ;;  %13631 = vmatpush3.bf16.msra.mxu1 %v13628_v0  ;;  %v20956_v28 = vand.u32 4294901760, %v18577_v39  ;;  %v14500_v27 = vpack.c.bf16 %v8223_v8, %v8216_v13  ;;  %14495 = vmatpush3.bf16.msra.mxu0 %v14492_v41 }
 0x2de   : > { %11504 = vmatmul.mubr.f32.gmra.mrb[2].mxu1 %v20954_v21  ;;  %v8143_v40 = vand.u32 4294901760, %v8142_v14  ;;  %v8162_v20 = vsub.f32 %v19162_v59, %v20131_v7  ;;  %13633 = vmatprep.subr.bf16.mxu1 %v13632_v31  ;;  %v8230_v38 = vand.u32 4294901760, %v8229_v62  ;;  %v8237_v4 = vand.u32 4294901760, %v8236_v30 }
 0x2df   : > { %v13636_v33 = vpack.c.bf16 %v20956_v28, %v20955_v44  ;;  %v8243_v0 = vsub.f32 %v19170_v45, %v20130_v49  ;;  %v8250_v61 = vsub.f32 %v19175_v53, %v20129_v60  ;;  %14497 = vmatprep.subr.bf16.mxu0 %v14496_v15  ;;  %v20957_v39 = vand.u32 4294901760, %v18610_v46  ;;  %12694 = vmatprep.mubr.f32.mxu0 %v8133_v2  ;;  %v21031_v49 = vld [vmem:[#allocation30_spill] sm:$0xff] }
 0x2e0   : > { %v20128_v13 = vand.u32 4294901760, %v19204_v19  ;;  %v20127_v32 = vand.u32 4294901760, %v19209_v9  ;;  %v20958_v41 = vand.u32 4294901760, %v18991_v3  ;;  %v20959_v47 = vand.u32 4294901760, %v18996_v17  ;;  %12695 = vmatmul.mubr.f32.gmra.mrb[4].mxu0 %v8143_v40 }
 0x2e1   : > { %11506 = vmatprep.mubr.f32.mxu1 %v20957_v39  ;;  %v20960_v62 = vand.u32 4294901760, %v18617_v10  ;;  %v8153_v46 = vand.u32 4294901760, %v8152_v1  ;;  %13635 = vmatpush3.bf16.msra.mxu1 %v13632_v31  ;;  %v8163_v6 = vand.u32 4294901760, %v8162_v20  ;;  %v20961_v30 = vand.u32 4294901760, %v18625_v58 }
 0x2e2   : > { %v19236_v8 = vsub.f32 %v18991_v3, %v20958_v41  ;;  %v19241_v14 = vsub.f32 %v18996_v17, %v20959_v47  ;;  %14499 = vmatpush3.bf16.msra.mxu0 %v14496_v15  ;;  %13637 = vmatprep.subr.bf16.mxu1 %v13636_v33  ;;  %v20962_v3 = vand.u32 4294901760, %v18630_v25  ;;  %v14504_v56 = vpack.c.bf16 %v8237_v4, %v8230_v38  ;;  %v20972_v47 = vld [vmem:[#allocation23_spill] sm:$0xff] }
 0x2e3   : > { %11507 = vmatmul.mubr.f32.gmra.mrb[4].mxu1 %v20960_v62  ;;  %v8244_v63 = vand.u32 4294901760, %v8243_v0  ;;  %v8251_v21 = vand.u32 4294901760, %v8250_v61  ;;  %14501 = vmatprep.subr.bf16.mxu0 %v14500_v27  ;;  %v8257_v10 = vsub.f32 %v19204_v19, %v20128_v13  ;;  %v8264_v17 = vsub.f32 %v19209_v9, %v20127_v32  ;;  %v20973_v62 = vld [vmem:[#allocation77_spill] sm:$0xff] }
 0x2e4   : > { %v13640_v50 = vpack.c.bf16 %v20962_v3, %v20961_v30  ;;  %v20963_v31 = vand.u32 4294901760, %v18649_v54  ;;  %v20126_v58 = vand.u32 4294901760, %v19236_v8  ;;  %v20125_v25 = vand.u32 4294901760, %v19241_v14  ;;  %12697 = vmatprep.mubr.f32.mxu0 %v8153_v46  ;;  %v20975_v46 = vld [vmem:[#allocation8_spill] sm:$0xff]  ;;  %v20977_v3 = vld [vmem:[#allocation65_spill] sm:$0xff] }
 0x2e5   : > { %v20964_v15 = vand.u32 4294901760, %v18659_v55  ;;  %13639 = vmatpush3.bf16.msra.mxu1 %v13636_v33  ;;  %12698 = vmatmul.mubr.f32.gmra.mrb[6].mxu0 %v8163_v6  ;;  %v20965_v2 = vand.u32 4294901760, %v18667_v35  ;;  %v20966_v1 = vand.u32 4294901760, %v18672_v11  ;;  %v14508_v28 = vpack.c.bf16 %v8251_v21, %v8244_v63  ;;  %v20976_v30 = vld [vmem:[#allocation40_spill] sm:$0xff]  ;;  %v20980_v63 = vld [vmem:[#allocation63_spill] sm:$0xff] }
 0x2e6   : > { %11509 = vmatprep.mubr.f32.mxu1 %v20963_v31  ;;  %14503 = vmatpush3.bf16.msra.mxu0 %v14500_v27  ;;  %v8258_v54 = vand.u32 4294901760, %v8257_v10  ;;  %v8265_v40 = vand.u32 4294901760, %v8264_v17  ;;  %v8271_v20 = vsub.f32 %v19236_v8, %v20126_v58  ;;  %v8278_v55 = vsub.f32 %v19241_v14, %v20125_v25  ;;  %v20981_v21 = vld [vmem:[#allocation68_spill] sm:$0xff]  ;;  %v20982_v17 = vld [vmem:[#allocation81_spill] sm:$0xff]  ;;  %v20983_v31 = vld [vmem:[#allocation74_spill] sm:$0xff] }
 0x2e7   : > { %11510 = vmatmul.mubr.f32.gmra.mrb[6].mxu1 %v20964_v15  ;;  %13641 = vmatprep.subr.bf16.mxu1 %v13640_v50  ;;  %v13644_v44 = vpack.c.bf16 %v20966_v1, %v20965_v2  ;;  %v20967_v35 = vand.u32 4294901760, %v18702_v42  ;;  %v20968_v11 = vand.u32 4294901760, %v18707_v29  ;;  %v20969_v0 = vand.u32 4294901760, %v18734_v23  ;;  %v20971_v42 = vld [vmem:[#allocation43_spill] sm:$0xff]  ;;  %v20984_v15 = vld [vmem:[#allocation64_spill] sm:$0xff]  ;;  %v20985_v2 = vld [vmem:[#allocation6_spill] sm:$0xff] }
 0x2e8   : > { %14505 = vmatprep.subr.bf16.mxu0 %v14504_v56  ;;  %11544 = vmatprep.mubr.f32.mxu1 %v18361_v22  ;;  %v14512_v27 = vpack.c.bf16 %v8265_v40, %v8258_v54  ;;  %v8272_v38 = vand.u32 4294901760, %v8271_v20  ;;  %v8279_v4 = vand.u32 4294901760, %v8278_v55  ;;  %v20970_v61 = vand.u32 4294901760, %v18739_v48  ;;  %v20974_v48 = vld [vmem:[#allocation61_spill] sm:$0xff]  ;;  %v20986_v1 = vld [vmem:[#allocation10_spill] sm:$0xff]  ;;  %v20989_v40 = vld [vmem:[#allocation75_spill] sm:$0xff] }
 0x2e9   : > { %12732 = vmatprep.mubr.f32.mxu0 %v18863_v57  ;;  %13643 = vmatpush3.bf16.msra.mxu1 %v13640_v50  ;;  %v13648_v33 = vpack.c.bf16 %v20968_v11, %v20967_v35  ;;  %v14520_v29 = vpack.c.bf16 %v20971_v42, %v18921_v51  ;;  %v14524_v23 = vpack.c.bf16 %v19025_v16, %v19007_v12  ;;  %v20978_v50 = vld [vmem:[#allocation85_spill] sm:$0xff]  ;;  %v20990_v20 = vld [vmem:[#allocation82_spill] sm:$0xff]  ;;  %v20991_v55 = vld [vmem:[#allocation80_spill] sm:$0xff]  ;;  %v21029_v32 = vand.u32 4294901760, %v18921_v51 }
 0x2ea   : > { %14507 = vmatpush3.bf16.msra.mxu0 %v14504_v56  ;;  %13645 = vmatprep.subr.bf16.mxu1 %v13644_v44  ;;  %v13652_v39 = vpack.c.bf16 %v20970_v61, %v20969_v0  ;;  %v14516_v41 = vpack.c.bf16 %v8279_v4, %v8272_v38  ;;  %v14528_v6 = vpack.c.bf16 %v19056_v52, %v19051_v36  ;;  %v20979_v56 = vld [vmem:[#allocation73_spill] sm:$0xff]  ;;  %v20994_v38 = vld [vmem:[#allocation18_spill] sm:$0xff]  ;;  %v20996_v0 = vld [vmem:[#allocation3_spill] sm:$0xff]  ;;  %v21032_v7 = vand.u32 4294901760, %v21031_v49 }
 0x2eb   : > { %14509 = vmatprep.subr.bf16.mxu0 %v14508_v28  ;;  %v14532_v10 = vpack.c.bf16 %v19078_v43, %v20981_v21  ;;  %v20988_v54 = vld [vmem:[#allocation21_spill] sm:$0xff]  ;;  %v14540_v35 = vpack.c.bf16 %v19175_v53, %v19170_v45  ;;  %v20997_v61 = vld [vmem:[#allocation4_spill] sm:$0xff]  ;;  %v21035_v51 = vand.u32 4294901760, %v19007_v12  ;;  %v21042_v12 = vand.u32 4294901760, %v21041_v18 }
 0x2ec   : > { %v20992_v11 = vld [vmem:[#allocation69_spill] sm:$0xff] }
 0x2ed   : > { %13647 = vmatpush3.bf16.msra.mxu1 %v13644_v44  ;;  %v14536_v44 = vpack.c.bf16 %v19130_v34, %v19125_v37  ;;  %v20995_v4 = vld [vmem:[#allocation17_spill] sm:$0xff] }
 0x2ee   : > { %14511 = vmatpush3.bf16.msra.mxu0 %v14508_v28  ;;  %13649 = vmatprep.subr.bf16.mxu1 %v13648_v33  ;;  %v20987_v28 = vld [vmem:[#allocation26_spill] sm:$0xff] }
 0x2ef   : > { %14513 = vmatprep.subr.bf16.mxu0 %v14512_v27 }
 0x2f1   : > { %13651 = vmatpush3.bf16.msra.mxu1 %v13648_v33  ;;  %v20993_v33 = vld [vmem:[#allocation87_spill] sm:$0xff] }
 0x2f2   : > { %14515 = vmatpush3.bf16.msra.mxu0 %v14512_v27  ;;  %13653 = vmatprep.subr.bf16.mxu1 %v13652_v39  ;;  %v14544_v27 = vpack.c.bf16 %v19209_v9, %v19204_v19 }
 0x2f3   : > { %14517 = vmatprep.subr.bf16.mxu0 %v14516_v41 }
 0x2f5   : > { %13655 = vmatpush3.bf16.msra.mxu1 %v13652_v39  ;;  %v20998_v39 = vld [vmem:[#allocation86_spill] sm:$0xff] }
 0x2f6   : > { %14519 = vmatpush3.bf16.msra.mxu0 %v14516_v41  ;;  %13657 = vmatprep.subr.bf16.mxu1 %v20972_v47  ;;  %v20999_v41 = vld [vmem:[#allocation5_spill] sm:$0xff] }
 0x2f7   : > { %14521 = vmatprep.subr.bf16.mxu0 %v14520_v29 }
 0x2f8   : > { %11545 = vmatmul.mubr.f32.vlgmr.msra.gmra.mrb[0].mxu1 %v20973_v62 }
 0x2f9   : > { %13659 = vmatpush3.bf16.msra.mxu1 %v20972_v47  ;;  %12733 = vmatmul.mubr.f32.vlgmr.msra.gmra.mrb[0].mxu0 %v20974_v48  ;;  %v21001_v47 = vld [vmem:[#allocation2_spill] sm:$0xff] }
 0x2fa   : > { %14523 = vmatpush3.bf16.msra.mxu0 %v14520_v29  ;;  %13661 = vmatprep.subr.bf16.mxu1 %v20975_v46  ;;  %v21000_v29 = vld [vmem:[#allocation67_spill] sm:$0xff] }
 0x2fb   : > { %14525 = vmatprep.subr.bf16.mxu0 %v14524_v23  ;;  %11547 = vmatprep.mubr.f32.mxu1 %v20976_v30 }
 0x2fc   : > { %12735 = vmatprep.mubr.f32.mxu0 %v20977_v3  ;;  %11548 = vmatmul.mubr.f32.gmra.mrb[2].mxu1 %v20978_v50 }
 0x2fd   : > { %13663 = vmatpush3.bf16.msra.mxu1 %v20975_v46  ;;  %12736 = vmatmul.mubr.f32.gmra.mrb[2].mxu0 %v20979_v56  ;;  %v21004_v46 = vld [vmem:[#allocation79_spill] sm:$0xff] }
 0x2fe   : > { %14527 = vmatpush3.bf16.msra.mxu0 %v14524_v23  ;;  %13665 = vmatprep.subr.bf16.mxu1 %v20980_v63  ;;  %v21002_v23 = vld [vmem:[#allocation72_spill] sm:$0xff] }
 0x2ff   : > { %14529 = vmatprep.subr.bf16.mxu0 %v14528_v6  ;;  %11550 = vmatprep.mubr.f32.mxu1 %v20982_v17 }
 0x300   : > { %12738 = vmatprep.mubr.f32.mxu0 %v20983_v31  ;;  %11551 = vmatmul.mubr.f32.gmra.mrb[4].mxu1 %v20984_v15 }
 0x301   : > { %13667 = vmatpush3.bf16.msra.mxu1 %v20980_v63  ;;  %12739 = vmatmul.mubr.f32.gmra.mrb[4].mxu0 %v20985_v2  ;;  %v21008_v63 = vld [vmem:[#allocation70_spill] sm:$0xff] }
 0x302   : > { %14531 = vmatpush3.bf16.msra.mxu0 %v14528_v6  ;;  %13669 = vmatprep.subr.bf16.mxu1 %v20986_v1  ;;  %v21005_v6 = vld [vmem:[#allocation9_spill] sm:$0xff] }
 0x303   : > { %14533 = vmatprep.subr.bf16.mxu0 %v14532_v10  ;;  %11553 = vmatprep.mubr.f32.mxu1 %v20987_v28 }
 0x304   : > { %12741 = vmatprep.mubr.f32.mxu0 %v20988_v54  ;;  %11554 = vmatmul.mubr.f32.gmra.mrb[6].mxu1 %v20989_v40 }
 0x305   : > { %13671 = vmatpush3.bf16.msra.mxu1 %v20986_v1  ;;  %12742 = vmatmul.mubr.f32.gmra.mrb[6].mxu0 %v20990_v20  ;;  %v21012_v1 = vld [vmem:[#allocation13_spill] sm:$0xff] }
 0x306   : > { %14535 = vmatpush3.bf16.msra.mxu0 %v14532_v10  ;;  %13673 = vmatprep.subr.bf16.mxu1 %v20991_v55  ;;  %v21009_v10 = vld [vmem:[#allocation32_spill] sm:$0xff] }
 0x307   : > { %14537 = vmatprep.subr.bf16.mxu0 %v14536_v44  ;;  %11588 = vmatprep.mubr.f32.mxu1 %v18361_v22  ;;  %v14548_v22 = vpack.c.bf16 %v19241_v14, %v19236_v8 }
 0x308   : > { %12776 = vmatprep.mubr.f32.mxu0 %v20992_v11 }
 0x309   : > { %13675 = vmatpush3.bf16.msra.mxu1 %v20991_v55 }
 0x30a   : > { %14539 = vmatpush3.bf16.msra.mxu0 %v14536_v44  ;;  %13677 = vmatprep.subr.bf16.mxu1 %v20993_v33  ;;  %v21013_v44 = vand.u32 4294901760, %v21012_v1 }
 0x30b   : > { %14541 = vmatprep.subr.bf16.mxu0 %v14540_v35 }
 0x30d   : > { %13679 = vmatpush3.bf16.msra.mxu1 %v20993_v33  ;;  %v21016_v33 = vld [vmem:[#allocation62_spill] sm:$0xff] }
 0x30e   : > { %14543 = vmatpush3.bf16.msra.mxu0 %v14540_v35  ;;  %13681 = vmatprep.subr.bf16.mxu1 %v20994_v38 }
 0x30f   : > { %14545 = vmatprep.subr.bf16.mxu0 %v14544_v27 }
 0x311   : > { %13683 = vmatpush3.bf16.msra.mxu1 %v20994_v38 }
 0x312   : > { %14547 = vmatpush3.bf16.msra.mxu0 %v14544_v27  ;;  %13685 = vmatprep.subr.bf16.mxu1 %v20995_v4 }
 0x313   : > { %14549 = vmatprep.subr.bf16.mxu0 %v14548_v22 }
 0x315   : > { %13687 = vmatpush3.bf16.msra.mxu1 %v20995_v4 }
 0x316   : > { %14551 = vmatpush3.bf16.msra.mxu0 %v14548_v22  ;;  %13689 = vmatprep.subr.bf16.mxu1 %v20996_v0  ;;  %v21018_v22 = vld [vmem:[#allocation25_spill] sm:$0xff] }
 0x317   : > { %14553 = vmatprep.subr.bf16.mxu0 %v20997_v61  ;;  %v21019_v4 = vand.u32 4294901760, %v21018_v22 }
 0x318   : > { %11589 = vmatmul.mubr.f32.vlgmr.msra.gmra.mrb[0].mxu1 %v20973_v62  ;;  %v21003_v62 = vld [vmem:[#allocation7_spill] sm:$0xff] }
 0x319   : > { %13691 = vmatpush3.bf16.msra.mxu1 %v20996_v0  ;;  %12777 = vmatmul.mubr.f32.vlgmr.msra.gmra.mrb[0].mxu0 %v20998_v39  ;;  %v4286_v0 = vsub.f32 %v21018_v22, %v21019_v4 }
 0x31a   : > { %14555 = vmatpush3.bf16.msra.mxu0 %v20997_v61  ;;  %13693 = vmatprep.subr.bf16.mxu1 %v20999_v41 }
 0x31b   : > { %14557 = vmatprep.subr.bf16.mxu0 %v21000_v29  ;;  %11591 = vmatprep.mubr.f32.mxu1 %v20976_v30  ;;  %v21006_v30 = vld [vmem:[#allocation84_spill] sm:$0xff]  ;;  %v4287_v25 = vand.u32 4294901760, %v4286_v0 }
 0x31c   : > { %12779 = vmatprep.mubr.f32.mxu0 %v21001_v47  ;;  %11592 = vmatmul.mubr.f32.gmra.mrb[2].mxu1 %v20978_v50  ;;  %v21007_v50 = vld [vmem:[#allocation11_spill] sm:$0xff] }
 0x31d   : > { %13695 = vmatpush3.bf16.msra.mxu1 %v20999_v41  ;;  %12780 = vmatmul.mubr.f32.gmra.mrb[2].mxu0 %v21002_v23  ;;  %v21020_v41 = vld [vmem:[#allocation27_spill] sm:$0xff] }
 0x31e   : > { %14559 = vmatpush3.bf16.msra.mxu0 %v21000_v29  ;;  %13697 = vmatprep.subr.bf16.mxu1 %v21003_v62 }
 0x31f   : > { %14561 = vmatprep.subr.bf16.mxu0 %v21004_v46  ;;  %11594 = vmatprep.mubr.f32.mxu1 %v20982_v17  ;;  %v21010_v17 = vand.u32 4294901760, %v20992_v11  ;;  %v21017_v11 = vld [vmem:[#allocation22_spill] sm:$0xff] }
 0x320   : > { %12782 = vmatprep.mubr.f32.mxu0 %v19108_v5  ;;  %11595 = vmatmul.mubr.f32.gmra.mrb[4].mxu1 %v20984_v15  ;;  %v21011_v15 = vld [vmem:[#allocation19_spill] sm:$0xff] }
 0x321   : > { %13699 = vmatpush3.bf16.msra.mxu1 %v21003_v62  ;;  %12783 = vmatmul.mubr.f32.gmra.mrb[4].mxu0 %v19116_v24  ;;  %v21021_v62 = vand.u32 4294901760, %v21020_v41 }
 0x322   : > { %14563 = vmatpush3.bf16.msra.mxu0 %v21004_v46  ;;  %13701 = vmatprep.subr.bf16.mxu1 %v21005_v6 }
 0x323   : > { %14565 = vmatprep.subr.bf16.mxu0 %v21006_v30  ;;  %11597 = vmatprep.mubr.f32.mxu1 %v20987_v28  ;;  %v4272_v28 = vsub.f32 %v21012_v1, %v21013_v44  ;;  %v21025_v44 = vld [vmem:[#allocation29_spill] sm:$0xff] }
 0x324   : > { %12785 = vmatprep.mubr.f32.mxu0 %v19151_v26  ;;  %11598 = vmatmul.mubr.f32.gmra.mrb[6].mxu1 %v20989_v40  ;;  %v21014_v40 = vld [vmem:[#allocation14_spill] sm:$0xff] }
 0x325   : > { %13703 = vmatpush3.bf16.msra.mxu1 %v21005_v6  ;;  %12786 = vmatmul.mubr.f32.gmra.mrb[6].mxu0 %v19162_v59  ;;  %v21015_v55 = vand.u32 4294901760, %v21014_v40  ;;  %v4273_v27 = vand.u32 4294901760, %v4272_v28  ;;  %v4293_v6 = vsub.f32 %v21020_v41, %v21021_v62  ;;  %v21028_v62 = vld [vmem:[#allocation78_spill] sm:$0xff] }
 0x326   : > { %14567 = vmatpush3.bf16.msra.mxu0 %v21006_v30  ;;  %13705 = vmatprep.subr.bf16.mxu1 %v21007_v50 }
 0x327   : > { %14569 = vmatprep.subr.bf16.mxu0 %v21008_v63  ;;  %11632 = vmatprep.mubr.f32.mxu1 %v21009_v10  ;;  %v4279_v35 = vsub.f32 %v21014_v40, %v21015_v55  ;;  %v21023_v10 = vld [vmem:[#allocation28_spill] sm:$0xff]  ;;  %v21026_v55 = vand.u32 4294901760, %v21025_v44  ;;  %v4294_v58 = vand.u32 4294901760, %v4293_v6 }
 0x328   : > { %12820 = vmatprep.mubr.f32.mxu0 %v21010_v17  ;;  %v21024_v17 = vand.u32 4294901760, %v21023_v10 }
 0x329   : > { %13707 = vmatpush3.bf16.msra.mxu1 %v21007_v50  ;;  %v4280_v38 = vand.u32 4294901760, %v4279_v35  ;;  %v21022_v50 = vld [vmem:[#allocation76_spill] sm:$0xff]  ;;  %v4307_v28 = vsub.f32 %v21025_v44, %v21026_v55  ;;  %v13724_v55 = vpack.c.bf16 %v4294_v58, %v4287_v25 }
 0x32a   : > { %14571 = vmatpush3.bf16.msra.mxu0 %v21008_v63  ;;  %13709 = vmatprep.subr.bf16.mxu1 %v21011_v15  ;;  %v21027_v35 = vld [vmem:[#allocation24_spill] sm:$0xff] }
 0x32b   : > { %14573 = vmatprep.subr.bf16.mxu0 %v21016_v33  ;;  %v13720_v4 = vpack.c.bf16 %v4280_v38, %v4273_v27  ;;  %v4308_v60 = vand.u32 4294901760, %v4307_v28  ;;  %v4314_v27 = vsub.f32 %v21031_v49, %v21032_v7  ;;  %v21033_v38 = vld [vmem:[#allocation31_spill] sm:$0xff]  ;;  %v21038_v28 = vand.u32 4294901760, %v20998_v39 }
 0x32c   : > { %v21034_v0 = vand.u32 4294901760, %v21033_v38 }
 0x32d   : > { %13711 = vmatpush3.bf16.msra.mxu1 %v21011_v15  ;;  %v4300_v15 = vsub.f32 %v21023_v10, %v21024_v17  ;;  %v4315_v7 = vand.u32 4294901760, %v4314_v27 }
 0x32e   : > { %14575 = vmatpush3.bf16.msra.mxu0 %v21016_v33  ;;  %13713 = vmatprep.subr.bf16.mxu1 %v21017_v11  ;;  %v4321_v6 = vsub.f32 %v21033_v38, %v21034_v0 }
 0x32f   : > { %14577 = vmatprep.subr.bf16.mxu0 %v21022_v50  ;;  %v4301_v17 = vand.u32 4294901760, %v4300_v15  ;;  %v21037_v15 = vld [vmem:[#allocation33_spill] sm:$0xff] }
 0x330   : > { %v4322_v25 = vand.u32 4294901760, %v4321_v6 }
 0x331   : > { %13715 = vmatpush3.bf16.msra.mxu1 %v21017_v11  ;;  %v21030_v11 = vand.u32 4294901760, %v20971_v42  ;;  %v13728_v58 = vpack.c.bf16 %v4308_v60, %v4301_v17  ;;  %v21046_v60 = vand.u32 4294901760, %v21001_v47  ;;  %v21048_v17 = vld [vmem:[#allocation56_spill] sm:$0xff] }
 0x332   : > { %14579 = vmatpush3.bf16.msra.mxu0 %v21022_v50  ;;  %13717 = vmatprep.subr.bf16.mxu1 %v21027_v35  ;;  %v21049_v27 = vand.u32 4294901760, %v21048_v17  ;;  %v13732_v47 = vpack.c.bf16 %v4322_v25, %v4315_v7  ;;  %v21060_v7 = vand.u32 4294901760, %v19116_v24  ;;  %v21061_v25 = vld [vmem:[#allocation51_spill] sm:$0xff]  ;;  %v21068_v24 = vand.u32 4294901760, %v19151_v26 }
 0x333   : > { %14581 = vmatprep.subr.bf16.mxu0 %v21028_v62  ;;  %v14584_v13 = vpack.c.bf16 %v21030_v11, %v21029_v32  ;;  %v21036_v32 = vand.u32 4294901760, %v19025_v16  ;;  %v4335_v16 = vsub.f32 %v21041_v18, %v21042_v12  ;;  %v21074_v26 = vand.u32 4294901760, %v19170_v45 }
 0x334   : > { %v4261_v6 = vsub.f32 %v21048_v17, %v21049_v27  ;;  %v21057_v27 = vld [vmem:[#allocation54_spill] sm:$0xff] }
 0x335   : > { %13719 = vmatpush3.bf16.msra.mxu1 %v21027_v35  ;;  %v14588_v42 = vpack.c.bf16 %v21036_v32, %v21035_v51  ;;  %v21039_v35 = vld [vmem:[#allocation34_spill] sm:$0xff]  ;;  %v21043_v51 = vand.u32 4294901760, %v19051_v36  ;;  %v21045_v32 = vld [vmem:[#allocation45_spill] sm:$0xff] }
 0x336   : > { %14583 = vmatpush3.bf16.msra.mxu0 %v21028_v62  ;;  %13721 = vmatprep.subr.bf16.mxu1 %v13720_v4  ;;  %v21040_v11 = vand.u32 4294901760, %v21039_v35  ;;  %v21052_v36 = vld [vmem:[#allocation42_spill] sm:$0xff] }
 0x337   : > { %14585 = vmatprep.subr.bf16.mxu0 %v14584_v13  ;;  %v21053_v12 = vand.u32 4294901760, %v21052_v36 }
 0x338   : > { %11633 = vmatmul.mubr.f32.vlgmr.msra.gmra.mrb[0].mxu1 %v21037_v15  ;;  %v4328_v0 = vsub.f32 %v21039_v35, %v21040_v11  ;;  %v21050_v15 = vld [vmem:[#allocation39_spill] sm:$0xff] }
 0x339   : > { %13723 = vmatpush3.bf16.msra.mxu1 %v13720_v4  ;;  %12821 = vmatmul.mubr.f32.vlgmr.msra.gmra.mrb[0].mxu0 %v21038_v28  ;;  %v21044_v4 = vand.u32 4294901760, %v19056_v52  ;;  %v21051_v28 = vand.u32 4294901760, %v21050_v15  ;;  %v4349_v52 = vsub.f32 %v21052_v36, %v21053_v12  ;;  %v21059_v12 = vld [vmem:[#allocation57_spill] sm:$0xff] }
 0x33a   : > { %14587 = vmatpush3.bf16.msra.mxu0 %v14584_v13  ;;  %13725 = vmatprep.subr.bf16.mxu1 %v13724_v55  ;;  %v21047_v13 = vld [vmem:[#allocation48_spill] sm:$0xff] }
 0x33b   : > { %14589 = vmatprep.subr.bf16.mxu0 %v14588_v42  ;;  %v14592_v39 = vpack.c.bf16 %v21044_v4, %v21043_v51  ;;  %11635 = vmatprep.mubr.f32.mxu1 %v21045_v32  ;;  %v4342_v11 = vsub.f32 %v21050_v15, %v21051_v28  ;;  %v21054_v51 = vand.u32 4294901760, %v21002_v23  ;;  %v4329_v4 = vand.u32 4294901760, %v4328_v0 }
 0x33c   : > { %12823 = vmatprep.mubr.f32.mxu0 %v21046_v60  ;;  %11636 = vmatmul.mubr.f32.gmra.mrb[2].mxu1 %v21047_v13  ;;  %v4336_v32 = vand.u32 4294901760, %v4335_v16  ;;  %v21055_v60 = vand.u32 4294901760, %v20981_v21  ;;  %v21058_v28 = vand.u32 4294901760, %v19108_v5  ;;  %v4262_v23 = vand.u32 4294901760, %v4261_v6  ;;  %v21063_v16 = vld [vmem:[#allocation53_spill] sm:$0xff] }
 0x33d   : > { %13727 = vmatpush3.bf16.msra.mxu1 %v13724_v55  ;;  %12824 = vmatmul.mubr.f32.gmra.mrb[2].mxu0 %v21054_v51  ;;  %v21056_v55 = vand.u32 4294901760, %v19078_v43  ;;  %v4350_v51 = vand.u32 4294901760, %v4349_v52  ;;  %v21062_v43 = vand.u32 4294901760, %v21061_v25  ;;  %v21065_v6 = vand.u32 4294901760, %v19125_v37  ;;  %v21067_v52 = vld [vmem:[#allocation60_spill] sm:$0xff] }
 0x33e   : > { %14591 = vmatpush3.bf16.msra.mxu0 %v14588_v42  ;;  %13729 = vmatprep.subr.bf16.mxu1 %v13728_v58  ;;  %v4343_v42 = vand.u32 4294901760, %v4342_v11  ;;  %v13736_v21 = vpack.c.bf16 %v4336_v32, %v4329_v4  ;;  %v21069_v4 = vand.u32 4294901760, %v19162_v59  ;;  %v21076_v59 = vld [vmem:[#allocation12_spill] sm:$0xff] }
 0x33f   : > { %14593 = vmatprep.subr.bf16.mxu0 %v14592_v39  ;;  %v14596_v13 = vpack.c.bf16 %v21056_v55, %v21055_v60  ;;  %11638 = vmatprep.mubr.f32.mxu1 %v21057_v27  ;;  %v4356_v0 = vsub.f32 %v21061_v25, %v21062_v43  ;;  %v21064_v60 = vand.u32 4294901760, %v21063_v16  ;;  %v21070_v27 = vld [vmem:[#allocation58_spill] sm:$0xff]  ;;  %v21077_v43 = vand.u32 4294901760, %v19204_v19 }
 0x340   : > { %12826 = vmatprep.mubr.f32.mxu0 %v21058_v28  ;;  %11639 = vmatmul.mubr.f32.gmra.mrb[4].mxu1 %v21059_v12  ;;  %v21071_v37 = vand.u32 4294901760, %v21070_v27  ;;  %v21072_v28 = vld [vmem:[#allocation59_spill] sm:$0xff]  ;;  %v13756_v19 = vpack.c.bf16 %v21020_v41, %v21018_v22 }
 0x341   : > { %13731 = vmatpush3.bf16.msra.mxu1 %v13728_v58  ;;  %12827 = vmatmul.mubr.f32.gmra.mrb[4].mxu0 %v21060_v7  ;;  %v4363_v5 = vsub.f32 %v21063_v16, %v21064_v60  ;;  %v21066_v58 = vand.u32 4294901760, %v19130_v34  ;;  %v4357_v32 = vand.u32 4294901760, %v4356_v0  ;;  %v21073_v12 = vand.u32 4294901760, %v21072_v28  ;;  %v21085_v22 = vld [vmem:[#allocation47_spill] sm:$0xff] }
 0x342   : > { %14595 = vmatpush3.bf16.msra.mxu0 %v14592_v39  ;;  %13733 = vmatprep.subr.bf16.mxu1 %v13732_v47  ;;  %v13740_v39 = vpack.c.bf16 %v4350_v51, %v4343_v42  ;;  %v4370_v34 = vsub.f32 %v21070_v27, %v21071_v37  ;;  %v21078_v0 = vand.u32 4294901760, %v19209_v9  ;;  %v21081_v9 = vld [vmem:[#allocation16_spill] sm:$0xff]  ;;  %v21087_v41 = vld [vmem:[#allocation55_spill] sm:$0xff] }
 0x343   : > { %14597 = vmatprep.subr.bf16.mxu0 %v14596_v13  ;;  %v14600_v11 = vpack.c.bf16 %v21066_v58, %v21065_v6  ;;  %11641 = vmatprep.mubr.f32.mxu1 %v21067_v52  ;;  %v4364_v55 = vand.u32 4294901760, %v4363_v5  ;;  %v4377_v7 = vsub.f32 %v21072_v28, %v21073_v12  ;;  %v13752_v6 = vpack.c.bf16 %v21014_v40, %v21012_v1  ;;  %v21083_v1 = vld [vmem:[#allocation37_spill] sm:$0xff]  ;;  %v21084_v40 = vld [vmem:[#allocation44_spill] sm:$0xff] }
 0x344   : > { %12829 = vmatprep.mubr.f32.mxu0 %v21068_v24  ;;  %11642 = vmatmul.mubr.f32.gmra.mrb[6].mxu1 %v4262_v23  ;;  %v4371_v42 = vand.u32 4294901760, %v4370_v34  ;;  %v14608_v60 = vpack.c.bf16 %v21078_v0, %v21077_v43 }
 0x345   : > { %13735 = vmatpush3.bf16.msra.mxu1 %v13732_v47  ;;  %12830 = vmatmul.mubr.f32.gmra.mrb[6].mxu0 %v21069_v4  ;;  %v21075_v47 = vand.u32 4294901760, %v19175_v53  ;;  %v4378_v51 = vand.u32 4294901760, %v4377_v7  ;;  %v21079_v53 = vand.u32 4294901760, %v19236_v8  ;;  %v13760_v8 = vpack.c.bf16 %v21025_v44, %v21023_v10  ;;  %v21092_v44 = vld [vmem:[#allocation46_spill] sm:$0xff] }
 0x346   : > { %14599 = vmatpush3.bf16.msra.mxu0 %v14596_v13  ;;  %13737 = vmatprep.subr.bf16.mxu1 %v13736_v21  ;;  %v13744_v13 = vpack.c.bf16 %v4364_v55, %v4357_v32  ;;  %v13776_v10 = vpack.c.bf16 %v21063_v16, %v21061_v25 }
 0x347   : > { %14601 = vmatprep.subr.bf16.mxu0 %v14600_v11  ;;  %v14604_v23 = vpack.c.bf16 %v21075_v47, %v21074_v26  ;;  %11676 = vmatprep.mubr.f32.mxu1 %v21076_v59  ;;  %v13748_v45 = vpack.c.bf16 %v4378_v51, %v4371_v42 }
 0x348   : > { %12864 = vmatprep.mubr.f32.mxu0 %v18863_v57 }
 0x349   : > { %13739 = vmatpush3.bf16.msra.mxu1 %v13736_v21  ;;  %v21080_v21 = vand.u32 4294901760, %v19241_v14  ;;  %v21082_v14 = vld [vmem:[#allocation35_spill] sm:$0xff] }
 0x34a   : > { %14603 = vmatpush3.bf16.msra.mxu0 %v14600_v11  ;;  %13741 = vmatprep.subr.bf16.mxu1 %v13740_v39 }
 0x34b   : > { %14605 = vmatprep.subr.bf16.mxu0 %v14604_v23  ;;  %v14612_v5 = vpack.c.bf16 %v21080_v21, %v21079_v53 }
 0x34d   : > { %13743 = vmatpush3.bf16.msra.mxu1 %v13740_v39 }
 0x34e   : > { %14607 = vmatpush3.bf16.msra.mxu0 %v14604_v23  ;;  %13745 = vmatprep.subr.bf16.mxu1 %v13744_v13 }
 0x34f   : > { %14609 = vmatprep.subr.bf16.mxu0 %v14608_v60 }
 0x351   : > { %13747 = vmatpush3.bf16.msra.mxu1 %v13744_v13 }
 0x352   : > { %14611 = vmatpush3.bf16.msra.mxu0 %v14608_v60  ;;  %13749 = vmatprep.subr.bf16.mxu1 %v13748_v45 }
 0x353   : > { %14613 = vmatprep.subr.bf16.mxu0 %v14612_v5 }
 0x355   : > { %13751 = vmatpush3.bf16.msra.mxu1 %v13748_v45 }
 0x356   : > { %14615 = vmatpush3.bf16.msra.mxu0 %v14612_v5  ;;  %13753 = vmatprep.subr.bf16.mxu1 %v13752_v6 }
 0x357   : > { %14617 = vmatprep.subr.bf16.mxu0 %v20997_v61 }
 0x358   : > { %11677 = vmatmul.mubr.f32.vlgmr.msra.gmra.mrb[0].mxu1 %v21081_v9 }
 0x359   : > { %13755 = vmatpush3.bf16.msra.mxu1 %v13752_v6  ;;  %12865 = vmatmul.mubr.f32.vlgmr.msra.gmra.mrb[0].mxu0 %v20974_v48 }
 0x35a   : > { %14619 = vmatpush3.bf16.msra.mxu0 %v20997_v61  ;;  %13757 = vmatprep.subr.bf16.mxu1 %v13756_v19  ;;  %v13764_v61 = vpack.c.bf16 %v21033_v38, %v21031_v49  ;;  %v21086_v49 = vld [vmem:[#allocation50_spill] sm:$0xff] }
 0x35b   : > { %14621 = vmatprep.subr.bf16.mxu0 %v21000_v29  ;;  %11679 = vmatprep.mubr.f32.mxu1 %v21082_v14 }
 0x35c   : > { %12867 = vmatprep.mubr.f32.mxu0 %v20977_v3  ;;  %11680 = vmatmul.mubr.f32.gmra.mrb[2].mxu1 %v21083_v1 }
 0x35d   : > { %13759 = vmatpush3.bf16.msra.mxu1 %v13756_v19  ;;  %12868 = vmatmul.mubr.f32.gmra.mrb[2].mxu0 %v20979_v56 }
 0x35e   : > { %14623 = vmatpush3.bf16.msra.mxu0 %v21000_v29  ;;  %13761 = vmatprep.subr.bf16.mxu1 %v13760_v8  ;;  %v13768_v29 = vpack.c.bf16 %v21041_v18, %v21039_v35  ;;  %v21088_v18 = vld [vmem:[#allocation15_spill] sm:$0xff] }
 0x35f   : > { %14625 = vmatprep.subr.bf16.mxu0 %v21004_v46  ;;  %11682 = vmatprep.mubr.f32.mxu1 %v21084_v40 }
 0x360   : > { %12870 = vmatprep.mubr.f32.mxu0 %v20983_v31  ;;  %11683 = vmatmul.mubr.f32.gmra.mrb[4].mxu1 %v21085_v22 }
 0x361   : > { %13763 = vmatpush3.bf16.msra.mxu1 %v13760_v8  ;;  %12871 = vmatmul.mubr.f32.gmra.mrb[4].mxu0 %v20985_v2 }
 0x362   : > { %14627 = vmatpush3.bf16.msra.mxu0 %v21004_v46  ;;  %13765 = vmatprep.subr.bf16.mxu1 %v13764_v61  ;;  %v13772_v46 = vpack.c.bf16 %v21052_v36, %v21050_v15 }
 0x363   : > { %14629 = vmatprep.subr.bf16.mxu0 %v21006_v30  ;;  %11685 = vmatprep.mubr.f32.mxu1 %v21086_v49 }
 0x364   : > { %12873 = vmatprep.mubr.f32.mxu0 %v20988_v54  ;;  %11686 = vmatmul.mubr.f32.gmra.mrb[6].mxu1 %v21087_v41 }
 0x365   : > { %13767 = vmatpush3.bf16.msra.mxu1 %v13764_v61  ;;  %12874 = vmatmul.mubr.f32.gmra.mrb[6].mxu0 %v20990_v20 }
 0x366   : > { %14631 = vmatpush3.bf16.msra.mxu0 %v21006_v30  ;;  %13769 = vmatprep.subr.bf16.mxu1 %v13768_v29  ;;  %v13780_v30 = vpack.c.bf16 %v21072_v28, %v21070_v27 }
 0x367   : > { %14633 = vmatprep.subr.bf16.mxu0 %v21008_v63  ;;  %11720 = vmatprep.mubr.f32.mxu1 %v21088_v18 }
 0x368   : > { %12908 = vmatprep.mubr.f32.mxu0 %v18863_v57  ;;  %v21089_v57 = vld [vmem:[#allocation20_spill] sm:$0xff] }
 0x369   : > { %13771 = vmatpush3.bf16.msra.mxu1 %v13768_v29 }
 0x36a   : > { %14635 = vmatpush3.bf16.msra.mxu0 %v21008_v63  ;;  %13773 = vmatprep.subr.bf16.mxu1 %v13772_v46  ;;  %v21090_v63 = vld [vmem:[#allocation36_spill] sm:$0xff] }
 0x36b   : > { %14637 = vmatprep.subr.bf16.mxu0 %v21016_v33 }
 0x36d   : > { %13775 = vmatpush3.bf16.msra.mxu1 %v13772_v46 }
 0x36e   : > { %14639 = vmatpush3.bf16.msra.mxu0 %v21016_v33  ;;  %13777 = vmatprep.subr.bf16.mxu1 %v13776_v10  ;;  %v21091_v33 = vld [vmem:[#allocation41_spill] sm:$0xff] }
 0x36f   : > { %14641 = vmatprep.subr.bf16.mxu0 %v21022_v50 }
 0x371   : > { %13779 = vmatpush3.bf16.msra.mxu1 %v13776_v10 }
 0x372   : > { %14643 = vmatpush3.bf16.msra.mxu0 %v21022_v50  ;;  %13781 = vmatprep.subr.bf16.mxu1 %v13780_v30  ;;  %v21093_v50 = vld [vmem:[#allocation49_spill] sm:$0xff] }
 0x373   : > { %14645 = vmatprep.subr.bf16.mxu0 %v21028_v62 }
 0x375   : > { %13783 = vmatpush3.bf16.msra.mxu1 %v13780_v30 }
 0x376   : > { %14647 = vmatpush3.bf16.msra.mxu0 %v21028_v62  ;;  %v21094_v62 = vld [vmem:[#allocation52_spill] sm:$0xff] }
 0x378   : > { %11721 = vmatmul.mubr.f32.vlgmr.msra.gmra.mrb[0].mxu1 %v21089_v57 }
 0x379   : > { %12909 = vmatmul.mubr.f32.vlgmr.msra.gmra.mrb[0].mxu0 %v20974_v48  ;;  %11723 = vmatprep.mubr.f32.mxu1 %v21090_v63 }
 0x37a   : > { %12911 = vmatprep.mubr.f32.mxu0 %v20977_v3 }
 0x37c   : > { %11724 = vmatmul.mubr.f32.gmra.mrb[2].mxu1 %v21091_v33 }
 0x37d   : > { %12912 = vmatmul.mubr.f32.gmra.mrb[2].mxu0 %v20979_v56  ;;  %11726 = vmatprep.mubr.f32.mxu1 %v21092_v44  ;;  %v9243_v56 = vld [vmem:[%s19570_s2] ss:$0 sm:$0xff] }
 0x37e   : > { %12914 = vmatprep.mubr.f32.mxu0 %v20983_v31 }
 0x380   : > { %11727 = vmatmul.mubr.f32.gmra.mrb[4].mxu1 %v21093_v50 }
 0x381   : > { %12915 = vmatmul.mubr.f32.gmra.mrb[4].mxu0 %v20985_v2  ;;  %11729 = vmatprep.mubr.f32.mxu1 %v21094_v62  ;;  %v9244_v2 = vld [vmem:[%s19571_s3] ss:$0 sm:$0xff] }
 0x382   : > { %12917 = vmatprep.mubr.f32.mxu0 %v20988_v54 }
 0x384   : > { %11730 = vmatmul.mubr.f32.gmra.mrb[6].mxu1 %v21048_v17 }
 0x385   : > { %12918 = vmatmul.mubr.f32.gmra.mrb[6].mxu0 %v20990_v20 }
 0x44b   : > { %v11722_v48 = vpop.f32.mrb[0].mxu1 }
 0x44c   : > { %v12910_v3 = vpop.f32.mrb[0].mxu0  ;;  %v4561_v38 = vpop.f32.mrb[1].mxu1 }
 0x44d   : > { %v14648_v31 = vadd.f32 %v12910_v3, %v11722_v48  ;;  %v8904_v35 = vpop.f32.mrb[1].mxu0 }
 0x44e   : > { %v14649_v15 = vadd.f32 %v8904_v35, %v4561_v38 }
 0x44f   : > { %v8966_v54 = vmul.f32 %v14648_v31, %v9243_v56  ;;  %v11725_v36 = vpop.f32.mrb[2].mxu1 }
 0x450   : > { %v8965_v17 = vmul.f32 %v14649_v15, %v9243_v56  ;;  %v12913_v25 = vpop.f32.mrb[2].mxu0  ;;  %v4575_v20 = vpop.f32.mrb[3].mxu1 }
 0x451   : > { %v8981_v16 = vadd.f32 %v9244_v2, %v8966_v54  ;;  %v14650_v58 = vadd.f32 %v12913_v25, %v11725_v36  ;;  %v8916_v11 = vpop.f32.mrb[3].mxu0 }
 0x452   : > { %v8980_v52 = vadd.f32 %v9244_v2, %v8965_v17  ;;  %v14651_v24 = vadd.f32 %v8916_v11, %v4575_v20 }
 0x453   : > { %v8989_v39 = vmax.f32 %v8981_v16, 0.0  ;;  %v8968_v4 = vmul.f32 %v14650_v58, %v9243_v56  ;;  %v11728_v32 = vpop.f32.mrb[4].mxu1 }
 0x454   : > { %v8988_v55 = vmax.f32 %v8980_v52, 0.0  ;;  %v8967_v27 = vmul.f32 %v14651_v24, %v9243_v56  ;;  %v12916_v37 = vpop.f32.mrb[4].mxu0  ;;  %v4589_v34 = vpop.f32.mrb[5].mxu1 }
 0x455   : > { %8997 = vst [vmem:[%s19555_s12 + $0x8] sm:$0xff] %v8989_v39  ;;  %v8983_v28 = vadd.f32 %v9244_v2, %v8968_v4  ;;  %v14652_v12 = vadd.f32 %v12916_v37, %v11728_v32  ;;  %v8928_v7 = vpop.f32.mrb[5].mxu0 }
 0x456   : > { %8996 = vst [vmem:[%s19555_s12] sm:$0xff] %v8988_v55  ;;  %v8982_v26 = vadd.f32 %v9244_v2, %v8967_v27  ;;  %v14653_v47 = vadd.f32 %v8928_v7, %v4589_v34 }
 0x457   : > { %v8991_v23 = vmax.f32 %v8983_v28, 0.0  ;;  %v8970_v59 = vmul.f32 %v14652_v12, %v9243_v56  ;;  %v11731_v13 = vpop.f32.mrb[6].mxu1 }
 0x458   : > { %v8990_v42 = vmax.f32 %v8982_v26, 0.0  ;;  %v8969_v51 = vmul.f32 %v14653_v47, %v9243_v56  ;;  %v12919_v43 = vpop.f32.mrb[6].mxu0  ;;  %v4603_v0 = vpop.f32.mrb[7].mxu1 }
 0x459   : > { %8999 = vst [vmem:[%s19555_s12 + $0x18] sm:$0xff] %v8991_v23  ;;  %v8985_v60 = vadd.f32 %v9244_v2, %v8970_v59  ;;  %v14654_v45 = vadd.f32 %v12919_v43, %v11731_v13  ;;  %v8940_v53 = vpop.f32.mrb[7].mxu0 }
 0x45a   : > { %8998 = vst [vmem:[%s19555_s12 + $0x10] sm:$0xff] %v8990_v42  ;;  %v8984_v21 = vadd.f32 %v9244_v2, %v8969_v51  ;;  %v14655_v5 = vadd.f32 %v8940_v53, %v4603_v0 }
 0x45b   : > { %v8993_v6 = vmax.f32 %v8985_v60, 0.0  ;;  %v8972_v19 = vmul.f32 %v14654_v45, %v9243_v56 }
 0x45c   : > { %v8992_v9 = vmax.f32 %v8984_v21, 0.0  ;;  %v8971_v8 = vmul.f32 %v14655_v5, %v9243_v56 }
 0x45d   : > { %9001 = vst [vmem:[%s19555_s12 + $0x28] sm:$0xff] %v8993_v6  ;;  %v8987_v14 = vadd.f32 %v9244_v2, %v8972_v19 }
 0x45e   : > { %9000 = vst [vmem:[%s19555_s12 + $0x20] sm:$0xff] %v8992_v9  ;;  %v8986_v1 = vadd.f32 %v9244_v2, %v8971_v8 }
 0x45f   : > { %v8995_v61 = vmax.f32 %v8987_v14, 0.0 }
 0x460   : > { %v8994_v40 = vmax.f32 %v8986_v1, 0.0 }
 0x461   : > { %9003 = vst [vmem:[%s19555_s12 + $0x38] sm:$0xff] %v8995_v61 }
 0x462   : > { %9002 = vst [vmem:[%s19555_s12 + $0x30] sm:$0xff] %v8994_v40 }
 0x463 PF: > { %s14_s15 = sadd.s32 1, %s15087_s15  }
 0x464   : > { %p11_p4 = scmp.ge.s32.totalorder %s14_s15, 4  }
 0x466   :  { %13 = sbr.rel (!%p11_p4) target bundleno = 1 (0x1), region = 76 }

</bundles_post_ra>
